<compile_context>
chip_gen: v7x
topology: tpu7x:2x2x1
jax: 0.10.0
libtpu: 0.0.40
codegen_flags: <defaults>
</compile_context>

<pallas_src>
import functools
import math

import jax
import jax.numpy as jnp
from jax.experimental import pallas as pl
from jax.experimental.pallas import tpu as pltpu


# ---------------------------------------------------------------------------
# VMEM budget per chip generation (v7x: 64 MiB/TC, v5e/v6e: 128 MiB)
# ---------------------------------------------------------------------------
def _vmem_limit_bytes():
    try:
        cap = pltpu.get_tpu_info().vmem_capacity_bytes
    except Exception:
        cap = 64 << 20            # conservative fallback (v7x per-TC size)
    return min(int(cap * 3 // 4), 112 << 20)


# ---------------------------------------------------------------------------
# Fused kernel: patch-embed + single-head Q-Former cross-attn block.
# One grid step = `Bblk` images; weights are VMEM-resident across steps.
# ---------------------------------------------------------------------------
def _fused_kernel(Bblk, NQ, P, P_pad,
                  patches_ref, q_ref,
                  pe_w_ref, pe_b_ref,
                  wq_ref, wk_ref, wv_ref, wo_ref, bo_ref,
                  w1_ref, b1_ref, w2_ref, b2_ref,
                  o_ref):
    D = q_ref.shape[-1]

    # --- patch embedding (conv-as-matmul), bf16 operands, f32 accumulate ---
    x = patches_ref[...]                                        # bf16 (Bblk, P_pad, PK)
    x = x.reshape(Bblk * P_pad, x.shape[-1])
    feats = (jnp.dot(x, pe_w_ref[...], preferred_element_type=jnp.float32)
             + pe_b_ref[...])                                   # f32 (Bblk*P_pad, VD)
    f_bf = feats.astype(jnp.bfloat16)

    # --- Q/K/V projections (1/sqrt(D) already folded into wq) --------------
    q_in = q_ref[...].reshape(Bblk * NQ, D)                     # f32 (residual path)
    Q = jnp.dot(q_in.astype(jnp.bfloat16), wq_ref[...],
                preferred_element_type=jnp.float32)             # (Bblk*NQ, D)
    K = jnp.dot(f_bf, wk_ref[...],
                preferred_element_type=jnp.float32).astype(jnp.bfloat16)
    V = jnp.dot(f_bf, wv_ref[...],
                preferred_element_type=jnp.float32).astype(jnp.bfloat16)

    # --- per-image cross-attention: bf16 MXU operands, f32 accumulation ----
    Qb = Q.astype(jnp.bfloat16).reshape(Bblk, NQ, D)
    Kb = K.reshape(Bblk, P_pad, D)
    Vb = V.reshape(Bblk, P_pad, D)
    s = jnp.einsum('bqd,bkd->bqk', Qb, Kb,
                   preferred_element_type=jnp.float32)          # (Bblk, NQ, P_pad)
    if P_pad > P:                                               # mask padded patches
        col = jax.lax.broadcasted_iota(jnp.int32, s.shape, 2)
        s = jnp.where(col < P, s, -1e30)
    s = s - jnp.max(s, axis=-1, keepdims=True)                  # stable softmax
    p = jnp.exp(s)
    p = p * pl.reciprocal(jnp.sum(p, axis=-1, keepdims=True), approx=True)
    ctx = jnp.einsum('bqk,bkd->bqd', p.astype(jnp.bfloat16), Vb,
                     preferred_element_type=jnp.float32)        # (Bblk, NQ, D)
    ctx = ctx.reshape(Bblk * NQ, D)

    # --- output projection + residual, FFN + residual ----------------------
    h = (jnp.dot(ctx.astype(jnp.bfloat16), wo_ref[...],
                 preferred_element_type=jnp.float32) + bo_ref[...] + q_in)
    ff = (jnp.dot(h.astype(jnp.bfloat16), w1_ref[...],
                  preferred_element_type=jnp.float32) + b1_ref[...])
    # TODO(synk): PyTorch nn.GELU default is the exact erf form; tanh approx
    # used here for cheap EUP lowering (tiny numeric difference).
    ff = jax.nn.gelu(ff, approximate=True)
    out = (jnp.dot(ff.astype(jnp.bfloat16), w2_ref[...],
                   preferred_element_type=jnp.float32) + b2_ref[...] + h)
    o_ref[...] = out.reshape(Bblk, NQ, D)
    # TODO(synk): a real BLIP-2 Q-Former stacks several such layers with
    # LayerNorm and multi-head attention; this is a single fused single-head
    # block with the same cross-attention data flow.


def fused_qformer(patches, queries, params, *, valid_p, block_batch):
    """patches: (B, P_pad, PK) bf16,  queries: (B, NQ, D) f32."""
    B, P_pad, PK = patches.shape
    _, NQ, D = queries.shape
    VD = params["pe_w"].shape[1]
    FD = params["w1"].shape[1]

    # Pad batch so the grid tiles it evenly.
    steps = -(-B // block_batch)
    B_pad = steps * block_batch
    if B_pad != B:
        patches = jnp.pad(patches, ((0, B_pad - B), (0, 0), (0, 0)))
        queries = jnp.pad(queries, ((0, B_pad - B), (0, 0), (0, 0)))

    const2 = lambda i: (0, 0)        # weights/biases: VMEM-resident (no re-DMA)
    bmap = lambda i: (i, 0, 0)       # activations: tiled along the batch axis

    flops = 2 * B_pad * (P_pad * PK * VD          # patch embed
                         + 2 * P_pad * VD * D     # K, V projections
                         + 2 * NQ * D * D         # Q, output projections
                         + 2 * NQ * P_pad * D     # scores + context
                         + 2 * NQ * D * FD)       # FFN
    transcendentals = B_pad * NQ * (P_pad + FD)
    weight_bytes = sum(int(v.size) * v.dtype.itemsize for v in params.values())
    bytes_accessed = (int(patches.size) * 2 + int(queries.size) * 4
                      + B_pad * NQ * D * 4 + weight_bytes)

    out = pl.pallas_call(
        functools.partial(_fused_kernel, block_batch, NQ, valid_p, P_pad),
        out_shape=jax.ShapeDtypeStruct((B_pad, NQ, D), jnp.float32),
        grid_spec=pltpu.PrefetchScalarGridSpec(
            num_scalar_prefetch=0,
            grid=(steps,),
            in_specs=[
                pl.BlockSpec((block_batch, P_pad, PK), bmap),   # patches (bf16)
                pl.BlockSpec((block_batch, NQ, D), bmap),       # queries (f32)
                pl.BlockSpec((PK, VD), const2),                 # pe_w (bf16)
                pl.BlockSpec((1, VD), const2),                  # pe_b
                pl.BlockSpec((D, D), const2),                   # wq (scale folded)
                pl.BlockSpec((VD, D), const2),                  # wk
                pl.BlockSpec((VD, D), const2),                  # wv
                pl.BlockSpec((D, D), const2),                   # wo
                pl.BlockSpec((1, D), const2),                   # bo
                pl.BlockSpec((D, FD), const2),                  # w1
                pl.BlockSpec((1, FD), const2),                  # b1
                pl.BlockSpec((FD, D), const2),                  # w2
                pl.BlockSpec((1, D), const2),                   # b2
            ],
            out_specs=pl.BlockSpec((block_batch, NQ, D), bmap),
        ),
        compiler_params=pltpu.CompilerParams(
            dimension_semantics=("parallel",),      # megacore sharding on v7x
            vmem_limit_bytes=_vmem_limit_bytes(),
        ),
        cost_estimate=pl.CostEstimate(
            flops=flops,
            transcendentals=transcendentals,
            bytes_accessed=bytes_accessed),
    )(
        patches, queries,
        params["pe_w"], params["pe_b"],
        params["wq"], params["wk"], params["wv"], params["wo"], params["bo"],
        params["w1"], params["b1"], params["w2"], params["b2"],
    )
    return out[:B] if B_pad != B else out


# ---------------------------------------------------------------------------
# Python-side module equivalent
# ---------------------------------------------------------------------------
def extract_patches(img, ps, lane_pad=128):
    """NCHW -> (B, P_pad, C*ps*ps) bf16 rows, channel-major per patch (matches
    Conv2d).  P is padded to a lane multiple so the in-kernel softmax axis
    stays dense; padded scores are masked inside the kernel."""
    B, C, H, W = img.shape
    hp, wp = H // ps, W // ps
    P = hp * wp
    x = img.reshape(B, C, hp, ps, wp, ps)
    x = jnp.transpose(x, (0, 2, 4, 1, 3, 5))          # (B, hp, wp, C, ps, ps)
    x = x.reshape(B, P, C * ps * ps).astype(jnp.bfloat16)
    P_pad = -(-P // lane_pad) * lane_pad
    if P_pad != P:
        x = jnp.pad(x, ((0, 0), (0, P_pad - P), (0, 0)))
    return x, P


def init_params(key, patch_dim, vis_dim, qdim, ffn_dim):
    ks = jax.random.split(key, 9)
    s = 0.02
    w = lambda k, shp: (s * jax.random.normal(k, shp, jnp.float32)  # noqa: E731
                        ).astype(jnp.bfloat16)
    # 1/sqrt(D) attention scale folded into wq (saves a per-row VPU multiply).
    wq = ((s / math.sqrt(qdim)) *
          jax.random.normal(ks[1], (qdim, qdim), jnp.float32)).astype(jnp.bfloat16)
    return {
        "pe_w": w(ks[0], (patch_dim, vis_dim)),
        "pe_b": jnp.zeros((1, vis_dim), jnp.float32),
        "wq": wq,
        "wk": w(ks[2], (vis_dim, qdim)),
        "wv": w(ks[3], (vis_dim, qdim)),
        "wo": w(ks[4], (qdim, qdim)),
        "bo": jnp.zeros((1, qdim), jnp.float32),
        "w1": w(ks[5], (qdim, ffn_dim)),
        "b1": jnp.zeros((1, ffn_dim), jnp.float32),
        "w2": w(ks[6], (ffn_dim, qdim)),
        "b2": jnp.zeros((1, qdim), jnp.float32),
    }


@functools.partial(jax.jit, static_argnames=("patch_size", "block_batch"))
def visual_encoder_with_qformer(img, queries, params, *, patch_size,
                                block_batch=2):
    # image_encoder(img)['last_hidden_state'] -> patch rows, fused below.
    patches, P = extract_patches(img, patch_size)
    # NOTE: for production sizes pick block_batch so block_batch*NQ >= 256
    # (v6e/v7x MXU granularity); >=128 suffices on v5e.
    return fused_qformer(patches, queries, params,
                         valid_p=P, block_batch=block_batch)


if __name__ == "__main__":
    key = jax.random.PRNGKey(0)
    k_img, k_q, k_par = jax.random.split(key, 3)

    B, C, H, W = 4, 4, 16, 16
    PS = 4                         # patch size -> P = 16 patches/image
    VIS_DIM = 256                  # image-encoder hidden
    Q_DIM = 768                    # qformer hidden (queries are (B, 32, 768))
    NQ = 32
    FFN_DIM = 768

    img = jax.random.normal(k_img, (B, C, H, W), jnp.float32)
    # torch.randn(B, 32, 768) equivalent, made deterministic via PRNGKey.
    queries = jax.random.normal(k_q, (B, NQ, Q_DIM), jnp.float32)

    params = init_params(k_par, C * PS * PS, VIS_DIM, Q_DIM, FFN_DIM)

    out = visual_encoder_with_qformer(img, queries, params,
                                      patch_size=PS, block_batch=2)
    out = jax.block_until_ready(out)
    assert out.shape == (B, NQ, Q_DIM), out.shape
    assert jnp.isfinite(out).all()
    print("KERNEL_OK")
</pallas_src>

<mosaic_0001>
module attributes {stable_mosaic.version = 11 : i64} {
  func.func @_fused_kernel(%arg0: i32, %arg1: memref<2x128x64xbf16, #tpu.memory_space<vmem>>, %arg2: memref<2x32x768xf32, #tpu.memory_space<vmem>>, %arg3: memref<64x256xbf16, #tpu.memory_space<vmem>>, %arg4: memref<1x256xf32, #tpu.memory_space<vmem>>, %arg5: memref<768x768xbf16, #tpu.memory_space<vmem>>, %arg6: memref<256x768xbf16, #tpu.memory_space<vmem>>, %arg7: memref<256x768xbf16, #tpu.memory_space<vmem>>, %arg8: memref<768x768xbf16, #tpu.memory_space<vmem>>, %arg9: memref<1x768xf32, #tpu.memory_space<vmem>>, %arg10: memref<768x768xbf16, #tpu.memory_space<vmem>>, %arg11: memref<1x768xf32, #tpu.memory_space<vmem>>, %arg12: memref<768x768xbf16, #tpu.memory_space<vmem>>, %arg13: memref<1x768xf32, #tpu.memory_space<vmem>>, %arg14: memref<2x32x768xf32, #tpu.memory_space<vmem>>) attributes {dimension_semantics = [#tpu.dimension_semantics<parallel>], iteration_bounds = array<i64: 2>, scalar_prefetch = 0 : i64, scratch_operands = 0 : i64, tpu.core_type = #tpu.core_type<tc>, window_params = [{transform_indices = @transform_0, window_bounds = array<i64: 2, 128, 64>}, {transform_indices = @transform_1, window_bounds = array<i64: 2, 32, 768>}, {pipeline_mode = #tpu.pipeline_mode<synchronous>, transform_indices = @transform_2, window_bounds = array<i64: 64, 256>}, {pipeline_mode = #tpu.pipeline_mode<synchronous>, transform_indices = @transform_3, window_bounds = array<i64: 1, 256>}, {pipeline_mode = #tpu.pipeline_mode<synchronous>, transform_indices = @transform_4, window_bounds = array<i64: 768, 768>}, {pipeline_mode = #tpu.pipeline_mode<synchronous>, transform_indices = @transform_5, window_bounds = array<i64: 256, 768>}, {pipeline_mode = #tpu.pipeline_mode<synchronous>, transform_indices = @transform_6, window_bounds = array<i64: 256, 768>}, {pipeline_mode = #tpu.pipeline_mode<synchronous>, transform_indices = @transform_7, window_bounds = array<i64: 768, 768>}, {pipeline_mode = #tpu.pipeline_mode<synchronous>, transform_indices = @transform_8, window_bounds = array<i64: 1, 768>}, {pipeline_mode = #tpu.pipeline_mode<synchronous>, transform_indices = @transform_9, window_bounds = array<i64: 768, 768>}, {pipeline_mode = #tpu.pipeline_mode<synchronous>, transform_indices = @transform_10, window_bounds = array<i64: 1, 768>}, {pipeline_mode = #tpu.pipeline_mode<synchronous>, transform_indices = @transform_11, window_bounds = array<i64: 768, 768>}, {pipeline_mode = #tpu.pipeline_mode<synchronous>, transform_indices = @transform_12, window_bounds = array<i64: 1, 768>}, {transform_indices = @transform_13, window_bounds = array<i64: 2, 32, 768>}]} {
    %c0 = arith.constant 0 : index
    %c0_0 = arith.constant 0 : index
    %c0_1 = arith.constant 0 : index
    %0 = vector.load %arg1[%c0, %c0_0, %c0_1] : memref<2x128x64xbf16, #tpu.memory_space<vmem>>, vector<2x128x64xbf16>
    %1 = vector.shape_cast %0 : vector<2x128x64xbf16> to vector<256x64xbf16>
    %c0_2 = arith.constant 0 : index
    %c0_3 = arith.constant 0 : index
    %2 = vector.load %arg3[%c0_2, %c0_3] : memref<64x256xbf16, #tpu.memory_space<vmem>>, vector<64x256xbf16>
    %cst = arith.constant dense<0.000000e+00> : vector<256x256xf32>
    %3 = tpu.matmul %1, %2, %cst {dimension_numbers = #tpu.dot_dimension_numbers<[1], [0], [0], [1], [0, 0, 1, 1], [], []>} : vector<256x64xbf16>, vector<64x256xbf16>, vector<256x256xf32> -> vector<256x256xf32>
    %c0_4 = arith.constant 0 : index
    %c0_5 = arith.constant 0 : index
    %4 = vector.load %arg4[%c0_4, %c0_5] : memref<1x256xf32, #tpu.memory_space<vmem>>, vector<1x256xf32>
    %5 = vector.broadcast %4 : vector<1x256xf32> to vector<256x256xf32>
    %6 = arith.addf %3, %5 : vector<256x256xf32>
    %7 = arith.truncf %6 : vector<256x256xf32> to vector<256x256xbf16>
    %c0_6 = arith.constant 0 : index
    %c0_7 = arith.constant 0 : index
    %c0_8 = arith.constant 0 : index
    %8 = vector.load %arg2[%c0_6, %c0_7, %c0_8] : memref<2x32x768xf32, #tpu.memory_space<vmem>>, vector<2x32x768xf32>
    %9 = vector.shape_cast %8 : vector<2x32x768xf32> to vector<64x768xf32>
    %10 = arith.truncf %9 : vector<64x768xf32> to vector<64x768xbf16>
    %c0_9 = arith.constant 0 : index
    %c0_10 = arith.constant 0 : index
    %11 = vector.load %arg5[%c0_9, %c0_10] : memref<768x768xbf16, #tpu.memory_space<vmem>>, vector<768x768xbf16>
    %cst_11 = arith.constant dense<0.000000e+00> : vector<64x768xf32>
    %12 = tpu.matmul %10, %11, %cst_11 {dimension_numbers = #tpu.dot_dimension_numbers<[1], [0], [0], [1], [0, 0, 1, 1], [], []>} : vector<64x768xbf16>, vector<768x768xbf16>, vector<64x768xf32> -> vector<64x768xf32>
    %c0_12 = arith.constant 0 : index
    %c0_13 = arith.constant 0 : index
    %13 = vector.load %arg6[%c0_12, %c0_13] : memref<256x768xbf16, #tpu.memory_space<vmem>>, vector<256x768xbf16>
    %cst_14 = arith.constant dense<0.000000e+00> : vector<256x768xf32>
    %14 = tpu.matmul %7, %13, %cst_14 {dimension_numbers = #tpu.dot_dimension_numbers<[1], [0], [0], [1], [0, 0, 1, 1], [], []>} : vector<256x256xbf16>, vector<256x768xbf16>, vector<256x768xf32> -> vector<256x768xf32>
    %15 = arith.truncf %14 : vector<256x768xf32> to vector<256x768xbf16>
    %c0_15 = arith.constant 0 : index
    %c0_16 = arith.constant 0 : index
    %16 = vector.load %arg7[%c0_15, %c0_16] : memref<256x768xbf16, #tpu.memory_space<vmem>>, vector<256x768xbf16>
    %cst_17 = arith.constant dense<0.000000e+00> : vector<256x768xf32>
    %17 = tpu.matmul %7, %16, %cst_17 {dimension_numbers = #tpu.dot_dimension_numbers<[1], [0], [0], [1], [0, 0, 1, 1], [], []>} : vector<256x256xbf16>, vector<256x768xbf16>, vector<256x768xf32> -> vector<256x768xf32>
    %18 = arith.truncf %17 : vector<256x768xf32> to vector<256x768xbf16>
    %19 = arith.truncf %12 : vector<64x768xf32> to vector<64x768xbf16>
    %20 = vector.shape_cast %19 : vector<64x768xbf16> to vector<2x32x768xbf16>
    %21 = vector.shape_cast %15 : vector<256x768xbf16> to vector<2x128x768xbf16>
    %22 = vector.shape_cast %18 : vector<256x768xbf16> to vector<2x128x768xbf16>
    "tpu.trace_start"() <{level = 10 : i32, message = "bqd,bkd->bqk"}> : () -> ()
    %cst_18 = arith.constant dense<0.000000e+00> : vector<2x32x128xf32>
    %23 = tpu.matmul %20, %21, %cst_18 {dimension_numbers = #tpu.dot_dimension_numbers<[2], [2], [1], [1], [0, 0, 0, 1, 1, 1], [0], [0]>} : vector<2x32x768xbf16>, vector<2x128x768xbf16>, vector<2x32x128xf32> -> vector<2x32x128xf32>
    "tpu.trace_stop"() : () -> ()
    %24 = tpu.iota {dimensions = array<i32: 2>} : vector<2x32x128xi32>
    %c16_i32 = arith.constant 16 : i32
    %25 = vector.broadcast %c16_i32 : i32 to vector<2x32x128xi32>
    %26 = arith.cmpi slt, %24, %25 : vector<2x32x128xi32>
    %cst_19 = arith.constant -1.000000e+30 : f32
    %27 = vector.broadcast %cst_19 : f32 to vector<2x32x128xf32>
    %28 = arith.select %26, %23, %27 : vector<2x32x128xi1>, vector<2x32x128xf32>
    %cst_20 = arith.constant dense<0xFF800000> : vector<2x32xf32>
    %29 = vector.multi_reduction <maximumf>, %28, %cst_20 [2] : vector<2x32x128xf32> to vector<2x32xf32>
    %30 = vector.shape_cast %29 : vector<2x32xf32> to vector<2x32x1xf32>
    %31 = vector.broadcast %30 : vector<2x32x1xf32> to vector<2x32x128xf32>
    %32 = arith.subf %28, %31 : vector<2x32x128xf32>
    %33 = math.exp %32 : vector<2x32x128xf32>
    %cst_21 = arith.constant dense<0.000000e+00> : vector<2x32xf32>
    %34 = vector.multi_reduction <add>, %33, %cst_21 [2] : vector<2x32x128xf32> to vector<2x32xf32>
    %35 = vector.shape_cast %34 : vector<2x32xf32> to vector<2x32x1xf32>
    %36 = tpu.reciprocal %35 {approx = true} : vector<2x32x1xf32> -> vector<2x32x1xf32>
    %37 = vector.broadcast %36 : vector<2x32x1xf32> to vector<2x32x128xf32>
    %38 = arith.mulf %33, %37 : vector<2x32x128xf32>
    %39 = arith.truncf %38 : vector<2x32x128xf32> to vector<2x32x128xbf16>
    "tpu.trace_start"() <{level = 10 : i32, message = "bqk,bkd->bqd"}> : () -> ()
    %cst_22 = arith.constant dense<0.000000e+00> : vector<2x32x768xf32>
    %40 = tpu.matmul %39, %22, %cst_22 {dimension_numbers = #tpu.dot_dimension_numbers<[2], [1], [1], [2], [0, 0, 0, 1, 1, 2], [0], [0]>} : vector<2x32x128xbf16>, vector<2x128x768xbf16>, vector<2x32x768xf32> -> vector<2x32x768xf32>
    "tpu.trace_stop"() : () -> ()
    %41 = vector.shape_cast %40 : vector<2x32x768xf32> to vector<64x768xf32>
    %42 = arith.truncf %41 : vector<64x768xf32> to vector<64x768xbf16>
    %c0_23 = arith.constant 0 : index
    %c0_24 = arith.constant 0 : index
    %43 = vector.load %arg8[%c0_23, %c0_24] : memref<768x768xbf16, #tpu.memory_space<vmem>>, vector<768x768xbf16>
    %cst_25 = arith.constant dense<0.000000e+00> : vector<64x768xf32>
    %44 = tpu.matmul %42, %43, %cst_25 {dimension_numbers = #tpu.dot_dimension_numbers<[1], [0], [0], [1], [0, 0, 1, 1], [], []>} : vector<64x768xbf16>, vector<768x768xbf16>, vector<64x768xf32> -> vector<64x768xf32>
    %c0_26 = arith.constant 0 : index
    %c0_27 = arith.constant 0 : index
    %45 = vector.load %arg9[%c0_26, %c0_27] : memref<1x768xf32, #tpu.memory_space<vmem>>, vector<1x768xf32>
    %46 = vector.broadcast %45 : vector<1x768xf32> to vector<64x768xf32>
    %47 = arith.addf %44, %46 : vector<64x768xf32>
    %48 = arith.addf %47, %9 : vector<64x768xf32>
    %49 = arith.truncf %48 : vector<64x768xf32> to vector<64x768xbf16>
    %c0_28 = arith.constant 0 : index
    %c0_29 = arith.constant 0 : index
    %50 = vector.load %arg10[%c0_28, %c0_29] : memref<768x768xbf16, #tpu.memory_space<vmem>>, vector<768x768xbf16>
    %cst_30 = arith.constant dense<0.000000e+00> : vector<64x768xf32>
    %51 = tpu.matmul %49, %50, %cst_30 {dimension_numbers = #tpu.dot_dimension_numbers<[1], [0], [0], [1], [0, 0, 1, 1], [], []>} : vector<64x768xbf16>, vector<768x768xbf16>, vector<64x768xf32> -> vector<64x768xf32>
    %c0_31 = arith.constant 0 : index
    %c0_32 = arith.constant 0 : index
    %52 = vector.load %arg11[%c0_31, %c0_32] : memref<1x768xf32, #tpu.memory_space<vmem>>, vector<1x768xf32>
    %53 = vector.broadcast %52 : vector<1x768xf32> to vector<64x768xf32>
    %54 = arith.addf %51, %53 : vector<64x768xf32>
    %55 = arith.mulf %54, %54 : vector<64x768xf32>
    %56 = arith.mulf %54, %55 : vector<64x768xf32>
    %cst_33 = arith.constant 4.471500e-02 : f32
    %57 = vector.broadcast %cst_33 : f32 to vector<64x768xf32>
    %58 = arith.mulf %57, %56 : vector<64x768xf32>
    %59 = arith.addf %54, %58 : vector<64x768xf32>
    %cst_34 = arith.constant 0.797884583 : f32
    %60 = vector.broadcast %cst_34 : f32 to vector<64x768xf32>
    %61 = arith.mulf %60, %59 : vector<64x768xf32>
    %62 = math.tanh %61 : vector<64x768xf32>
    %cst_35 = arith.constant 1.000000e+00 : f32
    %63 = vector.broadcast %cst_35 : f32 to vector<64x768xf32>
    %64 = arith.addf %63, %62 : vector<64x768xf32>
    %cst_36 = arith.constant 5.000000e-01 : f32
    %65 = vector.broadcast %cst_36 : f32 to vector<64x768xf32>
    %66 = arith.mulf %65, %64 : vector<64x768xf32>
    %67 = arith.mulf %54, %66 : vector<64x768xf32>
    %68 = arith.truncf %67 : vector<64x768xf32> to vector<64x768xbf16>
    %c0_37 = arith.constant 0 : index
    %c0_38 = arith.constant 0 : index
    %69 = vector.load %arg12[%c0_37, %c0_38] : memref<768x768xbf16, #tpu.memory_space<vmem>>, vector<768x768xbf16>
    %cst_39 = arith.constant dense<0.000000e+00> : vector<64x768xf32>
    %70 = tpu.matmul %68, %69, %cst_39 {dimension_numbers = #tpu.dot_dimension_numbers<[1], [0], [0], [1], [0, 0, 1, 1], [], []>} : vector<64x768xbf16>, vector<768x768xbf16>, vector<64x768xf32> -> vector<64x768xf32>
    %c0_40 = arith.constant 0 : index
    %c0_41 = arith.constant 0 : index
    %71 = vector.load %arg13[%c0_40, %c0_41] : memref<1x768xf32, #tpu.memory_space<vmem>>, vector<1x768xf32>
    %72 = vector.broadcast %71 : vector<1x768xf32> to vector<64x768xf32>
    %73 = arith.addf %70, %72 : vector<64x768xf32>
    %74 = arith.addf %73, %48 : vector<64x768xf32>
    %75 = vector.shape_cast %74 : vector<64x768xf32> to vector<2x32x768xf32>
    %c0_42 = arith.constant 0 : index
    %c0_43 = arith.constant 0 : index
    %c0_44 = arith.constant 0 : index
    %76 = vector.load %arg14[%c0_42, %c0_43, %c0_44] : memref<2x32x768xf32, #tpu.memory_space<vmem>>, vector<2x32x768xf32>
    tpu.vector_store %arg14[%c0_42, %c0_43, %c0_44], %75 {strides = array<i32>} : memref<2x32x768xf32, #tpu.memory_space<vmem>>, vector<2x32x768xf32>,
    return
  }
  func.func @transform_0(%arg0: i32) -> (i32, i32, i32) {
    %c0_i32 = arith.constant 0 : i32
    %c0_i32_0 = arith.constant 0 : i32
    %c0_i32_1 = arith.constant 0 : i32
    return %arg0, %c0_i32, %c0_i32_0 : i32, i32, i32
  }
  func.func @transform_1(%arg0: i32) -> (i32, i32, i32) {
    %c0_i32 = arith.constant 0 : i32
    %c0_i32_0 = arith.constant 0 : i32
    %c0_i32_1 = arith.constant 0 : i32
    return %arg0, %c0_i32, %c0_i32_0 : i32, i32, i32
  }
  func.func @transform_2(%arg0: i32) -> (i32, i32) {
    %c0_i32 = arith.constant 0 : i32
    %c0_i32_0 = arith.constant 0 : i32
    %c0_i32_1 = arith.constant 0 : i32
    return %c0_i32, %c0_i32_0 : i32, i32
  }
  func.func @transform_3(%arg0: i32) -> (i32, i32) {
    %c0_i32 = arith.constant 0 : i32
    %c0_i32_0 = arith.constant 0 : i32
    %c0_i32_1 = arith.constant 0 : i32
    return %c0_i32, %c0_i32_0 : i32, i32
  }
  func.func @transform_4(%arg0: i32) -> (i32, i32) {
    %c0_i32 = arith.constant 0 : i32
    %c0_i32_0 = arith.constant 0 : i32
    %c0_i32_1 = arith.constant 0 : i32
    return %c0_i32, %c0_i32_0 : i32, i32
  }
  func.func @transform_5(%arg0: i32) -> (i32, i32) {
    %c0_i32 = arith.constant 0 : i32
    %c0_i32_0 = arith.constant 0 : i32
    %c0_i32_1 = arith.constant 0 : i32
    return %c0_i32, %c0_i32_0 : i32, i32
  }
  func.func @transform_6(%arg0: i32) -> (i32, i32) {
    %c0_i32 = arith.constant 0 : i32
    %c0_i32_0 = arith.constant 0 : i32
    %c0_i32_1 = arith.constant 0 : i32
    return %c0_i32, %c0_i32_0 : i32, i32
  }
  func.func @transform_7(%arg0: i32) -> (i32, i32) {
    %c0_i32 = arith.constant 0 : i32
    %c0_i32_0 = arith.constant 0 : i32
    %c0_i32_1 = arith.constant 0 : i32
    return %c0_i32, %c0_i32_0 : i32, i32
  }
  func.func @transform_8(%arg0: i32) -> (i32, i32) {
    %c0_i32 = arith.constant 0 : i32
    %c0_i32_0 = arith.constant 0 : i32
    %c0_i32_1 = arith.constant 0 : i32
    return %c0_i32, %c0_i32_0 : i32, i32
  }
  func.func @transform_9(%arg0: i32) -> (i32, i32) {
    %c0_i32 = arith.constant 0 : i32
    %c0_i32_0 = arith.constant 0 : i32
    %c0_i32_1 = arith.constant 0 : i32
    return %c0_i32, %c0_i32_0 : i32, i32
  }
  func.func @transform_10(%arg0: i32) -> (i32, i32) {
    %c0_i32 = arith.constant 0 : i32
    %c0_i32_0 = arith.constant 0 : i32
    %c0_i32_1 = arith.constant 0 : i32
    return %c0_i32, %c0_i32_0 : i32, i32
  }
  func.func @transform_11(%arg0: i32) -> (i32, i32) {
    %c0_i32 = arith.constant 0 : i32
    %c0_i32_0 = arith.constant 0 : i32
    %c0_i32_1 = arith.constant 0 : i32
    return %c0_i32, %c0_i32_0 : i32, i32
  }
  func.func @transform_12(%arg0: i32) -> (i32, i32) {
    %c0_i32 = arith.constant 0 : i32
    %c0_i32_0 = arith.constant 0 : i32
    %c0_i32_1 = arith.constant 0 : i32
    return %c0_i32, %c0_i32_0 : i32, i32
  }
  func.func @transform_13(%arg0: i32) -> (i32, i32, i32) {
    %c0_i32 = arith.constant 0 : i32
    %c0_i32_0 = arith.constant 0 : i32
    %c0_i32_1 = arith.constant 0 : i32
    return %arg0, %c0_i32, %c0_i32_0 : i32, i32, i32
  }
}

</mosaic_0001>

<bundles_post_ra>
// kernel: visual_encoder_with_qformer.1
= control target key start
LH: loop header
LB: loop body
LE: loop exit
PB: predicated region body
PF: predicated region fallthrough
CT: control target
= control target key end

     0   :  { %s24257_s0 = inlined_call_operand.vmem [shape: bf16[4,128,64], index: 0, kind: input, shape index: {}]   ;;  %s24258_s1 = inlined_call_operand.hbm [shape: f32[4,32,768], index: 1, kind: input, shape index: {}]   ;;  %s24259_s2 = inlined_call_operand.vmem [shape: bf16[64,256], index: 2, kind: input, shape index: {}]   ;;  %s24260_s3 = inlined_call_operand.vmem [shape: f32[1,256], index: 3, kind: input, shape index: {}]   ;;  %s24261_s4 = inlined_call_operand.vmem [shape: bf16[768,768], index: 4, kind: input, shape index: {}]   ;;  %s24262_s5 = inlined_call_operand.hbm [shape: bf16[256,768], index: 5, kind: input, shape index: {}]   ;;  %s24263_s6 = inlined_call_operand.hbm [shape: bf16[256,768], index: 6, kind: input, shape index: {}]   ;;  %s24264_s7 = inlined_call_operand.hbm [shape: bf16[768,768], index: 7, kind: input, shape index: {}]   ;;  %s24265_s8 = inlined_call_operand.vmem [shape: f32[1,768], index: 8, kind: input, shape index: {}]   ;;  %s24266_s9 = inlined_call_operand.hbm [shape: bf16[768,768], index: 9, kind: input, shape index: {}]   ;;  %s24267_s10 = inlined_call_operand.vmem [shape: f32[1,768], index: 10, kind: input, shape index: {}]   ;;  %s24268_s11 = inlined_call_operand.hbm [shape: bf16[768,768], index: 11, kind: input, shape index: {}]   ;;  %s24269_s12 = inlined_call_operand.vmem [shape: f32[1,768], index: 12, kind: input, shape index: {}]   ;;  %s24270_s13 = inlined_call_operand.hbm [shape: f32[4,32,768], index: 13, kind: output, shape index: {}]  }
   0x1   :  { %24569 = sst [smem:[#allocation141_spill]] %s24260_s3 }
   0x2   :  { %24570 = sst [smem:[#allocation142_spill]] %s24262_s5 }
   0x3   :  { %24571 = sst [smem:[#allocation143_spill]] %s24263_s6 }
   0x4   :  { %24572 = sst [smem:[#allocation144_spill]] %s24265_s8 }
   0x5   :  { %24573 = sst [smem:[#allocation145_spill]] %s24267_s10 }
   0x6   :  { %24574 = sst [smem:[#allocation146_spill]] %s24269_s12 }
   0x7   :  { %24575 = sst [smem:[#allocation147_spill]] %s24270_s13 }
   0x8   :  { %18 = vsyncpa [#allocation3], 0 }
   0x9   :  { %20 = vsyncpa [#allocation3 + $0x1], 0 }
   0xa   :  { %21 = vsyncpa [#allocation6], 0 }
   0xb   :  { %22 = vsyncpa [#allocation9], 0 }
   0xc   :  { %23 = vsyncpa [#allocation12], 0 }
   0xd   :  { %24 = vsyncpa [#allocation4], 0 }
   0xe   :  { %26 = vsyncpa [#allocation4 + $0x1], 0  ;;  %s19369_s25 = smov 0   ;;  %s19371_s26 = smov 0  }
   0xf   :  { %s19373_s27 = smov 0   ;;  %s19375_s28 = smov 0  }
  0x10 LB: > { %s19285_s29 = smov [#allocation5]   ;;  %s19390_s14 = sadd.s32 4294967295, %s19283_s28   ;;  %s19283_s28 = sphi %s19375_s28, %s25360_s28   ;;  %s19279_s27 = sphi %s19373_s27, %s25359_s27   ;;  %s19275_s26 = sphi %s19371_s26, %s25358_s26   ;;  %s19271_s25 = sphi %s19369_s25, %s25357_s25  }
  0x11   : > { %s367_s30 = sshll.u32 %s19285_s29, 4  ;;  %p14737_p0 = scmp.ge.s32.totalorder %s19283_s28, 1  ;;  %s19395_s30 = int_to_ptr.vmem [resolvable:$true] %s367_s30 }
  0x12   : > { %p24273_p1 = scmp.eq.s32.totalorder %s19390_s14, 0  ;;  %p346_p2 = scmp.lt.s32.totalorder %s19283_s28, 3 }
  0x13   : > { %s19286_s16 = smov [#allocation8]   ;;  %s19287_s19 = smov [#allocation7]  }
  0x14   : > { %p19397_p3 = pnand %p14737_p0, %p346_p2  ;;  %s393_s17 = sshll.u32 %s19286_s16, 4  ;;  %s19410_s17 = int_to_ptr.vmem [resolvable:$true] %s393_s17 }
  0x15   : > { %s380_s20 = sshll.u32 %s19287_s19, 4  ;;  %s24578_s5 = sld [smem:[#allocation142_spill]]  ;;  %s19412_s20 = int_to_ptr.vmem [resolvable:$true] %s380_s20 }
  0x16   : > { %s24576_s15 = scalar_select %p19397_p3, 1, 0 }
  0x17   : > { %p16734_p5 = pneg %p19397_p3 }
  0x19   : > { %p19406_p6 = pnand %p16734_p5, %p24273_p1 }
  0x1b   : > { %s19035_s23 = scalar_lea.hbm %s24578_s5, 12288  ;;  %p19422_p8 = pneg %p19406_p6 }
  0x1c   : > { %p19036_p7 = scmp.ne.s32.totalorder %s24578_s5, %s19035_s23  ;;  %p19042_p11 = scmp.lt.u32.totalorder %s19035_s23, %s24578_s5 }
  0x1e   : > { %p19038_p9 = pnand %p19422_p8, %p19036_p7 }
  0x20   : > { %p19039_p10 = pneg %p19038_p9 }
  0x22   : > { %p19044_p12 = pnand %p19042_p11, %p19039_p10 }
  0x24   : > { %19047 = shalt.err (!%p19044_p12)
}
  0x25   : > { %s19048_s21 = scalar_lea.vmem %s19395_s30, 12288  ;;  %p19056_p5 = scmp.lt.s32.totalorder %s19395_s30, %s19395_s30 }
  0x26   : > { %p19049_p13 = scmp.ne.s32.totalorder %s19395_s30, %s19048_s21  ;;  %p19057_p4 = scmp.lt.s32.totalorder %s19048_s21, %s19048_s21 }
  0x28   : > { %p19051_p0 = pnand %p19049_p13, %p19422_p8  ;;  %p19058_p7 = por %p19057_p4, %p19056_p5 }
  0x2a   : > { %p19052_p2 = pneg %p19051_p0 }
  0x2c   : > { %p19059_p9 = pnand %p19058_p7, %p19052_p2 }
  0x2e   : > { %19062 = shalt.err (!%p19059_p9)
}
  0x2f   : > { %s19288_s22 = smov 384   ;;  %s19289_s13 = smov 24  }
  0x30   : > { %16737 = dma.hbm_to_vmem [thread:$0]  (!%p19406_p6), %s24578_s5, 12288, %s19395_s30, [#allocation6], %s19288_s22, %s19288_s22, %s19289_s13  }
  0x31   : > { %s19063_s21 = scalar_lea.hbm %s24264_s7, 36864 }
  0x32   : > { %p19064_p4 = scmp.ne.s32.totalorder %s24264_s7, %s19063_s21  ;;  %p19070_p12 = scmp.lt.u32.totalorder %s19063_s21, %s24264_s7 }
  0x34   : > { %p19066_p10 = pnand %p19064_p4, %p19422_p8 }
  0x36   : > { %p19067_p11 = pneg %p19066_p10 }
  0x38   : > { %p19072_p13 = pnand %p19070_p12, %p19067_p11 }
  0x3a   : > { %19075 = shalt.err (!%p19072_p13)
}
  0x3b   : > { %s19076_s30 = scalar_lea.vmem %s19410_s17, 36864  ;;  %p19084_p7 = scmp.lt.s32.totalorder %s19410_s17, %s19410_s17 }
  0x3c   : > { %p19077_p0 = scmp.ne.s32.totalorder %s19410_s17, %s19076_s30  ;;  %p19085_p9 = scmp.lt.s32.totalorder %s19076_s30, %s19076_s30 }
  0x3e   : > { %p19079_p2 = pnand %p19077_p0, %p19422_p8  ;;  %p19086_p4 = por %p19085_p9, %p19084_p7 }
  0x40   : > { %p19080_p5 = pneg %p19079_p2 }
  0x42   : > { %p19087_p10 = pnand %p19086_p4, %p19080_p5 }
  0x44   : > { %19090 = shalt.err (!%p19087_p10)
}
  0x45   : > { %16743 = dma.hbm_to_vmem [thread:$0]  (!%p19406_p6), %s24264_s7, 36864, %s19410_s17, [#allocation9], %s19288_s22, %s19288_s22, %s19289_s13  }
  0x46   : > { %s24580_s6 = sld [smem:[#allocation143_spill]] }
  0x4c   : > { %s19091_s23 = scalar_lea.hbm %s24580_s6, 12288 }
  0x4d   : > { %p19092_p11 = scmp.ne.s32.totalorder %s24580_s6, %s19091_s23  ;;  %p19098_p0 = scmp.lt.u32.totalorder %s19091_s23, %s24580_s6 }
  0x4f   : > { %p19094_p12 = pnand %p19092_p11, %p19422_p8 }
  0x51   : > { %p19095_p13 = pneg %p19094_p12 }
  0x53   : > { %p19100_p2 = pnand %p19098_p0, %p19095_p13 }
  0x55   : > { %19103 = shalt.err (!%p19100_p2)
}
  0x56   : > { %s19104_s17 = scalar_lea.vmem %s19412_s20, 12288  ;;  %p19112_p4 = scmp.lt.s32.totalorder %s19412_s20, %s19412_s20 }
  0x57   : > { %p19105_p5 = scmp.ne.s32.totalorder %s19412_s20, %s19104_s17  ;;  %p19113_p10 = scmp.lt.s32.totalorder %s19104_s17, %s19104_s17 }
  0x59   : > { %p19107_p7 = pnand %p19105_p5, %p19422_p8  ;;  %p19114_p11 = por %p19113_p10, %p19112_p4 }
  0x5b   : > { %p19108_p9 = pneg %p19107_p7 }
  0x5d   : > { %p19115_p12 = pnand %p19114_p11, %p19108_p9 }
  0x5f   : > { %19118 = shalt.err (!%p19115_p12)
}
  0x60   : > { %16740 = dma.hbm_to_vmem [thread:$0]  (!%p19406_p6), %s24580_s6, 12288, %s19412_s20, [#allocation6], %s19288_s22, %s19288_s22, %s19289_s13  }
  0x61   : > { %s19290_s8 = smov [#allocation10]   ;;  %s19291_s12 = smov [#allocation11]  }
  0x62   : > { %s409_s10 = sshll.u32 %s19290_s8, 4  ;;  %s425_s23 = sshll.u32 %s19291_s12, 4  ;;  %s410_s10 = int_to_ptr.vmem [resolvable:$true] %s409_s10  ;;  %s426_s23 = int_to_ptr.vmem [resolvable:$true] %s425_s23 }
  0x63   : > { %s19119_s19 = scalar_lea.hbm %s24266_s9, 36864 }
  0x64   : > { %p19120_p13 = scmp.ne.s32.totalorder %s24266_s9, %s19119_s19  ;;  %p19126_p5 = scmp.lt.u32.totalorder %s19119_s19, %s24266_s9 }
  0x66   : > { %p19122_p0 = pnand %p19120_p13, %p19422_p8 }
  0x68   : > { %p19123_p2 = pneg %p19122_p0 }
  0x6a   : > { %p19128_p7 = pnand %p19126_p5, %p19123_p2 }
  0x6c   : > { %19131 = shalt.err (!%p19128_p7)
}
  0x6d   : > { %s19132_s20 = scalar_lea.vmem %s410_s10, 36864  ;;  %p19140_p11 = scmp.lt.s32.totalorder %s410_s10, %s410_s10 }
  0x6e   : > { %p19133_p9 = scmp.ne.s32.totalorder %s410_s10, %s19132_s20  ;;  %p19141_p12 = scmp.lt.s32.totalorder %s19132_s20, %s19132_s20 }
  0x70   : > { %p19135_p4 = pnand %p19133_p9, %p19422_p8  ;;  %p19142_p1 = por %p19141_p12, %p19140_p11 }
  0x72   : > { %p19136_p10 = pneg %p19135_p4 }
  0x74   : > { %p19143_p3 = pnand %p19142_p1, %p19136_p10 }
  0x76   : > { %19146 = shalt.err (!%p19143_p3)
}
  0x77   : > { %16746 = dma.hbm_to_vmem [thread:$0]  (!%p19406_p6), %s24266_s9, 36864, %s410_s10, [#allocation9], %s19288_s22, %s19288_s22, %s19289_s13  }
  0x78   : > { %s19147_s24 = scalar_lea.hbm %s24268_s11, 36864 }
  0x79   : > { %p19148_p1 = scmp.ne.s32.totalorder %s24268_s11, %s19147_s24  ;;  %p19154_p0 = scmp.lt.u32.totalorder %s19147_s24, %s24268_s11 }
  0x7b   : > { %p19150_p3 = pnand %p19148_p1, %p19422_p8 }
  0x7d   : > { %p19151_p13 = pneg %p19150_p3 }
  0x7f   : > { %p19156_p2 = pnand %p19154_p0, %p19151_p13 }
  0x81   : > { %19159 = shalt.err (!%p19156_p2)
}
  0x82   : > { %s19160_s30 = scalar_lea.vmem %s426_s23, 36864  ;;  %p19168_p4 = scmp.lt.s32.totalorder %s426_s23, %s426_s23 }
  0x83   : > { %p19161_p5 = scmp.ne.s32.totalorder %s426_s23, %s19160_s30  ;;  %p19169_p10 = scmp.lt.s32.totalorder %s19160_s30, %s19160_s30 }
  0x85   : > { %p19163_p7 = pnand %p19161_p5, %p19422_p8  ;;  %p19170_p11 = por %p19169_p10, %p19168_p4 }
  0x87   : > { %p19164_p9 = pneg %p19163_p7 }
  0x89   : > { %p19171_p12 = pnand %p19170_p11, %p19164_p9 }
  0x8b   : > { %19174 = shalt.err (!%p19171_p12)
}
  0x8c   : > { %16749 = dma.hbm_to_vmem [thread:$0]  (!%p19406_p6), %s24268_s11, 36864, %s426_s23, [#allocation12], %s19288_s22, %s19288_s22, %s19289_s13  }
  0x8d   : > { %s14736_s18 = sadd.s32 4294967294, %s19283_s28   ;;  %s19542_s16 = sadd.s32 1, %s19283_s28  }
  0x8e   : > { %s65_s5 = sadd.s32 1, %s19279_s27  ;;  %s62_s3 = ssub.s32 %s19283_s28, %s19542_s16 }
  0x8f   : > { %p72_p8 = scmp.ne.s32.totalorder %s19279_s27, %s19275_s26  ;;  %p63_p1 = scmp.eq.s32.totalorder %s62_s3, 0 }
  0x90   : > { %p73_p3 = scmp.eq.s32.totalorder %s19283_s28, 0  ;;  %p78_p13 = scmp.ne.s32.totalorder %s19275_s26, %s19271_s25 }
  0x91   : > { %p333_p0 = scmp.eq.s32.totalorder %s19390_s14, 1  ;;  %p24581_p5 = scmp.eq.s32.totalorder %s19390_s14, 0 }
  0x92   : > { %s19554_s8 = scalar_select %p63_p1, %s19279_s27, %s65_s5  }
  0x93   : > { %p74_p2 = por %p73_p3, %p72_p8  ;;  %p19558_p7 = por %p24581_p5, %p78_p13 }
  0x94   : > { %p19562_p6 = por %p333_p0, %p72_p8  ;;  %p339_p9 = scmp.eq.s32.totalorder %s14736_s18, 1 }
  0x95   : > { %p16763_p4 = scmp.lt.s32.totalorder %s19283_s28, 2  ;;  %s452_s13 = sand.u32 1, %s19279_s27  }
  0x96   : > { %s24583_s22 = scalar_select %p19562_p6, 1, 0 }
  0x97   : > { %p19568_p10 = por %p339_p9, %p78_p13  ;;  %s16706_s24 = smul.u32 384, %s452_s13 }
  0x98   : > { %p19572_p11 = pnand %p16763_p4, %p74_p2  ;;  %s16707_s19 = smul.u32 6144, %s19283_s28 }
  0x99   : > { %s24584_s23 = scalar_select %p19568_p10, 1, 0 }
  0x9a   : > { %s19580_s30 = scalar_lea.hbm %s24258_s1, %s16707_s19  ;;  %s456_s10 = scalar_lea.vmem [#allocation2], %s16706_s24 }
  0x9b   : > { %s464_s20 = sshll.u32 %s456_s10, 4  ;;  %s19584_s18 = scalar_lea.sflag [#allocation3], %s452_s13  ;;  %s19582_s20 = int_to_ptr.vmem [resolvable:$true] %s464_s20 }
  0x9c   : > { %s19175_s5 = scalar_lea.hbm %s19580_s30, 6144  ;;  %p19177_p8 = pneg %p19572_p11 }
  0x9d   : > { %p19176_p12 = scmp.ne.s32.totalorder %s19580_s30, %s19175_s5  ;;  %s19180_s21 = scalar_lea.hbm %s24258_s1, 12288 }
  0x9e   : > { %p19181_p13 = scmp.lt.u32.totalorder %s19580_s30, %s24258_s1  ;;  %p19182_p0 = scmp.lt.u32.totalorder %s19180_s21, %s19175_s5 }
  0x9f   : > { %p19178_p1 = pnand %p19177_p8, %p19176_p12  ;;  %p19184_p5 = scmp.lt.u32.totalorder %s19175_s5, %s19580_s30 }
  0xa0   : > { %p19183_p2 = por %p19182_p0, %p19181_p13 }
  0xa1   : > { %p19179_p3 = pneg %p19178_p1 }
  0xa2   : > { %p19185_p9 = por %p19184_p5, %p19183_p2 }
  0xa4   : > { %p19186_p4 = pnand %p19185_p9, %p19179_p3 }
  0xa6   : > { %19189 = shalt.err (!%p19186_p4)
}
  0xa7   : > { %s19190_s13 = scalar_lea.vmem %s19582_s20, 6144  ;;  %s19292_s24 = smov [#allocation2]  }
  0xa8   : > { %p19191_p12 = scmp.ne.s32.totalorder %s19582_s20, %s19190_s13  ;;  %s19195_s10 = sshll.u32 %s19292_s24, 4  ;;  %s19196_s10 = int_to_ptr.vmem [resolvable:$false] %s19195_s10 }
  0xa9   : > { %s19197_s6 = scalar_lea.vmem %s19196_s10, 12288  ;;  %p19198_p6 = scmp.lt.s32.totalorder %s19582_s20, %s19196_s10 }
  0xaa   : > { %p19193_p1 = pnand %p19191_p12, %p19177_p8  ;;  %p19199_p13 = scmp.lt.s32.totalorder %s19197_s6, %s19190_s13 }
  0xac   : > { %p19194_p10 = pneg %p19193_p1  ;;  %p19200_p0 = por %p19199_p13, %p19198_p6 }
  0xae   : > { %p19201_p2 = pnand %p19200_p0, %p19194_p10 }
  0xb0   : > { %19204 = shalt.err (!%p19201_p2)
}
  0xb1   : > { %s19293_s5 = smov 768   ;;  %s19294_s3 = smov 48  }
  0xb2   : > { %16753 = dma.hbm_to_vmem [thread:$0]  (!%p19572_p11), %s19580_s30, 6144, %s19582_s20, %s19584_s18, %s19293_s5, %s19293_s5, %s19294_s3  }
  0xb3   : > { %p24586_p8 = scmp.ne.s32.totalorder %s24576_s15, 0 }
  0xb5   : > { %476 = sbr.rel (%p24586_p8) target bundleno = 3416 (0xd58), region = 72 }
  0xbc   : > { %s19615_s19 = sand.u32 1, %s19275_s26  }
  0xbd   : > { %s16708_s21 = smul.u32 384, %s19615_s19  ;;  %s479_s17 = scalar_lea.sflag [#allocation3], %s19615_s19 }
  0xbf   : > { %s19621_s13 = scalar_lea.vmem [#allocation2], %s16708_s21 }
  0xc0   : > { %19250 = dma.done.wait (%p19558_p7), %s479_s17, 6144  }
  0xc1   : > { %19252 = vsyncadd (%p19558_p7), %s479_s17, 4294961152  ;;  %p24587_p6 = scmp.eq.s32.totalorder %s19390_s14, 0 }
  0xc3   : > { %19254 = dma.done.wait (%p24587_p6), [#allocation6], 24576   ;;  %p24588_p10 = pmov %p24587_p6 }
  0xc4   : > { %p24589_p11 = pmov %p24587_p6 }
  0xc5   : > { %19256 = vsyncadd (%p24588_p10), [#allocation6], 4294942720 }
  0xc6   : > { %19258 = dma.done.wait (%p24589_p11), [#allocation9], 73728   ;;  %p24590_p3 = pmov %p24587_p6 }
  0xc8   : > { %19260 = vsyncadd (%p24590_p3), [#allocation9], 4294893568  ;;  %p24591_p5 = pmov %p24590_p3 }
  0xc9   : > { %p24592_p9 = pmov %p24590_p3 }
  0xca   : > { %19262 = dma.done.wait (%p24591_p5), [#allocation12], 36864  }
  0xcb   : > { %19264 = vsyncadd (%p24592_p9), [#allocation12], 4294930432  ;;  %v24277_v0 = vmov 0   ;;  %s14753_s15 = sshll.u32 %s19390_s14, 1  ;;  %v16814_v1 = vld [vmem:[%s24259_s2 + $0x4] ss:$8 sps:$4 sm:$0xff]  }
  0xcc   : > { %814 = vmatprep.mubr.bf16.mxu0 %v24277_v0  ;;  %p552_p7 = scmp.lt.s32.totalorder %s14753_s15, 3  ;;  %v16816_v2 = vld [vmem:[%s24261_s4 + $0x304] ss:$24 sps:$4 sm:$0xff]   ;;  %782 = vmatprep.subr.bf16.mxu0 %v16814_v1  ;;  %v16818_v3 = vld [vmem:[%s24259_s2] ss:$8 sps:$4 sm:$0xff]   ;;  %vm733_vm0 = vcmask 523264  }
  0xcd   : > { %v16819_v4 = vld [vmem:[%s24261_s4 + $0x300] ss:$24 sps:$4 sm:$0xff]   ;;  %2880 = vmatprep.subr.bf16.mxu1 %v16816_v2  ;;  %v16820_v5 = vld [vmem:[%s24259_s2 + $0x14] ss:$8 sps:$4 sm:$0xff]   ;;  %783 = vmatpush1.bf16.msra.mxu0 %v16818_v3  ;;  %v16825_v8 = vld [vmem:[%s24261_s4 + $0x330] ss:$24 sps:$4 sm:$0xff]  }
  0xce   : > { %s25362_s15 = smov (!%p552_p7, %s14753_s15), 3  ;;  %2881 = vmatpush1.bf16.msra.mxu1 %v16819_v4  ;;  %v16822_v6 = vld [vmem:[%s24261_s4 + $0x334] ss:$24 sps:$4 sm:$0xff]   ;;  %v16824_v7 = vld [vmem:[%s24259_s2 + $0x10] ss:$8 sps:$4 sm:$0xff]   ;;  %784 = vmatprep.subr.bf16.mxu0 %v16820_v5  ;;  %s24595_s30 = sld [smem:[#allocation141_spill]] }
  0xcf   : > { %2882 = vmatprep.subr.bf16.mxu1 %v16822_v6  ;;  %v16826_v9 = vld [vmem:[%s24259_s2 + $0x24] ss:$8 sps:$4 sm:$0xff]   ;;  %s16145_s6 = sshll.u32 %s25362_s15, 6  ;;  %v16830_v11 = vld [vmem:[%s24259_s2 + $0x20] ss:$8 sps:$4 sm:$0xff]   ;;  %v1010_v50 = vld [vmem:[%s19621_s13 + $0x18] sm:$0xff] }
  0xd0   : > { %v16828_v10 = vld [vmem:[%s24261_s4 + $0x364] ss:$24 sps:$4 sm:$0xff]   ;;  %v16831_v12 = vld [vmem:[%s24261_s4 + $0x360] ss:$24 sps:$4 sm:$0xff]   ;;  %v16834_v14 = vld [vmem:[%s24261_s4 + $0x394] ss:$24 sps:$4 sm:$0xff]   ;;  %s19686_s3 = scalar_lea.vmem %s24257_s0, %s16145_s6 }
  0xd1   : > { %785 = vmatpush1.bf16.msra.mxu0 %v16824_v7  ;;  %v16832_v13 = vld [vmem:[%s24259_s2 + $0x34] ss:$8 sps:$4 sm:$0xff]   ;;  %v16836_v15 = vld [vmem:[%s24259_s2 + $0x30] ss:$8 sps:$4 sm:$0xff]   ;;  %v16838_v19 = vld [vmem:[%s19686_s3] sm:$0xff]   ;;  %s25298_s17 = sld [smem:[#allocation145_spill]] }
  0xd2   : > { %2883 = vmatpush1.bf16.msra.mxu1 %v16825_v8  ;;  %786 = vmatprep.subr.bf16.mxu0 %v16826_v9  ;;  %v16837_v16 = vld [vmem:[%s24261_s4 + $0x390] ss:$24 sps:$4 sm:$0xff]   ;;  %v16841_v17 = vld [vmem:[%s24261_s4 + $0x4] ss:$24 sps:$4 sm:$0xff]   ;;  %v16839_v20 = vld [vmem:[%s24261_s4] ss:$24 sps:$4 sm:$0xff]  }
  0xd3   : > { %2884 = vmatprep.subr.bf16.mxu1 %v16828_v10  ;;  %v16842_v18 = vld [vmem:[%s24261_s4 + $0x3c4] ss:$24 sps:$4 sm:$0xff]   ;;  %v16844_v21 = vld [vmem:[%s24261_s4 + $0x3c0] ss:$24 sps:$4 sm:$0xff]   ;;  %v16845_v22 = vld [vmem:[%s24261_s4 + $0x3f4] ss:$24 sps:$4 sm:$0xff]  }
  0xd4   : > { %v16851_v23 = vld [vmem:[%s24261_s4 + $0x34] ss:$24 sps:$4 sm:$0xff]   ;;  %v16847_v24 = vld [vmem:[%s24261_s4 + $0x3f0] ss:$24 sps:$4 sm:$0xff]   ;;  %v16852_v26 = vld [vmem:[%s24261_s4 + $0x424] ss:$24 sps:$4 sm:$0xff]  }
  0xd5   : > { %787 = vmatpush1.bf16.msra.mxu0 %v16830_v11  ;;  %v16849_v25 = vld [vmem:[%s24261_s4 + $0x30] ss:$24 sps:$4 sm:$0xff]   ;;  %v16861_v27 = vld [vmem:[%s24261_s4 + $0x64] ss:$24 sps:$4 sm:$0xff]   ;;  %v16854_v29 = vld [vmem:[%s24261_s4 + $0x420] ss:$24 sps:$4 sm:$0xff]  }
  0xd6   : > { %2885 = vmatpush1.bf16.msra.mxu1 %v16831_v12  ;;  %788 = vmatprep.subr.bf16.mxu0 %v16832_v13  ;;  %v16848_v28 = vld [vmem:[%s19686_s3 + $0x8] sm:$0xff]   ;;  %v16859_v31 = vld [vmem:[%s24261_s4 + $0x60] ss:$24 sps:$4 sm:$0xff]   ;;  %v16862_v34 = vld [vmem:[%s24261_s4 + $0x484] ss:$24 sps:$4 sm:$0xff]   ;;  %s25300_s18 = sld [smem:[#allocation146_spill]] }
  0xd7   : > { %2886 = vmatprep.subr.bf16.mxu1 %v16834_v14  ;;  %v16855_v30 = vld [vmem:[%s24261_s4 + $0x454] ss:$24 sps:$4 sm:$0xff]   ;;  %v16857_v32 = vld [vmem:[%s24261_s4 + $0x450] ss:$24 sps:$4 sm:$0xff]   ;;  %v16864_v37 = vld [vmem:[%s24261_s4 + $0x480] ss:$24 sps:$4 sm:$0xff]  }
  0xd8   : > { %v16871_v33 = vld [vmem:[%s24261_s4 + $0x94] ss:$24 sps:$4 sm:$0xff]   ;;  %v16869_v35 = vld [vmem:[%s24261_s4 + $0x90] ss:$24 sps:$4 sm:$0xff]   ;;  %v16881_v39 = vld [vmem:[%s24261_s4 + $0xc4] ss:$24 sps:$4 sm:$0xff]  }
  0xd9   : > { %789 = vmatpush1.bf16.msra.mxu0 %v16836_v15  ;;  %v16858_v36 = vld [vmem:[%s19686_s3 + $0x10] sm:$0xff]   ;;  %v16879_v40 = vld [vmem:[%s24261_s4 + $0xc0] ss:$24 sps:$4 sm:$0xff]   ;;  %v16872_v42 = vld [vmem:[%s24261_s4 + $0x4e4] ss:$24 sps:$4 sm:$0xff]   ;;  %s24083_s15 = scalar_lea.vmem [#allocation13], %s16708_s21 }
  0xda   : > { %2887 = vmatpush1.bf16.msra.mxu1 %v16837_v16  ;;  %2807 = vmatprep.subr.bf16.mxu0 %v16841_v17  ;;  %v16865_v38 = vld [vmem:[%s24261_s4 + $0x4b4] ss:$24 sps:$4 sm:$0xff]   ;;  %v16867_v41 = vld [vmem:[%s24261_s4 + $0x4b0] ss:$24 sps:$4 sm:$0xff]   ;;  %v16868_v45 = vld [vmem:[%s19686_s3 + $0x18] sm:$0xff]   ;;  %s16709_s21 = smul.u32 6144, %s19390_s14 }
  0xdb   : > { %2888 = vmatprep.subr.bf16.mxu1 %v16842_v18  ;;  %v16889_v43 = vld [vmem:[%s24261_s4 + $0xf0] ss:$24 sps:$4 sm:$0xff]   ;;  %v16891_v44 = vld [vmem:[%s24261_s4 + $0xf4] ss:$24 sps:$4 sm:$0xff]   ;;  %v16874_v46 = vld [vmem:[%s24261_s4 + $0x4e0] ss:$24 sps:$4 sm:$0xff]  }
  0xdc   : > { %14780 = vmatmul.mubr.msk.bf16.vlgmr.msra.gmra.mrb[0].mxu0 %vm733_vm0, %v16838_v19  ;;  %v16875_v47 = vld [vmem:[%s24261_s4 + $0x514] ss:$24 sps:$4 sm:$0xff]   ;;  %v16899_v48 = vld [vmem:[%s24261_s4 + $0x120] ss:$24 sps:$4 sm:$0xff]   ;;  %v16901_v49 = vld [vmem:[%s24261_s4 + $0x124] ss:$24 sps:$4 sm:$0xff]  }
  0xdd   : > { %2808 = vmatpush1.bf16.msra.mxu0 %v16839_v20  ;;  %824 = vmatprep.mubr.bf16.mxu0 %v24277_v0  ;;  %v1016_v51 = vld [vmem:[%s19621_s13 + $0x48] sm:$0xff]  ;;  %v16882_v54 = vld [vmem:[%s24261_s4 + $0x544] ss:$24 sps:$4 sm:$0xff]   ;;  %v16884_v56 = vld [vmem:[%s24261_s4 + $0x540] ss:$24 sps:$4 sm:$0xff]   ;;  %s14603_s6 = sshll.u32 %s24083_s15, 4  ;;  %s24211_s6 = int_to_ptr.vmem [resolvable:$true] %s14603_s6 }
  0xde   : > { %2889 = vmatpush1.bf16.msra.mxu1 %v16844_v21  ;;  %2809 = vmatprep.subr.bf16.mxu0 %v16851_v23  ;;  %v16877_v52 = vld [vmem:[%s24261_s4 + $0x510] ss:$24 sps:$4 sm:$0xff]   ;;  %v19798_v53 = vpack.c.bf16 %v1016_v51, %v1010_v50  ;;  %v16878_v55 = vld [vmem:[%s19686_s3 + $0x20] sm:$0xff]   ;;  %v16885_v57 = vld [vmem:[%s24261_s4 + $0x574] ss:$24 sps:$4 sm:$0xff]   ;;  %s19205_s5 = scalar_lea.vmem %s24211_s6, 6144 }
  0xdf   : > { %2890 = vmatprep.subr.bf16.mxu1 %v16845_v22  ;;  %v16909_v58 = vld [vmem:[%s24261_s4 + $0x150] ss:$24 sps:$4 sm:$0xff]   ;;  %v16911_v59 = vld [vmem:[%s24261_s4 + $0x154] ss:$24 sps:$4 sm:$0xff]   ;;  %v16892_v61 = vld [vmem:[%s24261_s4 + $0x5a4] ss:$24 sps:$4 sm:$0xff]   ;;  %p19206_p4 = scmp.ne.s32.totalorder %s24211_s6, %s19205_s5 }
  0xe0   : > { %2912 = vmatprep.mubr.bf16.mxu1 %v19798_v53  ;;  %v16887_v60 = vld [vmem:[%s24261_s4 + $0x570] ss:$24 sps:$4 sm:$0xff]   ;;  %v16919_v62 = vld [vmem:[%s24261_s4 + $0x180] ss:$24 sps:$4 sm:$0xff]   ;;  %v16921_v63 = vld [vmem:[%s24261_s4 + $0x184] ss:$24 sps:$4 sm:$0xff]  }
  0xe1   : > { %2810 = vmatpush1.bf16.msra.mxu0 %v16849_v25  ;;  %v16888_v1 = vld [vmem:[%s19686_s3 + $0x28] sm:$0xff]   ;;  %v16894_v2 = vld [vmem:[%s24261_s4 + $0x5a0] ss:$24 sps:$4 sm:$0xff]   ;;  %v1009_v7 = vld [vmem:[%s19621_s13 + $0x10] sm:$0xff]  ;;  %p25354_p12 = scmp.ne.s32.totalorder %s24583_s22, 0  ;;  %s19296_s12 = smov [#allocation13]  }
  0xe2   : > { %2891 = vmatpush1.bf16.msra.mxu1 %v16847_v24  ;;  %2811 = vmatprep.subr.bf16.mxu0 %v16861_v27  ;;  %v16895_v3 = vld [vmem:[%s24261_s4 + $0x5d4] ss:$24 sps:$4 sm:$0xff]   ;;  %v16897_v4 = vld [vmem:[%s24261_s4 + $0x5d0] ss:$24 sps:$4 sm:$0xff]   ;;  %v1015_v8 = vld [vmem:[%s19621_s13 + $0x40] sm:$0xff]  ;;  %s19209_s29 = sshll.u32 %s19296_s12, 4  ;;  %s19210_s29 = int_to_ptr.vmem [resolvable:$false] %s19209_s29 }
  0xe3   : > { %2892 = vmatprep.subr.bf16.mxu1 %v16852_v26  ;;  %v16929_v5 = vld [vmem:[%s24261_s4 + $0x1b0] ss:$24 sps:$4 sm:$0xff]   ;;  %v16931_v6 = vld [vmem:[%s24261_s4 + $0x1b4] ss:$24 sps:$4 sm:$0xff]   ;;  %v16904_v9 = vld [vmem:[%s24261_s4 + $0x604] ss:$24 sps:$4 sm:$0xff]   ;;  %v19858_v12 = vpack.c.bf16 %v1015_v8, %v1009_v7  ;;  %p19207_p1 = pnand %p19206_p4, %p25354_p12  ;;  %p19212_p0 = scmp.lt.s32.totalorder %s24211_s6, %s19210_s29 }
  0xe4   : > { %14781 = vmatmul.mubr.msk.bf16.gmra.mrb[4].mxu0 %vm733_vm0, %v16848_v28  ;;  %v16898_v10 = vld [vmem:[%s19686_s3 + $0x30] sm:$0xff]   ;;  %v16902_v11 = vld [vmem:[%s24261_s4 + $0x600] ss:$24 sps:$4 sm:$0xff]   ;;  %v16941_v13 = vld [vmem:[%s24261_s4 + $0x1e4] ss:$24 sps:$4 sm:$0xff]  }
  0xe5   : > { %834 = vmatprep.mubr.bf16.mxu0 %v24277_v0  ;;  %2812 = vmatpush1.bf16.msra.mxu0 %v16859_v31  ;;  %v16907_v14 = vld [vmem:[%s24261_s4 + $0x634] ss:$24 sps:$4 sm:$0xff]   ;;  %v16939_v15 = vld [vmem:[%s24261_s4 + $0x1e0] ss:$24 sps:$4 sm:$0xff]   ;;  %v16905_v16 = vld [vmem:[%s24261_s4 + $0x630] ss:$24 sps:$4 sm:$0xff]   ;;  %p19208_p13 = pneg %p19207_p1 }
  0xe6   : > { %2893 = vmatpush1.bf16.msra.mxu1 %v16854_v29  ;;  %2813 = vmatprep.subr.bf16.mxu0 %v16871_v33  ;;  %v16914_v17 = vld [vmem:[%s24261_s4 + $0x664] ss:$24 sps:$4 sm:$0xff]   ;;  %v16949_v18 = vld [vmem:[%s24261_s4 + $0x210] ss:$24 sps:$4 sm:$0xff]   ;;  %v16951_v19 = vld [vmem:[%s24261_s4 + $0x214] ss:$24 sps:$4 sm:$0xff]  }
  0xe7   : > { %2894 = vmatprep.subr.bf16.mxu1 %v16855_v30  ;;  %v1022_v20 = vld [vmem:[%s19621_s13 + $0x78] sm:$0xff]  ;;  %v1028_v21 = vld [vmem:[%s19621_s13 + $0xa8] sm:$0xff]  ;;  %v1021_v24 = vld [vmem:[%s19621_s13 + $0x70] sm:$0xff] }
  0xe8   : > { %v19886_v22 = vpack.c.bf16 %v1028_v21, %v1022_v20  ;;  %v16908_v23 = vld [vmem:[%s19686_s3 + $0x38] sm:$0xff]   ;;  %v1027_v25 = vld [vmem:[%s19621_s13 + $0xa0] sm:$0xff]  ;;  %v16917_v28 = vld [vmem:[%s24261_s4 + $0x694] ss:$24 sps:$4 sm:$0xff]  }
  0xe9   : > { %2814 = vmatpush1.bf16.msra.mxu0 %v16869_v35  ;;  %v16912_v26 = vld [vmem:[%s24261_s4 + $0x660] ss:$24 sps:$4 sm:$0xff]   ;;  %v19895_v27 = vpack.c.bf16 %v1027_v25, %v1021_v24  ;;  %v16915_v29 = vld [vmem:[%s24261_s4 + $0x690] ss:$24 sps:$4 sm:$0xff]   ;;  %v16961_v31 = vld [vmem:[%s24261_s4 + $0x244] ss:$24 sps:$4 sm:$0xff]  }
  0xea   : > { %2895 = vmatpush1.bf16.msra.mxu1 %v16857_v32  ;;  %2815 = vmatprep.subr.bf16.mxu0 %v16881_v39  ;;  %v16959_v30 = vld [vmem:[%s24261_s4 + $0x240] ss:$24 sps:$4 sm:$0xff]   ;;  %v1040_v33 = vld [vmem:[%s19621_s13 + $0x108] sm:$0xff]  ;;  %v16934_v50 = vld [vmem:[%s24261_s4 + $0x724] ss:$24 sps:$4 sm:$0xff]  }
  0xeb   : > { %2896 = vmatprep.subr.bf16.mxu1 %v16862_v34  ;;  %v1034_v32 = vld [vmem:[%s19621_s13 + $0xd8] sm:$0xff]  ;;  %v16928_v51 = vld [vmem:[%s19686_s3 + $0x48] sm:$0xff]   ;;  %v1011_v24 = vld [vmem:[%s19621_s13 + $0x20] sm:$0xff] }
  0xec   : > { %14782 = vmatmul.mubr.msk.bf16.gmra.mrb[8].mxu0 %vm733_vm0, %v16858_v36  ;;  %v16924_v34 = vld [vmem:[%s24261_s4 + $0x6c4] ss:$24 sps:$4 sm:$0xff]   ;;  %v19917_v35 = vpack.c.bf16 %v1040_v33, %v1034_v32  ;;  %v1033_v36 = vld [vmem:[%s19621_s13 + $0xd0] sm:$0xff]  ;;  %v16922_v39 = vld [vmem:[%s24261_s4 + $0x6c0] ss:$24 sps:$4 sm:$0xff]  }
  0xed   : > { %844 = vmatprep.mubr.bf16.mxu0 %v24277_v0  ;;  %2816 = vmatpush1.bf16.msra.mxu0 %v16879_v40  ;;  %v16954_v7 = vld [vmem:[%s24261_s4 + $0x7e4] ss:$24 sps:$4 sm:$0xff]   ;;  %v16972_v20 = vld [vmem:[%s24261_s4 + $0x8a0] ss:$24 sps:$4 sm:$0xff]   ;;  %v16977_v21 = vld [vmem:[%s24261_s4 + $0x8d4] ss:$24 sps:$4 sm:$0xff]  }
  0xee   : > { %2897 = vmatpush1.bf16.msra.mxu1 %v16864_v37  ;;  %2817 = vmatprep.subr.bf16.mxu0 %v16891_v44  ;;  %v1039_v37 = vld [vmem:[%s19621_s13 + $0x100] sm:$0xff]  ;;  %v1046_v44 = vld [vmem:[%s19621_s13 + $0x138] sm:$0xff]  ;;  %v1017_v25 = vld [vmem:[%s19621_s13 + $0x50] sm:$0xff] }
  0xef   : > { %2898 = vmatprep.subr.bf16.mxu1 %v16865_v38  ;;  %v16918_v38 = vld [vmem:[%s19686_s3 + $0x40] sm:$0xff]   ;;  %v19926_v40 = vpack.c.bf16 %v1039_v37, %v1033_v36  ;;  %v16948_v8 = vld [vmem:[%s19686_s3 + $0x58] sm:$0xff]   ;;  %v16982_v32 = vld [vmem:[%s24261_s4 + $0x10] ss:$24 sps:$4 sm:$0xff]  }
  0xf0   : > { %v16987_v33 = vld [vmem:[%s24261_s4 + $0x44] ss:$24 sps:$4 sm:$0xff]   ;;  %v16985_v36 = vld [vmem:[%s24261_s4 + $0x40] ss:$24 sps:$4 sm:$0xff]   ;;  %v16994_v37 = vld [vmem:[%s24261_s4 + $0x74] ss:$24 sps:$4 sm:$0xff]  }
  0xf1   : > { %2818 = vmatpush1.bf16.msra.mxu0 %v16889_v43  ;;  %v16971_v43 = vld [vmem:[%s24261_s4 + $0x274] ss:$24 sps:$4 sm:$0xff]  }
  0xf2   : > { %2899 = vmatpush1.bf16.msra.mxu1 %v16867_v41  ;;  %2819 = vmatprep.subr.bf16.mxu0 %v16901_v49  ;;  %v16927_v41 = vld [vmem:[%s24261_s4 + $0x6f4] ss:$24 sps:$4 sm:$0xff]   ;;  %v1051_v49 = vld [vmem:[%s19621_s13 + $0x160] sm:$0xff] }
  0xf3   : > { %2900 = vmatprep.subr.bf16.mxu1 %v16872_v42  ;;  %v16969_v42 = vld [vmem:[%s24261_s4 + $0x270] ss:$24 sps:$4 sm:$0xff]  }
  0xf4   : > { %14783 = vmatmul.mubr.msk.bf16.gmra.mrb[12].mxu0 %vm733_vm0, %v16868_v45  ;;  %v1052_v45 = vld [vmem:[%s19621_s13 + $0x168] sm:$0xff] }
  0xf5   : > { %854 = vmatprep.mubr.bf16.mxu0 %v24277_v0  ;;  %2820 = vmatpush1.bf16.msra.mxu0 %v16899_v48  ;;  %v1045_v48 = vld [vmem:[%s19621_s13 + $0x130] sm:$0xff] }
  0xf6   : > { %2901 = vmatpush1.bf16.msra.mxu1 %v16874_v46  ;;  %2821 = vmatprep.subr.bf16.mxu0 %v16911_v59  ;;  %v16925_v46 = vld [vmem:[%s24261_s4 + $0x6f0] ss:$24 sps:$4 sm:$0xff]  }
  0xf7   : > { %2902 = vmatprep.subr.bf16.mxu1 %v16875_v47  ;;  %v19944_v47 = vpack.c.bf16 %v1052_v45, %v1046_v44  ;;  %v1042_v44 = vld [vmem:[%s19621_s13 + $0x118] sm:$0xff] }
  0xf8   : > { %v16988_v45 = vld [vmem:[%s19686_s3 + $0x78] sm:$0xff]  }
  0xf9   : > { %2822 = vmatpush1.bf16.msra.mxu0 %v16909_v58  ;;  %v16937_v58 = vld [vmem:[%s24261_s4 + $0x754] ss:$24 sps:$4 sm:$0xff]  }
  0xfa   : > { %2903 = vmatpush1.bf16.msra.mxu1 %v16877_v52  ;;  %2823 = vmatprep.subr.bf16.mxu0 %v16921_v63  ;;  %v16932_v52 = vld [vmem:[%s24261_s4 + $0x720] ss:$24 sps:$4 sm:$0xff]   ;;  %v16989_v63 = vld [vmem:[%s24261_s4 + $0x2d0] ss:$24 sps:$4 sm:$0xff]  }
  0xfb   : > { %2904 = vmatprep.subr.bf16.mxu1 %v16882_v54  ;;  %v19957_v54 = vpack.c.bf16 %v1051_v49, %v1045_v48  ;;  %v16992_v48 = vld [vmem:[%s24261_s4 + $0x70] ss:$24 sps:$4 sm:$0xff]  }
  0xfc   : > { %14784 = vmatmul.mubr.msk.bf16.gmra.mrb[16].mxu0 %vm733_vm0, %v16878_v55  ;;  %v16981_v55 = vld [vmem:[%s24261_s4 + $0x2a4] ss:$24 sps:$4 sm:$0xff]  }
  0xfd   : > { %864 = vmatprep.mubr.bf16.mxu0 %v24277_v0  ;;  %2824 = vmatpush1.bf16.msra.mxu0 %v16919_v62  ;;  %v16944_v62 = vld [vmem:[%s24261_s4 + $0x784] ss:$24 sps:$4 sm:$0xff]  }
  0xfe   : > { %2905 = vmatpush1.bf16.msra.mxu1 %v16884_v56  ;;  %2825 = vmatprep.subr.bf16.mxu0 %v16931_v6  ;;  %v1012_v56 = vld [vmem:[%s19621_s13 + $0x28] sm:$0xff] }
  0xff   : > { %2906 = vmatprep.subr.bf16.mxu1 %v16885_v57  ;;  %v1018_v57 = vld [vmem:[%s19621_s13 + $0x58] sm:$0xff]  ;;  %v16945_v6 = vld [vmem:[%s24261_s4 + $0x7b0] ss:$24 sps:$4 sm:$0xff]  }
 0x100   : > { %v19967_v59 = vpack.c.bf16 %v1018_v57, %v1012_v56  ;;  %v1013_v56 = vld [vmem:[%s19621_s13 + $0x30] sm:$0xff]  ;;  %v1035_v57 = vld [vmem:[%s19621_s13 + $0xe0] sm:$0xff] }
 0x101   : > { %2826 = vmatpush1.bf16.msra.mxu0 %v16929_v5  ;;  %v17000_v5 = vld [vmem:[%s24261_s4 + $0xc] ss:$24 sps:$4 sm:$0xff]  }
 0x102   : > { %2907 = vmatpush1.bf16.msra.mxu1 %v16887_v60  ;;  %2827 = vmatprep.subr.bf16.mxu0 %v16941_v13  ;;  %v16979_v60 = vld [vmem:[%s24261_s4 + $0x2a0] ss:$24 sps:$4 sm:$0xff]   ;;  %v16964_v13 = vld [vmem:[%s24261_s4 + $0x844] ss:$24 sps:$4 sm:$0xff]  }
 0x103   : > { %2908 = vmatprep.subr.bf16.mxu1 %v16892_v61  ;;  %v16935_v61 = vld [vmem:[%s24261_s4 + $0x750] ss:$24 sps:$4 sm:$0xff]  }
 0x104   : > { %14785 = vmatmul.mubr.msk.bf16.gmra.mrb[20].mxu0 %vm733_vm0, %v16888_v1  ;;  %v16991_v1 = vld [vmem:[%s24261_s4 + $0x2d4] ss:$24 sps:$4 sm:$0xff]  }
 0x105   : > { %874 = vmatprep.mubr.bf16.mxu0 %v24277_v0  ;;  %2828 = vmatpush1.bf16.msra.mxu0 %v16939_v15  ;;  %v16962_v15 = vld [vmem:[%s24261_s4 + $0x840] ss:$24 sps:$4 sm:$0xff]  }
 0x106   : > { %2909 = vmatpush1.bf16.msra.mxu1 %v16894_v2  ;;  %2829 = vmatprep.subr.bf16.mxu0 %v16951_v19  ;;  %v16938_v2 = vld [vmem:[%s19686_s3 + $0x50] sm:$0xff]   ;;  %v16968_v19 = vld [vmem:[%s19686_s3 + $0x68] sm:$0xff]  }
 0x107   : > { %2910 = vmatprep.subr.bf16.mxu1 %v16895_v3  ;;  %v16942_v3 = vld [vmem:[%s24261_s4 + $0x780] ss:$24 sps:$4 sm:$0xff]  }
 0x109   : > { %2830 = vmatpush1.bf16.msra.mxu0 %v16949_v18  ;;  %v16974_v18 = vld [vmem:[%s24261_s4 + $0x8a4] ss:$24 sps:$4 sm:$0xff]  }
 0x10a   : > { %2911 = vmatpush1.bf16.msra.mxu1 %v16897_v4  ;;  %2831 = vmatprep.subr.bf16.mxu0 %v16961_v31  ;;  %v16947_v4 = vld [vmem:[%s24261_s4 + $0x7b4] ss:$24 sps:$4 sm:$0xff]   ;;  %v20056_v31 = vpack.c.bf16 %v1017_v25, %v1011_v24  ;;  %v1038_v25 = vld [vmem:[%s19621_s13 + $0xf8] sm:$0xff] }
 0x10b   : > { %2953 = vmatprep.subr.bf16.mxu1 %v16904_v9  ;;  %v16952_v9 = vld [vmem:[%s24261_s4 + $0x7e0] ss:$24 sps:$4 sm:$0xff]   ;;  %v1032_v24 = vld [vmem:[%s19621_s13 + $0xc8] sm:$0xff] }
 0x10c   : > { %14786 = vmatmul.mubr.msk.bf16.gmra.mrb[24].mxu0 %vm733_vm0, %v16898_v10  ;;  %v16957_v10 = vld [vmem:[%s24261_s4 + $0x814] ss:$24 sps:$4 sm:$0xff]  }
 0x10d   : > { %2913 = vmatmul.mubr.bf16.vlgmr.msra.gmra.mrb[0].mxu1 %v19858_v12  ;;  %884 = vmatprep.mubr.bf16.mxu0 %v24277_v0 }
 0x10e   : > { %2954 = vmatpush1.bf16.msra.mxu1 %v16902_v11  ;;  %2922 = vmatprep.mubr.bf16.mxu1 %v19886_v22  ;;  %v16955_v11 = vld [vmem:[%s24261_s4 + $0x810] ss:$24 sps:$4 sm:$0xff]  }
 0x10f   : > { %2955 = vmatprep.subr.bf16.mxu1 %v16907_v14  ;;  %2832 = vmatpush1.bf16.msra.mxu0 %v16959_v30  ;;  %v16958_v14 = vld [vmem:[%s19686_s3 + $0x60] sm:$0xff]   ;;  %v16978_v30 = vld [vmem:[%s19686_s3 + $0x70] sm:$0xff]   ;;  %s25243_s3 = sld [smem:[#allocation144_spill]] }
 0x110   : > { %2833 = vmatprep.subr.bf16.mxu0 %v16971_v43  ;;  %v1036_v43 = vld [vmem:[%s19621_s13 + $0xe8] sm:$0xff] }
 0x112   : > { %2956 = vmatpush1.bf16.msra.mxu1 %v16905_v16  ;;  %v16967_v16 = vld [vmem:[%s24261_s4 + $0x874] ss:$24 sps:$4 sm:$0xff]  }
 0x113   : > { %2957 = vmatprep.subr.bf16.mxu1 %v16914_v17  ;;  %2834 = vmatpush1.bf16.msra.mxu0 %v16969_v42  ;;  %v16965_v17 = vld [vmem:[%s24261_s4 + $0x870] ss:$24 sps:$4 sm:$0xff]   ;;  %v1014_v42 = vld [vmem:[%s19621_s13 + $0x38] sm:$0xff] }
 0x114   : > { %14787 = vmatmul.mubr.msk.bf16.gmra.mrb[28].mxu0 %vm733_vm0, %v16908_v23  ;;  %2835 = vmatprep.subr.bf16.mxu0 %v16981_v55  ;;  %v16975_v23 = vld [vmem:[%s24261_s4 + $0x8d0] ss:$24 sps:$4 sm:$0xff]   ;;  %v1007_v55 = vld [vmem:[%s19621_s13] sm:$0xff] }
 0x115   : > { %2923 = vmatmul.mubr.bf16.gmra.mrb[4].mxu1 %v19895_v27  ;;  %894 = vmatprep.mubr.bf16.mxu0 %v24277_v0 }
 0x116   : > { %2958 = vmatpush1.bf16.msra.mxu1 %v16912_v26  ;;  %2932 = vmatprep.mubr.bf16.mxu1 %v19917_v35  ;;  %v16984_v26 = vld [vmem:[%s24261_s4 + $0x14] ss:$24 sps:$4 sm:$0xff]  }
 0x117   : > { %2959 = vmatprep.subr.bf16.mxu1 %v16917_v28  ;;  %2836 = vmatpush1.bf16.msra.mxu0 %v16979_v60  ;;  %v1024_v28 = vld [vmem:[%s19621_s13 + $0x88] sm:$0xff] }
 0x118   : > { %2837 = vmatprep.subr.bf16.mxu0 %v16991_v1  ;;  %v17003_v60 = vld [vmem:[%s24261_s4 + $0xd4] ss:$24 sps:$4 sm:$0xff]   ;;  %v20116_v1 = vpack.c.bf16 %v1013_v56, %v1007_v55  ;;  %v1043_v56 = vld [vmem:[%s19621_s13 + $0x120] sm:$0xff] }
 0x11a   : > { %2960 = vmatpush1.bf16.msra.mxu1 %v16915_v29  ;;  %v1030_v29 = vld [vmem:[%s19621_s13 + $0xb8] sm:$0xff] }
 0x11b   : > { %2961 = vmatprep.subr.bf16.mxu1 %v16924_v34  ;;  %2838 = vmatpush1.bf16.msra.mxu0 %v16989_v63  ;;  %v20064_v34 = vpack.c.bf16 %v1030_v29, %v1024_v28  ;;  %v1020_v63 = vld [vmem:[%s19621_s13 + $0x68] sm:$0xff]  ;;  %v17021_v28 = vld [vmem:[%s24261_s4 + $0x164] ss:$24 sps:$4 sm:$0xff]   ;;  %v17016_v29 = vld [vmem:[%s24261_s4 + $0x98] ss:$24 sps:$4 sm:$0xff]  }
 0x11c   : > { %14788 = vmatmul.mubr.msk.bf16.gmra.mrb[32].mxu0 %vm733_vm0, %v16918_v38  ;;  %3026 = vmatprep.subr.bf16.mxu0 %v17000_v5  ;;  %v1008_v38 = vld [vmem:[%s19621_s13 + $0x8] sm:$0xff]  ;;  %v1054_v5 = vld [vmem:[%s19621_s13 + $0x178] sm:$0xff] }
 0x11d   : > { %2933 = vmatmul.mubr.bf16.gmra.mrb[8].mxu1 %v19926_v40  ;;  %904 = vmatprep.mubr.bf16.mxu0 %v24277_v0  ;;  %v20088_v49 = vpack.c.bf16 %v1014_v42, %v1008_v38  ;;  %v17027_v38 = vld [vmem:[%s24261_s4 + $0x194] ss:$24 sps:$4 sm:$0xff]  }
 0x11e   : > { %2962 = vmatpush1.bf16.msra.mxu1 %v16922_v39  ;;  %2942 = vmatprep.mubr.bf16.mxu1 %v19944_v47  ;;  %v1023_v39 = vld [vmem:[%s19621_s13 + $0x80] sm:$0xff] }
 0x11f   : > { %2963 = vmatprep.subr.bf16.mxu1 %v16927_v41  ;;  %v1029_v41 = vld [vmem:[%s19621_s13 + $0xb0] sm:$0xff] }
 0x122   : > { %2964 = vmatpush1.bf16.msra.mxu1 %v16925_v46  ;;  %v20083_v46 = vpack.c.bf16 %v1029_v41, %v1023_v39  ;;  %v17022_v39 = vld [vmem:[%s24261_s4 + $0xc8] ss:$24 sps:$4 sm:$0xff]  }
 0x123   : > { %2965 = vmatprep.subr.bf16.mxu1 %v16934_v50  ;;  %v16997_v50 = vld [vmem:[%s24261_s4 + $0xa4] ss:$24 sps:$4 sm:$0xff]   ;;  %v17025_v41 = vld [vmem:[%s24261_s4 + $0x190] ss:$24 sps:$4 sm:$0xff]  }
 0x124   : > { %14789 = vmatmul.mubr.msk.bf16.gmra.mrb[36].mxu0 %vm733_vm0, %v16928_v51  ;;  %v20093_v51 = vpack.c.bf16 %v1042_v44, %v1036_v43  ;;  %v1044_v43 = vld [vmem:[%s19621_s13 + $0x128] sm:$0xff]  ;;  %v1050_v44 = vld [vmem:[%s19621_s13 + $0x158] sm:$0xff] }
 0x125   : > { %2943 = vmatmul.mubr.bf16.gmra.mrb[12].mxu1 %v19957_v54  ;;  %914 = vmatprep.mubr.bf16.mxu0 %v24277_v0  ;;  %v20213_v55 = vpack.c.bf16 %v1050_v44, %v1044_v43  ;;  %v17084_v43 = vld [vmem:[%s24261_s4 + $0x2ac] ss:$24 sps:$4 sm:$0xff]  }
 0x126   : > { %2966 = vmatpush1.bf16.msra.mxu1 %v16932_v52  ;;  %2985 = vmatprep.mubr.bf16.mxu1 %v19967_v59  ;;  %v16995_v52 = vld [vmem:[%s24261_s4 + $0xa0] ss:$24 sps:$4 sm:$0xff]   ;;  %v17087_v44 = vld [vmem:[%s24261_s4 + $0x374] ss:$24 sps:$4 sm:$0xff]  }
 0x127   : > { %2967 = vmatprep.subr.bf16.mxu1 %v16937_v58  ;;  %v1041_v58 = vld [vmem:[%s19621_s13 + $0x110] sm:$0xff] }
 0x12a   : > { %2968 = vmatpush1.bf16.msra.mxu1 %v16935_v61  ;;  %v16998_v61 = vld [vmem:[%s24261_s4 + $0x8] ss:$24 sps:$4 sm:$0xff]  }
 0x12b   : > { %2969 = vmatprep.subr.bf16.mxu1 %v16944_v62  ;;  %v17001_v62 = vld [vmem:[%s24261_s4 + $0xd0] ss:$24 sps:$4 sm:$0xff]  }
 0x12c   : > { %14790 = vmatmul.mubr.msk.bf16.gmra.mrb[40].mxu0 %vm733_vm0, %v16938_v2  ;;  %v20118_v2 = vpack.c.bf16 %v1041_v58, %v1035_v57  ;;  %v1049_v57 = vld [vmem:[%s19621_s13 + $0x150] sm:$0xff]  ;;  %v17036_v58 = vld [vmem:[%s24261_s4 + $0x12c] ss:$24 sps:$4 sm:$0xff]  }
 0x12d   : > { %924 = vmatprep.mubr.bf16.mxu0 %v24277_v0 }
 0x12e   : > { %2970 = vmatpush1.bf16.msra.mxu1 %v16942_v3  ;;  %v1026_v3 = vld [vmem:[%s19621_s13 + $0x98] sm:$0xff] }
 0x12f   : > { %2971 = vmatprep.subr.bf16.mxu1 %v16947_v4  ;;  %v1048_v4 = vld [vmem:[%s19621_s13 + $0x148] sm:$0xff] }
 0x132   : > { %2972 = vmatpush1.bf16.msra.mxu1 %v16945_v6  ;;  %v17006_v6 = vld [vmem:[%s24261_s4 + $0x3c] ss:$24 sps:$4 sm:$0xff]  }
 0x133   : > { %2973 = vmatprep.subr.bf16.mxu1 %v16954_v7  ;;  %v17009_v7 = vld [vmem:[%s24261_s4 + $0x104] ss:$24 sps:$4 sm:$0xff]  }
 0x134   : > { %14791 = vmatmul.mubr.msk.bf16.gmra.mrb[44].mxu0 %vm733_vm0, %v16948_v8  ;;  %v17004_v8 = vld [vmem:[%s24261_s4 + $0x38] ss:$24 sps:$4 sm:$0xff]  }
 0x135   : > { %934 = vmatprep.mubr.bf16.mxu0 %v24277_v0 }
 0x136   : > { %2974 = vmatpush1.bf16.msra.mxu1 %v16952_v9  ;;  %v17007_v9 = vld [vmem:[%s24261_s4 + $0x100] ss:$24 sps:$4 sm:$0xff]  }
 0x137   : > { %2975 = vmatprep.subr.bf16.mxu1 %v16957_v10  ;;  %v20135_v10 = vpack.c.bf16 %v1026_v3, %v1020_v63  ;;  %v17037_v63 = vld [vmem:[%s24261_s4 + $0x1f0] ss:$24 sps:$4 sm:$0xff]   ;;  %v17042_v3 = vld [vmem:[%s24261_s4 + $0x15c] ss:$24 sps:$4 sm:$0xff]  }
 0x13a   : > { %2976 = vmatpush1.bf16.msra.mxu1 %v16955_v11  ;;  %v1019_v11 = vld [vmem:[%s19621_s13 + $0x60] sm:$0xff] }
 0x13b   : > { %2977 = vmatprep.subr.bf16.mxu1 %v16964_v13  ;;  %v20138_v13 = vpack.c.bf16 %v1054_v5, %v1048_v4  ;;  %v17045_v4 = vld [vmem:[%s24261_s4 + $0x224] ss:$24 sps:$4 sm:$0xff]   ;;  %v17040_v5 = vld [vmem:[%s24261_s4 + $0x158] ss:$24 sps:$4 sm:$0xff]  }
 0x13c   : > { %14792 = vmatmul.mubr.msk.bf16.gmra.mrb[48].mxu0 %vm733_vm0, %v16958_v14  ;;  %v17012_v14 = vld [vmem:[%s24261_s4 + $0x6c] ss:$24 sps:$4 sm:$0xff]  }
 0x13d   : > { %944 = vmatprep.mubr.bf16.mxu0 %v24277_v0 }
 0x13e   : > { %2978 = vmatpush1.bf16.msra.mxu1 %v16962_v15  ;;  %v1025_v15 = vld [vmem:[%s19621_s13 + $0x90] sm:$0xff] }
 0x13f   : > { %2979 = vmatprep.subr.bf16.mxu1 %v16967_v16  ;;  %v1047_v16 = vld [vmem:[%s19621_s13 + $0x140] sm:$0xff] }
 0x142   : > { %2980 = vmatpush1.bf16.msra.mxu1 %v16965_v17  ;;  %v1053_v17 = vld [vmem:[%s19621_s13 + $0x170] sm:$0xff] }
 0x143   : > { %2981 = vmatprep.subr.bf16.mxu1 %v16974_v18  ;;  %v17015_v18 = vld [vmem:[%s24261_s4 + $0x134] ss:$24 sps:$4 sm:$0xff]  }
 0x144   : > { %14793 = vmatmul.mubr.msk.bf16.gmra.mrb[52].mxu0 %vm733_vm0, %v16968_v19  ;;  %v17010_v19 = vld [vmem:[%s24261_s4 + $0x68] ss:$24 sps:$4 sm:$0xff]  }
 0x145   : > { %954 = vmatprep.mubr.bf16.mxu0 %v24277_v0 }
 0x146   : > { %2982 = vmatpush1.bf16.msra.mxu1 %v16972_v20  ;;  %v17013_v20 = vld [vmem:[%s24261_s4 + $0x130] ss:$24 sps:$4 sm:$0xff]  }
 0x147   : > { %2983 = vmatprep.subr.bf16.mxu1 %v16977_v21  ;;  %v20159_v21 = vpack.c.bf16 %v1025_v15, %v1019_v11  ;;  %v17049_v11 = vld [vmem:[%s24261_s4 + $0x250] ss:$24 sps:$4 sm:$0xff]  }
 0x148   : > { %v17052_v15 = vld [vmem:[%s24261_s4 + $0x1b8] ss:$24 sps:$4 sm:$0xff]  }
 0x14a   : > { %2984 = vmatpush1.bf16.msra.mxu1 %v16975_v23  ;;  %v20161_v23 = vpack.c.bf16 %v1053_v17, %v1047_v16  ;;  %v17055_v16 = vld [vmem:[%s24261_s4 + $0x280] ss:$24 sps:$4 sm:$0xff]   ;;  %v17060_v17 = vld [vmem:[%s24261_s4 + $0x1ec] ss:$24 sps:$4 sm:$0xff]  }
 0x14b   : > { %3245 = vmatprep.subr.bf16.mxu1 %v16984_v26  ;;  %v17018_v26 = vld [vmem:[%s24261_s4 + $0x9c] ss:$24 sps:$4 sm:$0xff]  }
 0x14c   : > { %14794 = vmatmul.mubr.msk.bf16.gmra.mrb[56].mxu0 %vm733_vm0, %v16978_v30  ;;  %v17019_v30 = vld [vmem:[%s24261_s4 + $0x160] ss:$24 sps:$4 sm:$0xff]  }
 0x14d   : > { %2986 = vmatmul.mubr.bf16.vlgmr.msra.gmra.mrb[0].mxu1 %v20056_v31  ;;  %964 = vmatprep.mubr.bf16.mxu0 %v24277_v0 }
 0x14e   : > { %3246 = vmatpush1.bf16.msra.mxu1 %v16982_v32  ;;  %2995 = vmatprep.mubr.bf16.mxu1 %v20064_v34  ;;  %v20177_v32 = vpack.c.bf16 %v1038_v25, %v1032_v24  ;;  %v17066_v24 = vld [vmem:[%s24261_s4 + $0x21c] ss:$24 sps:$4 sm:$0xff]  }
 0x14f   : > { %3247 = vmatprep.subr.bf16.mxu1 %v16987_v33  ;;  %v17024_v33 = vld [vmem:[%s24261_s4 + $0xcc] ss:$24 sps:$4 sm:$0xff]  }
 0x150   : > { %v17069_v25 = vld [vmem:[%s24261_s4 + $0x2e4] ss:$24 sps:$4 sm:$0xff]  }
 0x152   : > { %3248 = vmatpush1.bf16.msra.mxu1 %v16985_v36  ;;  %v1031_v36 = vld [vmem:[%s19621_s13 + $0xc0] sm:$0xff] }
 0x153   : > { %3249 = vmatprep.subr.bf16.mxu1 %v16994_v37  ;;  %v1037_v37 = vld [vmem:[%s19621_s13 + $0xf0] sm:$0xff] }
 0x154   : > { %14795 = vmatmul.mubr.msk.bf16.gmra.mrb[60].mxu0 %vm733_vm0, %v16988_v45  ;;  %v20197_v42 = vpack.c.bf16 %v1037_v37, %v1031_v36  ;;  %v17030_v45 = vld [vmem:[%s24261_s4 + $0xfc] ss:$24 sps:$4 sm:$0xff]   ;;  %v17073_v36 = vld [vmem:[%s24261_s4 + $0x310] ss:$24 sps:$4 sm:$0xff]  }
 0x155   : > { %2996 = vmatmul.mubr.bf16.gmra.mrb[4].mxu1 %v20083_v46  ;;  %2839 = vmatprep.mubr.bf16.mxu0 %v20088_v49  ;;  %v17078_v37 = vld [vmem:[%s24261_s4 + $0x27c] ss:$24 sps:$4 sm:$0xff]  }
 0x156   : > { %3250 = vmatpush1.bf16.msra.mxu1 %v16992_v48  ;;  %3005 = vmatprep.mubr.bf16.mxu1 %v20093_v51  ;;  %v17033_v48 = vld [vmem:[%s24261_s4 + $0x1c4] ss:$24 sps:$4 sm:$0xff]  }
 0x157   : > { %3251 = vmatprep.subr.bf16.mxu1 %v16997_v50  ;;  %v17028_v50 = vld [vmem:[%s24261_s4 + $0xf8] ss:$24 sps:$4 sm:$0xff]  }
 0x15a   : > { %3252 = vmatpush1.bf16.msra.mxu1 %v16995_v52  ;;  %v17031_v52 = vld [vmem:[%s24261_s4 + $0x1c0] ss:$24 sps:$4 sm:$0xff]  }
 0x15b   : > { %3253 = vmatprep.subr.bf16.mxu1 %v17003_v60  ;;  %v17039_v60 = vld [vmem:[%s24261_s4 + $0x1f4] ss:$24 sps:$4 sm:$0xff]  }
 0x15c   : > { %2840 = vmatmul.mubr.bf16.vlgmr.msra.gmra.mrb[64].mxu0 %v20116_v1 }
 0x15d   : > { %3006 = vmatmul.mubr.bf16.gmra.mrb[8].mxu1 %v20118_v2  ;;  %3027 = vmatpush1.bf16.msra.mxu0 %v16998_v61  ;;  %v17034_v61 = vld [vmem:[%s24261_s4 + $0x128] ss:$24 sps:$4 sm:$0xff]  }
 0x15e   : > { %3254 = vmatpush1.bf16.msra.mxu1 %v17001_v62  ;;  %3028 = vmatprep.subr.bf16.mxu0 %v17006_v6  ;;  %v20228_v62 = vpack.c.bf16 %v1049_v57, %v1043_v56  ;;  %v17043_v6 = vld [vmem:[%s24261_s4 + $0x220] ss:$24 sps:$4 sm:$0xff]  }
 0x15f   : > { %3255 = vmatprep.subr.bf16.mxu1 %v17009_v7  ;;  %2849 = vmatprep.mubr.bf16.mxu0 %v20135_v10  ;;  %v17048_v7 = vld [vmem:[%s24261_s4 + $0x18c] ss:$24 sps:$4 sm:$0xff]   ;;  %v17088_v56 = vld [vmem:[%s24261_s4 + $0x2d8] ss:$24 sps:$4 sm:$0xff]  }
 0x160   : > { %3015 = vmatprep.mubr.bf16.mxu1 %v20138_v13  ;;  %v17091_v57 = vld [vmem:[%s24261_s4 + $0x3a0] ss:$24 sps:$4 sm:$0xff]  }
 0x161   : > { %3029 = vmatpush1.bf16.msra.mxu0 %v17004_v8  ;;  %v17051_v8 = vld [vmem:[%s24261_s4 + $0x254] ss:$24 sps:$4 sm:$0xff]  }
 0x162   : > { %3256 = vmatpush1.bf16.msra.mxu1 %v17007_v9  ;;  %3030 = vmatprep.subr.bf16.mxu0 %v17012_v14  ;;  %v17046_v9 = vld [vmem:[%s24261_s4 + $0x188] ss:$24 sps:$4 sm:$0xff]   ;;  %v17054_v14 = vld [vmem:[%s24261_s4 + $0x1bc] ss:$24 sps:$4 sm:$0xff]  }
 0x163   : > { %3257 = vmatprep.subr.bf16.mxu1 %v17015_v18  ;;  %v17063_v18 = vld [vmem:[%s24261_s4 + $0x2b4] ss:$24 sps:$4 sm:$0xff]  }
 0x164   : > { %2850 = vmatmul.mubr.bf16.gmra.mrb[68].mxu0 %v20159_v21 }
 0x165   : > { %3016 = vmatmul.mubr.bf16.gmra.mrb[12].mxu1 %v20161_v23  ;;  %3031 = vmatpush1.bf16.msra.mxu0 %v17010_v19  ;;  %v17058_v19 = vld [vmem:[%s24261_s4 + $0x1e8] ss:$24 sps:$4 sm:$0xff]  }
 0x166   : > { %3258 = vmatpush1.bf16.msra.mxu1 %v17013_v20  ;;  %3032 = vmatprep.subr.bf16.mxu0 %v17018_v26  ;;  %v17061_v20 = vld [vmem:[%s24261_s4 + $0x2b0] ss:$24 sps:$4 sm:$0xff]  }
 0x167   : > { %3259 = vmatprep.subr.bf16.mxu1 %v17021_v28  ;;  %2859 = vmatprep.mubr.bf16.mxu0 %v20177_v32  ;;  %v17064_v26 = vld [vmem:[%s24261_s4 + $0x218] ss:$24 sps:$4 sm:$0xff]  }
 0x168   : > { %3277 = vmatprep.mubr.bf16.mxu1 %v20088_v49  ;;  %v17067_v28 = vld [vmem:[%s24261_s4 + $0x2e0] ss:$24 sps:$4 sm:$0xff]  }
 0x169   : > { %3033 = vmatpush1.bf16.msra.mxu0 %v17016_v29  ;;  %v17072_v29 = vld [vmem:[%s24261_s4 + $0x24c] ss:$24 sps:$4 sm:$0xff]  }
 0x16a   : > { %3260 = vmatpush1.bf16.msra.mxu1 %v17019_v30  ;;  %3034 = vmatprep.subr.bf16.mxu0 %v17024_v33  ;;  %v17075_v30 = vld [vmem:[%s24261_s4 + $0x314] ss:$24 sps:$4 sm:$0xff]   ;;  %v17070_v33 = vld [vmem:[%s24261_s4 + $0x248] ss:$24 sps:$4 sm:$0xff]  }
 0x16b   : > { %3261 = vmatprep.subr.bf16.mxu1 %v17027_v38  ;;  %v17081_v38 = vld [vmem:[%s24261_s4 + $0x344] ss:$24 sps:$4 sm:$0xff]  }
 0x16c   : > { %2860 = vmatmul.mubr.bf16.gmra.mrb[72].mxu0 %v20197_v42 }
 0x16d   : > { %3035 = vmatpush1.bf16.msra.mxu0 %v17022_v39  ;;  %2869 = vmatprep.mubr.bf16.mxu0 %v20213_v55  ;;  %v17076_v39 = vld [vmem:[%s24261_s4 + $0x278] ss:$24 sps:$4 sm:$0xff]  }
 0x16e   : > { %3262 = vmatpush1.bf16.msra.mxu1 %v17025_v41  ;;  %3036 = vmatprep.subr.bf16.mxu0 %v17030_v45  ;;  %v17079_v41 = vld [vmem:[%s24261_s4 + $0x340] ss:$24 sps:$4 sm:$0xff]  }
 0x16f   : > { %3263 = vmatprep.subr.bf16.mxu1 %v17033_v48  ;;  %v17082_v45 = vld [vmem:[%s24261_s4 + $0x2a8] ss:$24 sps:$4 sm:$0xff]  }
 0x170   : > { %v17085_v48 = vld [vmem:[%s24261_s4 + $0x370] ss:$24 sps:$4 sm:$0xff]  }
 0x171   : > { %3037 = vmatpush1.bf16.msra.mxu0 %v17028_v50  ;;  %v17090_v50 = vld [vmem:[%s24261_s4 + $0x2dc] ss:$24 sps:$4 sm:$0xff]  }
 0x172   : > { %3264 = vmatpush1.bf16.msra.mxu1 %v17031_v52  ;;  %3038 = vmatprep.subr.bf16.mxu0 %v17036_v58  ;;  %v17093_v52 = vld [vmem:[%s24261_s4 + $0x3a4] ss:$24 sps:$4 sm:$0xff]  }
 0x173   : > { %3265 = vmatprep.subr.bf16.mxu1 %v17039_v60  ;;  %v17096_v58 = vld [vmem:[%s24261_s4 + $0x30c] ss:$24 sps:$4 sm:$0xff]  }
 0x174   : > { %2870 = vmatmul.mubr.bf16.gmra.mrb[76].mxu0 %v20228_v62  ;;  %v17099_v60 = vld [vmem:[%s24261_s4 + $0x3d4] ss:$24 sps:$4 sm:$0xff]  }
 0x175   : > { %3039 = vmatpush1.bf16.msra.mxu0 %v17034_v61  ;;  %3058 = vmatprep.mubr.bf16.mxu0 %v20088_v49  ;;  %v17057_v49 = vld [vmem:[%s24261_s4 + $0x284] ss:$24 sps:$4 sm:$0xff]   ;;  %v17094_v61 = vld [vmem:[%s24261_s4 + $0x308] ss:$24 sps:$4 sm:$0xff]  }
 0x176   : > { %3266 = vmatpush1.bf16.msra.mxu1 %v17037_v63  ;;  %3040 = vmatprep.subr.bf16.mxu0 %v17042_v3  ;;  %v17097_v63 = vld [vmem:[%s24261_s4 + $0x3d0] ss:$24 sps:$4 sm:$0xff]   ;;  %v17102_v3 = vld [vmem:[%s24261_s4 + $0x33c] ss:$24 sps:$4 sm:$0xff]  }
 0x177   : > { %3267 = vmatprep.subr.bf16.mxu1 %v17045_v4  ;;  %v17105_v4 = vld [vmem:[%s24261_s4 + $0x404] ss:$24 sps:$4 sm:$0xff]  }
 0x179   : > { %3041 = vmatpush1.bf16.msra.mxu0 %v17040_v5  ;;  %v17100_v5 = vld [vmem:[%s24261_s4 + $0x338] ss:$24 sps:$4 sm:$0xff]  }
 0x17a   : > { %3268 = vmatpush1.bf16.msra.mxu1 %v17043_v6  ;;  %3042 = vmatprep.subr.bf16.mxu0 %v17048_v7  ;;  %v17103_v6 = vld [vmem:[%s24261_s4 + $0x400] ss:$24 sps:$4 sm:$0xff]   ;;  %v17108_v7 = vld [vmem:[%s24261_s4 + $0x36c] ss:$24 sps:$4 sm:$0xff]  }
 0x17b   : > { %3269 = vmatprep.subr.bf16.mxu1 %v17051_v8  ;;  %v17106_v8 = vld [vmem:[%s24261_s4 + $0x368] ss:$24 sps:$4 sm:$0xff]  }
 0x17d   : > { %3043 = vmatpush1.bf16.msra.mxu0 %v17046_v9  ;;  %v17109_v9 = vld [vmem:[%s24261_s4 + $0x430] ss:$24 sps:$4 sm:$0xff]  }
 0x17e   : > { %3270 = vmatpush1.bf16.msra.mxu1 %v17049_v11  ;;  %3044 = vmatprep.subr.bf16.mxu0 %v17054_v14  ;;  %v17114_v11 = vld [vmem:[%s24261_s4 + $0x39c] ss:$24 sps:$4 sm:$0xff]   ;;  %v24276_v14 = vlaneseq }
 0x17f   : > { %3271 = vmatprep.subr.bf16.mxu1 %v17057_v49  ;;  %v17112_v49 = vld [vmem:[%s24261_s4 + $0x398] ss:$24 sps:$4 sm:$0xff]  }
 0x181   : > { %3045 = vmatpush1.bf16.msra.mxu0 %v17052_v15  ;;  %v17115_v15 = vld [vmem:[%s24261_s4 + $0x460] ss:$24 sps:$4 sm:$0xff]  }
 0x182   : > { %3272 = vmatpush1.bf16.msra.mxu1 %v17055_v16  ;;  %3046 = vmatprep.subr.bf16.mxu0 %v17060_v17  ;;  %v17120_v16 = vld [vmem:[%s24261_s4 + $0x3cc] ss:$24 sps:$4 sm:$0xff]  }
 0x183   : > { %3273 = vmatprep.subr.bf16.mxu1 %v17063_v18  ;;  %v17123_v17 = vld [vmem:[%s24261_s4 + $0x494] ss:$24 sps:$4 sm:$0xff]   ;;  %v17118_v18 = vld [vmem:[%s24261_s4 + $0x3c8] ss:$24 sps:$4 sm:$0xff]  }
 0x185   : > { %3047 = vmatpush1.bf16.msra.mxu0 %v17058_v19  ;;  %v17121_v19 = vld [vmem:[%s24261_s4 + $0x490] ss:$24 sps:$4 sm:$0xff]  }
 0x186   : > { %3274 = vmatpush1.bf16.msra.mxu1 %v17061_v20  ;;  %3048 = vmatprep.subr.bf16.mxu0 %v17066_v24  ;;  %v17129_v24 = vld [vmem:[%s24261_s4 + $0x4c4] ss:$24 sps:$4 sm:$0xff]  }
 0x187   : > { %3275 = vmatprep.subr.bf16.mxu1 %v17069_v25  ;;  %v601_v25 = vld [vmem:[%s24595_s30] sm:$0x3]  ;;  %s19211_s30 = scalar_lea.vmem %s19210_s29, 12288 }
 0x188   : > { %p19213_p2 = scmp.lt.s32.totalorder %s19211_s30, %s19205_s5 }
 0x189   : > { %3049 = vmatpush1.bf16.msra.mxu0 %v17064_v26 }
 0x18a   : > { %3276 = vmatpush1.bf16.msra.mxu1 %v17067_v28  ;;  %3050 = vmatprep.subr.bf16.mxu0 %v17072_v29  ;;  %v17124_v28 = vld [vmem:[%s24261_s4 + $0x3f8] ss:$24 sps:$4 sm:$0xff]   ;;  %p19214_p8 = por %p19213_p2, %p19212_p0 }
 0x18b   : > { %3318 = vmatprep.subr.bf16.mxu1 %v17075_v30  ;;  %v17127_v29 = vld [vmem:[%s24261_s4 + $0x4c0] ss:$24 sps:$4 sm:$0xff]  }
 0x18c   : > { %p19215_p6 = pnand %p19214_p8, %p19208_p13 }
 0x18d   : > { %3278 = vmatmul.mubr.bf16.vlgmr.msra.gmra.mrb[16].mxu1 %v20116_v1  ;;  %3051 = vmatpush1.bf16.msra.mxu0 %v17070_v33  ;;  %v17132_v33 = vld [vmem:[%s24261_s4 + $0x42c] ss:$24 sps:$4 sm:$0xff]  }
 0x18e   : > { %3319 = vmatpush1.bf16.msra.mxu1 %v17073_v36  ;;  %3052 = vmatprep.subr.bf16.mxu0 %v17078_v37  ;;  %v17135_v36 = vld [vmem:[%s24261_s4 + $0x4f4] ss:$24 sps:$4 sm:$0xff]  }
 0x18f   : > { %3320 = vmatprep.subr.bf16.mxu1 %v17081_v38  ;;  %3287 = vmatprep.mubr.bf16.mxu1 %v20135_v10 }
 0x191   : > { %3053 = vmatpush1.bf16.msra.mxu0 %v17076_v39  ;;  %v17130_v39 = vld [vmem:[%s24261_s4 + $0x428] ss:$24 sps:$4 sm:$0xff]  }
 0x192   : > { %3321 = vmatpush1.bf16.msra.mxu1 %v17079_v41  ;;  %3054 = vmatprep.subr.bf16.mxu0 %v17084_v43  ;;  %v17133_v43 = vld [vmem:[%s24261_s4 + $0x4f0] ss:$24 sps:$4 sm:$0xff]  }
 0x193   : > { %3322 = vmatprep.subr.bf16.mxu1 %v17087_v44 }
 0x195   : > { %3288 = vmatmul.mubr.bf16.gmra.mrb[20].mxu1 %v20159_v21  ;;  %3055 = vmatpush1.bf16.msra.mxu0 %v17082_v45 }
 0x196   : > { %3323 = vmatpush1.bf16.msra.mxu1 %v17085_v48  ;;  %3056 = vmatprep.subr.bf16.mxu0 %v17090_v50  ;;  %v17141_v50 = vld [vmem:[%s24261_s4 + $0x524] ss:$24 sps:$4 sm:$0xff]  }
 0x197   : > { %3324 = vmatprep.subr.bf16.mxu1 %v17093_v52  ;;  %3297 = vmatprep.mubr.bf16.mxu1 %v20177_v32 }
 0x199   : > { %3057 = vmatpush1.bf16.msra.mxu0 %v17088_v56 }
 0x19a   : > { %3325 = vmatpush1.bf16.msra.mxu1 %v17091_v57  ;;  %3099 = vmatprep.subr.bf16.mxu0 %v17096_v58  ;;  %v17136_v58 = vld [vmem:[%s24261_s4 + $0x458] ss:$24 sps:$4 sm:$0xff]  }
 0x19b   : > { %3326 = vmatprep.subr.bf16.mxu1 %v17099_v60 }
 0x19c   : > { %3059 = vmatmul.mubr.bf16.vlgmr.msra.gmra.mrb[80].mxu0 %v20116_v1  ;;  %v17111_v1 = vld [vmem:[%s24261_s4 + $0x434] ss:$24 sps:$4 sm:$0xff]  }
 0x19d   : > { %3298 = vmatmul.mubr.bf16.gmra.mrb[24].mxu1 %v20197_v42  ;;  %3100 = vmatpush1.bf16.msra.mxu0 %v17094_v61  ;;  %v17139_v61 = vld [vmem:[%s24261_s4 + $0x520] ss:$24 sps:$4 sm:$0xff]  }
 0x19e   : > { %3327 = vmatpush1.bf16.msra.mxu1 %v17097_v63  ;;  %3101 = vmatprep.subr.bf16.mxu0 %v17102_v3  ;;  %v17144_v63 = vld [vmem:[%s24261_s4 + $0x48c] ss:$24 sps:$4 sm:$0xff]  }
 0x19f   : > { %3328 = vmatprep.subr.bf16.mxu1 %v17105_v4  ;;  %3068 = vmatprep.mubr.bf16.mxu0 %v20135_v10  ;;  %v17117_v10 = vld [vmem:[%s24261_s4 + $0x464] ss:$24 sps:$4 sm:$0xff]   ;;  %v17147_v3 = vld [vmem:[%s24261_s4 + $0x554] ss:$24 sps:$4 sm:$0xff]  }
 0x1a0   : > { %3307 = vmatprep.mubr.bf16.mxu1 %v20213_v55 }
 0x1a1   : > { %3102 = vmatpush1.bf16.msra.mxu0 %v17100_v5  ;;  %v17142_v5 = vld [vmem:[%s24261_s4 + $0x488] ss:$24 sps:$4 sm:$0xff]  }
 0x1a2   : > { %3329 = vmatpush1.bf16.msra.mxu1 %v17103_v6  ;;  %3103 = vmatprep.subr.bf16.mxu0 %v17108_v7  ;;  %v17145_v7 = vld [vmem:[%s24261_s4 + $0x550] ss:$24 sps:$4 sm:$0xff]  }
 0x1a3   : > { %3330 = vmatprep.subr.bf16.mxu1 %v17111_v1 }
 0x1a4   : > { %3069 = vmatmul.mubr.bf16.gmra.mrb[84].mxu0 %v20159_v21  ;;  %v20408_v21 = vshrl.u32 %v24276_v14, 7 }
 0x1a5   : > { %3308 = vmatmul.mubr.bf16.gmra.mrb[28].mxu1 %v20228_v62  ;;  %3104 = vmatpush1.bf16.msra.mxu0 %v17106_v8 }
 0x1a6   : > { %3331 = vmatpush1.bf16.msra.mxu1 %v17109_v9  ;;  %3105 = vmatprep.subr.bf16.mxu0 %v17114_v11  ;;  %24593 = vst [vmem:[#allocation19_spill] sm:$0xff] %v20408_v21  ;;  %v20419_v20 = vsub.s32 0, %v20408_v21  ;;  %v20431_v26 = vsub.s32 1, %v20408_v21  ;;  %v17153_v11 = vld [vmem:[%s24261_s4 + $0x584] ss:$24 sps:$4 sm:$0xff]  }
 0x1a7   : > { %3332 = vmatprep.subr.bf16.mxu1 %v17117_v10  ;;  %3078 = vmatprep.mubr.bf16.mxu0 %v20177_v32  ;;  %v17126_v32 = vld [vmem:[%s24261_s4 + $0x3fc] ss:$24 sps:$4 sm:$0xff]  }
 0x1a8   : > { %3350 = vmatprep.mubr.bf16.mxu1 %v19798_v53  ;;  %24594 = vst [vmem:[#allocation20_spill] sm:$0xff] %v20419_v20  ;;  %24596 = vst [vmem:[#allocation21_spill] sm:$0xff] %v20431_v26  ;;  %v20441_v30 = vrot.slane %v601_v25, %v20419_v20  ;;  %v20450_v37 = vrot.slane %v601_v25, %v20431_v26  ;;  %v17345_v20 = vld [vmem:[#allocation5 + $0x27c] ss:$24 sps:$4 sm:$0xff]   ;;  %v17343_v26 = vld [vmem:[#allocation5 + $0x278] ss:$24 sps:$4 sm:$0xff]  }
 0x1a9   : > { %3106 = vmatpush1.bf16.msra.mxu0 %v17112_v49 }
 0x1aa   : > { %3333 = vmatpush1.bf16.msra.mxu1 %v17115_v15  ;;  %3107 = vmatprep.subr.bf16.mxu0 %v17120_v16  ;;  %v17148_v16 = vld [vmem:[%s24261_s4 + $0x4b8] ss:$24 sps:$4 sm:$0xff]  }
 0x1ab   : > { %3334 = vmatprep.subr.bf16.mxu1 %v17123_v17 }
 0x1ac   : > { %3079 = vmatmul.mubr.bf16.gmra.mrb[88].mxu0 %v20197_v42 }
 0x1ad   : > { %3108 = vmatpush1.bf16.msra.mxu0 %v17118_v18  ;;  %3088 = vmatprep.mubr.bf16.mxu0 %v20213_v55  ;;  %v17138_v55 = vld [vmem:[%s24261_s4 + $0x45c] ss:$24 sps:$4 sm:$0xff]   ;;  %v17151_v18 = vld [vmem:[%s24261_s4 + $0x580] ss:$24 sps:$4 sm:$0xff]  }
 0x1ae   : > { %3335 = vmatpush1.bf16.msra.mxu1 %v17121_v19  ;;  %3109 = vmatprep.subr.bf16.mxu0 %v17126_v32  ;;  %v17156_v19 = vld [vmem:[%s24261_s4 + $0x4ec] ss:$24 sps:$4 sm:$0xff]  }
 0x1af   : > { %3336 = vmatprep.subr.bf16.mxu1 %v17129_v24  ;;  %v816_v42 = vpop.f32.mrb[0].mxu0  ;;  %v17159_v32 = vld [vmem:[%s24261_s4 + $0x5b4] ss:$24 sps:$4 sm:$0xff]  }
 0x1b0   : > { %v818_v38 = vpop.f32.mrb[1].mxu0  ;;  %v817_v44 = vadd.f32 %v816_v42, %v20441_v30 }
 0x1b1   : > { %3110 = vmatpush1.bf16.msra.mxu0 %v17124_v28  ;;  %v820_v41 = vpop.f32.mrb[2].mxu0  ;;  %v819_v52 = vadd.f32 %v818_v38, %v20450_v37  ;;  %v17154_v28 = vld [vmem:[%s24261_s4 + $0x4e8] ss:$24 sps:$4 sm:$0xff]  }
 0x1b2   : > { %3337 = vmatpush1.bf16.msra.mxu1 %v17127_v29  ;;  %v821_v45 = vadd.f32 %v820_v41, %v20441_v30  ;;  %v822_v48 = vpop.f32.mrb[3].mxu0  ;;  %3111 = vmatprep.subr.bf16.mxu0 %v17132_v33  ;;  %v17157_v33 = vld [vmem:[%s24261_s4 + $0x5b0] ss:$24 sps:$4 sm:$0xff]   ;;  %v17165_v41 = vld [vmem:[%s24261_s4 + $0x5e4] ss:$24 sps:$4 sm:$0xff]  }
 0x1b3   : > { %3338 = vmatprep.subr.bf16.mxu1 %v17135_v36  ;;  %v823_v56 = vadd.f32 %v822_v48, %v20450_v37  ;;  %v17160_v48 = vld [vmem:[%s24261_s4 + $0x518] ss:$24 sps:$4 sm:$0xff]  }
 0x1b4   : > { %v20469_v57 = vpack.c.bf16 %v821_v45, %v817_v44  ;;  %3089 = vmatmul.mubr.bf16.gmra.mrb[92].mxu0 %v20228_v62 }
 0x1b5   : > { %v20475_v60 = vpack.c.bf16 %v823_v56, %v819_v52  ;;  %3112 = vmatpush1.bf16.msra.mxu0 %v17130_v39  ;;  %3131 = vmatprep.mubr.bf16.mxu0 %v19798_v53  ;;  %v17150_v53 = vld [vmem:[%s24261_s4 + $0x4bc] ss:$24 sps:$4 sm:$0xff]   ;;  %v17168_v52 = vld [vmem:[%s24261_s4 + $0x54c] ss:$24 sps:$4 sm:$0xff]  }
 0x1b6   : > { %3339 = vmatpush1.bf16.msra.mxu1 %v17133_v43  ;;  %3113 = vmatprep.subr.bf16.mxu0 %v17138_v55  ;;  %v17162_v39 = vld [vmem:[%s24261_s4 + $0x51c] ss:$24 sps:$4 sm:$0xff]  }
 0x1b7   : > { %3340 = vmatprep.subr.bf16.mxu1 %v17141_v50  ;;  %v826_v4 = vpop.f32.mrb[4].mxu0  ;;  %v17163_v50 = vld [vmem:[%s24261_s4 + $0x5e0] ss:$24 sps:$4 sm:$0xff]   ;;  %v17171_v56 = vld [vmem:[%s24261_s4 + $0x614] ss:$24 sps:$4 sm:$0xff]  }
 0x1b8   : > { %v828_v62 = vpop.f32.mrb[5].mxu0  ;;  %v827_v1 = vadd.f32 %v826_v4, %v20441_v30  ;;  %v17169_v4 = vld [vmem:[%s24261_s4 + $0x610] ss:$24 sps:$4 sm:$0xff]  }
 0x1b9   : > { %3114 = vmatpush1.bf16.msra.mxu0 %v17136_v58  ;;  %v830_v6 = vpop.f32.mrb[6].mxu0  ;;  %v829_v10 = vadd.f32 %v828_v62, %v20450_v37 }
 0x1ba   : > { %3341 = vmatpush1.bf16.msra.mxu1 %v17139_v61  ;;  %v831_v8 = vadd.f32 %v830_v6, %v20441_v30  ;;  %v832_v9 = vpop.f32.mrb[7].mxu0  ;;  %3115 = vmatprep.subr.bf16.mxu0 %v17144_v63  ;;  %v17166_v63 = vld [vmem:[%s24261_s4 + $0x548] ss:$24 sps:$4 sm:$0xff]  }
 0x1bb   : > { %3342 = vmatprep.subr.bf16.mxu1 %v17147_v3  ;;  %v833_v49 = vadd.f32 %v832_v9, %v20450_v37 }
 0x1bc   : > { %v20503_v15 = vpack.c.bf16 %v831_v8, %v827_v1  ;;  %v17177_v1 = vld [vmem:[%s24261_s4 + $0x644] ss:$24 sps:$4 sm:$0xff]  }
 0x1bd   : > { %v20508_v17 = vpack.c.bf16 %v833_v49, %v829_v10  ;;  %3116 = vmatpush1.bf16.msra.mxu0 %v17142_v5  ;;  %v17175_v49 = vld [vmem:[%s24261_s4 + $0x640] ss:$24 sps:$4 sm:$0xff]  }
 0x1be   : > { %3343 = vmatpush1.bf16.msra.mxu1 %v17145_v7  ;;  %3117 = vmatprep.subr.bf16.mxu0 %v17150_v53  ;;  %v17174_v7 = vld [vmem:[%s24261_s4 + $0x57c] ss:$24 sps:$4 sm:$0xff]  }
 0x1bf   : > { %3344 = vmatprep.subr.bf16.mxu1 %v17153_v11  ;;  %v836_v24 = vpop.f32.mrb[8].mxu0  ;;  %v17172_v11 = vld [vmem:[%s24261_s4 + $0x578] ss:$24 sps:$4 sm:$0xff]  }
 0x1c0   : > { %v838_v25 = vpop.f32.mrb[9].mxu0  ;;  %v837_v36 = vadd.f32 %v836_v24, %v20441_v30  ;;  %v17178_v24 = vld [vmem:[%s24261_s4 + $0x5a8] ss:$24 sps:$4 sm:$0xff]  }
 0x1c1   : > { %3118 = vmatpush1.bf16.msra.mxu0 %v17148_v16  ;;  %v840_v29 = vpop.f32.mrb[10].mxu0  ;;  %v839_v43 = vadd.f32 %v838_v25, %v20450_v37  ;;  %v17180_v16 = vld [vmem:[%s24261_s4 + $0x5ac] ss:$24 sps:$4 sm:$0xff]  }
 0x1c2   : > { %3345 = vmatpush1.bf16.msra.mxu1 %v17151_v18  ;;  %v841_v42 = vadd.f32 %v840_v29, %v20441_v30  ;;  %v842_v38 = vpop.f32.mrb[11].mxu0  ;;  %3119 = vmatprep.subr.bf16.mxu0 %v17156_v19  ;;  %v17183_v18 = vld [vmem:[%s24261_s4 + $0x674] ss:$24 sps:$4 sm:$0xff]  }
 0x1c3   : > { %3346 = vmatprep.subr.bf16.mxu1 %v17159_v32  ;;  %v843_v44 = vadd.f32 %v842_v38, %v20450_v37  ;;  %v17189_v38 = vld [vmem:[%s24261_s4 + $0x6a4] ss:$24 sps:$4 sm:$0xff]  }
 0x1c4   : > { %v20535_v45 = vpack.c.bf16 %v841_v42, %v837_v36  ;;  %v17186_v42 = vld [vmem:[%s24261_s4 + $0x5dc] ss:$24 sps:$4 sm:$0xff]  }
 0x1c5   : > { %v20540_v55 = vpack.c.bf16 %v843_v44, %v839_v43  ;;  %3120 = vmatpush1.bf16.msra.mxu0 %v17154_v28  ;;  %v17181_v28 = vld [vmem:[%s24261_s4 + $0x670] ss:$24 sps:$4 sm:$0xff]  }
 0x1c6   : > { %3347 = vmatpush1.bf16.msra.mxu1 %v17157_v33  ;;  %3121 = vmatprep.subr.bf16.mxu0 %v17162_v39  ;;  %v17184_v44 = vld [vmem:[%s24261_s4 + $0x5d8] ss:$24 sps:$4 sm:$0xff]  }
 0x1c7   : > { %3348 = vmatprep.subr.bf16.mxu1 %v17165_v41  ;;  %v846_v58 = vpop.f32.mrb[12].mxu0 }
 0x1c8   : > { %v848_v61 = vpop.f32.mrb[13].mxu0  ;;  %v847_v62 = vadd.f32 %v846_v58, %v20441_v30 }
 0x1c9   : > { %3122 = vmatpush1.bf16.msra.mxu0 %v17160_v48  ;;  %v850_v3 = vpop.f32.mrb[14].mxu0  ;;  %v849_v8 = vadd.f32 %v848_v61, %v20450_v37  ;;  %v17190_v61 = vld [vmem:[%s24261_s4 + $0x608] ss:$24 sps:$4 sm:$0xff]  }
 0x1ca   : > { %3349 = vmatpush1.bf16.msra.mxu1 %v17163_v50  ;;  %v851_v5 = vadd.f32 %v850_v3, %v20441_v30  ;;  %v852_v6 = vpop.f32.mrb[15].mxu0  ;;  %3123 = vmatprep.subr.bf16.mxu0 %v17168_v52  ;;  %v17187_v50 = vld [vmem:[%s24261_s4 + $0x6a0] ss:$24 sps:$4 sm:$0xff]   ;;  %v17192_v52 = vld [vmem:[%s24261_s4 + $0x60c] ss:$24 sps:$4 sm:$0xff]  }
 0x1cb   : > { %3391 = vmatprep.subr.bf16.mxu1 %v17171_v56  ;;  %v853_v9 = vadd.f32 %v852_v6, %v20450_v37  ;;  %v17195_v56 = vld [vmem:[%s24261_s4 + $0x6d4] ss:$24 sps:$4 sm:$0xff]  }
 0x1cc   : > { %v20567_v53 = vpack.c.bf16 %v851_v5, %v847_v62  ;;  %v17201_v5 = vld [vmem:[%s24261_s4 + $0x704] ss:$24 sps:$4 sm:$0xff]  }
 0x1cd   : > { %3351 = vmatmul.mubr.bf16.vlgmr.msra.gmra.mrb[16].mxu1 %v19858_v12  ;;  %v20573_v10 = vpack.c.bf16 %v853_v9, %v849_v8  ;;  %3124 = vmatpush1.bf16.msra.mxu0 %v17166_v63  ;;  %v17193_v63 = vld [vmem:[%s24261_s4 + $0x6d0] ss:$24 sps:$4 sm:$0xff]  }
 0x1ce   : > { %3392 = vmatpush1.bf16.msra.mxu1 %v17169_v4  ;;  %3125 = vmatprep.subr.bf16.mxu0 %v17174_v7  ;;  %v17198_v4 = vld [vmem:[%s24261_s4 + $0x63c] ss:$24 sps:$4 sm:$0xff]  }
 0x1cf   : > { %3393 = vmatprep.subr.bf16.mxu1 %v17177_v1  ;;  %v856_v19 = vpop.f32.mrb[16].mxu0  ;;  %3360 = vmatprep.mubr.bf16.mxu1 %v19886_v22 }
 0x1d0   : > { %v858_v32 = vpop.f32.mrb[17].mxu0  ;;  %v857_v29 = vadd.f32 %v856_v19, %v20441_v30  ;;  %v17207_v19 = vld [vmem:[%s24261_s4 + $0x734] ss:$24 sps:$4 sm:$0xff]  }
 0x1d1   : > { %3126 = vmatpush1.bf16.msra.mxu0 %v17172_v11  ;;  %v860_v25 = vpop.f32.mrb[18].mxu0  ;;  %v859_v39 = vadd.f32 %v858_v32, %v20450_v37  ;;  %v17196_v11 = vld [vmem:[%s24261_s4 + $0x638] ss:$24 sps:$4 sm:$0xff]  }
 0x1d2   : > { %3394 = vmatpush1.bf16.msra.mxu1 %v17175_v49  ;;  %v861_v33 = vadd.f32 %v860_v25, %v20441_v30  ;;  %v862_v36 = vpop.f32.mrb[19].mxu0  ;;  %3127 = vmatprep.subr.bf16.mxu0 %v17180_v16  ;;  %v17199_v49 = vld [vmem:[%s24261_s4 + $0x700] ss:$24 sps:$4 sm:$0xff]   ;;  %v17205_v25 = vld [vmem:[%s24261_s4 + $0x730] ss:$24 sps:$4 sm:$0xff]  }
 0x1d3   : > { %3395 = vmatprep.subr.bf16.mxu1 %v17183_v18  ;;  %v863_v41 = vadd.f32 %v862_v36, %v20450_v37  ;;  %v17204_v18 = vld [vmem:[%s24261_s4 + $0x66c] ss:$24 sps:$4 sm:$0xff]  }
 0x1d4   : > { %v20601_v43 = vpack.c.bf16 %v861_v33, %v857_v29  ;;  %v17210_v29 = vld [vmem:[%s24261_s4 + $0x69c] ss:$24 sps:$4 sm:$0xff]  }
 0x1d5   : > { %3361 = vmatmul.mubr.bf16.gmra.mrb[20].mxu1 %v19895_v27  ;;  %v20607_v48 = vpack.c.bf16 %v863_v41, %v859_v39  ;;  %3128 = vmatpush1.bf16.msra.mxu0 %v17178_v24  ;;  %v17213_v33 = vld [vmem:[%s24261_s4 + $0x764] ss:$24 sps:$4 sm:$0xff]  }
 0x1d6   : > { %3396 = vmatpush1.bf16.msra.mxu1 %v17181_v28  ;;  %3129 = vmatprep.subr.bf16.mxu0 %v17186_v42 }
 0x1d7   : > { %3397 = vmatprep.subr.bf16.mxu1 %v17189_v38  ;;  %v866_v58 = vpop.f32.mrb[20].mxu0  ;;  %3370 = vmatprep.mubr.bf16.mxu1 %v19917_v35 }
 0x1d8   : > { %v868_v3 = vpop.f32.mrb[21].mxu0  ;;  %v867_v6 = vadd.f32 %v866_v58, %v20441_v30  ;;  %v17219_v58 = vld [vmem:[%s24261_s4 + $0x794] ss:$24 sps:$4 sm:$0xff]  }
 0x1d9   : > { %3130 = vmatpush1.bf16.msra.mxu0 %v17184_v44  ;;  %v870_v62 = vpop.f32.mrb[22].mxu0  ;;  %v869_v8 = vadd.f32 %v868_v3, %v20450_v37  ;;  %v17208_v44 = vld [vmem:[%s24261_s4 + $0x698] ss:$24 sps:$4 sm:$0xff]   ;;  %v17214_v3 = vld [vmem:[%s24261_s4 + $0x6c8] ss:$24 sps:$4 sm:$0xff]  }
 0x1da   : > { %3398 = vmatpush1.bf16.msra.mxu1 %v17187_v50  ;;  %v871_v7 = vadd.f32 %v870_v62, %v20441_v30  ;;  %v872_v1 = vpop.f32.mrb[23].mxu0  ;;  %3172 = vmatprep.subr.bf16.mxu0 %v17192_v52  ;;  %v17211_v50 = vld [vmem:[%s24261_s4 + $0x760] ss:$24 sps:$4 sm:$0xff]   ;;  %v17222_v62 = vld [vmem:[%s24261_s4 + $0x6fc] ss:$24 sps:$4 sm:$0xff]  }
 0x1db   : > { %3399 = vmatprep.subr.bf16.mxu1 %v17195_v56  ;;  %v873_v9 = vadd.f32 %v872_v1, %v20450_v37  ;;  %v17216_v56 = vld [vmem:[%s24261_s4 + $0x6cc] ss:$24 sps:$4 sm:$0xff]  }
 0x1dc   : > { %v20641_v16 = vpack.c.bf16 %v871_v7, %v867_v6  ;;  %3132 = vmatmul.mubr.bf16.vlgmr.msra.gmra.mrb[80].mxu0 %v19858_v12  ;;  %v17202_v12 = vld [vmem:[%s24261_s4 + $0x668] ss:$24 sps:$4 sm:$0xff]  }
 0x1dd   : > { %3371 = vmatmul.mubr.bf16.gmra.mrb[24].mxu1 %v19926_v40  ;;  %v20651_v32 = vpack.c.bf16 %v873_v9, %v869_v8  ;;  %3173 = vmatpush1.bf16.msra.mxu0 %v17190_v61 }
 0x1de   : > { %3400 = vmatpush1.bf16.msra.mxu1 %v17193_v63  ;;  %3174 = vmatprep.subr.bf16.mxu0 %v17198_v4  ;;  %v17217_v4 = vld [vmem:[%s24261_s4 + $0x790] ss:$24 sps:$4 sm:$0xff]  }
 0x1df   : > { %3401 = vmatprep.subr.bf16.mxu1 %v17201_v5  ;;  %v876_v24 = vpop.f32.mrb[24].mxu0  ;;  %3141 = vmatprep.mubr.bf16.mxu0 %v19886_v22  ;;  %v17225_v5 = vld [vmem:[%s24261_s4 + $0x7c4] ss:$24 sps:$4 sm:$0xff]  }
 0x1e0   : > { %3380 = vmatprep.mubr.bf16.mxu1 %v19944_v47  ;;  %v878_v28 = vpop.f32.mrb[25].mxu0  ;;  %v877_v42 = vadd.f32 %v876_v24, %v20441_v30  ;;  %v17231_v24 = vld [vmem:[%s24261_s4 + $0x7f4] ss:$24 sps:$4 sm:$0xff]  }
 0x1e1   : > { %3175 = vmatpush1.bf16.msra.mxu0 %v17196_v11  ;;  %v880_v36 = vpop.f32.mrb[26].mxu0  ;;  %v879_v22 = vadd.f32 %v878_v28, %v20450_v37  ;;  %v17220_v11 = vld [vmem:[%s24261_s4 + $0x6f8] ss:$24 sps:$4 sm:$0xff]   ;;  %v17226_v28 = vld [vmem:[%s24261_s4 + $0x728] ss:$24 sps:$4 sm:$0xff]  }
 0x1e2   : > { %3402 = vmatpush1.bf16.msra.mxu1 %v17199_v49  ;;  %v881_v38 = vadd.f32 %v880_v36, %v20441_v30  ;;  %v882_v39 = vpop.f32.mrb[27].mxu0  ;;  %3176 = vmatprep.subr.bf16.mxu0 %v17204_v18  ;;  %v17223_v49 = vld [vmem:[%s24261_s4 + $0x7c0] ss:$24 sps:$4 sm:$0xff]   ;;  %v17237_v36 = vld [vmem:[%s24261_s4 + $0x824] ss:$24 sps:$4 sm:$0xff]  }
 0x1e3   : > { %3403 = vmatprep.subr.bf16.mxu1 %v17207_v19  ;;  %v883_v41 = vadd.f32 %v882_v39, %v20450_v37  ;;  %v17228_v19 = vld [vmem:[%s24261_s4 + $0x72c] ss:$24 sps:$4 sm:$0xff]  }
 0x1e4   : > { %v20677_v52 = vpack.c.bf16 %v881_v38, %v877_v42  ;;  %3142 = vmatmul.mubr.bf16.gmra.mrb[84].mxu0 %v19895_v27 }
 0x1e5   : > { %3381 = vmatmul.mubr.bf16.gmra.mrb[28].mxu1 %v19957_v54  ;;  %v20687_v61 = vpack.c.bf16 %v883_v41, %v879_v22  ;;  %3177 = vmatpush1.bf16.msra.mxu0 %v17202_v12 }
 0x1e6   : > { %3404 = vmatpush1.bf16.msra.mxu1 %v17205_v25  ;;  %3178 = vmatprep.subr.bf16.mxu0 %v17210_v29  ;;  %v17229_v29 = vld [vmem:[%s24261_s4 + $0x7f0] ss:$24 sps:$4 sm:$0xff]  }
 0x1e7   : > { %3405 = vmatprep.subr.bf16.mxu1 %v17213_v33  ;;  %v886_v63 = vpop.f32.mrb[28].mxu0  ;;  %3151 = vmatprep.mubr.bf16.mxu0 %v19917_v35 }
 0x1e8   : > { %3423 = vmatprep.mubr.bf16.mxu1 %v19967_v59  ;;  %v888_v27 = vpop.f32.mrb[29].mxu0  ;;  %v887_v7 = vadd.f32 %v886_v63, %v20441_v30  ;;  %v17243_v63 = vld [vmem:[%s24261_s4 + $0x854] ss:$24 sps:$4 sm:$0xff]  }
 0x1e9   : > { %3179 = vmatpush1.bf16.msra.mxu0 %v17208_v44  ;;  %v890_v6 = vpop.f32.mrb[30].mxu0  ;;  %v889_v35 = vadd.f32 %v888_v27, %v20450_v37  ;;  %v17232_v44 = vld [vmem:[%s24261_s4 + $0x758] ss:$24 sps:$4 sm:$0xff]   ;;  %v17238_v27 = vld [vmem:[%s24261_s4 + $0x788] ss:$24 sps:$4 sm:$0xff]  }
 0x1ea   : > { %3406 = vmatpush1.bf16.msra.mxu1 %v17211_v50  ;;  %v891_v1 = vadd.f32 %v890_v6, %v20441_v30  ;;  %v892_v8 = vpop.f32.mrb[31].mxu0  ;;  %3180 = vmatprep.subr.bf16.mxu0 %v17216_v56  ;;  %v17235_v50 = vld [vmem:[%s24261_s4 + $0x820] ss:$24 sps:$4 sm:$0xff]   ;;  %v17249_v6 = vld [vmem:[%s24261_s4 + $0x884] ss:$24 sps:$4 sm:$0xff]  }
 0x1eb   : > { %3407 = vmatprep.subr.bf16.mxu1 %v17219_v58  ;;  %v893_v9 = vadd.f32 %v892_v8, %v20450_v37  ;;  %v17240_v58 = vld [vmem:[%s24261_s4 + $0x78c] ss:$24 sps:$4 sm:$0xff]  }
 0x1ec   : > { %v20713_v18 = vpack.c.bf16 %v891_v1, %v887_v7  ;;  %3152 = vmatmul.mubr.bf16.gmra.mrb[88].mxu0 %v19926_v40  ;;  %v17234_v40 = vld [vmem:[%s24261_s4 + $0x75c] ss:$24 sps:$4 sm:$0xff]  }
 0x1ed   : > { %v20722_v12 = vpack.c.bf16 %v893_v9, %v889_v35  ;;  %3181 = vmatpush1.bf16.msra.mxu0 %v17214_v3  ;;  %3161 = vmatprep.mubr.bf16.mxu0 %v19944_v47 }
 0x1ee   : > { %3408 = vmatpush1.bf16.msra.mxu1 %v17217_v4  ;;  %3182 = vmatprep.subr.bf16.mxu0 %v17222_v62  ;;  %v17241_v62 = vld [vmem:[%s24261_s4 + $0x850] ss:$24 sps:$4 sm:$0xff]  }
 0x1ef   : > { %3409 = vmatprep.subr.bf16.mxu1 %v17225_v5  ;;  %v896_v25 = vpop.f32.mrb[32].mxu0 }
 0x1f0   : > { %v898_v33 = vpop.f32.mrb[33].mxu0  ;;  %v897_v38 = vadd.f32 %v896_v25, %v20441_v30  ;;  %v17255_v25 = vld [vmem:[%s24261_s4 + $0x8b4] ss:$24 sps:$4 sm:$0xff]  }
 0x1f1   : > { %3183 = vmatpush1.bf16.msra.mxu0 %v17220_v11  ;;  %v900_v42 = vpop.f32.mrb[34].mxu0  ;;  %v899_v47 = vadd.f32 %v898_v33, %v20450_v37  ;;  %v17244_v11 = vld [vmem:[%s24261_s4 + $0x7b8] ss:$24 sps:$4 sm:$0xff]   ;;  %v17250_v33 = vld [vmem:[%s24261_s4 + $0x7e8] ss:$24 sps:$4 sm:$0xff]  }
 0x1f2   : > { %3410 = vmatpush1.bf16.msra.mxu1 %v17223_v49  ;;  %v901_v39 = vadd.f32 %v900_v42, %v20441_v30  ;;  %v902_v22 = vpop.f32.mrb[35].mxu0  ;;  %3184 = vmatprep.subr.bf16.mxu0 %v17228_v19  ;;  %v17247_v49 = vld [vmem:[%s24261_s4 + $0x880] ss:$24 sps:$4 sm:$0xff]   ;;  %v17258_v42 = vld [vmem:[%s24261_s4 + $0x81c] ss:$24 sps:$4 sm:$0xff]  }
 0x1f3   : > { %3411 = vmatprep.subr.bf16.mxu1 %v17231_v24  ;;  %v903_v41 = vadd.f32 %v902_v22, %v20450_v37  ;;  %v17252_v24 = vld [vmem:[%s24261_s4 + $0x7ec] ss:$24 sps:$4 sm:$0xff]  }
 0x1f4   : > { %v20747_v56 = vpack.c.bf16 %v901_v39, %v897_v38  ;;  %3162 = vmatmul.mubr.bf16.gmra.mrb[92].mxu0 %v19957_v54  ;;  %v17246_v54 = vld [vmem:[%s24261_s4 + $0x7bc] ss:$24 sps:$4 sm:$0xff]  }
 0x1f5   : > { %v20756_v3 = vpack.c.bf16 %v903_v41, %v899_v47  ;;  %3185 = vmatpush1.bf16.msra.mxu0 %v17226_v28  ;;  %3204 = vmatprep.mubr.bf16.mxu0 %v19967_v59  ;;  %v17261_v38 = vld [vmem:[%s24261_s4 + $0x8e4] ss:$24 sps:$4 sm:$0xff]  }
 0x1f6   : > { %3412 = vmatpush1.bf16.msra.mxu1 %v17229_v29  ;;  %3186 = vmatprep.subr.bf16.mxu0 %v17234_v40  ;;  %v17253_v40 = vld [vmem:[%s24261_s4 + $0x8b0] ss:$24 sps:$4 sm:$0xff]  }
 0x1f7   : > { %3413 = vmatprep.subr.bf16.mxu1 %v17237_v36  ;;  %v906_v4 = vpop.f32.mrb[36].mxu0 }
 0x1f8   : > { %v908_v5 = vpop.f32.mrb[37].mxu0  ;;  %v907_v1 = vadd.f32 %v906_v4, %v20441_v30 }
 0x1f9   : > { %3187 = vmatpush1.bf16.msra.mxu0 %v17232_v44  ;;  %v910_v7 = vpop.f32.mrb[38].mxu0  ;;  %v909_v59 = vadd.f32 %v908_v5, %v20450_v37 }
 0x1fa   : > { %3414 = vmatpush1.bf16.msra.mxu1 %v17235_v50  ;;  %v911_v8 = vadd.f32 %v910_v7, %v20441_v30  ;;  %v912_v35 = vpop.f32.mrb[39].mxu0  ;;  %3188 = vmatprep.subr.bf16.mxu0 %v17240_v58  ;;  %v17256_v58 = vld [vmem:[%s24261_s4 + $0x818] ss:$24 sps:$4 sm:$0xff]   ;;  %v17265_v7 = vld [vmem:[#allocation5 + $0x8] ss:$24 sps:$4 sm:$0xff]  }
 0x1fb   : > { %3415 = vmatprep.subr.bf16.mxu1 %v17243_v63  ;;  %v913_v9 = vadd.f32 %v912_v35, %v20450_v37  ;;  %v17259_v63 = vld [vmem:[%s24261_s4 + $0x8e0] ss:$24 sps:$4 sm:$0xff]   ;;  %v17273_v35 = vld [vmem:[#allocation5 + $0x3c] ss:$24 sps:$4 sm:$0xff]  }
 0x1fc   : > { %v20781_v19 = vpack.c.bf16 %v911_v8, %v907_v1  ;;  %v17270_v8 = vld [vmem:[%s24261_s4 + $0x87c] ss:$24 sps:$4 sm:$0xff]  }
 0x1fd   : > { %v20789_v28 = vpack.c.bf16 %v913_v9, %v909_v59  ;;  %3189 = vmatpush1.bf16.msra.mxu0 %v17238_v27  ;;  %v17264_v27 = vld [vmem:[%s24261_s4 + $0x84c] ss:$24 sps:$4 sm:$0xff]  }
 0x1fe   : > { %3416 = vmatpush1.bf16.msra.mxu1 %v17241_v62  ;;  %3190 = vmatprep.subr.bf16.mxu0 %v17246_v54  ;;  %v17267_v62 = vld [vmem:[#allocation5 + $0xc] ss:$24 sps:$4 sm:$0xff]  }
 0x1ff   : > { %3417 = vmatprep.subr.bf16.mxu1 %v17249_v6  ;;  %v916_v29 = vpop.f32.mrb[40].mxu0  ;;  %v17262_v6 = vld [vmem:[%s24261_s4 + $0x848] ss:$24 sps:$4 sm:$0xff]  }
 0x200   : > { %v918_v36 = vpop.f32.mrb[41].mxu0  ;;  %v917_v22 = vadd.f32 %v916_v29, %v20441_v30 }
 0x201   : > { %3191 = vmatpush1.bf16.msra.mxu0 %v17244_v11  ;;  %v920_v39 = vpop.f32.mrb[42].mxu0  ;;  %v919_v44 = vadd.f32 %v918_v36, %v20450_v37 }
 0x202   : > { %3418 = vmatpush1.bf16.msra.mxu1 %v17247_v49  ;;  %v921_v47 = vadd.f32 %v920_v39, %v20441_v30  ;;  %v922_v41 = vpop.f32.mrb[43].mxu0  ;;  %3192 = vmatprep.subr.bf16.mxu0 %v17252_v24 }
 0x203   : > { %3419 = vmatprep.subr.bf16.mxu1 %v17255_v25  ;;  %v923_v50 = vadd.f32 %v922_v41, %v20450_v37 }
 0x204   : > { %v20813_v4 = vpack.c.bf16 %v921_v47, %v917_v22  ;;  %v17274_v22 = vld [vmem:[%s24261_s4 + $0x8a8] ss:$24 sps:$4 sm:$0xff]  }
 0x205   : > { %v20818_v5 = vpack.c.bf16 %v923_v50, %v919_v44  ;;  %3193 = vmatpush1.bf16.msra.mxu0 %v17250_v33  ;;  %v17268_v33 = vld [vmem:[%s24261_s4 + $0x878] ss:$24 sps:$4 sm:$0xff]   ;;  %v17277_v47 = vld [vmem:[#allocation5 + $0x68] ss:$24 sps:$4 sm:$0xff]   ;;  %v17282_v44 = vld [vmem:[%s24261_s4 + $0x8dc] ss:$24 sps:$4 sm:$0xff]  }
 0x206   : > { %3420 = vmatpush1.bf16.msra.mxu1 %v17253_v40  ;;  %3194 = vmatprep.subr.bf16.mxu0 %v17258_v42  ;;  %v17271_v40 = vld [vmem:[#allocation5 + $0x38] ss:$24 sps:$4 sm:$0xff]   ;;  %v17276_v42 = vld [vmem:[%s24261_s4 + $0x8ac] ss:$24 sps:$4 sm:$0xff]   ;;  %v17285_v50 = vld [vmem:[#allocation5 + $0x9c] ss:$24 sps:$4 sm:$0xff]  }
 0x207   : > { %3421 = vmatprep.subr.bf16.mxu1 %v17261_v38  ;;  %v926_v54 = vpop.f32.mrb[44].mxu0  ;;  %v17279_v38 = vld [vmem:[#allocation5 + $0x6c] ss:$24 sps:$4 sm:$0xff]  }
 0x208   : > { %v928_v1 = vpop.f32.mrb[45].mxu0  ;;  %v927_v9 = vadd.f32 %v926_v54, %v20441_v30 }
 0x209   : > { %3195 = vmatpush1.bf16.msra.mxu0 %v17256_v58  ;;  %v930_v59 = vpop.f32.mrb[46].mxu0  ;;  %v929_v24 = vadd.f32 %v928_v1, %v20450_v37  ;;  %v17280_v1 = vld [vmem:[%s24261_s4 + $0x8d8] ss:$24 sps:$4 sm:$0xff]  }
 0x20a   : > { %3422 = vmatpush1.bf16.msra.mxu1 %v17259_v63  ;;  %v931_v11 = vadd.f32 %v930_v59, %v20441_v30  ;;  %v932_v49 = vpop.f32.mrb[47].mxu0  ;;  %3196 = vmatprep.subr.bf16.mxu0 %v17264_v27  ;;  %v17288_v59 = vld [vmem:[#allocation5 + $0x4] ss:$24 sps:$4 sm:$0xff]  }
 0x20b   : > { %4233 = vmatprep.subr.bf16.mxu1 %v17267_v62  ;;  %v933_v25 = vadd.f32 %v932_v49, %v20450_v37  ;;  %v17286_v49 = vld [vmem:[#allocation5] ss:$24 sps:$4 sm:$0xff]  }
 0x20c   : > { %v20830_v29 = vpack.c.bf16 %v931_v11, %v927_v9  ;;  %v17291_v9 = vld [vmem:[#allocation5 + $0xcc] ss:$24 sps:$4 sm:$0xff]  }
 0x20d   : > { %3424 = vmatmul.mubr.bf16.vlgmr.msra.gmra.mrb[16].mxu1 %v20056_v31  ;;  %v20836_v36 = vpack.c.bf16 %v933_v25, %v929_v24  ;;  %3197 = vmatpush1.bf16.msra.mxu0 %v17262_v6  ;;  %v17289_v24 = vld [vmem:[#allocation5 + $0xc8] ss:$24 sps:$4 sm:$0xff]  }
 0x20e   : > { %4234 = vmatpush1.bf16.msra.mxu1 %v17265_v7  ;;  %3198 = vmatprep.subr.bf16.mxu0 %v17270_v8  ;;  %v17283_v8 = vld [vmem:[#allocation5 + $0x98] ss:$24 sps:$4 sm:$0xff]  }
 0x20f   : > { %4235 = vmatprep.subr.bf16.mxu1 %v17273_v35  ;;  %v936_v39 = vpop.f32.mrb[48].mxu0  ;;  %3433 = vmatprep.mubr.bf16.mxu1 %v20064_v34 }
 0x210   : > { %v938_v41 = vpop.f32.mrb[49].mxu0  ;;  %v937_v63 = vadd.f32 %v936_v39, %v20441_v30 }
 0x211   : > { %3199 = vmatpush1.bf16.msra.mxu0 %v17268_v33  ;;  %v940_v58 = vpop.f32.mrb[50].mxu0  ;;  %v939_v54 = vadd.f32 %v938_v41, %v20450_v37  ;;  %v17294_v33 = vld [vmem:[#allocation5 + $0x34] ss:$24 sps:$4 sm:$0xff]  }
 0x212   : > { %4236 = vmatpush1.bf16.msra.mxu1 %v17271_v40  ;;  %v941_v27 = vadd.f32 %v940_v58, %v20441_v30  ;;  %v942_v62 = vpop.f32.mrb[51].mxu0  ;;  %3200 = vmatprep.subr.bf16.mxu0 %v17276_v42  ;;  %v17297_v40 = vld [vmem:[#allocation5 + $0xfc] ss:$24 sps:$4 sm:$0xff]   ;;  %v17295_v58 = vld [vmem:[#allocation5 + $0xf8] ss:$24 sps:$4 sm:$0xff]  }
 0x213   : > { %4237 = vmatprep.subr.bf16.mxu1 %v17279_v38  ;;  %v943_v6 = vadd.f32 %v942_v62, %v20450_v37  ;;  %v17303_v62 = vld [vmem:[#allocation5 + $0x12c] ss:$24 sps:$4 sm:$0xff]  }
 0x214   : > { %v20852_v7 = vpack.c.bf16 %v941_v27, %v937_v63  ;;  %v17300_v27 = vld [vmem:[#allocation5 + $0x64] ss:$24 sps:$4 sm:$0xff]  }
 0x215   : > { %3434 = vmatmul.mubr.bf16.gmra.mrb[20].mxu1 %v20083_v46  ;;  %v20858_v35 = vpack.c.bf16 %v943_v6, %v939_v54  ;;  %3201 = vmatpush1.bf16.msra.mxu0 %v17274_v22  ;;  %v17298_v6 = vld [vmem:[#allocation5 + $0x60] ss:$24 sps:$4 sm:$0xff]  }
 0x216   : > { %4238 = vmatpush1.bf16.msra.mxu1 %v17277_v47  ;;  %3202 = vmatprep.subr.bf16.mxu0 %v17282_v44 }
 0x217   : > { %4239 = vmatprep.subr.bf16.mxu1 %v17285_v50  ;;  %v946_v11 = vpop.f32.mrb[52].mxu0  ;;  %3443 = vmatprep.mubr.bf16.mxu1 %v20093_v51  ;;  %v17292_v50 = vld [vmem:[#allocation5 + $0x30] ss:$24 sps:$4 sm:$0xff]  }
 0x218   : > { %v948_v25 = vpop.f32.mrb[53].mxu0  ;;  %v947_v38 = vadd.f32 %v946_v11, %v20441_v30 }
 0x219   : > { %3203 = vmatpush1.bf16.msra.mxu0 %v17280_v1  ;;  %v950_v42 = vpop.f32.mrb[54].mxu0  ;;  %v949_v47 = vadd.f32 %v948_v25, %v20450_v37  ;;  %v17301_v1 = vld [vmem:[#allocation5 + $0x128] ss:$24 sps:$4 sm:$0xff]  }
 0x21a   : > { %4240 = vmatpush1.bf16.msra.mxu1 %v17283_v8  ;;  %v951_v39 = vadd.f32 %v950_v42, %v20441_v30  ;;  %v952_v22 = vpop.f32.mrb[55].mxu0  ;;  %4040 = vmatprep.subr.bf16.mxu0 %v17288_v59  ;;  %v17306_v59 = vld [vmem:[#allocation5 + $0x94] ss:$24 sps:$4 sm:$0xff]  }
 0x21b   : > { %4241 = vmatprep.subr.bf16.mxu1 %v17291_v9  ;;  %v953_v41 = vadd.f32 %v952_v22, %v20450_v37  ;;  %v17304_v22 = vld [vmem:[#allocation5 + $0x90] ss:$24 sps:$4 sm:$0xff]  }
 0x21c   : > { %v20865_v44 = vpack.c.bf16 %v951_v39, %v947_v38  ;;  %3205 = vmatmul.mubr.bf16.vlgmr.msra.gmra.mrb[80].mxu0 %v20056_v31  ;;  %v17309_v38 = vld [vmem:[#allocation5 + $0x15c] ss:$24 sps:$4 sm:$0xff]  }
 0x21d   : > { %3444 = vmatmul.mubr.bf16.gmra.mrb[24].mxu1 %v20118_v2  ;;  %v20869_v63 = vpack.c.bf16 %v953_v41, %v949_v47  ;;  %4041 = vmatpush1.bf16.msra.mxu0 %v17286_v49  ;;  %v17307_v47 = vld [vmem:[#allocation5 + $0x158] ss:$24 sps:$4 sm:$0xff]  }
 0x21e   : > { %4242 = vmatpush1.bf16.msra.mxu1 %v17289_v24  ;;  %4042 = vmatprep.subr.bf16.mxu0 %v17294_v33 }
 0x21f   : > { %4243 = vmatprep.subr.bf16.mxu1 %v17297_v40  ;;  %v956_v54 = vpop.f32.mrb[56].mxu0  ;;  %3214 = vmatprep.mubr.bf16.mxu0 %v20064_v34 }
 0x220   : > { %3453 = vmatprep.mubr.bf16.mxu1 %v20138_v13  ;;  %v20873_v31 = vpop.f32.mrb[0].mxu1  ;;  %v958_v8 = vpop.f32.mrb[57].mxu0  ;;  %v957_v24 = vadd.f32 %v956_v54, %v20441_v30  ;;  %v17313_v54 = vld [vmem:[#allocation5 + $0x188] ss:$24 sps:$4 sm:$0xff]  }
 0x221   : > { %v20875_v9 = vpop.f32.mrb[1].mxu1  ;;  %4043 = vmatpush1.bf16.msra.mxu0 %v17292_v50  ;;  %v960_v11 = vpop.f32.mrb[58].mxu0  ;;  %v959_v40 = vadd.f32 %v958_v8, %v20450_v37  ;;  %v17312_v50 = vld [vmem:[#allocation5 + $0xc4] ss:$24 sps:$4 sm:$0xff]  }
 0x222   : > { %4244 = vmatpush1.bf16.msra.mxu1 %v17295_v58  ;;  %v20877_v49 = vpop.f32.mrb[2].mxu1  ;;  %v961_v25 = vadd.f32 %v960_v11, %v20441_v30  ;;  %v962_v34 = vpop.f32.mrb[59].mxu0  ;;  %4044 = vmatprep.subr.bf16.mxu0 %v17300_v27  ;;  %v17315_v58 = vld [vmem:[#allocation5 + $0x18c] ss:$24 sps:$4 sm:$0xff]  }
 0x223   : > { %4245 = vmatprep.subr.bf16.mxu1 %v17303_v62  ;;  %v20881_v33 = vpop.f32.mrb[3].mxu1  ;;  %v963_v42 = vadd.f32 %v962_v34, %v20450_v37  ;;  %v17310_v62 = vld [vmem:[#allocation5 + $0xc0] ss:$24 sps:$4 sm:$0xff]   ;;  %v17318_v11 = vld [vmem:[#allocation5 + $0xf4] ss:$24 sps:$4 sm:$0xff]  }
 0x224   : > { %v20885_v39 = vpack.c.bf16 %v961_v25, %v957_v24  ;;  %3215 = vmatmul.mubr.bf16.gmra.mrb[84].mxu0 %v20083_v46  ;;  %v17321_v24 = vld [vmem:[#allocation5 + $0x1bc] ss:$24 sps:$4 sm:$0xff]  }
 0x225   : > { %3454 = vmatmul.mubr.bf16.gmra.mrb[28].mxu1 %v20161_v23  ;;  %v20889_v41 = vpack.c.bf16 %v963_v42, %v959_v40  ;;  %4045 = vmatpush1.bf16.msra.mxu0 %v17298_v6 }
 0x226   : > { %4246 = vmatpush1.bf16.msra.mxu1 %v17301_v1  ;;  %4265 = vmatprep.mubr.bf16.mxu1 %v20475_v60 }
 0x227   : > { %4046 = vmatprep.subr.bf16.mxu0 %v17306_v59  ;;  %v966_v27 = vpop.f32.mrb[60].mxu0  ;;  %4247 = vmatprep.subr.bf16.mxu1 %v17309_v38 }
 0x228   : > { %3224 = vmatprep.mubr.bf16.mxu0 %v20093_v51  ;;  %v20893_v46 = vpop.f32.mrb[4].mxu1  ;;  %v968_v8 = vpop.f32.mrb[61].mxu0  ;;  %v967_v59 = vadd.f32 %v966_v27, %v20441_v30  ;;  %v17322_v27 = vld [vmem:[#allocation5 + $0x120] ss:$24 sps:$4 sm:$0xff]  }
 0x229   : > { %v20895_v25 = vpop.f32.mrb[5].mxu1  ;;  %4047 = vmatpush1.bf16.msra.mxu0 %v17304_v22  ;;  %v970_v6 = vpop.f32.mrb[62].mxu0  ;;  %v969_v42 = vadd.f32 %v968_v8, %v20450_v37  ;;  %v17316_v22 = vld [vmem:[#allocation5 + $0xf0] ss:$24 sps:$4 sm:$0xff]  }
 0x22a   : > { %4248 = vmatpush1.bf16.msra.mxu1 %v17307_v47  ;;  %v20897_v1 = vpop.f32.mrb[6].mxu1  ;;  %v971_v34 = vadd.f32 %v970_v6, %v20441_v30  ;;  %v972_v40 = vpop.f32.mrb[63].mxu0  ;;  %4048 = vmatprep.subr.bf16.mxu0 %v17312_v50  ;;  %v17319_v47 = vld [vmem:[#allocation5 + $0x1b8] ss:$24 sps:$4 sm:$0xff]   ;;  %v17324_v30 = vld [vmem:[#allocation5 + $0x124] ss:$24 sps:$4 sm:$0xff]  }
 0x22b   : > { %4249 = vmatprep.subr.bf16.mxu1 %v17315_v58  ;;  %v20901_v51 = vpop.f32.mrb[7].mxu1  ;;  %v973_v38 = vadd.f32 %v972_v40, %v20450_v37  ;;  %v17327_v50 = vld [vmem:[#allocation5 + $0x1ec] ss:$24 sps:$4 sm:$0xff]   ;;  %v17325_v6 = vld [vmem:[#allocation5 + $0x1e8] ss:$24 sps:$4 sm:$0xff]  }
 0x22c   : > { %v20905_v14 = vpack.c.bf16 %v971_v34, %v967_v59  ;;  %3225 = vmatmul.mubr.bf16.gmra.mrb[88].mxu0 %v20118_v2  ;;  %v17330_v59 = vld [vmem:[#allocation5 + $0x154] ss:$24 sps:$4 sm:$0xff]  }
 0x22d   : > { %v20908_v0 = vpack.c.bf16 %v973_v38, %v969_v42  ;;  %4049 = vmatpush1.bf16.msra.mxu0 %v17310_v62  ;;  %3234 = vmatprep.mubr.bf16.mxu0 %v20138_v13  ;;  %v17333_v40 = vld [vmem:[#allocation5 + $0x21c] ss:$24 sps:$4 sm:$0xff]  }
 0x22e   : > { %4250 = vmatpush1.bf16.msra.mxu1 %v17313_v54  ;;  %4050 = vmatprep.subr.bf16.mxu0 %v17318_v11 }
 0x22f   : > { %4251 = vmatprep.subr.bf16.mxu1 %v17321_v24  ;;  %v2841_v58 = vpop.f32.mrb[64].mxu0 }
 0x230   : > { %v20911_v8 = vpop.f32.mrb[8].mxu1  ;;  %v20914_v37 = vadd.f32 %v20873_v31, %v2841_v58  ;;  %v2843_v2 = vpop.f32.mrb[65].mxu0 }
 0x231   : > { %v20916_v34 = vpop.f32.mrb[9].mxu1  ;;  %4051 = vmatpush1.bf16.msra.mxu0 %v17316_v22  ;;  %v2845_v62 = vpop.f32.mrb[66].mxu0  ;;  %v20919_v11 = vadd.f32 %v20875_v9, %v2843_v2  ;;  %v17328_v22 = vld [vmem:[#allocation5 + $0x150] ss:$24 sps:$4 sm:$0xff]  }
 0x232   : > { %24597 = vst [vmem:[#allocation22_spill] sm:$0xff] %v20914_v37  ;;  %4252 = vmatpush1.bf16.msra.mxu1 %v17319_v47  ;;  %v3011_v54 = vpop.f32.mrb[10].mxu1  ;;  %v20922_v13 = vadd.f32 %v20877_v49, %v2845_v62  ;;  %v2847_v24 = vpop.f32.mrb[67].mxu0  ;;  %4052 = vmatprep.subr.bf16.mxu0 %v17324_v30  ;;  %v17331_v47 = vld [vmem:[#allocation5 + $0x218] ss:$24 sps:$4 sm:$0xff]  }
 0x233   : > { %24598 = vst [vmem:[#allocation23_spill] sm:$0xff] %v20919_v11  ;;  %4253 = vmatprep.subr.bf16.mxu1 %v17327_v50  ;;  %v3013_v31 = vpop.f32.mrb[11].mxu1  ;;  %v20925_v42 = vadd.f32 %v20881_v33, %v2847_v24  ;;  %v17336_v49 = vld [vmem:[#allocation5 + $0x184] ss:$24 sps:$4 sm:$0xff]   ;;  %v17334_v33 = vld [vmem:[#allocation5 + $0x180] ss:$24 sps:$4 sm:$0xff]  }
 0x234   : > { %24599 = vst [vmem:[#allocation24_spill] sm:$0xff] %v20922_v13  ;;  %3235 = vmatmul.mubr.bf16.gmra.mrb[92].mxu0 %v20161_v23  ;;  %v17339_v30 = vld [vmem:[#allocation5 + $0x24c] ss:$24 sps:$4 sm:$0xff]   ;;  %v17337_v2 = vld [vmem:[#allocation5 + $0x248] ss:$24 sps:$4 sm:$0xff]  }
 0x235   : > { %24600 = vst [vmem:[#allocation25_spill] sm:$0xff] %v20925_v42  ;;  %4053 = vmatpush1.bf16.msra.mxu0 %v17322_v27  ;;  %4072 = vmatprep.mubr.bf16.mxu0 %v20475_v60  ;;  %v17342_v62 = vld [vmem:[#allocation5 + $0x1b4] ss:$24 sps:$4 sm:$0xff]  }
 0x236   : > { %4254 = vmatpush1.bf16.msra.mxu1 %v17325_v6  ;;  %4054 = vmatprep.subr.bf16.mxu0 %v17330_v59 }
 0x237   : > { %4255 = vmatprep.subr.bf16.mxu1 %v17333_v40  ;;  %v2851_v50 = vpop.f32.mrb[68].mxu0 }
 0x238   : > { %v3017_v58 = vpop.f32.mrb[12].mxu1  ;;  %v20934_v23 = vadd.f32 %v20893_v46, %v2851_v50  ;;  %v2853_v24 = vpop.f32.mrb[69].mxu0  ;;  %v17340_v50 = vld [vmem:[#allocation5 + $0x1b0] ss:$24 sps:$4 sm:$0xff]  }
 0x239   : > { %v3019_v27 = vpop.f32.mrb[13].mxu1  ;;  %4055 = vmatpush1.bf16.msra.mxu0 %v17328_v22  ;;  %v2855_v38 = vpop.f32.mrb[70].mxu0  ;;  %v20937_v9 = vadd.f32 %v20895_v25, %v2853_v24  ;;  %v17354_v24 = vld [vmem:[#allocation5 + $0x214] ss:$24 sps:$4 sm:$0xff]   ;;  %v17352_v25 = vld [vmem:[#allocation5 + $0x210] ss:$24 sps:$4 sm:$0xff]  }
 0x23a   : > { %24601 = vst [vmem:[#allocation26_spill] sm:$0xff] %v20934_v23  ;;  %v3021_v21 = vpop.f32.mrb[14].mxu1  ;;  %4256 = vmatpush1.bf16.msra.mxu1 %v17331_v47  ;;  %4056 = vmatprep.subr.bf16.mxu0 %v17336_v49  ;;  %v20940_v6 = vadd.f32 %v20897_v1, %v2855_v38  ;;  %v2857_v59 = vpop.f32.mrb[71].mxu0  ;;  %v17348_v1 = vld [vmem:[#allocation5 + $0x1e4] ss:$24 sps:$4 sm:$0xff]  }
 0x23b   : > { %24602 = vst [vmem:[#allocation27_spill] sm:$0xff] %v20937_v9  ;;  %v3023_v40 = vpop.f32.mrb[15].mxu1  ;;  %4257 = vmatprep.subr.bf16.mxu1 %v17339_v30  ;;  %v20943_v46 = vadd.f32 %v20901_v51, %v2857_v59  ;;  %v17351_v38 = vld [vmem:[#allocation5 + $0x2ac] ss:$24 sps:$4 sm:$0xff]   ;;  %v17346_v47 = vld [vmem:[#allocation5 + $0x1e0] ss:$24 sps:$4 sm:$0xff]  }
 0x23c   : > { %24603 = vst [vmem:[#allocation28_spill] sm:$0xff] %v20940_v6  ;;  %v17349_v30 = vld [vmem:[#allocation5 + $0x2a8] ss:$24 sps:$4 sm:$0xff]   ;;  %v17355_v23 = vld [vmem:[#allocation5 + $0x2d8] ss:$24 sps:$4 sm:$0xff]  }
 0x23d   : > { %24604 = vst [vmem:[#allocation29_spill] sm:$0xff] %v20943_v46  ;;  %4057 = vmatpush1.bf16.msra.mxu0 %v17334_v33  ;;  %v17549_v6 = vld [vmem:[#allocation7 + $0x224] ss:$24 sps:$4 sm:$0xff]   ;;  %v17499_v9 = vld [vmem:[#allocation7 + $0x188] ss:$24 sps:$4 sm:$0xff]  }
 0x23e   : > { %4258 = vmatpush1.bf16.msra.mxu1 %v17337_v2  ;;  %4058 = vmatprep.subr.bf16.mxu0 %v17342_v62 }
 0x23f   : > { %4259 = vmatprep.subr.bf16.mxu1 %v17345_v20  ;;  %v2861_v49 = vpop.f32.mrb[72].mxu0  ;;  %v17357_v20 = vld [vmem:[#allocation5 + $0x2dc] ss:$24 sps:$4 sm:$0xff]  }
 0x240   : > { %v20950_v51 = vadd.f32 %v20911_v8, %v2861_v49  ;;  %v2863_v59 = vpop.f32.mrb[73].mxu0 }
 0x241   : > { %4059 = vmatpush1.bf16.msra.mxu0 %v17340_v50  ;;  %v2865_v37 = vpop.f32.mrb[74].mxu0  ;;  %v20953_v33 = vadd.f32 %v20916_v34, %v2863_v59  ;;  %v17393_v34 = vld [vmem:[#allocation7 + $0x4] ss:$24 sps:$4 sm:$0xff]   ;;  %v17391_v59 = vld [vmem:[#allocation7] ss:$24 sps:$4 sm:$0xff]  }
 0x242   : > { %24605 = vst [vmem:[#allocation30_spill] sm:$0xff] %v20950_v51  ;;  %4260 = vmatpush1.bf16.msra.mxu1 %v17343_v26  ;;  %4060 = vmatprep.subr.bf16.mxu0 %v17348_v1  ;;  %v20955_v2 = vadd.f32 %v3011_v54, %v2865_v37  ;;  %v2867_v62 = vpop.f32.mrb[75].mxu0  ;;  %v17360_v26 = vld [vmem:[#allocation5 + $0x244] ss:$24 sps:$4 sm:$0xff]   ;;  %v17358_v37 = vld [vmem:[#allocation5 + $0x240] ss:$24 sps:$4 sm:$0xff]  }
 0x243   : > { %24606 = vst [vmem:[#allocation31_spill] sm:$0xff] %v20953_v33  ;;  %4261 = vmatprep.subr.bf16.mxu1 %v17351_v38  ;;  %v20957_v22 = vadd.f32 %v3013_v31, %v2867_v62  ;;  %v17363_v1 = vld [vmem:[#allocation5 + $0x274] ss:$24 sps:$4 sm:$0xff]  }
 0x244   : > { %24607 = vst [vmem:[#allocation32_spill] sm:$0xff] %v20955_v2  ;;  %v17396_v50 = vld [vmem:[#allocation7 + $0x34] ss:$24 sps:$4 sm:$0xff]  }
 0x245   : > { %24608 = vst [vmem:[#allocation33_spill] sm:$0xff] %v20957_v22  ;;  %4061 = vmatpush1.bf16.msra.mxu0 %v17346_v47 }
 0x246   : > { %4262 = vmatpush1.bf16.msra.mxu1 %v17349_v30  ;;  %4062 = vmatprep.subr.bf16.mxu0 %v17354_v24  ;;  %v17361_v30 = vld [vmem:[#allocation5 + $0x270] ss:$24 sps:$4 sm:$0xff]  }
 0x247   : > { %4263 = vmatprep.subr.bf16.mxu1 %v17357_v20  ;;  %v2871_v54 = vpop.f32.mrb[76].mxu0  ;;  %v17366_v20 = vld [vmem:[#allocation5 + $0x2a4] ss:$24 sps:$4 sm:$0xff]  }
 0x248   : > { %v2873_v38 = vpop.f32.mrb[77].mxu0  ;;  %v20963_v31 = vadd.f32 %v3017_v58, %v2871_v54  ;;  %v17405_v54 = vld [vmem:[#allocation7 + $0x94] ss:$24 sps:$4 sm:$0xff]  }
 0x249   : > { %4063 = vmatpush1.bf16.msra.mxu0 %v17352_v25  ;;  %v2875_v49 = vpop.f32.mrb[78].mxu0  ;;  %v20965_v62 = vadd.f32 %v3019_v27, %v2873_v38  ;;  %v17394_v25 = vld [vmem:[#allocation7 + $0x30] ss:$24 sps:$4 sm:$0xff]   ;;  %v17364_v27 = vld [vmem:[#allocation5 + $0x2a0] ss:$24 sps:$4 sm:$0xff]  }
 0x24a   : > { %24609 = vst [vmem:[#allocation34_spill] sm:$0xff] %v20963_v31  ;;  %4264 = vmatpush1.bf16.msra.mxu1 %v17355_v23  ;;  %4064 = vmatprep.subr.bf16.mxu0 %v17360_v26  ;;  %v2877_v47 = vpop.f32.mrb[79].mxu0  ;;  %v20967_v8 = vadd.f32 %v3021_v21, %v2875_v49  ;;  %v17402_v21 = vld [vmem:[#allocation7 + $0x64] ss:$24 sps:$4 sm:$0xff]   ;;  %v17400_v26 = vld [vmem:[#allocation7 + $0x60] ss:$24 sps:$4 sm:$0xff]  }
 0x24b   : > { %24610 = vst [vmem:[#allocation35_spill] sm:$0xff] %v20965_v62  ;;  %5291 = vmatprep.subr.bf16.mxu1 %v17393_v34  ;;  %v20969_v24 = vadd.f32 %v3023_v40, %v2877_v47  ;;  %v17369_v40 = vld [vmem:[#allocation5 + $0x2d4] ss:$24 sps:$4 sm:$0xff]   ;;  %v17367_v34 = vld [vmem:[#allocation5 + $0x2d0] ss:$24 sps:$4 sm:$0xff]  }
 0x24c   : > { %24611 = vst [vmem:[#allocation36_spill] sm:$0xff] %v20967_v8  ;;  %v17403_v38 = vld [vmem:[#allocation7 + $0x90] ss:$24 sps:$4 sm:$0xff]   ;;  %v17373_v47 = vld [vmem:[#allocation5 + $0x40] ss:$24 sps:$4 sm:$0xff]  }
 0x24d   : > { %24612 = vst [vmem:[#allocation37_spill] sm:$0xff] %v20969_v24  ;;  %4065 = vmatpush1.bf16.msra.mxu0 %v17358_v37  ;;  %4266 = vmatmul.mubr.bf16.vlgmr.msra.gmra.mrb[32].mxu1 %v20469_v57  ;;  %v17372_v37 = vld [vmem:[#allocation5 + $0x14] ss:$24 sps:$4 sm:$0xff]   ;;  %v17370_v49 = vld [vmem:[#allocation5 + $0x10] ss:$24 sps:$4 sm:$0xff]  }
 0x24e   : > { %4275 = vmatprep.mubr.bf16.mxu1 %v20508_v17  ;;  %4066 = vmatprep.subr.bf16.mxu0 %v17363_v1  ;;  %v17411_v1 = vld [vmem:[#allocation7 + $0xc4] ss:$24 sps:$4 sm:$0xff]   ;;  %v17532_v23 = vld [vmem:[#allocation7 + $0x190] ss:$24 sps:$4 sm:$0xff]  }
 0x24f   : > { %5292 = vmatpush1.bf16.msra.mxu1 %v17391_v59  ;;  %v17409_v59 = vld [vmem:[#allocation7 + $0xc0] ss:$24 sps:$4 sm:$0xff]   ;;  %v17483_v58 = vld [vmem:[#allocation7 + $0xfc] ss:$24 sps:$4 sm:$0xff]  }
 0x250   : > { %5293 = vmatprep.subr.bf16.mxu1 %v17396_v50  ;;  %v17375_v50 = vld [vmem:[#allocation5 + $0x44] ss:$24 sps:$4 sm:$0xff]  }
 0x251   : > { %4067 = vmatpush1.bf16.msra.mxu0 %v17361_v30  ;;  %v17414_v30 = vld [vmem:[#allocation7 + $0xf4] ss:$24 sps:$4 sm:$0xff]  }
 0x252   : > { %4068 = vmatprep.subr.bf16.mxu0 %v17366_v20  ;;  %v17378_v20 = vld [vmem:[#allocation5 + $0x74] ss:$24 sps:$4 sm:$0xff]  }
 0x253   : > { %5294 = vmatpush1.bf16.msra.mxu1 %v17394_v25  ;;  %v17412_v25 = vld [vmem:[#allocation7 + $0xf0] ss:$24 sps:$4 sm:$0xff]  }
 0x254   : > { %5295 = vmatprep.subr.bf16.mxu1 %v17402_v21  ;;  %v17420_v21 = vld [vmem:[#allocation7 + $0x124] ss:$24 sps:$4 sm:$0xff]  }
 0x255   : > { %4069 = vmatpush1.bf16.msra.mxu0 %v17364_v27  ;;  %4276 = vmatmul.mubr.bf16.gmra.mrb[36].mxu1 %v20503_v15  ;;  %v17376_v27 = vld [vmem:[#allocation5 + $0x70] ss:$24 sps:$4 sm:$0xff]  }
 0x256   : > { %4285 = vmatprep.mubr.bf16.mxu1 %v20540_v55  ;;  %4070 = vmatprep.subr.bf16.mxu0 %v17369_v40  ;;  %v17381_v40 = vld [vmem:[#allocation5 + $0xa4] ss:$24 sps:$4 sm:$0xff]  }
 0x257   : > { %5296 = vmatpush1.bf16.msra.mxu1 %v17400_v26  ;;  %v17418_v26 = vld [vmem:[#allocation7 + $0x120] ss:$24 sps:$4 sm:$0xff]  }
 0x258   : > { %5297 = vmatprep.subr.bf16.mxu1 %v17405_v54  ;;  %v17384_v54 = vld [vmem:[#allocation5 + $0xd4] ss:$24 sps:$4 sm:$0xff]  }
 0x259   : > { %4071 = vmatpush1.bf16.msra.mxu0 %v17367_v34  ;;  %v17379_v34 = vld [vmem:[#allocation5 + $0xa0] ss:$24 sps:$4 sm:$0xff]  }
 0x25a   : > { %4426 = vmatprep.subr.bf16.mxu0 %v17372_v37  ;;  %v17423_v37 = vld [vmem:[#allocation7 + $0x154] ss:$24 sps:$4 sm:$0xff]  }
 0x25b   : > { %5298 = vmatpush1.bf16.msra.mxu1 %v17403_v38  ;;  %v17421_v38 = vld [vmem:[#allocation7 + $0x150] ss:$24 sps:$4 sm:$0xff]  }
 0x25c   : > { %4073 = vmatmul.mubr.bf16.vlgmr.msra.gmra.mrb[96].mxu0 %v20469_v57  ;;  %5299 = vmatprep.subr.bf16.mxu1 %v17411_v1  ;;  %v17429_v1 = vld [vmem:[#allocation7 + $0x184] ss:$24 sps:$4 sm:$0xff]  }
 0x25d   : > { %4082 = vmatprep.mubr.bf16.mxu0 %v20508_v17  ;;  %4286 = vmatmul.mubr.bf16.gmra.mrb[40].mxu1 %v20535_v45 }
 0x25e   : > { %4427 = vmatpush1.bf16.msra.mxu0 %v17370_v49  ;;  %4295 = vmatprep.mubr.bf16.mxu1 %v20573_v10  ;;  %v17382_v49 = vld [vmem:[#allocation5 + $0xd0] ss:$24 sps:$4 sm:$0xff]  }
 0x25f   : > { %4428 = vmatprep.subr.bf16.mxu0 %v17375_v50  ;;  %5300 = vmatpush1.bf16.msra.mxu1 %v17409_v59  ;;  %v17387_v50 = vld [vmem:[#allocation5 + $0x104] ss:$24 sps:$4 sm:$0xff]   ;;  %v17427_v59 = vld [vmem:[#allocation7 + $0x180] ss:$24 sps:$4 sm:$0xff]  }
 0x260   : > { %5301 = vmatprep.subr.bf16.mxu1 %v17414_v30  ;;  %v17432_v30 = vld [vmem:[#allocation7 + $0x1b4] ss:$24 sps:$4 sm:$0xff]  }
 0x262   : > { %4429 = vmatpush1.bf16.msra.mxu0 %v17373_v47  ;;  %v17385_v47 = vld [vmem:[#allocation5 + $0x100] ss:$24 sps:$4 sm:$0xff]  }
 0x263   : > { %4430 = vmatprep.subr.bf16.mxu0 %v17378_v20  ;;  %5302 = vmatpush1.bf16.msra.mxu1 %v17412_v25  ;;  %v17390_v20 = vld [vmem:[#allocation5 + $0x134] ss:$24 sps:$4 sm:$0xff]   ;;  %v17430_v25 = vld [vmem:[#allocation7 + $0x1b0] ss:$24 sps:$4 sm:$0xff]  }
 0x264   : > { %4083 = vmatmul.mubr.bf16.gmra.mrb[100].mxu0 %v20503_v15  ;;  %5303 = vmatprep.subr.bf16.mxu1 %v17420_v21  ;;  %v17438_v21 = vld [vmem:[#allocation7 + $0x1e4] ss:$24 sps:$4 sm:$0xff]  }
 0x265   : > { %4092 = vmatprep.mubr.bf16.mxu0 %v20540_v55  ;;  %4296 = vmatmul.mubr.bf16.gmra.mrb[44].mxu1 %v20567_v53 }
 0x266   : > { %4305 = vmatprep.mubr.bf16.mxu1 %v20607_v48  ;;  %4431 = vmatpush1.bf16.msra.mxu0 %v17376_v27  ;;  %v17388_v27 = vld [vmem:[#allocation5 + $0x130] ss:$24 sps:$4 sm:$0xff]  }
 0x267   : > { %4432 = vmatprep.subr.bf16.mxu0 %v17381_v40  ;;  %5304 = vmatpush1.bf16.msra.mxu1 %v17418_v26  ;;  %v17399_v40 = vld [vmem:[#allocation5 + $0x164] ss:$24 sps:$4 sm:$0xff]   ;;  %v17436_v26 = vld [vmem:[#allocation7 + $0x1e0] ss:$24 sps:$4 sm:$0xff]  }
 0x268   : > { %5305 = vmatprep.subr.bf16.mxu1 %v17423_v37  ;;  %v17441_v37 = vld [vmem:[#allocation7 + $0x214] ss:$24 sps:$4 sm:$0xff]  }
 0x26a   : > { %4433 = vmatpush1.bf16.msra.mxu0 %v17379_v34  ;;  %v17397_v34 = vld [vmem:[#allocation5 + $0x160] ss:$24 sps:$4 sm:$0xff]  }
 0x26b   : > { %4434 = vmatprep.subr.bf16.mxu0 %v17384_v54  ;;  %5306 = vmatpush1.bf16.msra.mxu1 %v17421_v38  ;;  %v17408_v54 = vld [vmem:[#allocation5 + $0x194] ss:$24 sps:$4 sm:$0xff]   ;;  %v17439_v38 = vld [vmem:[#allocation7 + $0x210] ss:$24 sps:$4 sm:$0xff]  }
 0x26c   : > { %4093 = vmatmul.mubr.bf16.gmra.mrb[104].mxu0 %v20535_v45  ;;  %5307 = vmatprep.subr.bf16.mxu1 %v17429_v1  ;;  %v17447_v1 = vld [vmem:[#allocation7 + $0x244] ss:$24 sps:$4 sm:$0xff]  }
 0x26d   : > { %4102 = vmatprep.mubr.bf16.mxu0 %v20573_v10  ;;  %4306 = vmatmul.mubr.bf16.gmra.mrb[48].mxu1 %v20601_v43 }
 0x26e   : > { %4315 = vmatprep.mubr.bf16.mxu1 %v20651_v32  ;;  %4435 = vmatpush1.bf16.msra.mxu0 %v17382_v49  ;;  %v17406_v49 = vld [vmem:[#allocation5 + $0x190] ss:$24 sps:$4 sm:$0xff]  }
 0x26f   : > { %4436 = vmatprep.subr.bf16.mxu0 %v17387_v50  ;;  %5308 = vmatpush1.bf16.msra.mxu1 %v17427_v59  ;;  %v17417_v50 = vld [vmem:[#allocation5 + $0x1c4] ss:$24 sps:$4 sm:$0xff]   ;;  %v17445_v59 = vld [vmem:[#allocation7 + $0x240] ss:$24 sps:$4 sm:$0xff]  }
 0x270   : > { %5309 = vmatprep.subr.bf16.mxu1 %v17432_v30  ;;  %v17450_v30 = vld [vmem:[#allocation7 + $0x274] ss:$24 sps:$4 sm:$0xff]  }
 0x272   : > { %4437 = vmatpush1.bf16.msra.mxu0 %v17385_v47  ;;  %v17415_v47 = vld [vmem:[#allocation5 + $0x1c0] ss:$24 sps:$4 sm:$0xff]  }
 0x273   : > { %4438 = vmatprep.subr.bf16.mxu0 %v17390_v20  ;;  %5310 = vmatpush1.bf16.msra.mxu1 %v17430_v25  ;;  %v17426_v20 = vld [vmem:[#allocation5 + $0x1f4] ss:$24 sps:$4 sm:$0xff]   ;;  %v17448_v25 = vld [vmem:[#allocation7 + $0x270] ss:$24 sps:$4 sm:$0xff]  }
 0x274   : > { %4103 = vmatmul.mubr.bf16.gmra.mrb[108].mxu0 %v20567_v53  ;;  %5311 = vmatprep.subr.bf16.mxu1 %v17438_v21  ;;  %v17456_v21 = vld [vmem:[#allocation7 + $0x2a4] ss:$24 sps:$4 sm:$0xff]  }
 0x275   : > { %4112 = vmatprep.mubr.bf16.mxu0 %v20607_v48  ;;  %4316 = vmatmul.mubr.bf16.gmra.mrb[52].mxu1 %v20641_v16 }
 0x276   : > { %4325 = vmatprep.mubr.bf16.mxu1 %v20687_v61  ;;  %4439 = vmatpush1.bf16.msra.mxu0 %v17388_v27  ;;  %v17424_v27 = vld [vmem:[#allocation5 + $0x1f0] ss:$24 sps:$4 sm:$0xff]  }
 0x277   : > { %4440 = vmatprep.subr.bf16.mxu0 %v17399_v40  ;;  %5312 = vmatpush1.bf16.msra.mxu1 %v17436_v26  ;;  %v17435_v40 = vld [vmem:[#allocation5 + $0x224] ss:$24 sps:$4 sm:$0xff]   ;;  %v17454_v26 = vld [vmem:[#allocation7 + $0x2a0] ss:$24 sps:$4 sm:$0xff]  }
 0x278   : > { %5313 = vmatprep.subr.bf16.mxu1 %v17441_v37  ;;  %v17459_v37 = vld [vmem:[#allocation7 + $0x2d4] ss:$24 sps:$4 sm:$0xff]  }
 0x27a   : > { %4441 = vmatpush1.bf16.msra.mxu0 %v17397_v34  ;;  %v17433_v34 = vld [vmem:[#allocation5 + $0x220] ss:$24 sps:$4 sm:$0xff]  }
 0x27b   : > { %4442 = vmatprep.subr.bf16.mxu0 %v17408_v54  ;;  %5314 = vmatpush1.bf16.msra.mxu1 %v17439_v38  ;;  %v17444_v54 = vld [vmem:[#allocation5 + $0x254] ss:$24 sps:$4 sm:$0xff]   ;;  %v17457_v38 = vld [vmem:[#allocation7 + $0x2d0] ss:$24 sps:$4 sm:$0xff]  }
 0x27c   : > { %4113 = vmatmul.mubr.bf16.gmra.mrb[112].mxu0 %v20601_v43  ;;  %5315 = vmatprep.subr.bf16.mxu1 %v17447_v1  ;;  %v17442_v1 = vld [vmem:[#allocation5 + $0x250] ss:$24 sps:$4 sm:$0xff]  }
 0x27d   : > { %4122 = vmatprep.mubr.bf16.mxu0 %v20651_v32  ;;  %4326 = vmatmul.mubr.bf16.gmra.mrb[56].mxu1 %v20677_v52 }
 0x27e   : > { %4335 = vmatprep.mubr.bf16.mxu1 %v20722_v12  ;;  %4443 = vmatpush1.bf16.msra.mxu0 %v17406_v49  ;;  %v17453_v49 = vld [vmem:[#allocation5 + $0x284] ss:$24 sps:$4 sm:$0xff]  }
 0x27f   : > { %4444 = vmatprep.subr.bf16.mxu0 %v17417_v50  ;;  %5316 = vmatpush1.bf16.msra.mxu1 %v17445_v59  ;;  %v17489_v50 = vld [vmem:[#allocation7 + $0x14] ss:$24 sps:$4 sm:$0xff]   ;;  %v17451_v59 = vld [vmem:[#allocation5 + $0x280] ss:$24 sps:$4 sm:$0xff]  }
 0x280   : > { %5317 = vmatprep.subr.bf16.mxu1 %v17450_v30  ;;  %v17460_v30 = vld [vmem:[#allocation5 + $0x2b0] ss:$24 sps:$4 sm:$0xff]  }
 0x282   : > { %4445 = vmatpush1.bf16.msra.mxu0 %v17415_v47  ;;  %v17462_v47 = vld [vmem:[#allocation5 + $0x2b4] ss:$24 sps:$4 sm:$0xff]  }
 0x283   : > { %4446 = vmatprep.subr.bf16.mxu0 %v17426_v20  ;;  %5318 = vmatpush1.bf16.msra.mxu1 %v17448_v25  ;;  %v17465_v20 = vld [vmem:[#allocation5 + $0x2e4] ss:$24 sps:$4 sm:$0xff]   ;;  %v17463_v25 = vld [vmem:[#allocation5 + $0x2e0] ss:$24 sps:$4 sm:$0xff]  }
 0x284   : > { %4123 = vmatmul.mubr.bf16.gmra.mrb[116].mxu0 %v20641_v16  ;;  %5319 = vmatprep.subr.bf16.mxu1 %v17456_v21  ;;  %v17468_v21 = vld [vmem:[#allocation7 + $0xc] ss:$24 sps:$4 sm:$0xff]  }
 0x285   : > { %4132 = vmatprep.mubr.bf16.mxu0 %v20687_v61  ;;  %4336 = vmatmul.mubr.bf16.gmra.mrb[60].mxu1 %v20713_v18 }
 0x286   : > { %4345 = vmatprep.mubr.bf16.mxu1 %v20756_v3  ;;  %4447 = vmatpush1.bf16.msra.mxu0 %v17424_v27  ;;  %v17487_v27 = vld [vmem:[#allocation7 + $0x10] ss:$24 sps:$4 sm:$0xff]  }
 0x287   : > { %4448 = vmatprep.subr.bf16.mxu0 %v17435_v40  ;;  %5320 = vmatpush1.bf16.msra.mxu1 %v17454_v26  ;;  %v17492_v40 = vld [vmem:[#allocation7 + $0x44] ss:$24 sps:$4 sm:$0xff]   ;;  %v17490_v26 = vld [vmem:[#allocation7 + $0x40] ss:$24 sps:$4 sm:$0xff]  }
 0x288   : > { %5321 = vmatprep.subr.bf16.mxu1 %v17459_v37  ;;  %v17496_v37 = vld [vmem:[#allocation7 + $0x70] ss:$24 sps:$4 sm:$0xff]  }
 0x28a   : > { %4449 = vmatpush1.bf16.msra.mxu0 %v17433_v34  ;;  %v17498_v34 = vld [vmem:[#allocation7 + $0x74] ss:$24 sps:$4 sm:$0xff]  }
 0x28b   : > { %4450 = vmatprep.subr.bf16.mxu0 %v17444_v54  ;;  %5322 = vmatpush1.bf16.msra.mxu1 %v17457_v38  ;;  %v17504_v54 = vld [vmem:[#allocation7 + $0xa4] ss:$24 sps:$4 sm:$0xff]   ;;  %v17502_v38 = vld [vmem:[#allocation7 + $0xa0] ss:$24 sps:$4 sm:$0xff]  }
 0x28c   : > { %4133 = vmatmul.mubr.bf16.gmra.mrb[120].mxu0 %v20677_v52  ;;  %5677 = vmatprep.subr.bf16.mxu1 %v17489_v50  ;;  %v17471_v50 = vld [vmem:[#allocation7 + $0x3c] ss:$24 sps:$4 sm:$0xff]  }
 0x28d   : > { %4142 = vmatprep.mubr.bf16.mxu0 %v20722_v12  ;;  %4346 = vmatmul.mubr.bf16.gmra.mrb[64].mxu1 %v20747_v56 }
 0x28e   : > { %4355 = vmatprep.mubr.bf16.mxu1 %v20789_v28  ;;  %4451 = vmatpush1.bf16.msra.mxu0 %v17442_v1  ;;  %v17510_v1 = vld [vmem:[#allocation7 + $0xd4] ss:$24 sps:$4 sm:$0xff]  }
 0x28f   : > { %4452 = vmatprep.subr.bf16.mxu0 %v17453_v49  ;;  %v17466_v49 = vld [vmem:[#allocation7 + $0x8] ss:$24 sps:$4 sm:$0xff]  }
 0x292   : > { %4453 = vmatpush1.bf16.msra.mxu0 %v17451_v59  ;;  %v17508_v59 = vld [vmem:[#allocation7 + $0xd0] ss:$24 sps:$4 sm:$0xff]  }
 0x293   : > { %4454 = vmatprep.subr.bf16.mxu0 %v17462_v47  ;;  %v17516_v47 = vld [vmem:[#allocation7 + $0x104] ss:$24 sps:$4 sm:$0xff]  }
 0x294   : > { %4143 = vmatmul.mubr.bf16.gmra.mrb[124].mxu0 %v20713_v18 }
 0x295   : > { %4152 = vmatprep.mubr.bf16.mxu0 %v20756_v3  ;;  %4356 = vmatmul.mubr.bf16.gmra.mrb[68].mxu1 %v20781_v19 }
 0x296   : > { %4365 = vmatprep.mubr.bf16.mxu1 %v20818_v5  ;;  %4455 = vmatpush1.bf16.msra.mxu0 %v17460_v30  ;;  %v17469_v30 = vld [vmem:[#allocation7 + $0x38] ss:$24 sps:$4 sm:$0xff]  }
 0x297   : > { %4456 = vmatprep.subr.bf16.mxu0 %v17465_v20  ;;  %v17474_v20 = vld [vmem:[#allocation7 + $0x6c] ss:$24 sps:$4 sm:$0xff]  }
 0x29a   : > { %4457 = vmatpush1.bf16.msra.mxu0 %v17463_v25  ;;  %v17514_v25 = vld [vmem:[#allocation7 + $0x100] ss:$24 sps:$4 sm:$0xff]  }
 0x29b   : > { %5484 = vmatprep.subr.bf16.mxu0 %v17468_v21  ;;  %v17522_v21 = vld [vmem:[#allocation7 + $0x134] ss:$24 sps:$4 sm:$0xff]  }
 0x29c   : > { %4153 = vmatmul.mubr.bf16.gmra.mrb[128].mxu0 %v20747_v56 }
 0x29d   : > { %4162 = vmatprep.mubr.bf16.mxu0 %v20789_v28  ;;  %4366 = vmatmul.mubr.bf16.gmra.mrb[72].mxu1 %v20813_v4 }
 0x29e   : > { %4375 = vmatprep.mubr.bf16.mxu1 %v20836_v36 }
 0x2a4   : > { %4163 = vmatmul.mubr.bf16.gmra.mrb[132].mxu0 %v20781_v19 }
 0x2a5   : > { %4172 = vmatprep.mubr.bf16.mxu0 %v20818_v5  ;;  %4376 = vmatmul.mubr.bf16.gmra.mrb[76].mxu1 %v20830_v29 }
 0x2a6   : > { %4385 = vmatprep.mubr.bf16.mxu1 %v20858_v35 }
 0x2ac   : > { %4173 = vmatmul.mubr.bf16.gmra.mrb[136].mxu0 %v20813_v4 }
 0x2ad   : > { %4182 = vmatprep.mubr.bf16.mxu0 %v20836_v36  ;;  %4386 = vmatmul.mubr.bf16.gmra.mrb[80].mxu1 %v20852_v7 }
 0x2ae   : > { %4395 = vmatprep.mubr.bf16.mxu1 %v20869_v63 }
 0x2b4   : > { %4183 = vmatmul.mubr.bf16.gmra.mrb[140].mxu0 %v20830_v29 }
 0x2b5   : > { %4192 = vmatprep.mubr.bf16.mxu0 %v20858_v35  ;;  %4396 = vmatmul.mubr.bf16.gmra.mrb[84].mxu1 %v20865_v44 }
 0x2b6   : > { %4405 = vmatprep.mubr.bf16.mxu1 %v20889_v41 }
 0x2bc   : > { %4193 = vmatmul.mubr.bf16.gmra.mrb[144].mxu0 %v20852_v7 }
 0x2bd   : > { %4202 = vmatprep.mubr.bf16.mxu0 %v20869_v63  ;;  %4406 = vmatmul.mubr.bf16.gmra.mrb[88].mxu1 %v20885_v39 }
 0x2be   : > { %4415 = vmatprep.mubr.bf16.mxu1 %v20908_v0 }
 0x2c4   : > { %4203 = vmatmul.mubr.bf16.gmra.mrb[148].mxu0 %v20865_v44 }
 0x2c5   : > { %4212 = vmatprep.mubr.bf16.mxu0 %v20889_v41  ;;  %4416 = vmatmul.mubr.bf16.gmra.mrb[92].mxu1 %v20905_v14 }
 0x2c6   : > { %5323 = vmatprep.mubr.bf16.mxu1 %v20475_v60 }
 0x2cc   : > { %4213 = vmatmul.mubr.bf16.gmra.mrb[152].mxu0 %v20885_v39 }
 0x2cd   : > { %4222 = vmatprep.mubr.bf16.mxu0 %v20908_v0  ;;  %5324 = vmatmul.mubr.bf16.vlgmr.msra.gmra.mrb[96].mxu1 %v20469_v57 }
 0x2ce   : > { %5333 = vmatprep.mubr.bf16.mxu1 %v20508_v17  ;;  %5678 = vmatpush1.bf16.msra.mxu1 %v17487_v27 }
 0x2cf   : > { %5679 = vmatprep.subr.bf16.mxu1 %v17492_v40  ;;  %v17472_v40 = vld [vmem:[#allocation7 + $0x68] ss:$24 sps:$4 sm:$0xff]  }
 0x2d2   : > { %5680 = vmatpush1.bf16.msra.mxu1 %v17490_v26 }
 0x2d3   : > { %5681 = vmatprep.subr.bf16.mxu1 %v17498_v34  ;;  %v17477_v34 = vld [vmem:[#allocation7 + $0x9c] ss:$24 sps:$4 sm:$0xff]  }
 0x2d4   : > { %4223 = vmatmul.mubr.bf16.gmra.mrb[156].mxu0 %v20905_v14 }
 0x2d5   : > { %4458 = vmatprep.mubr.bf16.mxu0 %v20475_v60  ;;  %5334 = vmatmul.mubr.bf16.gmra.mrb[100].mxu1 %v20503_v15 }
 0x2d6   : > { %5343 = vmatprep.mubr.bf16.mxu1 %v20540_v55  ;;  %5682 = vmatpush1.bf16.msra.mxu1 %v17496_v37 }
 0x2d7   : > { %5683 = vmatprep.subr.bf16.mxu1 %v17504_v54  ;;  %v17520_v54 = vld [vmem:[#allocation7 + $0x130] ss:$24 sps:$4 sm:$0xff]  }
 0x2da   : > { %5684 = vmatpush1.bf16.msra.mxu1 %v17502_v38  ;;  %v17534_v38 = vld [vmem:[#allocation7 + $0x194] ss:$24 sps:$4 sm:$0xff]  }
 0x2db   : > { %5685 = vmatprep.subr.bf16.mxu1 %v17510_v1 }
 0x2dc   : > { %4459 = vmatmul.mubr.bf16.vlgmr.msra.gmra.mrb[160].mxu0 %v20469_v57 }
 0x2dd   : > { %4468 = vmatprep.mubr.bf16.mxu0 %v20508_v17  ;;  %5344 = vmatmul.mubr.bf16.gmra.mrb[104].mxu1 %v20535_v45 }
 0x2de   : > { %5485 = vmatpush1.bf16.msra.mxu0 %v17466_v49  ;;  %5353 = vmatprep.mubr.bf16.mxu1 %v20573_v10  ;;  %v17528_v49 = vld [vmem:[#allocation7 + $0x164] ss:$24 sps:$4 sm:$0xff]  }
 0x2df   : > { %5486 = vmatprep.subr.bf16.mxu0 %v17471_v50  ;;  %5686 = vmatpush1.bf16.msra.mxu1 %v17508_v59  ;;  %v17475_v59 = vld [vmem:[#allocation7 + $0x98] ss:$24 sps:$4 sm:$0xff]  }
 0x2e0   : > { %v21047_v27 = vpop.f32.mrb[16].mxu1  ;;  %5687 = vmatprep.subr.bf16.mxu1 %v17516_v47  ;;  %v17480_v47 = vld [vmem:[#allocation7 + $0xcc] ss:$24 sps:$4 sm:$0xff]  }
 0x2e1   : > { %24613 = vst [vmem:[#allocation38_spill] sm:$0xff] %v21047_v27  ;;  %v21049_v26 = vpop.f32.mrb[17].mxu1  ;;  %v17546_v27 = vld [vmem:[#allocation7 + $0x1f4] ss:$24 sps:$4 sm:$0xff]  }
 0x2e2   : > { %24614 = vst [vmem:[#allocation39_spill] sm:$0xff] %v21049_v26  ;;  %v21051_v37 = vpop.f32.mrb[18].mxu1  ;;  %5487 = vmatpush1.bf16.msra.mxu0 %v17469_v30  ;;  %v17526_v30 = vld [vmem:[#allocation7 + $0x160] ss:$24 sps:$4 sm:$0xff]   ;;  %v17544_v26 = vld [vmem:[#allocation7 + $0x1f0] ss:$24 sps:$4 sm:$0xff]  }
 0x2e3   : > { %24615 = vst [vmem:[#allocation40_spill] sm:$0xff] %v21051_v37  ;;  %v21055_v1 = vpop.f32.mrb[19].mxu1  ;;  %5488 = vmatprep.subr.bf16.mxu0 %v17474_v20  ;;  %5688 = vmatpush1.bf16.msra.mxu1 %v17514_v25  ;;  %v17478_v25 = vld [vmem:[#allocation7 + $0xc8] ss:$24 sps:$4 sm:$0xff]  }
 0x2e4   : > { %24616 = vst [vmem:[#allocation41_spill] sm:$0xff] %v21055_v1  ;;  %4469 = vmatmul.mubr.bf16.gmra.mrb[164].mxu0 %v20503_v15  ;;  %5689 = vmatprep.subr.bf16.mxu1 %v17522_v21 }
 0x2e5   : > { %4478 = vmatprep.mubr.bf16.mxu0 %v20540_v55  ;;  %5354 = vmatmul.mubr.bf16.gmra.mrb[108].mxu1 %v20567_v53 }
 0x2e6   : > { %5363 = vmatprep.mubr.bf16.mxu1 %v20607_v48  ;;  %5489 = vmatpush1.bf16.msra.mxu0 %v17472_v40  ;;  %v17540_v40 = vld [vmem:[#allocation7 + $0x1c4] ss:$24 sps:$4 sm:$0xff]  }
 0x2e7   : > { %5490 = vmatprep.subr.bf16.mxu0 %v17477_v34  ;;  %5690 = vmatpush1.bf16.msra.mxu1 %v17520_v54  ;;  %v17481_v54 = vld [vmem:[#allocation7 + $0xf8] ss:$24 sps:$4 sm:$0xff]   ;;  %v17484_v34 = vld [vmem:[#allocation7 + $0x128] ss:$24 sps:$4 sm:$0xff]  }
 0x2e8   : > { %v21063_v20 = vpop.f32.mrb[20].mxu1  ;;  %5691 = vmatprep.subr.bf16.mxu1 %v17528_v49  ;;  %v17486_v49 = vld [vmem:[#allocation7 + $0x12c] ss:$24 sps:$4 sm:$0xff]  }
 0x2e9   : > { %24617 = vst [vmem:[#allocation42_spill] sm:$0xff] %v21063_v20  ;;  %v21065_v50 = vpop.f32.mrb[21].mxu1 }
 0x2ea   : > { %24618 = vst [vmem:[#allocation43_spill] sm:$0xff] %v21065_v50  ;;  %v21067_v21 = vpop.f32.mrb[22].mxu1  ;;  %5491 = vmatpush1.bf16.msra.mxu0 %v17475_v59  ;;  %v17538_v59 = vld [vmem:[#allocation7 + $0x1c0] ss:$24 sps:$4 sm:$0xff]   ;;  %v17495_v50 = vld [vmem:[#allocation7 + $0x15c] ss:$24 sps:$4 sm:$0xff]  }
 0x2eb   : > { %24619 = vst [vmem:[#allocation44_spill] sm:$0xff] %v21067_v21  ;;  %v21071_v37 = vpop.f32.mrb[23].mxu1  ;;  %5492 = vmatprep.subr.bf16.mxu0 %v17480_v47  ;;  %5692 = vmatpush1.bf16.msra.mxu1 %v17526_v30 }
 0x2ec   : > { %24620 = vst [vmem:[#allocation45_spill] sm:$0xff] %v21071_v37  ;;  %4479 = vmatmul.mubr.bf16.gmra.mrb[168].mxu0 %v20535_v45  ;;  %5693 = vmatprep.subr.bf16.mxu1 %v17534_v38 }
 0x2ed   : > { %4488 = vmatprep.mubr.bf16.mxu0 %v20573_v10  ;;  %5364 = vmatmul.mubr.bf16.gmra.mrb[112].mxu1 %v20601_v43 }
 0x2ee   : > { %5373 = vmatprep.mubr.bf16.mxu1 %v20651_v32  ;;  %5493 = vmatpush1.bf16.msra.mxu0 %v17478_v25  ;;  %v17493_v25 = vld [vmem:[#allocation7 + $0x158] ss:$24 sps:$4 sm:$0xff]  }
 0x2ef   : > { %v21079_v20 = vpop.f32.mrb[80].mxu0  ;;  %5494 = vmatprep.subr.bf16.mxu0 %v17483_v58  ;;  %5694 = vmatpush1.bf16.msra.mxu1 %v17532_v23  ;;  %v17547_v58 = vld [vmem:[#allocation7 + $0x220] ss:$24 sps:$4 sm:$0xff]  }
 0x2f0   : > { %24621 = vst [vmem:[#allocation46_spill] sm:$0xff] %v21079_v20  ;;  %v21081_v47 = vpop.f32.mrb[24].mxu1  ;;  %v21083_v30 = vpop.f32.mrb[81].mxu0  ;;  %5695 = vmatprep.subr.bf16.mxu1 %v17540_v40  ;;  %v17507_v20 = vld [vmem:[#allocation7 + $0x1bc] ss:$24 sps:$4 sm:$0xff]  }
 0x2f1   : > { %24622 = vst [vmem:[#allocation47_spill] sm:$0xff] %v21081_v47  ;;  %24623 = vst [vmem:[#allocation48_spill] sm:$0xff] %v21083_v30  ;;  %v21085_v38 = vpop.f32.mrb[25].mxu1  ;;  %v21087_v21 = vpop.f32.mrb[82].mxu0  ;;  %v17552_v47 = vld [vmem:[#allocation7 + $0x254] ss:$24 sps:$4 sm:$0xff]  }
 0x2f2   : > { %24624 = vst [vmem:[#allocation49_spill] sm:$0xff] %v21085_v38  ;;  %24625 = vst [vmem:[#allocation50_spill] sm:$0xff] %v21087_v21  ;;  %v21089_v37 = vpop.f32.mrb[26].mxu1  ;;  %v21093_v1 = vpop.f32.mrb[83].mxu0  ;;  %5495 = vmatpush1.bf16.msra.mxu0 %v17481_v54  ;;  %v17501_v54 = vld [vmem:[#allocation7 + $0x18c] ss:$24 sps:$4 sm:$0xff]  }
 0x2f3   : > { %24626 = vst [vmem:[#allocation51_spill] sm:$0xff] %v21089_v37  ;;  %24627 = vst [vmem:[#allocation52_spill] sm:$0xff] %v21093_v1  ;;  %v21097_v23 = vpop.f32.mrb[27].mxu1  ;;  %5496 = vmatprep.subr.bf16.mxu0 %v17486_v49  ;;  %5696 = vmatpush1.bf16.msra.mxu1 %v17538_v59  ;;  %v17550_v38 = vld [vmem:[#allocation7 + $0x250] ss:$24 sps:$4 sm:$0xff]  }
 0x2f4   : > { %24628 = vst [vmem:[#allocation53_spill] sm:$0xff] %v21097_v23  ;;  %4489 = vmatmul.mubr.bf16.gmra.mrb[172].mxu0 %v20567_v53  ;;  %5697 = vmatprep.subr.bf16.mxu1 %v17546_v27  ;;  %v17558_v30 = vld [vmem:[#allocation7 + $0x2b4] ss:$24 sps:$4 sm:$0xff]  }
 0x2f5   : > { %4498 = vmatprep.mubr.bf16.mxu0 %v20607_v48  ;;  %5374 = vmatmul.mubr.bf16.gmra.mrb[116].mxu1 %v20641_v16 }
 0x2f6   : > { %5383 = vmatprep.mubr.bf16.mxu1 %v20687_v61  ;;  %5497 = vmatpush1.bf16.msra.mxu0 %v17484_v34  ;;  %v17505_v34 = vld [vmem:[#allocation7 + $0x1b8] ss:$24 sps:$4 sm:$0xff]  }
 0x2f7   : > { %v21107_v40 = vpop.f32.mrb[84].mxu0  ;;  %5498 = vmatprep.subr.bf16.mxu0 %v17495_v50  ;;  %5698 = vmatpush1.bf16.msra.mxu1 %v17544_v26  ;;  %v17555_v26 = vld [vmem:[#allocation7 + $0x284] ss:$24 sps:$4 sm:$0xff]  }
 0x2f8   : > { %24629 = vst [vmem:[#allocation54_spill] sm:$0xff] %v21107_v40  ;;  %v21109_v49 = vpop.f32.mrb[28].mxu1  ;;  %v21111_v59 = vpop.f32.mrb[85].mxu0  ;;  %5699 = vmatprep.subr.bf16.mxu1 %v17549_v6  ;;  %v17553_v40 = vld [vmem:[#allocation7 + $0x280] ss:$24 sps:$4 sm:$0xff]  }
 0x2f9   : > { %24630 = vst [vmem:[#allocation55_spill] sm:$0xff] %v21109_v49  ;;  %24631 = vst [vmem:[#allocation56_spill] sm:$0xff] %v21111_v59  ;;  %v21113_v27 = vpop.f32.mrb[29].mxu1  ;;  %v21115_v37 = vpop.f32.mrb[86].mxu0  ;;  %v17556_v49 = vld [vmem:[#allocation7 + $0x2b0] ss:$24 sps:$4 sm:$0xff]  }
 0x2fa   : > { %24632 = vst [vmem:[#allocation57_spill] sm:$0xff] %v21113_v27  ;;  %24633 = vst [vmem:[#allocation58_spill] sm:$0xff] %v21115_v37  ;;  %v21117_v21 = vpop.f32.mrb[30].mxu1  ;;  %v21121_v23 = vpop.f32.mrb[87].mxu0  ;;  %5499 = vmatpush1.bf16.msra.mxu0 %v17493_v25  ;;  %v17513_v25 = vld [vmem:[#allocation7 + $0x1ec] ss:$24 sps:$4 sm:$0xff]  }
 0x2fb   : > { %24634 = vst [vmem:[#allocation59_spill] sm:$0xff] %v21117_v21  ;;  %24635 = vst [vmem:[#allocation60_spill] sm:$0xff] %v21121_v23  ;;  %v21123_v50 = vpop.f32.mrb[31].mxu1  ;;  %5500 = vmatprep.subr.bf16.mxu0 %v17501_v54  ;;  %5700 = vmatpush1.bf16.msra.mxu1 %v17547_v58  ;;  %v17511_v54 = vld [vmem:[#allocation7 + $0x1e8] ss:$24 sps:$4 sm:$0xff]  }
 0x2fc   : > { %24636 = vst [vmem:[#allocation61_spill] sm:$0xff] %v21123_v50  ;;  %4499 = vmatmul.mubr.bf16.gmra.mrb[176].mxu0 %v20601_v43  ;;  %5701 = vmatprep.subr.bf16.mxu1 %v17552_v47  ;;  %v17519_v47 = vld [vmem:[#allocation7 + $0x21c] ss:$24 sps:$4 sm:$0xff]   ;;  %v17559_v50 = vld [vmem:[#allocation7 + $0x2e0] ss:$24 sps:$4 sm:$0xff]  }
 0x2fd   : > { %4508 = vmatprep.mubr.bf16.mxu0 %v20651_v32  ;;  %5384 = vmatmul.mubr.bf16.gmra.mrb[120].mxu1 %v20677_v52 }
 0x2fe   : > { %5393 = vmatprep.mubr.bf16.mxu1 %v20722_v12  ;;  %5501 = vmatpush1.bf16.msra.mxu0 %v17499_v9  ;;  %v17561_v9 = vld [vmem:[#allocation7 + $0x2e4] ss:$24 sps:$4 sm:$0xff]  }
 0x2ff   : > { %v21135_v6 = vpop.f32.mrb[88].mxu0  ;;  %5502 = vmatprep.subr.bf16.mxu0 %v17507_v20  ;;  %5702 = vmatpush1.bf16.msra.mxu1 %v17550_v38  ;;  %v17517_v38 = vld [vmem:[#allocation7 + $0x218] ss:$24 sps:$4 sm:$0xff]  }
 0x300   : > { %24637 = vst [vmem:[#allocation62_spill] sm:$0xff] %v21135_v6  ;;  %v21137_v58 = vpop.f32.mrb[89].mxu0  ;;  %5703 = vmatprep.subr.bf16.mxu1 %v17555_v26  ;;  %v17525_v26 = vld [vmem:[#allocation7 + $0x24c] ss:$24 sps:$4 sm:$0xff]  }
 0x301   : > { %24638 = vst [vmem:[#allocation63_spill] sm:$0xff] %v21137_v58  ;;  %v21139_v1 = vpop.f32.mrb[90].mxu0 }
 0x302   : > { %24639 = vst [vmem:[#allocation64_spill] sm:$0xff] %v21139_v1  ;;  %v21143_v27 = vpop.f32.mrb[91].mxu0  ;;  %5503 = vmatpush1.bf16.msra.mxu0 %v17505_v34 }
 0x303   : > { %24640 = vst [vmem:[#allocation65_spill] sm:$0xff] %v21143_v27  ;;  %5504 = vmatprep.subr.bf16.mxu0 %v17513_v25  ;;  %5704 = vmatpush1.bf16.msra.mxu1 %v17553_v40  ;;  %v17523_v25 = vld [vmem:[#allocation7 + $0x248] ss:$24 sps:$4 sm:$0xff]  }
 0x304   : > { %4509 = vmatmul.mubr.bf16.gmra.mrb[180].mxu0 %v20641_v16  ;;  %5705 = vmatprep.subr.bf16.mxu1 %v17558_v30  ;;  %v17531_v30 = vld [vmem:[#allocation7 + $0x27c] ss:$24 sps:$4 sm:$0xff]  }
 0x305   : > { %4518 = vmatprep.mubr.bf16.mxu0 %v20687_v61  ;;  %5394 = vmatmul.mubr.bf16.gmra.mrb[124].mxu1 %v20713_v18 }
 0x306   : > { %5403 = vmatprep.mubr.bf16.mxu1 %v20756_v3  ;;  %5505 = vmatpush1.bf16.msra.mxu0 %v17511_v54 }
 0x307   : > { %v21151_v34 = vpop.f32.mrb[92].mxu0  ;;  %5506 = vmatprep.subr.bf16.mxu0 %v17519_v47  ;;  %5706 = vmatpush1.bf16.msra.mxu1 %v17556_v49  ;;  %v17529_v49 = vld [vmem:[#allocation7 + $0x278] ss:$24 sps:$4 sm:$0xff]   ;;  %v17537_v47 = vld [vmem:[#allocation7 + $0x2ac] ss:$24 sps:$4 sm:$0xff]  }
 0x308   : > { %24641 = vst [vmem:[#allocation66_spill] sm:$0xff] %v21151_v34  ;;  %v21153_v40 = vpop.f32.mrb[93].mxu0  ;;  %5707 = vmatprep.subr.bf16.mxu1 %v17561_v9  ;;  %v17535_v9 = vld [vmem:[#allocation7 + $0x2a8] ss:$24 sps:$4 sm:$0xff]  }
 0x309   : > { %24642 = vst [vmem:[#allocation67_spill] sm:$0xff] %v21153_v40  ;;  %v21155_v21 = vpop.f32.mrb[94].mxu0 }
 0x30a   : > { %24643 = vst [vmem:[#allocation68_spill] sm:$0xff] %v21155_v21  ;;  %v21157_v20 = vpop.f32.mrb[95].mxu0  ;;  %5507 = vmatpush1.bf16.msra.mxu0 %v17517_v38  ;;  %v17543_v38 = vld [vmem:[#allocation7 + $0x2dc] ss:$24 sps:$4 sm:$0xff]  }
 0x30b   : > { %24644 = vst [vmem:[#allocation69_spill] sm:$0xff] %v21157_v20  ;;  %5508 = vmatprep.subr.bf16.mxu0 %v17525_v26  ;;  %5708 = vmatpush1.bf16.msra.mxu1 %v17559_v50  ;;  %v17541_v50 = vld [vmem:[#allocation7 + $0x2d8] ss:$24 sps:$4 sm:$0xff]  }
 0x30c   : > { %4519 = vmatmul.mubr.bf16.gmra.mrb[184].mxu0 %v20677_v52 }
 0x30d   : > { %4528 = vmatprep.mubr.bf16.mxu0 %v20722_v12  ;;  %5404 = vmatmul.mubr.bf16.gmra.mrb[128].mxu1 %v20747_v56 }
 0x30e   : > { %5413 = vmatprep.mubr.bf16.mxu1 %v20789_v28  ;;  %5509 = vmatpush1.bf16.msra.mxu0 %v17523_v25 }
 0x30f   : > { %5510 = vmatprep.subr.bf16.mxu0 %v17531_v30 }
 0x312   : > { %5511 = vmatpush1.bf16.msra.mxu0 %v17529_v49 }
 0x313   : > { %5512 = vmatprep.subr.bf16.mxu0 %v17537_v47 }
 0x314   : > { %4529 = vmatmul.mubr.bf16.gmra.mrb[188].mxu0 %v20713_v18 }
 0x315   : > { %4538 = vmatprep.mubr.bf16.mxu0 %v20756_v3  ;;  %5414 = vmatmul.mubr.bf16.gmra.mrb[132].mxu1 %v20781_v19 }
 0x316   : > { %5423 = vmatprep.mubr.bf16.mxu1 %v20818_v5  ;;  %5513 = vmatpush1.bf16.msra.mxu0 %v17535_v9 }
 0x317   : > { %5514 = vmatprep.subr.bf16.mxu0 %v17543_v38 }
 0x31a   : > { %5515 = vmatpush1.bf16.msra.mxu0 %v17541_v50 }
 0x31c   : > { %4539 = vmatmul.mubr.bf16.gmra.mrb[192].mxu0 %v20747_v56 }
 0x31d   : > { %4548 = vmatprep.mubr.bf16.mxu0 %v20789_v28  ;;  %5424 = vmatmul.mubr.bf16.gmra.mrb[136].mxu1 %v20813_v4 }
 0x31e   : > { %5433 = vmatprep.mubr.bf16.mxu1 %v20836_v36 }
 0x320   : > { %v21175_v26 = vpop.f32.mrb[32].mxu1 }
 0x321   : > { %24645 = vst [vmem:[#allocation70_spill] sm:$0xff] %v21175_v26  ;;  %v21177_v25 = vpop.f32.mrb[33].mxu1 }
 0x322   : > { %v21179_v30 = vpop.f32.mrb[34].mxu1 }
 0x323   : > { %24646 = vst [vmem:[#allocation71_spill] sm:$0xff] %v21179_v30  ;;  %v21181_v49 = vpop.f32.mrb[35].mxu1 }
 0x324   : > { %4549 = vmatmul.mubr.bf16.gmra.mrb[196].mxu0 %v20781_v19 }
 0x325   : > { %4558 = vmatprep.mubr.bf16.mxu0 %v20818_v5  ;;  %5434 = vmatmul.mubr.bf16.gmra.mrb[140].mxu1 %v20830_v29 }
 0x326   : > { %5443 = vmatprep.mubr.bf16.mxu1 %v20858_v35 }
 0x328   : > { %v21191_v38 = vpop.f32.mrb[36].mxu1 }
 0x329   : > { %24647 = vst [vmem:[#allocation72_spill] sm:$0xff] %v21191_v38  ;;  %v21193_v50 = vpop.f32.mrb[37].mxu1 }
 0x32a   : > { %24648 = vst [vmem:[#allocation73_spill] sm:$0xff] %v21193_v50  ;;  %v21195_v37 = vpop.f32.mrb[38].mxu1 }
 0x32b   : > { %24649 = vst [vmem:[#allocation74_spill] sm:$0xff] %v21195_v37  ;;  %v21197_v54 = vpop.f32.mrb[39].mxu1 }
 0x32c   : > { %24650 = vst [vmem:[#allocation75_spill] sm:$0xff] %v21197_v54  ;;  %4559 = vmatmul.mubr.bf16.gmra.mrb[200].mxu0 %v20813_v4 }
 0x32d   : > { %4568 = vmatprep.mubr.bf16.mxu0 %v20836_v36  ;;  %5444 = vmatmul.mubr.bf16.gmra.mrb[144].mxu1 %v20852_v7 }
 0x32e   : > { %5453 = vmatprep.mubr.bf16.mxu1 %v20869_v63 }
 0x32f   : > { %v21207_v59 = vpop.f32.mrb[96].mxu0 }
 0x330   : > { %v4076_v23 = vpop.f32.mrb[97].mxu0  ;;  %v21209_v34 = vpop.f32.mrb[40].mxu1 }
 0x331   : > { %24651 = vst [vmem:[#allocation76_spill] sm:$0xff] %v21209_v34  ;;  %v21211_v21 = vpop.f32.mrb[98].mxu0  ;;  %v21213_v40 = vpop.f32.mrb[41].mxu1 }
 0x332   : > { %24652 = vst [vmem:[#allocation77_spill] sm:$0xff] %v21213_v40  ;;  %v4080_v47 = vpop.f32.mrb[99].mxu0  ;;  %v21215_v20 = vpop.f32.mrb[42].mxu1  ;;  %v24675_v22 = vpack.c.bf16 %v21211_v21, %v21207_v59 }
 0x333   : > { %24653 = vst [vmem:[#allocation78_spill] sm:$0xff] %v21215_v20  ;;  %v21219_v6 = vpop.f32.mrb[43].mxu1  ;;  %v4620_v1 = vpack.c.bf16 %v4080_v47, %v4076_v23 }
 0x334   : > { %24654 = vst [vmem:[#allocation79_spill] sm:$0xff] %v21219_v6  ;;  %4569 = vmatmul.mubr.bf16.gmra.mrb[204].mxu0 %v20830_v29 }
 0x335   : > { %4578 = vmatprep.mubr.bf16.mxu0 %v20858_v35  ;;  %5454 = vmatmul.mubr.bf16.gmra.mrb[148].mxu1 %v20865_v44 }
 0x336   : > { %5990 = vmatprep.subr.bf16.mxu0 %v4620_v1  ;;  %5463 = vmatprep.mubr.bf16.mxu1 %v20889_v41 }
 0x337   : > { %v21229_v50 = vpop.f32.mrb[100].mxu0 }
 0x338   : > { %v21231_v9 = vpop.f32.mrb[101].mxu0  ;;  %v21233_v23 = vpop.f32.mrb[44].mxu1 }
 0x339   : > { %24655 = vst [vmem:[#allocation80_spill] sm:$0xff] %v21233_v23  ;;  %v21235_v47 = vpop.f32.mrb[102].mxu0  ;;  %v21237_v38 = vpop.f32.mrb[45].mxu1 }
 0x33a   : > { %24656 = vst [vmem:[#allocation81_spill] sm:$0xff] %v21237_v38  ;;  %v21239_v34 = vpop.f32.mrb[103].mxu0  ;;  %v21241_v37 = vpop.f32.mrb[46].mxu1 }
 0x33b   : > { %24657 = vst [vmem:[#allocation82_spill] sm:$0xff] %v21241_v37  ;;  %v21245_v1 = vpop.f32.mrb[47].mxu1 }
 0x33c   : > { %24658 = vst [vmem:[#allocation83_spill] sm:$0xff] %v21245_v1  ;;  %4579 = vmatmul.mubr.bf16.gmra.mrb[208].mxu0 %v20852_v7 }
 0x33d   : > { %4588 = vmatprep.mubr.bf16.mxu0 %v20869_v63  ;;  %5464 = vmatmul.mubr.bf16.gmra.mrb[152].mxu1 %v20885_v39 }
 0x33e   : > { %5473 = vmatprep.mubr.bf16.mxu1 %v20908_v0 }
 0x33f   : > { %v21257_v20 = vpop.f32.mrb[104].mxu0 }
 0x340   : > { %v21259_v46 = vpop.f32.mrb[105].mxu0  ;;  %v21261_v26 = vpop.f32.mrb[48].mxu1 }
 0x341   : > { %24659 = vst [vmem:[#allocation84_spill] sm:$0xff] %v21261_v26  ;;  %v21263_v40 = vpop.f32.mrb[106].mxu0  ;;  %v21265_v6 = vpop.f32.mrb[49].mxu1 }
 0x342   : > { %24660 = vst [vmem:[#allocation85_spill] sm:$0xff] %v21265_v6  ;;  %v21267_v23 = vpop.f32.mrb[107].mxu0  ;;  %v21269_v37 = vpop.f32.mrb[50].mxu1 }
 0x343   : > { %24661 = vst [vmem:[#allocation86_spill] sm:$0xff] %v21269_v37  ;;  %v21273_v38 = vpop.f32.mrb[51].mxu1 }
 0x344   : > { %24662 = vst [vmem:[#allocation87_spill] sm:$0xff] %v21273_v38  ;;  %4589 = vmatmul.mubr.bf16.gmra.mrb[212].mxu0 %v20865_v44 }
 0x345   : > { %4598 = vmatprep.mubr.bf16.mxu0 %v20889_v41  ;;  %5474 = vmatmul.mubr.bf16.gmra.mrb[156].mxu1 %v20905_v14 }
 0x346   : > { %5709 = vmatprep.mubr.bf16.mxu1 %v20475_v60 }
 0x347   : > { %v21285_v54 = vpop.f32.mrb[108].mxu0 }
 0x348   : > { %v21287_v58 = vpop.f32.mrb[109].mxu0  ;;  %v21289_v27 = vpop.f32.mrb[52].mxu1 }
 0x349   : > { %24663 = vst [vmem:[#allocation88_spill] sm:$0xff] %v21289_v27  ;;  %v21291_v1 = vpop.f32.mrb[110].mxu0  ;;  %v21293_v30 = vpop.f32.mrb[53].mxu1 }
 0x34a   : > { %24664 = vst [vmem:[#allocation89_spill] sm:$0xff] %v21293_v30  ;;  %v21295_v26 = vpop.f32.mrb[111].mxu0  ;;  %v21297_v37 = vpop.f32.mrb[54].mxu1 }
 0x34b   : > { %24665 = vst [vmem:[#allocation90_spill] sm:$0xff] %v21297_v37  ;;  %v21301_v6 = vpop.f32.mrb[55].mxu1 }
 0x34c   : > { %24666 = vst [vmem:[#allocation91_spill] sm:$0xff] %v21301_v6  ;;  %4599 = vmatmul.mubr.bf16.gmra.mrb[216].mxu0 %v20885_v39 }
 0x34d   : > { %4608 = vmatprep.mubr.bf16.mxu0 %v20908_v0  ;;  %5710 = vmatmul.mubr.bf16.vlgmr.msra.gmra.mrb[160].mxu1 %v20469_v57 }
 0x34e   : > { %5719 = vmatprep.mubr.bf16.mxu1 %v20508_v17 }
 0x34f   : > { %v21313_v13 = vpop.f32.mrb[112].mxu0 }
 0x350   : > { %v21315_v11 = vpop.f32.mrb[113].mxu0  ;;  %v21317_v42 = vpop.f32.mrb[56].mxu1 }
 0x351   : > { %24667 = vst [vmem:[#allocation92_spill] sm:$0xff] %v21317_v42  ;;  %v21319_v38 = vpop.f32.mrb[114].mxu0  ;;  %v21321_v31 = vpop.f32.mrb[57].mxu1 }
 0x352   : > { %24668 = vst [vmem:[#allocation93_spill] sm:$0xff] %v21321_v31  ;;  %v21323_v27 = vpop.f32.mrb[115].mxu0  ;;  %v21325_v37 = vpop.f32.mrb[58].mxu1  ;;  %v24676_v31 = vpack.c.bf16 %v21239_v34, %v21231_v9 }
 0x353   : > { %24669 = vst [vmem:[#allocation94_spill] sm:$0xff] %v21325_v37  ;;  %v21331_v6 = vpop.f32.mrb[59].mxu1 }
 0x354   : > { %24670 = vst [vmem:[#allocation95_spill] sm:$0xff] %v21331_v6  ;;  %4609 = vmatmul.mubr.bf16.gmra.mrb[220].mxu0 %v20905_v14 }
 0x355   : > { %5516 = vmatprep.mubr.bf16.mxu0 %v20475_v60  ;;  %5720 = vmatmul.mubr.bf16.gmra.mrb[164].mxu1 %v20503_v15 }
 0x356   : > { %5729 = vmatprep.mubr.bf16.mxu1 %v20540_v55 }
 0x357   : > { %v21341_v8 = vpop.f32.mrb[116].mxu0 }
 0x358   : > { %v21343_v51 = vpop.f32.mrb[117].mxu0  ;;  %v21345_v30 = vpop.f32.mrb[60].mxu1 }
 0x359   : > { %24671 = vst [vmem:[#allocation96_spill] sm:$0xff] %v21345_v30  ;;  %v21347_v42 = vpop.f32.mrb[118].mxu0  ;;  %v21349_v62 = vpop.f32.mrb[61].mxu1 }
 0x35a   : > { %24672 = vst [vmem:[#allocation97_spill] sm:$0xff] %v21349_v62  ;;  %v21351_v37 = vpop.f32.mrb[119].mxu0  ;;  %v21353_v24 = vpop.f32.mrb[62].mxu1 }
 0x35b   : > { %24673 = vst [vmem:[#allocation98_spill] sm:$0xff] %v21353_v24  ;;  %v21359_v6 = vpop.f32.mrb[63].mxu1  ;;  %v24677_v24 = vpack.c.bf16 %v21235_v47, %v21229_v50 }
 0x35c   : > { %24674 = vst [vmem:[#allocation99_spill] sm:$0xff] %v21359_v6  ;;  %5517 = vmatmul.mubr.bf16.vlgmr.msra.gmra.mrb[224].mxu0 %v20469_v57  ;;  %v24681_v6 = vpack.c.bf16 %v21263_v40, %v21257_v20 }
 0x35d   : > { %5991 = vmatpush1.bf16.xpose.msra.mxu0 %v24675_v22  ;;  %5526 = vmatprep.mubr.bf16.mxu0 %v20508_v17 }
 0x35e   : > { %5730 = vmatmul.mubr.bf16.gmra.mrb[168].mxu1 %v20535_v45  ;;  %5992 = vmatprep.subr.bf16.mxu0 %v24676_v31  ;;  %v24678_v31 = vpack.c.bf16 %v21267_v23, %v21259_v46  ;;  %v24682_v23 = vpack.c.bf16 %v21295_v26, %v21287_v58 }
 0x35f   : > { %5739 = vmatprep.mubr.bf16.mxu1 %v20573_v10  ;;  %v21375_v60 = vpop.f32.mrb[120].mxu0 }
 0x360   : > { %v21377_v2 = vpop.f32.mrb[121].mxu0  ;;  %v21379_v33 = vpop.f32.mrb[64].mxu1 }
 0x361   : > { %v21381_v57 = vpop.f32.mrb[122].mxu0  ;;  %v21383_v21 = vpop.f32.mrb[65].mxu1 }
 0x362   : > { %v21385_v22 = vpop.f32.mrb[123].mxu0  ;;  %v21387_v17 = vpop.f32.mrb[66].mxu1 }
 0x363   : > { %v21393_v34 = vpop.f32.mrb[67].mxu1 }
 0x364   : > { %5527 = vmatmul.mubr.bf16.gmra.mrb[228].mxu0 %v20503_v15 }
 0x365   : > { %5993 = vmatpush1.bf16.xpose.msra.mxu0 %v24677_v24  ;;  %5536 = vmatprep.mubr.bf16.mxu0 %v20540_v55 }
 0x366   : > { %5740 = vmatmul.mubr.bf16.gmra.mrb[172].mxu1 %v20567_v53  ;;  %5994 = vmatprep.subr.bf16.mxu0 %v24678_v31 }
 0x367   : > { %5749 = vmatprep.mubr.bf16.mxu1 %v20607_v48  ;;  %v21409_v59 = vpop.f32.mrb[124].mxu0 }
 0x368   : > { %v21411_v9 = vpop.f32.mrb[125].mxu0  ;;  %v21413_v30 = vpop.f32.mrb[68].mxu1 }
 0x369   : > { %24679 = vst [vmem:[#allocation100_spill] sm:$0xff] %v21413_v30  ;;  %v21415_v15 = vpop.f32.mrb[126].mxu0  ;;  %v21417_v50 = vpop.f32.mrb[69].mxu1 }
 0x36a   : > { %v21419_v24 = vpop.f32.mrb[127].mxu0  ;;  %v21421_v55 = vpop.f32.mrb[70].mxu1 }
 0x36b   : > { %24680 = vst [vmem:[#allocation101_spill] sm:$0xff] %v21421_v55  ;;  %v21427_v47 = vpop.f32.mrb[71].mxu1 }
 0x36c   : > { %5537 = vmatmul.mubr.bf16.gmra.mrb[232].mxu0 %v20535_v45 }
 0x36d   : > { %5995 = vmatpush1.bf16.xpose.msra.mxu0 %v24681_v6  ;;  %5546 = vmatprep.mubr.bf16.mxu0 %v20573_v10 }
 0x36e   : > { %5750 = vmatmul.mubr.bf16.gmra.mrb[176].mxu1 %v20601_v43  ;;  %5996 = vmatprep.subr.bf16.mxu0 %v24682_v23  ;;  %v24683_v23 = vpack.c.bf16 %v21291_v1, %v21285_v54 }
 0x36f   : > { %5759 = vmatprep.mubr.bf16.mxu1 %v20651_v32  ;;  %v4154_v46 = vpop.f32.mrb[128].mxu0 }
 0x370   : > { %v4156_v31 = vpop.f32.mrb[129].mxu0  ;;  %v21443_v30 = vpop.f32.mrb[72].mxu1 }
 0x371   : > { %v4158_v62 = vpop.f32.mrb[130].mxu0  ;;  %v21445_v45 = vpop.f32.mrb[73].mxu1 }
 0x372   : > { %v4160_v55 = vpop.f32.mrb[131].mxu0  ;;  %v21447_v20 = vpop.f32.mrb[74].mxu1  ;;  %v4667_v6 = vpack.c.bf16 %v4158_v62, %v4154_v46  ;;  %v24684_v62 = vpack.c.bf16 %v21323_v27, %v21315_v11 }
 0x373   : > { %v21451_v40 = vpop.f32.mrb[75].mxu1  ;;  %v4668_v58 = vpack.c.bf16 %v4160_v55, %v4156_v31 }
 0x374   : > { %5547 = vmatmul.mubr.bf16.gmra.mrb[236].mxu0 %v20567_v53 }
 0x375   : > { %5997 = vmatpush1.bf16.xpose.msra.mxu0 %v24683_v23  ;;  %5556 = vmatprep.mubr.bf16.mxu0 %v20607_v48 }
 0x376   : > { %5760 = vmatmul.mubr.bf16.gmra.mrb[180].mxu1 %v20641_v16  ;;  %5998 = vmatprep.subr.bf16.mxu0 %v24684_v62  ;;  %v24686_v62 = vpack.c.bf16 %v21351_v37, %v21343_v51 }
 0x377   : > { %6137 = vmatprep.subr.bf16.mxu1 %v4668_v58  ;;  %5769 = vmatprep.mubr.bf16.mxu1 %v20687_v61  ;;  %v4164_v55 = vpop.f32.mrb[132].mxu0  ;;  %v24713_v58 = vld [vmem:[#allocation33_spill] sm:$0xff] }
 0x378   : > { %6138 = vmatpush1.bf16.xpose.msra.mxu1 %v4667_v6  ;;  %v4166_v46 = vpop.f32.mrb[133].mxu0  ;;  %v21465_v31 = vpop.f32.mrb[76].mxu1  ;;  %v24685_v6 = vpack.c.bf16 %v21319_v38, %v21313_v13 }
 0x379   : > { %v4168_v53 = vpop.f32.mrb[134].mxu0  ;;  %v21467_v10 = vpop.f32.mrb[77].mxu1 }
 0x37a   : > { %v4170_v54 = vpop.f32.mrb[135].mxu0  ;;  %v21469_v1 = vpop.f32.mrb[78].mxu1  ;;  %v4673_v48 = vpack.c.bf16 %v4168_v53, %v4164_v55 }
 0x37b   : > { %v21473_v11 = vpop.f32.mrb[79].mxu1  ;;  %v4674_v27 = vpack.c.bf16 %v4170_v54, %v4166_v46 }
 0x37c   : > { %5557 = vmatmul.mubr.bf16.gmra.mrb[240].mxu0 %v20601_v43 }
 0x37d   : > { %5999 = vmatpush1.bf16.xpose.msra.mxu0 %v24685_v6  ;;  %5566 = vmatprep.mubr.bf16.mxu0 %v20651_v32 }
 0x37e   : > { %5770 = vmatmul.mubr.bf16.gmra.mrb[184].mxu1 %v20677_v52  ;;  %6000 = vmatprep.subr.bf16.mxu0 %v24686_v62  ;;  %v24688_v62 = vpack.c.bf16 %v21385_v22, %v21377_v2 }
 0x37f   : > { %6139 = vmatprep.subr.bf16.mxu1 %v4674_v27  ;;  %5779 = vmatprep.mubr.bf16.mxu1 %v20722_v12  ;;  %v4174_v55 = vpop.f32.mrb[136].mxu0 }
 0x380   : > { %6140 = vmatpush1.bf16.xpose.msra.mxu1 %v4673_v48  ;;  %v4176_v46 = vpop.f32.mrb[137].mxu0  ;;  %v21487_v53 = vpop.f32.mrb[80].mxu1  ;;  %v24687_v48 = vpack.c.bf16 %v21347_v42, %v21341_v8 }
 0x381   : > { %v4178_v43 = vpop.f32.mrb[138].mxu0  ;;  %v21489_v54 = vpop.f32.mrb[81].mxu1 }
 0x382   : > { %v4180_v13 = vpop.f32.mrb[139].mxu0  ;;  %v21491_v38 = vpop.f32.mrb[82].mxu1  ;;  %v4679_v32 = vpack.c.bf16 %v4178_v43, %v4174_v55 }
 0x383   : > { %v21495_v51 = vpop.f32.mrb[83].mxu1  ;;  %v4680_v37 = vpack.c.bf16 %v4180_v13, %v4176_v46 }
 0x384   : > { %5567 = vmatmul.mubr.bf16.gmra.mrb[244].mxu0 %v20641_v16 }
 0x385   : > { %6001 = vmatpush1.bf16.xpose.msra.mxu0 %v24687_v48  ;;  %5576 = vmatprep.mubr.bf16.mxu0 %v20687_v61 }
 0x386   : > { %5780 = vmatmul.mubr.bf16.gmra.mrb[188].mxu1 %v20713_v18  ;;  %6002 = vmatprep.subr.bf16.mxu0 %v24688_v62  ;;  %v24690_v62 = vpack.c.bf16 %v21419_v24, %v21411_v9 }
 0x387   : > { %6141 = vmatprep.subr.bf16.mxu1 %v4680_v37  ;;  %5789 = vmatprep.mubr.bf16.mxu1 %v20756_v3  ;;  %v4184_v55 = vpop.f32.mrb[140].mxu0 }
 0x388   : > { %6142 = vmatpush1.bf16.xpose.msra.mxu1 %v4679_v32  ;;  %v4186_v46 = vpop.f32.mrb[141].mxu0  ;;  %v21509_v43 = vpop.f32.mrb[84].mxu1  ;;  %v24689_v32 = vpack.c.bf16 %v21381_v57, %v21375_v60 }
 0x389   : > { %v4188_v16 = vpop.f32.mrb[142].mxu0  ;;  %v21511_v13 = vpop.f32.mrb[85].mxu1 }
 0x38a   : > { %v4190_v42 = vpop.f32.mrb[143].mxu0  ;;  %v21513_v8 = vpop.f32.mrb[86].mxu1  ;;  %v4685_v61 = vpack.c.bf16 %v4188_v16, %v4184_v55 }
 0x38b   : > { %v21517_v2 = vpop.f32.mrb[87].mxu1  ;;  %v4686_v22 = vpack.c.bf16 %v4190_v42, %v4186_v46 }
 0x38c   : > { %5577 = vmatmul.mubr.bf16.gmra.mrb[248].mxu0 %v20677_v52 }
 0x38d   : > { %6003 = vmatpush1.bf16.xpose.msra.mxu0 %v24689_v32  ;;  %5586 = vmatprep.mubr.bf16.mxu0 %v20722_v12 }
 0x38e   : > { %5790 = vmatmul.mubr.bf16.gmra.mrb[192].mxu1 %v20747_v56  ;;  %6004 = vmatprep.subr.bf16.mxu0 %v24690_v62  ;;  %v24692_v62 = vpack.c.bf16 %v21181_v49, %v21177_v25 }
 0x38f   : > { %6143 = vmatprep.subr.bf16.mxu1 %v4686_v22  ;;  %5799 = vmatprep.mubr.bf16.mxu1 %v20789_v28  ;;  %v4194_v55 = vpop.f32.mrb[144].mxu0 }
 0x390   : > { %6144 = vmatpush1.bf16.xpose.msra.mxu1 %v4685_v61  ;;  %v4196_v46 = vpop.f32.mrb[145].mxu0  ;;  %v21531_v16 = vpop.f32.mrb[88].mxu1  ;;  %v24691_v61 = vpack.c.bf16 %v21415_v15, %v21409_v59 }
 0x391   : > { %v4198_v52 = vpop.f32.mrb[146].mxu0  ;;  %v21533_v42 = vpop.f32.mrb[89].mxu1 }
 0x392   : > { %v4200_v60 = vpop.f32.mrb[147].mxu0  ;;  %v21535_v57 = vpop.f32.mrb[90].mxu1  ;;  %v4691_v12 = vpack.c.bf16 %v4198_v52, %v4194_v55 }
 0x393   : > { %v21539_v9 = vpop.f32.mrb[91].mxu1  ;;  %v4692_v24 = vpack.c.bf16 %v4200_v60, %v4196_v46 }
 0x394   : > { %5587 = vmatmul.mubr.bf16.gmra.mrb[252].mxu0 %v20713_v18 }
 0x395   : > { %6005 = vmatpush1.bf16.xpose.msra.mxu0 %v24691_v61  ;;  %5596 = vmatprep.mubr.bf16.mxu0 %v20756_v3 }
 0x396   : > { %5800 = vmatmul.mubr.bf16.gmra.mrb[196].mxu1 %v20781_v19  ;;  %6039 = vmatprep.subr.bf16.mxu0 %v24692_v62 }
 0x397   : > { %6145 = vmatprep.subr.bf16.mxu1 %v4692_v24  ;;  %5809 = vmatprep.mubr.bf16.mxu1 %v20818_v5  ;;  %v4204_v55 = vpop.f32.mrb[148].mxu0 }
 0x398   : > { %6146 = vmatpush1.bf16.xpose.msra.mxu1 %v4691_v12  ;;  %v4206_v46 = vpop.f32.mrb[149].mxu0  ;;  %v21553_v52 = vpop.f32.mrb[92].mxu1 }
 0x399   : > { %v4208_v18 = vpop.f32.mrb[150].mxu0  ;;  %v21555_v60 = vpop.f32.mrb[93].mxu1 }
 0x39a   : > { %v4210_v59 = vpop.f32.mrb[151].mxu0  ;;  %v21557_v15 = vpop.f32.mrb[94].mxu1  ;;  %v4697_v3 = vpack.c.bf16 %v4208_v18, %v4204_v55 }
 0x39b   : > { %v21561_v25 = vpop.f32.mrb[95].mxu1  ;;  %v4698_v49 = vpack.c.bf16 %v4210_v59, %v4206_v46 }
 0x39c   : > { %5597 = vmatmul.mubr.bf16.gmra.mrb[0].mxu0 %v20747_v56 }
 0x39d   : > { %5606 = vmatprep.mubr.bf16.mxu0 %v20789_v28  ;;  %6147 = vmatprep.subr.bf16.mxu1 %v4698_v49 }
 0x39e   : > { %5810 = vmatmul.mubr.bf16.gmra.mrb[200].mxu1 %v20813_v4 }
 0x39f   : > { %5819 = vmatprep.mubr.bf16.mxu1 %v20836_v36  ;;  %v4214_v12 = vpop.f32.mrb[152].mxu0 }
 0x3a0   : > { %6148 = vmatpush1.bf16.xpose.msra.mxu1 %v4697_v3  ;;  %v4216_v62 = vpop.f32.mrb[153].mxu0  ;;  %v21569_v55 = vpop.f32.mrb[96].mxu1 }
 0x3a1   : > { %24693 = vst [vmem:[#allocation102_spill] sm:$0xff] %v21569_v55  ;;  %v4218_v18 = vpop.f32.mrb[154].mxu0  ;;  %v21571_v61 = vpop.f32.mrb[97].mxu1 }
 0x3a2   : > { %24694 = vst [vmem:[#allocation103_spill] sm:$0xff] %v21571_v61  ;;  %v4703_v46 = vpack.c.bf16 %v4218_v18, %v4214_v12  ;;  %v4220_v59 = vpop.f32.mrb[155].mxu0  ;;  %v21573_v24 = vpop.f32.mrb[98].mxu1  ;;  %v24759_v61 = vld [vmem:[#allocation73_spill] sm:$0xff] }
 0x3a3   : > { %24695 = vst [vmem:[#allocation104_spill] sm:$0xff] %v21573_v24  ;;  %v4704_v56 = vpack.c.bf16 %v4220_v59, %v4216_v62  ;;  %v21577_v49 = vpop.f32.mrb[99].mxu1 }
 0x3a4   : > { %5607 = vmatmul.mubr.bf16.gmra.mrb[4].mxu0 %v20781_v19 }
 0x3a5   : > { %5616 = vmatprep.mubr.bf16.mxu0 %v20818_v5  ;;  %6149 = vmatprep.subr.bf16.mxu1 %v4704_v56 }
 0x3a6   : > { %5820 = vmatmul.mubr.bf16.gmra.mrb[204].mxu1 %v20830_v29 }
 0x3a7   : > { %5829 = vmatprep.mubr.bf16.mxu1 %v20858_v35  ;;  %v4224_v3 = vpop.f32.mrb[156].mxu0 }
 0x3a8   : > { %6150 = vmatpush1.bf16.xpose.msra.mxu1 %v4703_v46  ;;  %v4226_v12 = vpop.f32.mrb[157].mxu0  ;;  %v21585_v62 = vpop.f32.mrb[100].mxu1 }
 0x3a9   : > { %24696 = vst [vmem:[#allocation105_spill] sm:$0xff] %v21585_v62  ;;  %v4228_v18 = vpop.f32.mrb[158].mxu0  ;;  %v21587_v59 = vpop.f32.mrb[101].mxu1 }
 0x3aa   : > { %24697 = vst [vmem:[#allocation106_spill] sm:$0xff] %v21587_v59  ;;  %v4709_v28 = vpack.c.bf16 %v4228_v18, %v4224_v3  ;;  %v4230_v22 = vpop.f32.mrb[159].mxu0  ;;  %v21589_v32 = vpop.f32.mrb[102].mxu1  ;;  %v24725_v59 = vld [vmem:[#allocation35_spill] sm:$0xff] }
 0x3ab   : > { %24698 = vst [vmem:[#allocation107_spill] sm:$0xff] %v21589_v32  ;;  %v4710_v19 = vpack.c.bf16 %v4230_v22, %v4226_v12  ;;  %v21593_v56 = vpop.f32.mrb[103].mxu1  ;;  %v24701_v12 = vpack.c.bf16 %v21393_v34, %v21383_v21  ;;  %v24723_v32 = vpack.c.bf16 %v21387_v17, %v21379_v33  ;;  %v24735_v33 = vld [vmem:[#allocation36_spill] sm:$0xff] }
 0x3ac   : > { %24699 = vst [vmem:[#allocation108_spill] sm:$0xff] %v21593_v56  ;;  %5617 = vmatmul.mubr.bf16.gmra.mrb[8].mxu0 %v20813_v4 }
 0x3ad   : > { %5626 = vmatprep.mubr.bf16.mxu0 %v20836_v36  ;;  %6151 = vmatprep.subr.bf16.mxu1 %v4710_v19 }
 0x3ae   : > { %5830 = vmatmul.mubr.bf16.gmra.mrb[208].mxu1 %v20852_v7 }
 0x3af   : > { %5839 = vmatprep.mubr.bf16.mxu1 %v20869_v63  ;;  %v21601_v46 = vpop.f32.mrb[160].mxu0 }
 0x3b0   : > { %6152 = vmatpush1.bf16.xpose.msra.mxu1 %v4709_v28  ;;  %v21603_v22 = vpop.f32.mrb[161].mxu0  ;;  %v21605_v3 = vpop.f32.mrb[104].mxu1 }
 0x3b1   : > { %24700 = vst [vmem:[#allocation109_spill] sm:$0xff] %v21605_v3  ;;  %6186 = vmatprep.subr.bf16.mxu1 %v24701_v12  ;;  %v21610_v18 = vpop.f32.mrb[162].mxu0  ;;  %v21612_v4 = vpop.f32.mrb[105].mxu1 }
 0x3b2   : > { %24702 = vst [vmem:[#allocation110_spill] sm:$0xff] %v21612_v4  ;;  %v21616_v19 = vpop.f32.mrb[163].mxu0  ;;  %v21618_v5 = vpop.f32.mrb[106].mxu1 }
 0x3b3   : > { %24703 = vst [vmem:[#allocation111_spill] sm:$0xff] %v21618_v5  ;;  %v21624_v37 = vpop.f32.mrb[107].mxu1  ;;  %v24714_v5 = vld [vmem:[#allocation31_spill] sm:$0xff] }
 0x3b4   : > { %24704 = vst [vmem:[#allocation112_spill] sm:$0xff] %v21624_v37  ;;  %5627 = vmatmul.mubr.bf16.gmra.mrb[12].mxu0 %v20830_v29  ;;  %v24715_v4 = vpack.c.bf16 %v24713_v58, %v24714_v5  ;;  %v24724_v58 = vld [vmem:[#allocation37_spill] sm:$0xff] }
 0x3b5   : > { %5636 = vmatprep.mubr.bf16.mxu0 %v20858_v35  ;;  %v24726_v5 = vpack.c.bf16 %v24724_v58, %v24725_v59  ;;  %v24733_v58 = vld [vmem:[#allocation23_spill] sm:$0xff]  ;;  %v24739_v59 = vld [vmem:[#allocation100_spill] sm:$0xff] }
 0x3b6   : > { %5840 = vmatmul.mubr.bf16.gmra.mrb[212].mxu1 %v20865_v44 }
 0x3b7   : > { %5849 = vmatprep.mubr.bf16.mxu1 %v20889_v41  ;;  %v21632_v34 = vpop.f32.mrb[164].mxu0 }
 0x3b8   : > { %v21634_v12 = vpop.f32.mrb[165].mxu0  ;;  %v21636_v36 = vpop.f32.mrb[108].mxu1 }
 0x3b9   : > { %24705 = vst [vmem:[#allocation113_spill] sm:$0xff] %v21636_v36  ;;  %v21638_v48 = vpop.f32.mrb[166].mxu0  ;;  %v21640_v28 = vpop.f32.mrb[109].mxu1 }
 0x3ba   : > { %24706 = vst [vmem:[#allocation114_spill] sm:$0xff] %v21640_v28  ;;  %v21644_v29 = vpop.f32.mrb[167].mxu0  ;;  %v21646_v35 = vpop.f32.mrb[110].mxu1 }
 0x3bb   : > { %24707 = vst [vmem:[#allocation115_spill] sm:$0xff] %v21646_v35  ;;  %v21652_v23 = vpop.f32.mrb[111].mxu1 }
 0x3bc   : > { %24708 = vst [vmem:[#allocation116_spill] sm:$0xff] %v21652_v23  ;;  %5637 = vmatmul.mubr.bf16.gmra.mrb[16].mxu0 %v20852_v7 }
 0x3bd   : > { %5646 = vmatprep.mubr.bf16.mxu0 %v20869_v63 }
 0x3be   : > { %5850 = vmatmul.mubr.bf16.gmra.mrb[216].mxu1 %v20885_v39 }
 0x3bf   : > { %5859 = vmatprep.mubr.bf16.mxu1 %v20908_v0  ;;  %v21660_v21 = vpop.f32.mrb[168].mxu0 }
 0x3c0   : > { %v21662_v26 = vpop.f32.mrb[169].mxu0  ;;  %v21664_v6 = vpop.f32.mrb[112].mxu1 }
 0x3c1   : > { %24709 = vst [vmem:[#allocation117_spill] sm:$0xff] %v21664_v6  ;;  %v21666_v27 = vpop.f32.mrb[170].mxu0  ;;  %v21668_v36 = vpop.f32.mrb[113].mxu1 }
 0x3c2   : > { %24710 = vst [vmem:[#allocation118_spill] sm:$0xff] %v21668_v36  ;;  %v21672_v7 = vpop.f32.mrb[171].mxu0  ;;  %v21674_v63 = vpop.f32.mrb[114].mxu1  ;;  %v24727_v36 = vpack.c.bf16 %v21427_v47, %v21417_v50  ;;  %v24741_v50 = vld [vmem:[#allocation65_spill] sm:$0xff] }
 0x3c3   : > { %24711 = vst [vmem:[#allocation119_spill] sm:$0xff] %v21674_v63  ;;  %v21680_v23 = vpop.f32.mrb[115].mxu1 }
 0x3c4   : > { %24712 = vst [vmem:[#allocation120_spill] sm:$0xff] %v21680_v23  ;;  %5647 = vmatmul.mubr.bf16.gmra.mrb[20].mxu0 %v20865_v44  ;;  %v24720_v44 = vld [vmem:[#allocation32_spill] sm:$0xff]  ;;  %v24721_v23 = vld [vmem:[#allocation30_spill] sm:$0xff] }
 0x3c5   : > { %5656 = vmatprep.mubr.bf16.mxu0 %v20889_v41  ;;  %v24722_v62 = vpack.c.bf16 %v24720_v44, %v24721_v23  ;;  %v24732_v44 = vld [vmem:[#allocation25_spill] sm:$0xff] }
 0x3c6   : > { %5860 = vmatmul.mubr.bf16.gmra.mrb[220].mxu1 %v20905_v14 }
 0x3c7   : > { %6169 = vmatprep.mubr.bf16.mxu1 %v24715_v4  ;;  %v21690_v37 = vpop.f32.mrb[172].mxu0 }
 0x3c8   : > { %v21692_v35 = vpop.f32.mrb[173].mxu0  ;;  %v21694_v28 = vpop.f32.mrb[116].mxu1 }
 0x3c9   : > { %24716 = vst [vmem:[#allocation33_spill] sm:$0xff] %v21694_v28  ;;  %v21696_v6 = vpop.f32.mrb[174].mxu0  ;;  %v21698_v63 = vpop.f32.mrb[117].mxu1 }
 0x3ca   : > { %24717 = vst [vmem:[#allocation31_spill] sm:$0xff] %v21698_v63  ;;  %v21702_v41 = vpop.f32.mrb[175].mxu0  ;;  %v21704_v3 = vpop.f32.mrb[118].mxu1 }
 0x3cb   : > { %24718 = vst [vmem:[#allocation121_spill] sm:$0xff] %v21704_v3  ;;  %v21710_v4 = vpop.f32.mrb[119].mxu1  ;;  %v24736_v3 = vld [vmem:[#allocation34_spill] sm:$0xff] }
 0x3cc   : > { %24719 = vst [vmem:[#allocation122_spill] sm:$0xff] %v21710_v4  ;;  %5657 = vmatmul.mubr.bf16.gmra.mrb[24].mxu0 %v20885_v39  ;;  %v24737_v63 = vpack.c.bf16 %v24735_v33, %v24736_v3  ;;  %v24738_v4 = vld [vmem:[#allocation101_spill] sm:$0xff]  ;;  %v24758_v33 = vld [vmem:[#allocation75_spill] sm:$0xff] }
 0x3cd   : > { %5666 = vmatprep.mubr.bf16.mxu0 %v20908_v0  ;;  %v24740_v56 = vpack.c.bf16 %v24738_v4, %v24739_v59  ;;  %v24749_v59 = vld [vmem:[#allocation24_spill] sm:$0xff] }
 0x3ce   : > { %6170 = vmatmul.mubr.bf16.vlgmr.msra.gmra.mrb[224].mxu1 %v24722_v62 }
 0x3cf   : > { %6187 = vmatpush1.bf16.xpose.msra.mxu1 %v24723_v32  ;;  %6177 = vmatprep.mubr.bf16.mxu1 %v24726_v5  ;;  %v21725_v28 = vpop.f32.mrb[176].mxu0  ;;  %v24734_v5 = vpack.c.bf16 %v24732_v44, %v24733_v58 }
 0x3d0   : > { %6188 = vmatprep.subr.bf16.mxu1 %v24727_v36  ;;  %v21730_v39 = vpop.f32.mrb[177].mxu0  ;;  %v21732_v0 = vpop.f32.mrb[120].mxu1  ;;  %v24753_v36 = vld [vmem:[#allocation70_spill] sm:$0xff] }
 0x3d1   : > { %24728 = vst [vmem:[#allocation32_spill] sm:$0xff] %v21732_v0  ;;  %v21734_v23 = vpop.f32.mrb[178].mxu0  ;;  %v21736_v62 = vpop.f32.mrb[121].mxu1  ;;  %v24742_v0 = vld [vmem:[#allocation63_spill] sm:$0xff] }
 0x3d2   : > { %24729 = vst [vmem:[#allocation30_spill] sm:$0xff] %v21736_v62  ;;  %v21740_v17 = vpop.f32.mrb[179].mxu0  ;;  %v21742_v32 = vpop.f32.mrb[122].mxu1  ;;  %v24755_v62 = vld [vmem:[#allocation29_spill] sm:$0xff] }
 0x3d3   : > { %24730 = vst [vmem:[#allocation37_spill] sm:$0xff] %v21742_v32  ;;  %v21748_v47 = vpop.f32.mrb[123].mxu1  ;;  %v24743_v32 = vpack.c.bf16 %v24741_v50, %v24742_v0  ;;  %v24750_v50 = vld [vmem:[#allocation22_spill] sm:$0xff] }
 0x3d4   : > { %24731 = vst [vmem:[#allocation35_spill] sm:$0xff] %v21748_v47  ;;  %5667 = vmatmul.mubr.bf16.gmra.mrb[28].mxu0 %v20905_v14  ;;  %v24744_v14 = vpack.c.bf16 %v21451_v40, %v21445_v45  ;;  %v24756_v47 = vld [vmem:[#allocation27_spill] sm:$0xff]  ;;  %v24760_v45 = vpack.c.bf16 %v24758_v33, %v24759_v61  ;;  %v24767_v33 = vld [vmem:[#allocation28_spill] sm:$0xff] }
 0x3d5   : > { %6022 = vmatprep.mubr.bf16.mxu0 %v24734_v5  ;;  %v24751_v5 = vpack.c.bf16 %v24749_v59, %v24750_v50  ;;  %v24757_v24 = vpack.c.bf16 %v24755_v62, %v24756_v47  ;;  %v24762_v59 = vpack.c.bf16 %v21473_v11, %v21467_v10  ;;  %v24773_v61 = vld [vmem:[#allocation52_spill] sm:$0xff] }
 0x3d6   : > { %6178 = vmatmul.mubr.bf16.gmra.mrb[228].mxu1 %v24737_v63 }
 0x3d7   : > { %6189 = vmatpush1.bf16.xpose.msra.mxu1 %v24740_v56  ;;  %6218 = vmatprep.mubr.bf16.mxu1 %v24743_v32  ;;  %v21765_v55 = vpop.f32.mrb[180].mxu0 }
 0x3d8   : > { %6190 = vmatprep.subr.bf16.mxu1 %v24744_v14  ;;  %v21770_v44 = vpop.f32.mrb[181].mxu0  ;;  %v21772_v58 = vpop.f32.mrb[124].mxu1  ;;  %v24752_v14 = vld [vmem:[#allocation71_spill] sm:$0xff] }
 0x3d9   : > { %24745 = vst [vmem:[#allocation25_spill] sm:$0xff] %v21772_v58  ;;  %v21774_v3 = vpop.f32.mrb[182].mxu0  ;;  %v21776_v63 = vpop.f32.mrb[125].mxu1  ;;  %v24754_v56 = vpack.c.bf16 %v24752_v14, %v24753_v36  ;;  %v24761_v58 = vpack.c.bf16 %v21447_v20, %v21443_v30  ;;  %v24771_v14 = vld [vmem:[#allocation72_spill] sm:$0xff]  ;;  %v24776_v20 = vld [vmem:[#allocation79_spill] sm:$0xff] }
 0x3da   : > { %24746 = vst [vmem:[#allocation23_spill] sm:$0xff] %v21776_v63  ;;  %v21780_v4 = vpop.f32.mrb[183].mxu0  ;;  %v21782_v0 = vpop.f32.mrb[126].mxu1 }
 0x3db   : > { %24747 = vst [vmem:[#allocation36_spill] sm:$0xff] %v21782_v0  ;;  %v21788_v40 = vpop.f32.mrb[127].mxu1  ;;  %v24774_v0 = vld [vmem:[#allocation48_spill] sm:$0xff] }
 0x3dc   : > { %24748 = vst [vmem:[#allocation34_spill] sm:$0xff] %v21788_v40  ;;  %6023 = vmatmul.mubr.bf16.vlgmr.msra.gmra.mrb[32].mxu0 %v24751_v5  ;;  %v24770_v5 = vld [vmem:[#allocation74_spill] sm:$0xff]  ;;  %v24775_v63 = vpack.c.bf16 %v24773_v61, %v24774_v0  ;;  %v24777_v40 = vld [vmem:[#allocation77_spill] sm:$0xff] }
 0x3dd   : > { %6040 = vmatpush1.bf16.xpose.msra.mxu0 %v24754_v56  ;;  %6030 = vmatprep.mubr.bf16.mxu0 %v24757_v24  ;;  %v24778_v10 = vpack.c.bf16 %v24776_v20, %v24777_v40  ;;  %v24785_v20 = vld [vmem:[#allocation78_spill] sm:$0xff]  ;;  %v24791_v40 = vpack.c.bf16 %v21491_v38, %v21487_v53 }
 0x3de   : > { %6041 = vmatprep.subr.bf16.mxu0 %v24760_v45  ;;  %v24768_v45 = vld [vmem:[#allocation26_spill] sm:$0xff] }
 0x3df   : > { %6191 = vmatpush1.bf16.xpose.msra.mxu1 %v24761_v58  ;;  %v21807_v32 = vpop.f32.mrb[184].mxu0  ;;  %v24769_v50 = vpack.c.bf16 %v24767_v33, %v24768_v45  ;;  %v24780_v33 = vpack.c.bf16 %v21495_v51, %v21489_v54  ;;  %v24792_v54 = vpack.c.bf16 %v21517_v2, %v21511_v13  ;;  %v24797_v2 = vld [vmem:[#allocation82_spill] sm:$0xff] }
 0x3e0   : > { %6192 = vmatprep.subr.bf16.mxu1 %v24762_v59  ;;  %v21812_v36 = vpop.f32.mrb[185].mxu0  ;;  %v21814_v56 = vpop.f32.mrb[128].mxu1  ;;  %v24772_v59 = vpack.c.bf16 %v24770_v5, %v24771_v14  ;;  %v24788_v14 = vld [vmem:[#allocation83_spill] sm:$0xff] }
 0x3e1   : > { %24763 = vst [vmem:[#allocation101_spill] sm:$0xff] %v21814_v56  ;;  %v21816_v62 = vpop.f32.mrb[186].mxu0  ;;  %v21818_v24 = vpop.f32.mrb[129].mxu1  ;;  %v24779_v56 = vpack.c.bf16 %v21469_v1, %v21465_v31 }
 0x3e2   : > { %24764 = vst [vmem:[#allocation100_spill] sm:$0xff] %v21818_v24  ;;  %v21822_v47 = vpop.f32.mrb[187].mxu0  ;;  %v21824_v30 = vpop.f32.mrb[130].mxu1  ;;  %v24927_v24 = vld [vmem:[#allocation45_spill] sm:$0xff] }
 0x3e3   : > { %24765 = vst [vmem:[#allocation65_spill] sm:$0xff] %v21824_v30  ;;  %v21830_v11 = vpop.f32.mrb[131].mxu1 }
 0x3e4   : > { %24766 = vst [vmem:[#allocation63_spill] sm:$0xff] %v21830_v11  ;;  %6031 = vmatmul.mubr.bf16.gmra.mrb[36].mxu0 %v24769_v50  ;;  %v24928_v11 = vld [vmem:[#allocation43_spill] sm:$0xff] }
 0x3e5   : > { %6042 = vmatpush1.bf16.xpose.msra.mxu0 %v24772_v59  ;;  %6071 = vmatprep.mubr.bf16.mxu0 %v24775_v63  ;;  %v24789_v59 = vld [vmem:[#allocation81_spill] sm:$0xff] }
 0x3e6   : > { %6043 = vmatprep.subr.bf16.mxu0 %v24778_v10  ;;  %v24786_v10 = vld [vmem:[#allocation76_spill] sm:$0xff] }
 0x3e7   : > { %6193 = vmatpush1.bf16.xpose.msra.mxu1 %v24779_v56  ;;  %v21849_v58 = vpop.f32.mrb[188].mxu0  ;;  %v24787_v5 = vpack.c.bf16 %v24785_v20, %v24786_v10 }
 0x3e8   : > { %6194 = vmatprep.subr.bf16.mxu1 %v24780_v33  ;;  %v21854_v45 = vpop.f32.mrb[189].mxu0  ;;  %v21856_v50 = vpop.f32.mrb[132].mxu1  ;;  %v24790_v33 = vpack.c.bf16 %v24788_v14, %v24789_v59 }
 0x3e9   : > { %24781 = vst [vmem:[#allocation24_spill] sm:$0xff] %v21856_v50  ;;  %v21858_v0 = vpop.f32.mrb[190].mxu0  ;;  %v21860_v63 = vpop.f32.mrb[133].mxu1 }
 0x3ea   : > { %24782 = vst [vmem:[#allocation22_spill] sm:$0xff] %v21860_v63  ;;  %v21864_v61 = vpop.f32.mrb[191].mxu0  ;;  %v21866_v31 = vpop.f32.mrb[134].mxu1  ;;  %v24801_v63 = vld [vmem:[#allocation85_spill] sm:$0xff] }
 0x3eb   : > { %24783 = vst [vmem:[#allocation71_spill] sm:$0xff] %v21866_v31  ;;  %v21872_v51 = vpop.f32.mrb[135].mxu1 }
 0x3ec   : > { %24784 = vst [vmem:[#allocation70_spill] sm:$0xff] %v21872_v51 }
 0x3ed   : > { %6044 = vmatpush1.bf16.xpose.msra.mxu0 %v24787_v5 }
 0x3ee   : > { %6045 = vmatprep.subr.bf16.mxu0 %v24790_v33  ;;  %v24800_v33 = vld [vmem:[#allocation87_spill] sm:$0xff] }
 0x3ef   : > { %6195 = vmatpush1.bf16.xpose.msra.mxu1 %v24791_v40  ;;  %v21885_v1 = vpop.f32.mrb[192].mxu0  ;;  %v24798_v40 = vld [vmem:[#allocation80_spill] sm:$0xff]  ;;  %v24802_v51 = vpack.c.bf16 %v24800_v33, %v24801_v63 }
 0x3f0   : > { %6196 = vmatprep.subr.bf16.mxu1 %v24792_v54  ;;  %v4542_v50 = vpop.f32.mrb[193].mxu0  ;;  %v21890_v56 = vpop.f32.mrb[136].mxu1  ;;  %v24799_v54 = vpack.c.bf16 %v24797_v2, %v24798_v40  ;;  %v24810_v33 = vld [vmem:[#allocation84_spill] sm:$0xff] }
 0x3f1   : > { %24793 = vst [vmem:[#allocation29_spill] sm:$0xff] %v21890_v56  ;;  %v4544_v31 = vpop.f32.mrb[194].mxu0  ;;  %v21892_v20 = vpop.f32.mrb[137].mxu1  ;;  %v24813_v56 = vld [vmem:[#allocation89_spill] sm:$0xff] }
 0x3f2   : > { %24794 = vst [vmem:[#allocation27_spill] sm:$0xff] %v21892_v20  ;;  %v4671_v10 = vpack.c.bf16 %v4544_v31, %v21885_v1  ;;  %v4546_v5 = vpop.f32.mrb[195].mxu0  ;;  %v21895_v14 = vpop.f32.mrb[138].mxu1  ;;  %v24803_v31 = vpack.c.bf16 %v21513_v8, %v21509_v43  ;;  %v24804_v1 = vpack.c.bf16 %v21539_v9, %v21533_v42  ;;  %v24809_v9 = vld [vmem:[#allocation86_spill] sm:$0xff] }
 0x3f3   : > { %24795 = vst [vmem:[#allocation75_spill] sm:$0xff] %v21895_v14  ;;  %v4672_v59 = vpack.c.bf16 %v4546_v5, %v4542_v50  ;;  %v21899_v38 = vpop.f32.mrb[139].mxu1 }
 0x3f4   : > { %24796 = vst [vmem:[#allocation73_spill] sm:$0xff] %v21899_v38 }
 0x3f5   : > { %6046 = vmatpush1.bf16.xpose.msra.mxu0 %v24799_v54 }
 0x3f6   : > { %6047 = vmatprep.subr.bf16.mxu0 %v24802_v51 }
 0x3f7   : > { %6197 = vmatpush1.bf16.xpose.msra.mxu1 %v24803_v31  ;;  %v21912_v50 = vpop.f32.mrb[196].mxu0  ;;  %v24811_v31 = vpack.c.bf16 %v24809_v9, %v24810_v33 }
 0x3f8   : > { %6198 = vmatprep.subr.bf16.mxu1 %v24804_v1  ;;  %v4552_v5 = vpop.f32.mrb[197].mxu0  ;;  %v21917_v53 = vpop.f32.mrb[140].mxu1  ;;  %v24812_v1 = vld [vmem:[#allocation91_spill] sm:$0xff] }
 0x3f9   : > { %24805 = vst [vmem:[#allocation28_spill] sm:$0xff] %v21917_v53  ;;  %v4554_v13 = vpop.f32.mrb[198].mxu0  ;;  %v21919_v2 = vpop.f32.mrb[141].mxu1  ;;  %v24814_v14 = vpack.c.bf16 %v24812_v1, %v24813_v56  ;;  %v24822_v1 = vld [vmem:[#allocation88_spill] sm:$0xff]  ;;  %v24825_v53 = vld [vmem:[#allocation93_spill] sm:$0xff] }
 0x3fa   : > { %24806 = vst [vmem:[#allocation26_spill] sm:$0xff] %v21919_v2  ;;  %v4677_v40 = vpack.c.bf16 %v4554_v13, %v21912_v50  ;;  %v4556_v63 = vpop.f32.mrb[199].mxu0  ;;  %v21922_v51 = vpop.f32.mrb[142].mxu1  ;;  %v24815_v13 = vpack.c.bf16 %v21535_v57, %v21531_v16 }
 0x3fb   : > { %24807 = vst [vmem:[#allocation74_spill] sm:$0xff] %v21922_v51  ;;  %v4678_v54 = vpack.c.bf16 %v4556_v63, %v4552_v5  ;;  %v21926_v8 = vpop.f32.mrb[143].mxu1  ;;  %v24816_v5 = vpack.c.bf16 %v21561_v25, %v21555_v60  ;;  %v24821_v25 = vld [vmem:[#allocation90_spill] sm:$0xff] }
 0x3fc   : > { %24808 = vst [vmem:[#allocation72_spill] sm:$0xff] %v21926_v8 }
 0x3fd   : > { %6048 = vmatpush1.bf16.xpose.msra.mxu0 %v24811_v31 }
 0x3fe   : > { %6049 = vmatprep.subr.bf16.mxu0 %v24814_v14 }
 0x3ff   : > { %6199 = vmatpush1.bf16.xpose.msra.mxu1 %v24815_v13  ;;  %v21939_v50 = vpop.f32.mrb[200].mxu0  ;;  %v24823_v13 = vpack.c.bf16 %v24821_v25, %v24822_v1  ;;  %v24838_v25 = vld [vmem:[#allocation99_spill] sm:$0xff] }
 0x400   : > { %6200 = vmatprep.subr.bf16.mxu1 %v24816_v5  ;;  %v4562_v63 = vpop.f32.mrb[201].mxu0  ;;  %v21944_v43 = vpop.f32.mrb[144].mxu1  ;;  %v24824_v5 = vld [vmem:[#allocation95_spill] sm:$0xff] }
 0x401   : > { %24817 = vst [vmem:[#allocation52_spill] sm:$0xff] %v21944_v43  ;;  %v21946_v42 = vpop.f32.mrb[202].mxu0  ;;  %v21948_v9 = vpop.f32.mrb[145].mxu1  ;;  %v24826_v51 = vpack.c.bf16 %v24824_v5, %v24825_v53  ;;  %v24833_v5 = vld [vmem:[#allocation92_spill] sm:$0xff] }
 0x402   : > { %24818 = vst [vmem:[#allocation48_spill] sm:$0xff] %v21948_v9  ;;  %v4683_v56 = vpack.c.bf16 %v21946_v42, %v21939_v50  ;;  %v4566_v14 = vpop.f32.mrb[203].mxu0  ;;  %v21952_v33 = vpop.f32.mrb[146].mxu1  ;;  %v24827_v42 = vpack.c.bf16 %v21557_v15, %v21553_v52  ;;  %v24835_v43 = vld [vmem:[#allocation64_spill] sm:$0xff] }
 0x403   : > { %24819 = vst [vmem:[#allocation79_spill] sm:$0xff] %v21952_v33  ;;  %v4684_v16 = vpack.c.bf16 %v4566_v14, %v4562_v63  ;;  %v21956_v31 = vpop.f32.mrb[147].mxu1  ;;  %v24836_v33 = vld [vmem:[#allocation62_spill] sm:$0xff] }
 0x404   : > { %24820 = vst [vmem:[#allocation77_spill] sm:$0xff] %v21956_v31  ;;  %v24837_v9 = vpack.c.bf16 %v24835_v43, %v24836_v33  ;;  %v24839_v31 = vld [vmem:[#allocation97_spill] sm:$0xff] }
 0x405   : > { %6050 = vmatpush1.bf16.xpose.msra.mxu0 %v24823_v13  ;;  %v24832_v13 = vld [vmem:[#allocation94_spill] sm:$0xff]  ;;  %v24840_v2 = vpack.c.bf16 %v24838_v25, %v24839_v31 }
 0x406   : > { %6051 = vmatprep.subr.bf16.mxu0 %v24826_v51  ;;  %v24848_v25 = vld [vmem:[#allocation98_spill] sm:$0xff] }
 0x407   : > { %6201 = vmatpush1.bf16.xpose.msra.mxu1 %v24827_v42  ;;  %v21969_v50 = vpop.f32.mrb[204].mxu0  ;;  %v24834_v42 = vpack.c.bf16 %v24832_v13, %v24833_v5 }
 0x408   : > { %6235 = vmatprep.subr.bf16.mxu1 %v4672_v59  ;;  %v4572_v63 = vpop.f32.mrb[205].mxu0  ;;  %v21971_v14 = vpop.f32.mrb[148].mxu1 }
 0x409   : > { %24828 = vst [vmem:[#allocation78_spill] sm:$0xff] %v21971_v14  ;;  %v21973_v57 = vpop.f32.mrb[206].mxu0  ;;  %v21975_v60 = vpop.f32.mrb[149].mxu1 }
 0x40a   : > { %24829 = vst [vmem:[#allocation76_spill] sm:$0xff] %v21975_v60  ;;  %v4576_v1 = vpop.f32.mrb[207].mxu0  ;;  %v21979_v53 = vpop.f32.mrb[150].mxu1 }
 0x40b   : > { %24830 = vst [vmem:[#allocation83_spill] sm:$0xff] %v21979_v53  ;;  %v4690_v51 = vpack.c.bf16 %v4576_v1, %v4572_v63  ;;  %v21983_v15 = vpop.f32.mrb[151].mxu1  ;;  %v24841_v63 = vld [vmem:[#allocation69_spill] sm:$0xff]  ;;  %v24842_v1 = vld [vmem:[#allocation67_spill] sm:$0xff] }
 0x40c   : > { %24831 = vst [vmem:[#allocation81_spill] sm:$0xff] %v21983_v15  ;;  %v24843_v52 = vpack.c.bf16 %v24841_v63, %v24842_v1  ;;  %v24851_v63 = vld [vmem:[#allocation68_spill] sm:$0xff]  ;;  %v24852_v1 = vld [vmem:[#allocation66_spill] sm:$0xff] }
 0x40d   : > { %6052 = vmatpush1.bf16.xpose.msra.mxu0 %v24834_v42  ;;  %v24853_v60 = vpack.c.bf16 %v24851_v63, %v24852_v1  ;;  %v24862_v1 = vld [vmem:[#allocation50_spill] sm:$0xff] }
 0x40e   : > { %6219 = vmatmul.mubr.bf16.vlgmr.msra.gmra.mrb[224].mxu1 %v24837_v9  ;;  %6053 = vmatprep.subr.bf16.mxu0 %v24840_v2 }
 0x40f   : > { %6226 = vmatprep.mubr.bf16.mxu1 %v24843_v52  ;;  %6236 = vmatpush1.bf16.xpose.msra.mxu1 %v4671_v10  ;;  %v21999_v14 = vpop.f32.mrb[208].mxu0  ;;  %v24849_v52 = vld [vmem:[#allocation96_spill] sm:$0xff] }
 0x410   : > { %6237 = vmatprep.subr.bf16.mxu1 %v4678_v54  ;;  %v4582_v59 = vpop.f32.mrb[209].mxu0  ;;  %v22001_v53 = vpop.f32.mrb[152].mxu1  ;;  %v24850_v42 = vpack.c.bf16 %v24848_v25, %v24849_v52 }
 0x411   : > { %24844 = vst [vmem:[#allocation82_spill] sm:$0xff] %v22001_v53  ;;  %v22003_v13 = vpop.f32.mrb[210].mxu0  ;;  %v22005_v5 = vpop.f32.mrb[153].mxu1 }
 0x412   : > { %24845 = vst [vmem:[#allocation80_spill] sm:$0xff] %v22005_v5  ;;  %v4695_v43 = vpack.c.bf16 %v22003_v13, %v21999_v14  ;;  %v4586_v9 = vpop.f32.mrb[211].mxu0  ;;  %v22009_v2 = vpop.f32.mrb[154].mxu1  ;;  %v24854_v14 = vpack.c.bf16 %v21616_v19, %v21603_v22  ;;  %v24856_v13 = vld [vmem:[#allocation49_spill] sm:$0xff] }
 0x413   : > { %24846 = vst [vmem:[#allocation87_spill] sm:$0xff] %v22009_v2  ;;  %v4696_v33 = vpack.c.bf16 %v4586_v9, %v4582_v59  ;;  %v22013_v31 = vpop.f32.mrb[155].mxu1  ;;  %v24855_v59 = vld [vmem:[#allocation53_spill] sm:$0xff] }
 0x414   : > { %24847 = vst [vmem:[#allocation85_spill] sm:$0xff] %v22013_v31  ;;  %v24857_v9 = vpack.c.bf16 %v24855_v59, %v24856_v13  ;;  %v24865_v13 = vld [vmem:[#allocation60_spill] sm:$0xff]  ;;  %v24908_v5 = vld [vmem:[#allocation57_spill] sm:$0xff] }
 0x415   : > { %6054 = vmatpush1.bf16.xpose.msra.mxu0 %v24850_v42 }
 0x416   : > { %6227 = vmatmul.mubr.bf16.gmra.mrb[228].mxu1 %v24853_v60  ;;  %6088 = vmatprep.subr.bf16.mxu0 %v24854_v14  ;;  %v24863_v14 = vld [vmem:[#allocation46_spill] sm:$0xff] }
 0x417   : > { %6238 = vmatpush1.bf16.xpose.msra.mxu1 %v4677_v40  ;;  %6267 = vmatprep.mubr.bf16.mxu1 %v24857_v9  ;;  %v22029_v10 = vpop.f32.mrb[212].mxu0  ;;  %v24864_v59 = vpack.c.bf16 %v24862_v1, %v24863_v14  ;;  %v24866_v9 = vld [vmem:[#allocation56_spill] sm:$0xff] }
 0x418   : > { %6239 = vmatprep.subr.bf16.mxu1 %v4684_v16  ;;  %v4592_v54 = vpop.f32.mrb[213].mxu0  ;;  %v22031_v53 = vpop.f32.mrb[156].mxu1  ;;  %v24867_v2 = vpack.c.bf16 %v24865_v13, %v24866_v9 }
 0x419   : > { %24858 = vst [vmem:[#allocation86_spill] sm:$0xff] %v22031_v53  ;;  %v22033_v25 = vpop.f32.mrb[214].mxu0  ;;  %v22035_v52 = vpop.f32.mrb[157].mxu1 }
 0x41a   : > { %24859 = vst [vmem:[#allocation84_spill] sm:$0xff] %v22035_v52  ;;  %v4701_v60 = vpack.c.bf16 %v22033_v25, %v22029_v10  ;;  %v4596_v22 = vpop.f32.mrb[215].mxu0  ;;  %v22039_v19 = vpop.f32.mrb[158].mxu1  ;;  %v24868_v10 = vpack.c.bf16 %v21610_v18, %v21601_v46 }
 0x41b   : > { %24860 = vst [vmem:[#allocation91_spill] sm:$0xff] %v22039_v19  ;;  %v4702_v40 = vpack.c.bf16 %v4596_v22, %v4592_v54  ;;  %v22043_v63 = vpop.f32.mrb[159].mxu1  ;;  %v24869_v54 = vpack.c.bf16 %v21644_v29, %v21634_v12  ;;  %v24904_v19 = vld [vmem:[#allocation47_spill] sm:$0xff] }
 0x41c   : > { %24861 = vst [vmem:[#allocation89_spill] sm:$0xff] %v22043_v63  ;;  %6072 = vmatmul.mubr.bf16.vlgmr.msra.gmra.mrb[32].mxu0 %v24864_v59  ;;  %v24907_v63 = vld [vmem:[#allocation61_spill] sm:$0xff] }
 0x41d   : > { %6079 = vmatprep.mubr.bf16.mxu0 %v24867_v2  ;;  %6089 = vmatpush1.bf16.xpose.msra.mxu0 %v24868_v10  ;;  %v24873_v10 = vpack.c.bf16 %v21638_v48, %v21632_v34 }
 0x41e   : > { %6090 = vmatprep.subr.bf16.mxu0 %v24869_v54  ;;  %v24874_v54 = vld [vmem:[#allocation41_spill] sm:$0xff] }
 0x41f   : > { %6240 = vmatpush1.bf16.xpose.msra.mxu1 %v4683_v56  ;;  %v22059_v25 = vpop.f32.mrb[216].mxu0  ;;  %v24870_v56 = vld [vmem:[#allocation58_spill] sm:$0xff] }
 0x420   : > { %6241 = vmatprep.subr.bf16.mxu1 %v4690_v51  ;;  %v4602_v22 = vpop.f32.mrb[217].mxu0  ;;  %v22061_v42 = vpop.f32.mrb[160].mxu1  ;;  %v24871_v51 = vld [vmem:[#allocation54_spill] sm:$0xff] }
 0x421   : > { %v4604_v1 = vpop.f32.mrb[218].mxu0  ;;  %v22063_v14 = vpop.f32.mrb[161].mxu1  ;;  %v24872_v9 = vpack.c.bf16 %v24870_v56, %v24871_v51 }
 0x422   : > { %v4707_v2 = vpack.c.bf16 %v4604_v1, %v22059_v25  ;;  %v4606_v59 = vpop.f32.mrb[219].mxu0  ;;  %v22066_v13 = vpop.f32.mrb[162].mxu1  ;;  %v24875_v25 = vld [vmem:[#allocation39_spill] sm:$0xff] }
 0x423   : > { %v4708_v46 = vpack.c.bf16 %v4606_v59, %v4602_v22  ;;  %v22070_v12 = vpop.f32.mrb[163].mxu1  ;;  %v24876_v1 = vpack.c.bf16 %v24874_v54, %v24875_v25  ;;  %v24877_v22 = vpack.c.bf16 %v21672_v7, %v21662_v26  ;;  %v24878_v59 = vpack.c.bf16 %v21973_v57, %v21969_v50 }
 0x424   : > { %6080 = vmatmul.mubr.bf16.gmra.mrb[36].mxu0 %v24872_v9  ;;  %v24880_v25 = vpack.c.bf16 %v21702_v41, %v21692_v35 }
 0x425   : > { %6091 = vmatpush1.bf16.xpose.msra.mxu0 %v24873_v10  ;;  %6120 = vmatprep.mubr.bf16.mxu0 %v24876_v1 }
 0x426   : > { %6092 = vmatprep.subr.bf16.mxu0 %v24877_v22 }
 0x427   : > { %6242 = vmatpush1.bf16.xpose.msra.mxu1 %v24878_v59  ;;  %v22089_v16 = vpop.f32.mrb[220].mxu0 }
 0x428   : > { %6243 = vmatprep.subr.bf16.mxu1 %v4696_v33  ;;  %v4612_v56 = vpop.f32.mrb[221].mxu0  ;;  %v22091_v51 = vpop.f32.mrb[164].mxu1  ;;  %v24879_v33 = vpack.c.bf16 %v21666_v27, %v21660_v21 }
 0x429   : > { %v4614_v48 = vpop.f32.mrb[222].mxu0  ;;  %v22093_v34 = vpop.f32.mrb[165].mxu1 }
 0x42a   : > { %v4713_v9 = vpack.c.bf16 %v4614_v48, %v22089_v16  ;;  %v4616_v10 = vpop.f32.mrb[223].mxu0  ;;  %v22096_v54 = vpop.f32.mrb[166].mxu1 }
 0x42b   : > { %v4714_v26 = vpack.c.bf16 %v4616_v10, %v4612_v56  ;;  %v22100_v57 = vpop.f32.mrb[167].mxu1  ;;  %v24884_v10 = vpack.c.bf16 %v21696_v6, %v21690_v37 }
 0x42d   : > { %6093 = vmatpush1.bf16.xpose.msra.mxu0 %v24879_v33  ;;  %v24885_v33 = vpack.c.bf16 %v21740_v17, %v21730_v39 }
 0x42e   : > { %6094 = vmatprep.subr.bf16.mxu0 %v24880_v25 }
 0x42f   : > { %6244 = vmatpush1.bf16.xpose.msra.mxu1 %v4695_v43  ;;  %v22110_v16 = vpop.f32.mrb[224].mxu0 }
 0x430   : > { %6245 = vmatprep.subr.bf16.mxu1 %v4702_v40  ;;  %v22112_v1 = vpop.f32.mrb[225].mxu0 }
 0x431   : > { %v22114_v22 = vpop.f32.mrb[168].mxu1  ;;  %v22116_v59 = vpop.f32.mrb[226].mxu0 }
 0x432   : > { %24881 = vst [vmem:[#allocation90_spill] sm:$0xff] %v22114_v22  ;;  %v22120_v48 = vpop.f32.mrb[169].mxu1  ;;  %v22122_v27 = vpop.f32.mrb[227].mxu0 }
 0x433   : > { %24882 = vst [vmem:[#allocation88_spill] sm:$0xff] %v22120_v48  ;;  %v22126_v35 = vpop.f32.mrb[170].mxu1 }
 0x434   : > { %24883 = vst [vmem:[#allocation95_spill] sm:$0xff] %v22126_v35  ;;  %v22130_v43 = vpop.f32.mrb[171].mxu1 }
 0x435   : > { %6095 = vmatpush1.bf16.xpose.msra.mxu0 %v24884_v10  ;;  %v24890_v10 = vpack.c.bf16 %v21734_v23, %v21725_v28 }
 0x436   : > { %6096 = vmatprep.subr.bf16.mxu0 %v24885_v33  ;;  %v24891_v33 = vpack.c.bf16 %v21780_v4, %v21770_v44 }
 0x437   : > { %6246 = vmatpush1.bf16.xpose.msra.mxu1 %v4701_v60  ;;  %v22140_v25 = vpop.f32.mrb[228].mxu0 }
 0x438   : > { %6247 = vmatprep.subr.bf16.mxu1 %v4708_v46  ;;  %v22142_v7 = vpop.f32.mrb[229].mxu0 }
 0x439   : > { %v22144_v41 = vpop.f32.mrb[172].mxu1  ;;  %v22146_v50 = vpop.f32.mrb[230].mxu0 }
 0x43a   : > { %24886 = vst [vmem:[#allocation93_spill] sm:$0xff] %v22144_v41  ;;  %v22150_v18 = vpop.f32.mrb[173].mxu1  ;;  %v22152_v6 = vpop.f32.mrb[231].mxu0 }
 0x43b   : > { %24887 = vst [vmem:[#allocation94_spill] sm:$0xff] %v22150_v18  ;;  %v22156_v39 = vpop.f32.mrb[174].mxu1 }
 0x43c   : > { %24888 = vst [vmem:[#allocation92_spill] sm:$0xff] %v22156_v39  ;;  %v22160_v60 = vpop.f32.mrb[175].mxu1 }
 0x43d   : > { %24889 = vst [vmem:[#allocation64_spill] sm:$0xff] %v22160_v60  ;;  %6097 = vmatpush1.bf16.xpose.msra.mxu0 %v24890_v10  ;;  %v24896_v10 = vpack.c.bf16 %v21774_v3, %v21765_v55  ;;  %v24906_v3 = vpack.c.bf16 %v21864_v61, %v21854_v45  ;;  %v24918_v45 = vld [vmem:[#allocation103_spill] sm:$0xff] }
 0x43e   : > { %6098 = vmatprep.subr.bf16.mxu0 %v24891_v33  ;;  %v24897_v33 = vpack.c.bf16 %v21822_v47, %v21812_v36  ;;  %v24909_v47 = vpack.c.bf16 %v24907_v63, %v24908_v5  ;;  %v24919_v8 = vpack.c.bf16 %v21577_v49, %v24918_v45 }
 0x43f   : > { %6248 = vmatpush1.bf16.xpose.msra.mxu1 %v4707_v2  ;;  %v22170_v29 = vpop.f32.mrb[232].mxu0 }
 0x440   : > { %6249 = vmatprep.subr.bf16.mxu1 %v4714_v26  ;;  %v22172_v40 = vpop.f32.mrb[233].mxu0  ;;  %v24903_v26 = vld [vmem:[#allocation51_spill] sm:$0xff] }
 0x441   : > { %v22174_v17 = vpop.f32.mrb[176].mxu1  ;;  %v22176_v37 = vpop.f32.mrb[234].mxu0  ;;  %v24905_v52 = vpack.c.bf16 %v24903_v26, %v24904_v19 }
 0x442   : > { %24892 = vst [vmem:[#allocation62_spill] sm:$0xff] %v22174_v17  ;;  %v22180_v56 = vpop.f32.mrb[177].mxu1  ;;  %v22182_v28 = vpop.f32.mrb[235].mxu0  ;;  %v24967_v17 = vld [vmem:[#allocation117_spill] sm:$0xff] }
 0x443   : > { %24893 = vst [vmem:[#allocation99_spill] sm:$0xff] %v22180_v56  ;;  %v22186_v44 = vpop.f32.mrb[178].mxu1 }
 0x444   : > { %24894 = vst [vmem:[#allocation97_spill] sm:$0xff] %v22186_v44  ;;  %v22190_v2 = vpop.f32.mrb[179].mxu1 }
 0x445   : > { %24895 = vst [vmem:[#allocation69_spill] sm:$0xff] %v22190_v2  ;;  %6099 = vmatpush1.bf16.xpose.msra.mxu0 %v24896_v10 }
 0x446   : > { %6100 = vmatprep.subr.bf16.mxu0 %v24897_v33  ;;  %v24902_v33 = vpack.c.bf16 %v21816_v62, %v21807_v32 }
 0x447   : > { %6250 = vmatpush1.bf16.xpose.msra.mxu1 %v4713_v9  ;;  %v22200_v46 = vpop.f32.mrb[236].mxu0 }
 0x448   : > { %v22202_v23 = vpop.f32.mrb[237].mxu0 }
 0x449   : > { %v22204_v21 = vpop.f32.mrb[180].mxu1  ;;  %v22206_v4 = vpop.f32.mrb[238].mxu0 }
 0x44a   : > { %24898 = vst [vmem:[#allocation67_spill] sm:$0xff] %v22204_v21  ;;  %v22210_v53 = vpop.f32.mrb[181].mxu1  ;;  %v22212_v55 = vpop.f32.mrb[239].mxu0  ;;  %v24934_v21 = vld [vmem:[#allocation106_spill] sm:$0xff] }
 0x44b   : > { %24899 = vst [vmem:[#allocation98_spill] sm:$0xff] %v22210_v53  ;;  %v22216_v36 = vpop.f32.mrb[182].mxu1  ;;  %v24954_v53 = vld [vmem:[#allocation114_spill] sm:$0xff] }
 0x44c   : > { %24900 = vst [vmem:[#allocation96_spill] sm:$0xff] %v22216_v36  ;;  %v22220_v9 = vpop.f32.mrb[183].mxu1  ;;  %v24952_v36 = vmov 0  }
 0x44d   : > { %24901 = vst [vmem:[#allocation68_spill] sm:$0xff] %v22220_v9  ;;  %6101 = vmatpush1.bf16.xpose.msra.mxu0 %v24902_v33  ;;  %v24916_v33 = vld [vmem:[#allocation55_spill] sm:$0xff] }
 0x44e   : > { %6268 = vmatmul.mubr.bf16.vlgmr.msra.gmra.mrb[224].mxu1 %v24905_v52  ;;  %6102 = vmatprep.subr.bf16.mxu0 %v24906_v3  ;;  %v24914_v3 = vpack.c.bf16 %v21858_v0, %v21849_v58 }
 0x44f   : > { %6275 = vmatprep.mubr.bf16.mxu1 %v24909_v47  ;;  %v22236_v31 = vpop.f32.mrb[240].mxu0  ;;  %v24915_v47 = vld [vmem:[#allocation59_spill] sm:$0xff] }
 0x450   : > { %v22238_v15 = vpop.f32.mrb[241].mxu0  ;;  %v24917_v62 = vpack.c.bf16 %v24915_v47, %v24916_v33  ;;  %v24924_v47 = vld [vmem:[#allocation40_spill] sm:$0xff]  ;;  %v24925_v33 = vld [vmem:[#allocation38_spill] sm:$0xff] }
 0x451   : > { %v22240_v10 = vpop.f32.mrb[184].mxu1  ;;  %v22242_v32 = vpop.f32.mrb[242].mxu0  ;;  %v24926_v26 = vpack.c.bf16 %v24924_v47, %v24925_v33  ;;  %v24937_v47 = vld [vmem:[#allocation107_spill] sm:$0xff]  ;;  %v24938_v33 = vld [vmem:[#allocation105_spill] sm:$0xff] }
 0x452   : > { %24910 = vst [vmem:[#allocation66_spill] sm:$0xff] %v22240_v10  ;;  %v22246_v52 = vpop.f32.mrb[185].mxu1  ;;  %v22248_v19 = vpop.f32.mrb[243].mxu0  ;;  %v24929_v10 = vpack.c.bf16 %v24927_v24, %v24928_v11  ;;  %v24939_v58 = vpack.c.bf16 %v24937_v47, %v24938_v33  ;;  %v24946_v33 = vld [vmem:[#allocation44_spill] sm:$0xff]  ;;  %v24947_v11 = vld [vmem:[#allocation42_spill] sm:$0xff] }
 0x453   : > { %24911 = vst [vmem:[#allocation53_spill] sm:$0xff] %v22246_v52  ;;  %v22252_v61 = vpop.f32.mrb[186].mxu1 }
 0x454   : > { %24912 = vst [vmem:[#allocation49_spill] sm:$0xff] %v22252_v61  ;;  %v22256_v63 = vpop.f32.mrb[187].mxu1  ;;  %v24930_v61 = vld [vmem:[#allocation104_spill] sm:$0xff] }
 0x455   : > { %24913 = vst [vmem:[#allocation50_spill] sm:$0xff] %v22256_v63  ;;  %6103 = vmatpush1.bf16.xpose.msra.mxu0 %v24914_v3  ;;  %v24933_v63 = vld [vmem:[#allocation108_spill] sm:$0xff] }
 0x456   : > { %6276 = vmatmul.mubr.bf16.gmra.mrb[228].mxu1 %v24917_v62  ;;  %6371 = vmatprep.subr.bf16.mxu0 %v24919_v8  ;;  %v24931_v62 = vld [vmem:[#allocation102_spill] sm:$0xff]  ;;  %v24935_v8 = vpack.c.bf16 %v24933_v63, %v24934_v21 }
 0x457   : > { %v22269_v20 = vpop.f32.mrb[244].mxu0  ;;  %v24932_v52 = vpack.c.bf16 %v24930_v61, %v24931_v62  ;;  %v24942_v21 = vld [vmem:[#allocation110_spill] sm:$0xff]  ;;  %v24953_v62 = vld [vmem:[#allocation116_spill] sm:$0xff] }
 0x458   : > { %v22271_v5 = vpop.f32.mrb[245].mxu0  ;;  %v24955_v9 = vpack.c.bf16 %v24953_v62, %v24954_v53  ;;  %v24962_v53 = vld [vmem:[#allocation118_spill] sm:$0xff] }
 0x459   : > { %v22273_v38 = vpop.f32.mrb[188].mxu1  ;;  %v22275_v30 = vpop.f32.mrb[246].mxu0 }
 0x45a   : > { %24920 = vst [vmem:[#allocation46_spill] sm:$0xff] %v22273_v38  ;;  %v22279_v0 = vpop.f32.mrb[189].mxu1  ;;  %v22281_v3 = vpop.f32.mrb[247].mxu0 }
 0x45b   : > { %24921 = vst [vmem:[#allocation60_spill] sm:$0xff] %v22279_v0  ;;  %v22285_v49 = vpop.f32.mrb[190].mxu1  ;;  %v24948_v0 = vpack.c.bf16 %v24946_v33, %v24947_v11  ;;  %v24958_v11 = vld [vmem:[#allocation113_spill] sm:$0xff] }
 0x45c   : > { %24922 = vst [vmem:[#allocation56_spill] sm:$0xff] %v22285_v49  ;;  %v22289_v45 = vpop.f32.mrb[191].mxu1  ;;  %6121 = vmatmul.mubr.bf16.vlgmr.msra.gmra.mrb[32].mxu0 %v24926_v26 }
 0x45d   : > { %24923 = vst [vmem:[#allocation58_spill] sm:$0xff] %v22289_v45  ;;  %6128 = vmatprep.mubr.bf16.mxu0 %v24929_v10  ;;  %6372 = vmatpush1.bf16.msra.mxu0 %v24932_v52  ;;  %v24941_v52 = vld [vmem:[#allocation112_spill] sm:$0xff] }
 0x45e   : > { %6373 = vmatprep.subr.bf16.mxu0 %v24935_v8  ;;  %v24943_v61 = vpack.c.bf16 %v24941_v52, %v24942_v21  ;;  %v24949_v21 = vld [vmem:[#allocation111_spill] sm:$0xff] }
 0x45f   : > { %v22305_v38 = vpop.f32.mrb[248].mxu0 }
 0x460   : > { %v22307_v49 = vpop.f32.mrb[249].mxu0 }
 0x461   : > { %v22309_v26 = vpop.f32.mrb[192].mxu1  ;;  %6374 = vmatpush1.bf16.msra.mxu0 %v24939_v58  ;;  %v22314_v24 = vpop.f32.mrb[250].mxu0 }
 0x462   : > { %24936 = vst [vmem:[#allocation54_spill] sm:$0xff] %v22309_v26  ;;  %v22318_v10 = vpop.f32.mrb[193].mxu1  ;;  %6375 = vmatprep.subr.bf16.mxu0 %v24943_v61  ;;  %v22323_v63 = vpop.f32.mrb[251].mxu0  ;;  %v24950_v61 = vld [vmem:[#allocation109_spill] sm:$0xff] }
 0x463   : > { %24940 = vst [vmem:[#allocation41_spill] sm:$0xff] %v22318_v10  ;;  %v22327_v8 = vpop.f32.mrb[194].mxu1  ;;  %v24951_v45 = vpack.c.bf16 %v24949_v21, %v24950_v61  ;;  %v24961_v61 = vld [vmem:[#allocation120_spill] sm:$0xff] }
 0x464   : > { %24944 = vst [vmem:[#allocation39_spill] sm:$0xff] %v22327_v8  ;;  %v22331_v47 = vpop.f32.mrb[195].mxu1  ;;  %6129 = vmatmul.mubr.bf16.gmra.mrb[36].mxu0 %v24948_v0  ;;  %v24957_v0 = vld [vmem:[#allocation115_spill] sm:$0xff] }
 0x465   : > { %24945 = vst [vmem:[#allocation51_spill] sm:$0xff] %v22331_v47  ;;  %6376 = vmatpush1.bf16.msra.mxu0 %v24951_v45  ;;  %6403 = vmatprep.mubr.bf16.mxu0 %v24952_v36  ;;  %v24959_v33 = vpack.c.bf16 %v24957_v0, %v24958_v11  ;;  %v24966_v45 = vld [vmem:[#allocation119_spill] sm:$0xff]  ;;  %v24975_v0 = vld [vmem:[#allocation121_spill] sm:$0xff] }
 0x466   : > { %6377 = vmatprep.subr.bf16.mxu0 %v24955_v9  ;;  %v24963_v9 = vpack.c.bf16 %v24961_v61, %v24962_v53  ;;  %v24968_v44 = vpack.c.bf16 %v24966_v45, %v24967_v17  ;;  %v24969_v61 = vld [vmem:[#allocation122_spill] sm:$0xff]  ;;  %v24970_v53 = vld [vmem:[#allocation31_spill] sm:$0xff]  ;;  %v24986_v17 = vld [vmem:[#allocation37_spill] sm:$0xff] }
 0x467   : > { %v22345_v58 = vpop.f32.mrb[252].mxu0  ;;  %v24980_v45 = vld [vmem:[#allocation35_spill] sm:$0xff] }
 0x468   : > { %v22347_v26 = vpop.f32.mrb[253].mxu0 }
 0x469   : > { %v22349_v8 = vpop.f32.mrb[196].mxu1  ;;  %6378 = vmatpush1.bf16.msra.mxu0 %v24959_v33  ;;  %v22354_v52 = vpop.f32.mrb[254].mxu0 }
 0x46a   : > { %24956 = vst [vmem:[#allocation47_spill] sm:$0xff] %v22349_v8  ;;  %v22358_v21 = vpop.f32.mrb[197].mxu1  ;;  %6379 = vmatprep.subr.bf16.mxu0 %v24963_v9  ;;  %v22363_v62 = vpop.f32.mrb[255].mxu0  ;;  %v24971_v9 = vpack.c.bf16 %v24969_v61, %v24970_v53  ;;  %v24976_v8 = vld [vmem:[#allocation33_spill] sm:$0xff]  ;;  %v24981_v61 = vld [vmem:[#allocation30_spill] sm:$0xff] }
 0x46b   : > { %24960 = vst [vmem:[#allocation61_spill] sm:$0xff] %v22358_v21  ;;  %v22367_v47 = vpop.f32.mrb[198].mxu1  ;;  %v24982_v53 = vpack.c.bf16 %v24980_v45, %v24981_v61  ;;  %v24989_v45 = vld [vmem:[#allocation34_spill] sm:$0xff]  ;;  %v24990_v61 = vld [vmem:[#allocation23_spill] sm:$0xff] }
 0x46c   : > { %24964 = vst [vmem:[#allocation57_spill] sm:$0xff] %v22367_v47  ;;  %v22371_v11 = vpop.f32.mrb[199].mxu1  ;;  %v24977_v47 = vpack.c.bf16 %v24975_v0, %v24976_v8  ;;  %v24995_v8 = vld [vmem:[#allocation36_spill] sm:$0xff] }
 0x46d   : > { %24965 = vst [vmem:[#allocation59_spill] sm:$0xff] %v22371_v11  ;;  %6380 = vmatpush1.bf16.msra.mxu0 %v24968_v44  ;;  %v24987_v11 = vld [vmem:[#allocation32_spill] sm:$0xff] }
 0x46e   : > { %6381 = vmatprep.subr.bf16.mxu0 %v24971_v9 }
 0x46f   : > { %v22381_v56 = vpop.f32.mrb[0].mxu0 }
 0x470   : > { %24972 = vst [vmem:[#allocation55_spill] sm:$0xff] %v22381_v56  ;;  %v22383_v10 = vpop.f32.mrb[1].mxu0  ;;  %v24988_v56 = vpack.c.bf16 %v24986_v17, %v24987_v11  ;;  %v25000_v17 = vpack.c.bf16 %v22122_v27, %v22112_v1 }
 0x471   : > { %24973 = vst [vmem:[#allocation103_spill] sm:$0xff] %v22383_v10  ;;  %v22385_v2 = vpop.f32.mrb[200].mxu1  ;;  %6382 = vmatpush1.bf16.msra.mxu0 %v24977_v47  ;;  %v22390_v41 = vpop.f32.mrb[2].mxu0 }
 0x472   : > { %24974 = vst [vmem:[#allocation40_spill] sm:$0xff] %v22385_v2  ;;  %24978 = vst [vmem:[#allocation38_spill] sm:$0xff] %v22390_v41  ;;  %v22394_v44 = vpop.f32.mrb[201].mxu1  ;;  %6383 = vmatprep.subr.bf16.mxu0 %v24982_v53  ;;  %v22399_v9 = vpop.f32.mrb[3].mxu0  ;;  %v24991_v53 = vpack.c.bf16 %v24989_v45, %v24990_v61  ;;  %v24996_v2 = vld [vmem:[#allocation25_spill] sm:$0xff] }
 0x473   : > { %24979 = vst [vmem:[#allocation45_spill] sm:$0xff] %v22394_v44  ;;  %24983 = vst [vmem:[#allocation43_spill] sm:$0xff] %v22399_v9  ;;  %v22403_v21 = vpop.f32.mrb[202].mxu1 }
 0x474   : > { %24984 = vst [vmem:[#allocation104_spill] sm:$0xff] %v22403_v21  ;;  %v22407_v47 = vpop.f32.mrb[203].mxu1  ;;  %v24997_v21 = vpack.c.bf16 %v24995_v8, %v24996_v2 }
 0x475   : > { %24985 = vst [vmem:[#allocation102_spill] sm:$0xff] %v22407_v47  ;;  %6384 = vmatpush1.bf16.msra.mxu0 %v24988_v56 }
 0x476   : > { %6385 = vmatprep.subr.bf16.mxu0 %v24991_v53 }
 0x477   : > { %v22417_v41 = vpop.f32.mrb[4].mxu0 }
 0x478   : > { %24992 = vst [vmem:[#allocation108_spill] sm:$0xff] %v22417_v41  ;;  %v22419_v33 = vpop.f32.mrb[5].mxu0 }
 0x479   : > { %24993 = vst [vmem:[#allocation106_spill] sm:$0xff] %v22419_v33  ;;  %v22421_v10 = vpop.f32.mrb[204].mxu1  ;;  %6386 = vmatpush1.bf16.msra.mxu0 %v24997_v21  ;;  %v22426_v9 = vpop.f32.mrb[6].mxu0 }
 0x47a   : > { %24994 = vst [vmem:[#allocation107_spill] sm:$0xff] %v22421_v10  ;;  %24998 = vst [vmem:[#allocation105_spill] sm:$0xff] %v22426_v9  ;;  %v22430_v56 = vpop.f32.mrb[205].mxu1  ;;  %6424 = vmatprep.subr.bf16.mxu0 %v25000_v17  ;;  %v22435_v45 = vpop.f32.mrb[7].mxu0 }
 0x47b   : > { %24999 = vst [vmem:[#allocation112_spill] sm:$0xff] %v22430_v56  ;;  %25001 = vst [vmem:[#allocation110_spill] sm:$0xff] %v22435_v45  ;;  %v22439_v53 = vpop.f32.mrb[206].mxu1 }
 0x47c   : > { %25002 = vst [vmem:[#allocation44_spill] sm:$0xff] %v22439_v53  ;;  %v22443_v21 = vpop.f32.mrb[207].mxu1 }
 0x47d   : > { %25003 = vst [vmem:[#allocation42_spill] sm:$0xff] %v22443_v21 }
 0x47f   : > { %v22447_v0 = vpop.f32.mrb[8].mxu0 }
 0x480   : > { %25004 = vst [vmem:[#allocation111_spill] sm:$0xff] %v22447_v0  ;;  %v22449_v11 = vpop.f32.mrb[9].mxu0 }
 0x481   : > { %25005 = vst [vmem:[#allocation109_spill] sm:$0xff] %v22449_v11  ;;  %v22451_v1 = vpop.f32.mrb[208].mxu1  ;;  %v22453_v27 = vpop.f32.mrb[10].mxu0 }
 0x482   : > { %25006 = vst [vmem:[#allocation116_spill] sm:$0xff] %v22451_v1  ;;  %25007 = vst [vmem:[#allocation114_spill] sm:$0xff] %v22453_v27  ;;  %v22457_v61 = vpop.f32.mrb[209].mxu1  ;;  %v22459_v44 = vpop.f32.mrb[11].mxu0 }
 0x483   : > { %25008 = vst [vmem:[#allocation115_spill] sm:$0xff] %v22457_v61  ;;  %25009 = vst [vmem:[#allocation113_spill] sm:$0xff] %v22459_v44  ;;  %v22463_v10 = vpop.f32.mrb[210].mxu1 }
 0x484   : > { %25010 = vst [vmem:[#allocation120_spill] sm:$0xff] %v22463_v10  ;;  %v22467_v53 = vpop.f32.mrb[211].mxu1 }
 0x485   : > { %25011 = vst [vmem:[#allocation118_spill] sm:$0xff] %v22467_v53 }
 0x487   : > { %v22471_v21 = vpop.f32.mrb[12].mxu0 }
 0x488   : > { %25012 = vst [vmem:[#allocation119_spill] sm:$0xff] %v22471_v21  ;;  %v22473_v17 = vpop.f32.mrb[13].mxu0 }
 0x489   : > { %25013 = vst [vmem:[#allocation117_spill] sm:$0xff] %v22473_v17  ;;  %v22475_v47 = vpop.f32.mrb[212].mxu1  ;;  %v22477_v0 = vpop.f32.mrb[14].mxu0 }
 0x48a   : > { %25014 = vst [vmem:[#allocation122_spill] sm:$0xff] %v22475_v47  ;;  %25015 = vst [vmem:[#allocation31_spill] sm:$0xff] %v22477_v0  ;;  %v22481_v27 = vpop.f32.mrb[213].mxu1  ;;  %v22483_v11 = vpop.f32.mrb[15].mxu0 }
 0x48b   : > { %25016 = vst [vmem:[#allocation121_spill] sm:$0xff] %v22481_v27  ;;  %25017 = vst [vmem:[#allocation33_spill] sm:$0xff] %v22483_v11  ;;  %v22487_v1 = vpop.f32.mrb[214].mxu1 }
 0x48c   : > { %25018 = vst [vmem:[#allocation35_spill] sm:$0xff] %v22487_v1  ;;  %v22491_v10 = vpop.f32.mrb[215].mxu1 }
 0x48d   : > { %25019 = vst [vmem:[#allocation30_spill] sm:$0xff] %v22491_v10 }
 0x48f   : > { %v22495_v53 = vpop.f32.mrb[16].mxu0 }
 0x490   : > { %25020 = vst [vmem:[#allocation37_spill] sm:$0xff] %v22495_v53  ;;  %v22497_v2 = vpop.f32.mrb[17].mxu0 }
 0x491   : > { %25021 = vst [vmem:[#allocation32_spill] sm:$0xff] %v22497_v2  ;;  %v22499_v21 = vpop.f32.mrb[216].mxu1  ;;  %v22501_v0 = vpop.f32.mrb[18].mxu0 }
 0x492   : > { %25022 = vst [vmem:[#allocation34_spill] sm:$0xff] %v22499_v21  ;;  %25023 = vst [vmem:[#allocation23_spill] sm:$0xff] %v22501_v0  ;;  %v22505_v17 = vpop.f32.mrb[217].mxu1  ;;  %v22507_v11 = vpop.f32.mrb[19].mxu0 }
 0x493   : > { %25024 = vst [vmem:[#allocation36_spill] sm:$0xff] %v22505_v17  ;;  %25025 = vst [vmem:[#allocation25_spill] sm:$0xff] %v22507_v11  ;;  %v22511_v47 = vpop.f32.mrb[218].mxu1 }
 0x494   : > { %25026 = vst [vmem:[#allocation123_spill] sm:$0xff] %v22511_v47  ;;  %v22515_v1 = vpop.f32.mrb[219].mxu1 }
 0x495   : > { %25027 = vst [vmem:[#allocation124_spill] sm:$0xff] %v22515_v1 }
 0x497   : > { %v22519_v10 = vpop.f32.mrb[20].mxu0 }
 0x498   : > { %25028 = vst [vmem:[#allocation125_spill] sm:$0xff] %v22519_v10  ;;  %v22521_v8 = vpop.f32.mrb[21].mxu0 }
 0x499   : > { %25029 = vst [vmem:[#allocation126_spill] sm:$0xff] %v22521_v8  ;;  %v22523_v53 = vpop.f32.mrb[220].mxu1  ;;  %v22525_v0 = vpop.f32.mrb[22].mxu0 }
 0x49a   : > { %25030 = vst [vmem:[#allocation127_spill] sm:$0xff] %v22523_v53  ;;  %25031 = vst [vmem:[#allocation128_spill] sm:$0xff] %v22525_v0  ;;  %v22529_v2 = vpop.f32.mrb[221].mxu1  ;;  %v22531_v11 = vpop.f32.mrb[23].mxu0  ;;  %v25044_v0 = vlaneseq }
 0x49b   : > { %25032 = vst [vmem:[#allocation129_spill] sm:$0xff] %v22529_v2  ;;  %25033 = vst [vmem:[#allocation130_spill] sm:$0xff] %v22531_v11  ;;  %v22535_v21 = vpop.f32.mrb[222].mxu1 }
 0x49c   : > { %25034 = vst [vmem:[#allocation131_spill] sm:$0xff] %v22535_v21  ;;  %v22539_v47 = vpop.f32.mrb[223].mxu1 }
 0x49d   : > { %25035 = vst [vmem:[#allocation132_spill] sm:$0xff] %v22539_v47 }
 0x49f   : > { %v22543_v1 = vpop.f32.mrb[24].mxu0 }
 0x4a0   : > { %25036 = vst [vmem:[#allocation133_spill] sm:$0xff] %v22543_v1  ;;  %v22545_v56 = vpop.f32.mrb[25].mxu0  ;;  %v6285_v1 = vand.u32 127, %v25044_v0 }
 0x4a1   : > { %25037 = vst [vmem:[#allocation134_spill] sm:$0xff] %v22545_v56  ;;  %v22547_v10 = vpop.f32.mrb[26].mxu0 }
 0x4a2   : > { %25038 = vst [vmem:[#allocation135_spill] sm:$0xff] %v22547_v10  ;;  %v22551_v61 = vpop.f32.mrb[27].mxu0  ;;  %vm6286_vm1 = vcmp.lt.s32.totalorder %v6285_v1, 16 }
 0x4a3   : > { %25039 = vst [vmem:[#allocation136_spill] sm:$0xff] %v22551_v61 }
 0x4a7   : > { %v22555_v27 = vpop.f32.mrb[28].mxu0 }
 0x4a8   : > { %25040 = vst [vmem:[#allocation137_spill] sm:$0xff] %v22555_v27  ;;  %v22557_v53 = vpop.f32.mrb[29].mxu0 }
 0x4a9   : > { %25041 = vst [vmem:[#allocation138_spill] sm:$0xff] %v22557_v53  ;;  %v22559_v21 = vpop.f32.mrb[30].mxu0 }
 0x4aa   : > { %25042 = vst [vmem:[#allocation139_spill] sm:$0xff] %v22559_v21  ;;  %v22563_v2 = vpop.f32.mrb[31].mxu0 }
 0x4ab   : > { %25043 = vst [vmem:[#allocation140_spill] sm:$0xff] %v22563_v2 }
 0x521   : > { %v6269_v10 = vpop.f32.mrb[224].mxu1 }
 0x522   : > { %v6271_v11 = vpop.f32.mrb[225].mxu1  ;;  %v6291_v8 = vsel %vm6286_vm1, %v6269_v10, -1e+30 }
 0x523   : > { %v6272_v56 = vpop.f32.mrb[226].mxu1 }
 0x524   : > { %v6274_v61 = vpop.f32.mrb[227].mxu1  ;;  %v22570_v44 = vsel %vm6286_vm1, %v6272_v56, -1e+30 }
 0x529   : > { %v6277_v41 = vpop.f32.mrb[228].mxu1 }
 0x52a   : > { %v6279_v9 = vpop.f32.mrb[229].mxu1  ;;  %v6293_v17 = vsel %vm6286_vm1, %v6277_v41, -1e+30 }
 0x52b   : > { %v6280_v27 = vpop.f32.mrb[230].mxu1 }
 0x52c   : > { %v6282_v21 = vpop.f32.mrb[231].mxu1  ;;  %v22574_v47 = vsel %vm6286_vm1, %v6280_v27, -1e+30 }
 0x52f   : > { %v6122_v0 = vpop.f32.mrb[32].mxu0 }
 0x530   : > { %v6124_v53 = vpop.f32.mrb[33].mxu0  ;;  %v6287_v11 = vsel %vm6286_vm1, %v6122_v0, -1e+30 }
 0x531   : > { %6295 = vmax.xlane.f32.xlu0 %v6287_v11  ;;  %v6125_v10 = vpop.f32.mrb[34].mxu0 }
 0x532   : > { %v6127_v2 = vpop.f32.mrb[35].mxu0  ;;  %v6288_v61 = vsel %vm6286_vm1, %v6125_v10, -1e+30 }
 0x535   : > { %6297 = vmax.xlane.f32.xlu0 %v6288_v61 }
 0x537   : > { %v6130_v56 = vpop.f32.mrb[36].mxu0 }
 0x538   : > { %v6132_v33 = vpop.f32.mrb[37].mxu0  ;;  %v6289_v9 = vsel %vm6286_vm1, %v6130_v56, -1e+30 }
 0x539   : > { %6299 = vmax.xlane.f32.xlu1 %v6289_v9  ;;  %v6133_v41 = vpop.f32.mrb[38].mxu0 }
 0x53a   : > { %v6135_v21 = vpop.f32.mrb[39].mxu0  ;;  %v6290_v27 = vsel %vm6286_vm1, %v6133_v41, -1e+30 }
 0x53d   : > { %6301 = vmax.xlane.f32.xlu1 %v6290_v27 }
 0x5be   : > { %v6296_v45 = vpop.xlane.xlu0 %6295 }
 0x5bf   : > { %v6311_v53 = vsub.f32 %v6287_v11, %v6296_v45 }
 0x5c1   : > { %v6319_v39 = vmul.f32 1.442695, %v6311_v53 }
 0x5c2   : > { %v6298_v0 = vpop.xlane.xlu0 %6297 }
 0x5c3   : > { %18858 = vpow2.f32 %v6319_v39  ;;  %v6312_v18 = vsub.f32 %v6288_v61, %v6298_v0 }
 0x5c5   : > { %v6321_v2 = vmul.f32 1.442695, %v6312_v18 }
 0x5c6   : > { %v6300_v60 = vpop.xlane.xlu1 %6299 }
 0x5c7   : > { %18860 = vpow2.f32 %v6321_v2  ;;  %v6313_v10 = vsub.f32 %v6289_v9, %v6300_v60 }
 0x5c9   : > { %v6323_v33 = vmul.f32 1.442695, %v6313_v10 }
 0x5ca   : > { %v6302_v22 = vpop.xlane.xlu1 %6301 }
 0x5cb   : > { %v6314_v35 = vsub.f32 %v6290_v27, %v6302_v22  ;;  %18862 = vpow2.f32 %v6323_v33 }
 0x5cd   : > { %v18859_v56 = vpop.eup %18858  ;;  %v6325_v21 = vmul.f32 1.442695, %v6314_v35 }
 0x5ce   : > { %6335 = vadd.xlane.f32.xlu0 %v18859_v56 }
 0x5cf   : > { %18864 = vpow2.f32 %v6325_v21 }
 0x5d1   : > { %v18861_v1 = vpop.eup %18860 }
 0x5d2   : > { %6337 = vadd.xlane.f32.xlu1 %v18861_v1  ;;  %6303 = vmax.xlane.f32.xlu0 %v6291_v8 }
 0x5d5   : > { %v18863_v39 = vpop.eup %18862 }
 0x5d6   : > { %6305 = vmax.xlane.f32.xlu1 %v22570_v44  ;;  %6307 = vmax.xlane.f32.xlu0 %v6293_v17 }
 0x5d9   : > { %v18865_v18 = vpop.eup %18864 }
 0x5da   : > { %6339 = vadd.xlane.f32.xlu0 %v18863_v39  ;;  %6309 = vmax.xlane.f32.xlu1 %v22574_v47 }
 0x5de   : > { %6341 = vadd.xlane.f32.xlu1 %v18865_v18 }
 0x65b   : > { %v6336_v60 = vpop.xlane.xlu0 %6335 }
 0x65c   : > { %18866 = vrcp.f32 %v6336_v60 }
 0x65f   : > { %v6338_v22 = vpop.xlane.xlu1 %6337  ;;  %v6304_v45 = vpop.xlane.xlu0 %6303 }
 0x660   : > { %18868 = vrcp.f32 %v6338_v22  ;;  %v6315_v11 = vsub.f32 %v6291_v8, %v6304_v45 }
 0x662   : > { %v6327_v35 = vmul.f32 1.442695, %v6315_v11 }
 0x663   : > { %v6306_v61 = vpop.xlane.xlu1 %6305  ;;  %v6308_v9 = vpop.xlane.xlu0 %6307 }
 0x664   : > { %18870 = vpow2.f32 %v6327_v35  ;;  %v6316_v41 = vsub.f32 %v22570_v44, %v6306_v61  ;;  %v6317_v27 = vsub.f32 %v6293_v17, %v6308_v9  ;;  %v25046_v17 = vpack.c.bf16 %v22152_v6, %v22142_v7 }
 0x665   : > { %v25049_v9 = vpack.c.bf16 %v22176_v37, %v22170_v29  ;;  %v25053_v29 = vpack.c.bf16 %v22242_v32, %v22236_v31  ;;  %v25054_v37 = vpack.c.bf16 %v22281_v3, %v22271_v5  ;;  %v25058_v31 = vpack.c.bf16 %v22363_v62, %v22347_v26  ;;  %v17570_v5 = vld [vmem:[#allocation8 + $0x64] ss:$24 sps:$4 sm:$0xff]   ;;  %v25064_v26 = vld [vmem:[#allocation88_spill] sm:$0xff]  ;;  %v25073_v62 = vld [vmem:[#allocation93_spill] sm:$0xff] }
 0x666   : > { %v6329_v53 = vmul.f32 1.442695, %v6316_v41  ;;  %v6331_v0 = vmul.f32 1.442695, %v6317_v27  ;;  %v18867_v10 = vpop.eup %18866  ;;  %v25060_v32 = vpack.c.bf16 %v22070_v12, %v22063_v14  ;;  %v25062_v3 = vpack.c.bf16 %v22100_v57, %v22093_v34  ;;  %v17573_v12 = vld [vmem:[#allocation8 + $0x94] ss:$24 sps:$4 sm:$0xff]  }
 0x667   : > { %v6310_v2 = vpop.xlane.xlu1 %6309  ;;  %v6340_v33 = vpop.xlane.xlu0 %6339  ;;  %v6359_v22 = vmul.f32 %v18867_v10, %v18859_v56  ;;  %v25063_v14 = vpack.c.bf16 %v22096_v54, %v22091_v51  ;;  %v25067_v34 = vld [vmem:[#allocation90_spill] sm:$0xff]  ;;  %v25075_v41 = vld [vmem:[#allocation69_spill] sm:$0xff]  ;;  %v25076_v27 = vld [vmem:[#allocation99_spill] sm:$0xff] }
 0x668   : > { %18872 = vpow2.f32 %v6329_v53  ;;  %v6318_v21 = vsub.f32 %v22574_v47, %v6310_v2  ;;  %v25045_v47 = vpack.c.bf16 %v22116_v59, %v22110_v16  ;;  %v25048_v59 = vpack.c.bf16 %v22182_v28, %v22172_v40  ;;  %v25070_v51 = vld [vmem:[#allocation94_spill] sm:$0xff]  ;;  %v25078_v2 = vld [vmem:[#allocation97_spill] sm:$0xff] }
 0x669   : > { %18874 = vpow2.f32 %v6331_v0  ;;  %v25051_v40 = vpack.c.bf16 %v22206_v4, %v22200_v46  ;;  %v25052_v28 = vpack.c.bf16 %v22248_v19, %v22238_v15  ;;  %v25056_v46 = vpack.c.bf16 %v22323_v63, %v22307_v49  ;;  %v17564_v4 = vld [vmem:[#allocation8 + $0x4] ss:$24 sps:$4 sm:$0xff]   ;;  %v17565_v19 = vld [vmem:[#allocation8 + $0x30] ss:$24 sps:$4 sm:$0xff]   ;;  %v17568_v49 = vld [vmem:[#allocation8 + $0x60] ss:$24 sps:$4 sm:$0xff]  }
 0x66a   : > { %v18869_v60 = vpop.eup %18868  ;;  %v6333_v48 = vmul.f32 1.442695, %v6318_v21  ;;  %18876 = vrcp.f32 %v6340_v33  ;;  %v25057_v15 = vpack.c.bf16 %v22314_v24, %v22305_v38  ;;  %8473 = vmatprep.subr.bf16.mxu1 %v17564_v4  ;;  %v25061_v38 = vpack.c.bf16 %v22066_v13, %v22061_v42  ;;  %v17571_v42 = vld [vmem:[#allocation8 + $0x90] ss:$24 sps:$4 sm:$0xff]   ;;  %v25066_v13 = vld [vmem:[#allocation95_spill] sm:$0xff]  ;;  %v25079_v10 = vld [vmem:[#allocation62_spill] sm:$0xff] }
 0x66b   : > { %v6360_v8 = vmul.f32 %v18869_v60, %v18861_v1  ;;  %v6342_v45 = vpop.xlane.xlu1 %6341  ;;  %v25047_v1 = vpack.c.bf16 %v22146_v50, %v22140_v25  ;;  %v25050_v50 = vpack.c.bf16 %v22212_v55, %v22202_v23  ;;  %v25055_v23 = vpack.c.bf16 %v22275_v30, %v22269_v20  ;;  %v17562_v55 = vld [vmem:[#allocation8] ss:$24 sps:$4 sm:$0xff]   ;;  %v17567_v20 = vld [vmem:[#allocation8 + $0x34] ss:$24 sps:$4 sm:$0xff]   ;;  %v17576_v63 = vld [vmem:[#allocation8 + $0xc4] ss:$24 sps:$4 sm:$0xff]  }
 0x66c   : > { %18878 = vpow2.f32 %v6333_v48  ;;  %8474 = vmatpush1.bf16.msra.mxu1 %v17562_v55  ;;  %v25059_v30 = vpack.c.bf16 %v22354_v52, %v22345_v58  ;;  %v25065_v24 = vpack.c.bf16 %v22130_v43, %v25064_v26  ;;  %v25068_v57 = vpack.c.bf16 %v25066_v13, %v25067_v34  ;;  %v25069_v58 = vld [vmem:[#allocation64_spill] sm:$0xff]  ;;  %v17574_v52 = vld [vmem:[#allocation8 + $0xc0] ss:$24 sps:$4 sm:$0xff]   ;;  %v17582_v21 = vld [vmem:[#allocation8 + $0x124] ss:$24 sps:$4 sm:$0xff]  }
 0x66d   : > { %v22584_v11 = vpack.c.bf16 %v6360_v8, %v6359_v22  ;;  %18880 = vrcp.f32 %v6342_v45  ;;  %8475 = vmatprep.subr.bf16.mxu1 %v17567_v20  ;;  %v25071_v54 = vpack.c.bf16 %v25069_v58, %v25070_v51  ;;  %v25072_v43 = vld [vmem:[#allocation92_spill] sm:$0xff]  ;;  %v25077_v53 = vpack.c.bf16 %v25075_v41, %v25076_v27  ;;  %v25082_v22 = vld [vmem:[#allocation98_spill] sm:$0xff] }
 0x66e   : > { %v22586_v44 = vpop.eup %18870  ;;  %v17577_v0 = vld [vmem:[#allocation8 + $0xf0] ss:$24 sps:$4 sm:$0xff]   ;;  %v25080_v33 = vpack.c.bf16 %v25078_v2, %v25079_v10  ;;  %v17580_v45 = vld [vmem:[#allocation8 + $0x120] ss:$24 sps:$4 sm:$0xff]   ;;  %v17591_v55 = vld [vmem:[#allocation8 + $0x1b4] ss:$24 sps:$4 sm:$0xff]  }
 0x66f   : > { %6404 = vmatmul.mubr.bf16.vlgmr.msra.gmra.mrb[40].mxu0 %v22584_v11  ;;  %6343 = vadd.xlane.f32.xlu0 %v22586_v44  ;;  %v25081_v60 = vld [vmem:[#allocation68_spill] sm:$0xff]  ;;  %v25097_v4 = vld [vmem:[#allocation46_spill] sm:$0xff]  ;;  %v25123_v10 = vld [vmem:[#allocation77_spill] sm:$0xff] }
 0x670   : > { %6425 = vmatpush1.bf16.msra.mxu0 %v25045_v47  ;;  %6413 = vmatprep.mubr.bf16.mxu0 %v24952_v36  ;;  %v25083_v8 = vpack.c.bf16 %v25081_v60, %v25082_v22  ;;  %v25084_v47 = vld [vmem:[#allocation96_spill] sm:$0xff]  ;;  %v17598_v27 = vld [vmem:[#allocation8 + $0x240] ss:$24 sps:$4 sm:$0xff]  }
 0x671   : > { %6426 = vmatprep.subr.bf16.mxu0 %v25046_v17  ;;  %8476 = vmatpush1.bf16.msra.mxu1 %v17565_v19  ;;  %v25085_v17 = vld [vmem:[#allocation67_spill] sm:$0xff]  ;;  %v25100_v20 = vld [vmem:[#allocation100_spill] sm:$0xff] }
 0x672   : > { %v22597_v48 = vpop.eup %18872  ;;  %8477 = vmatprep.subr.bf16.mxu1 %v17570_v5  ;;  %v17589_v19 = vld [vmem:[#allocation8 + $0x1b0] ss:$24 sps:$4 sm:$0xff]   ;;  %v25126_v22 = vld [vmem:[#allocation79_spill] sm:$0xff] }
 0x673   : > { %v22599_v56 = vpop.eup %18874  ;;  %6345 = vadd.xlane.f32.xlu1 %v22597_v48  ;;  %v25103_v5 = vld [vmem:[#allocation101_spill] sm:$0xff]  ;;  %v25109_v13 = vld [vmem:[#allocation24_spill] sm:$0xff] }
 0x674   : > { %6427 = vmatpush1.bf16.msra.mxu0 %v25047_v1  ;;  %6347 = vadd.xlane.f32.xlu0 %v22599_v56  ;;  %v18877_v16 = vpop.eup %18876  ;;  %v25086_v1 = vpack.c.bf16 %v25084_v47, %v25085_v17  ;;  %v17595_v51 = vld [vmem:[#allocation8 + $0x210] ss:$24 sps:$4 sm:$0xff]   ;;  %v17606_v47 = vld [vmem:[#allocation8 + $0x2a4] ss:$24 sps:$4 sm:$0xff]  }
 0x675   : > { %6428 = vmatprep.subr.bf16.mxu0 %v25048_v59  ;;  %v6361_v6 = vmul.f32 %v18877_v16, %v18863_v39  ;;  %8478 = vmatpush1.bf16.msra.mxu1 %v17568_v49  ;;  %v25074_v39 = vpack.c.bf16 %v25072_v43, %v25073_v62  ;;  %v17585_v16 = vld [vmem:[#allocation8 + $0x154] ss:$24 sps:$4 sm:$0xff]   ;;  %v25087_v59 = vld [vmem:[#allocation50_spill] sm:$0xff]  ;;  %v17601_v60 = vld [vmem:[#allocation8 + $0x270] ss:$24 sps:$4 sm:$0xff]  }
 0x676   : > { %v22609_v35 = vpop.eup %18878  ;;  %8479 = vmatprep.subr.bf16.mxu1 %v17573_v12  ;;  %v17594_v49 = vld [vmem:[#allocation8 + $0x1e4] ss:$24 sps:$4 sm:$0xff]   ;;  %v25129_v17 = vld [vmem:[#allocation81_spill] sm:$0xff] }
 0x677   : > { %v18881_v7 = vpop.eup %18880  ;;  %6349 = vadd.xlane.f32.xlu1 %v22609_v35  ;;  %v25106_v12 = vld [vmem:[#allocation22_spill] sm:$0xff] }
 0x678   : > { %v6362_v61 = vmul.f32 %v18881_v7, %v18865_v18  ;;  %6429 = vmatpush1.bf16.msra.mxu0 %v25049_v9  ;;  %v17579_v18 = vld [vmem:[#allocation8 + $0xf4] ss:$24 sps:$4 sm:$0xff]   ;;  %v17600_v62 = vld [vmem:[#allocation8 + $0x244] ss:$24 sps:$4 sm:$0xff]  }
 0x679   : > { %6430 = vmatprep.subr.bf16.mxu0 %v25050_v50  ;;  %8480 = vmatpush1.bf16.msra.mxu1 %v17571_v42  ;;  %v25088_v7 = vld [vmem:[#allocation53_spill] sm:$0xff]  ;;  %v25091_v50 = vld [vmem:[#allocation66_spill] sm:$0xff]  ;;  %v25108_v42 = vld [vmem:[#allocation71_spill] sm:$0xff] }
 0x67a   : > { %v22618_v25 = vpack.c.bf16 %v6362_v61, %v6361_v6  ;;  %8481 = vmatprep.subr.bf16.mxu1 %v17576_v63  ;;  %v25089_v6 = vpack.c.bf16 %v25087_v59, %v25088_v7  ;;  %v17583_v61 = vld [vmem:[#allocation8 + $0x150] ss:$24 sps:$4 sm:$0xff]   ;;  %v25110_v34 = vpack.c.bf16 %v25108_v42, %v25109_v13  ;;  %v25112_v63 = vld [vmem:[#allocation27_spill] sm:$0xff] }
 0x67b   : > { %v25090_v9 = vld [vmem:[#allocation49_spill] sm:$0xff]  ;;  %v17604_v59 = vld [vmem:[#allocation8 + $0x2a0] ss:$24 sps:$4 sm:$0xff]  }
 0x67c   : > { %6414 = vmatmul.mubr.bf16.gmra.mrb[44].mxu0 %v22618_v25  ;;  %v25132_v7 = vld [vmem:[#allocation83_spill] sm:$0xff] }
 0x67d   : > { %6431 = vmatpush1.bf16.msra.mxu0 %v25051_v40  ;;  %6456 = vmatprep.mubr.bf16.mxu0 %v24952_v36  ;;  %v25092_v40 = vpack.c.bf16 %v25090_v9, %v25091_v50  ;;  %v17609_v9 = vld [vmem:[#allocation8 + $0x2d4] ss:$24 sps:$4 sm:$0xff]  }
 0x67e   : > { %6432 = vmatprep.subr.bf16.mxu0 %v25052_v28  ;;  %8482 = vmatpush1.bf16.msra.mxu1 %v17574_v52  ;;  %v17588_v28 = vld [vmem:[#allocation8 + $0x184] ss:$24 sps:$4 sm:$0xff]   ;;  %v25115_v52 = vld [vmem:[#allocation29_spill] sm:$0xff] }
 0x67f   : > { %8483 = vmatprep.subr.bf16.mxu1 %v17579_v18  ;;  %v25118_v18 = vld [vmem:[#allocation26_spill] sm:$0xff]  ;;  %v25135_v50 = vld [vmem:[#allocation85_spill] sm:$0xff] }
 0x681   : > { %6433 = vmatpush1.bf16.msra.mxu0 %v25053_v29  ;;  %v25093_v29 = vld [vmem:[#allocation58_spill] sm:$0xff] }
 0x682   : > { %6434 = vmatprep.subr.bf16.mxu0 %v25054_v37  ;;  %8484 = vmatpush1.bf16.msra.mxu1 %v17577_v0  ;;  %v25094_v37 = vld [vmem:[#allocation60_spill] sm:$0xff] }
 0x683   : > { %8485 = vmatprep.subr.bf16.mxu1 %v17582_v21  ;;  %v25121_v0 = vld [vmem:[#allocation28_spill] sm:$0xff] }
 0x685   : > { %6435 = vmatpush1.bf16.msra.mxu0 %v25055_v23  ;;  %v25095_v23 = vpack.c.bf16 %v25093_v29, %v25094_v37  ;;  %v17607_v29 = vld [vmem:[#allocation8 + $0x2d0] ss:$24 sps:$4 sm:$0xff]   ;;  %v25138_v37 = vld [vmem:[#allocation87_spill] sm:$0xff] }
 0x686   : > { %6436 = vmatprep.subr.bf16.mxu0 %v25056_v46  ;;  %8486 = vmatpush1.bf16.msra.mxu1 %v17580_v45  ;;  %v17586_v46 = vld [vmem:[#allocation8 + $0x180] ss:$24 sps:$4 sm:$0xff]  }
 0x687   : > { %8487 = vmatprep.subr.bf16.mxu1 %v17585_v16 }
 0x689   : > { %6437 = vmatpush1.bf16.msra.mxu0 %v25057_v15  ;;  %v25096_v15 = vld [vmem:[#allocation56_spill] sm:$0xff] }
 0x68a   : > { %6438 = vmatprep.subr.bf16.mxu0 %v25058_v31  ;;  %8488 = vmatpush1.bf16.msra.mxu1 %v17583_v61  ;;  %v25098_v31 = vpack.c.bf16 %v25096_v15, %v25097_v4  ;;  %v25141_v15 = vld [vmem:[#allocation89_spill] sm:$0xff]  ;;  %v25142_v4 = vld [vmem:[#allocation84_spill] sm:$0xff] }
 0x68b   : > { %8489 = vmatprep.subr.bf16.mxu1 %v17588_v28 }
 0x68d   : > { %6439 = vmatpush1.bf16.msra.mxu0 %v25059_v30  ;;  %v25099_v30 = vld [vmem:[#allocation63_spill] sm:$0xff] }
 0x68e   : > { %6477 = vmatprep.subr.bf16.mxu0 %v25060_v32  ;;  %8490 = vmatpush1.bf16.msra.mxu1 %v17586_v46  ;;  %v25101_v32 = vpack.c.bf16 %v25099_v30, %v25100_v20  ;;  %v25145_v30 = vld [vmem:[#allocation86_spill] sm:$0xff] }
 0x68f   : > { %8491 = vmatprep.subr.bf16.mxu1 %v17591_v55  ;;  %v25144_v55 = vld [vmem:[#allocation91_spill] sm:$0xff] }
 0x690   : > { %6457 = vmatmul.mubr.bf16.vlgmr.msra.gmra.mrb[48].mxu0 %v22584_v11  ;;  %v25146_v20 = vpack.c.bf16 %v25144_v55, %v25145_v30  ;;  %v25192_v55 = vld [vmem:[#allocation139_spill] sm:$0xff]  ;;  %v25193_v30 = vld [vmem:[#allocation137_spill] sm:$0xff] }
 0x691   : > { %6478 = vmatpush1.bf16.msra.mxu0 %v25061_v38  ;;  %6466 = vmatprep.mubr.bf16.mxu0 %v24952_v36  ;;  %v25102_v38 = vld [vmem:[#allocation65_spill] sm:$0xff] }
 0x692   : > { %6479 = vmatprep.subr.bf16.mxu0 %v25062_v3  ;;  %8492 = vmatpush1.bf16.msra.mxu1 %v17589_v19  ;;  %v25104_v3 = vpack.c.bf16 %v25102_v38, %v25103_v5  ;;  %v25148_v19 = vld [vmem:[#allocation103_spill] sm:$0xff] }
 0x693   : > { %8493 = vmatprep.subr.bf16.mxu1 %v17594_v49 }
 0x695   : > { %6480 = vmatpush1.bf16.msra.mxu0 %v25063_v14  ;;  %v25105_v14 = vld [vmem:[#allocation70_spill] sm:$0xff] }
 0x696   : > { %6481 = vmatprep.subr.bf16.mxu0 %v25065_v24  ;;  %v25107_v26 = vpack.c.bf16 %v25105_v14, %v25106_v12  ;;  %v17592_v24 = vld [vmem:[#allocation8 + $0x1e0] ss:$24 sps:$4 sm:$0xff]  }
 0x697   : > { %8494 = vmatpush1.bf16.msra.mxu1 %v17592_v24 }
 0x698   : > { %6467 = vmatmul.mubr.bf16.gmra.mrb[52].mxu0 %v22618_v25 }
 0x699   : > { %6482 = vmatpush1.bf16.msra.mxu0 %v25068_v57  ;;  %6509 = vmatprep.mubr.bf16.mxu0 %v24952_v36  ;;  %v25111_v57 = vld [vmem:[#allocation73_spill] sm:$0xff] }
 0x69a   : > { %6483 = vmatprep.subr.bf16.mxu0 %v25071_v54  ;;  %v25113_v58 = vpack.c.bf16 %v25111_v57, %v25112_v63  ;;  %v25114_v54 = vld [vmem:[#allocation75_spill] sm:$0xff]  ;;  %v25150_v57 = vld [vmem:[#allocation38_spill] sm:$0xff] }
 0x69b   : > { %v25116_v43 = vpack.c.bf16 %v25114_v54, %v25115_v52  ;;  %v25151_v63 = vld [vmem:[#allocation55_spill] sm:$0xff]  ;;  %v25153_v54 = vld [vmem:[#allocation110_spill] sm:$0xff] }
 0x69c   : > { %v25154_v52 = vld [vmem:[#allocation106_spill] sm:$0xff] }
 0x69d   : > { %6484 = vmatpush1.bf16.msra.mxu0 %v25074_v39  ;;  %v25117_v39 = vld [vmem:[#allocation72_spill] sm:$0xff] }
 0x69e   : > { %6485 = vmatprep.subr.bf16.mxu0 %v25077_v53  ;;  %v25119_v41 = vpack.c.bf16 %v25117_v39, %v25118_v18  ;;  %v25120_v53 = vld [vmem:[#allocation74_spill] sm:$0xff] }
 0x69f   : > { %v25122_v2 = vpack.c.bf16 %v25120_v53, %v25121_v0  ;;  %v17660_v0 = vld [vmem:[#allocation8 + $0x304] ss:$24 sps:$4 sm:$0xff]  }
 0x6a1   : > { %6486 = vmatpush1.bf16.msra.mxu0 %v25080_v33  ;;  %v25124_v33 = vld [vmem:[#allocation48_spill] sm:$0xff] }
 0x6a2   : > { %6487 = vmatprep.subr.bf16.mxu0 %v25083_v8  ;;  %v25125_v21 = vpack.c.bf16 %v25123_v10, %v25124_v33  ;;  %v25127_v8 = vld [vmem:[#allocation52_spill] sm:$0xff]  ;;  %v25166_v10 = vld [vmem:[#allocation117_spill] sm:$0xff] }
 0x6a3   : > { %v25128_v45 = vpack.c.bf16 %v25126_v22, %v25127_v8  ;;  %v25171_v8 = vld [vmem:[#allocation25_spill] sm:$0xff] }
 0x6a5   : > { %6488 = vmatpush1.bf16.msra.mxu0 %v25086_v1  ;;  %v25130_v1 = vld [vmem:[#allocation76_spill] sm:$0xff] }
 0x6a6   : > { %6489 = vmatprep.subr.bf16.mxu0 %v25089_v6  ;;  %v25131_v16 = vpack.c.bf16 %v25129_v17, %v25130_v1  ;;  %v25133_v6 = vld [vmem:[#allocation78_spill] sm:$0xff]  ;;  %v25174_v17 = vld [vmem:[#allocation23_spill] sm:$0xff]  ;;  %v25175_v1 = vld [vmem:[#allocation37_spill] sm:$0xff] }
 0x6a7   : > { %v25134_v61 = vpack.c.bf16 %v25132_v7, %v25133_v6  ;;  %v25178_v7 = vld [vmem:[#allocation126_spill] sm:$0xff] }
 0x6a9   : > { %6490 = vmatpush1.bf16.msra.mxu0 %v25092_v40  ;;  %v25136_v40 = vld [vmem:[#allocation80_spill] sm:$0xff] }
 0x6aa   : > { %6491 = vmatprep.subr.bf16.mxu0 %v25095_v23  ;;  %v25137_v28 = vpack.c.bf16 %v25135_v50, %v25136_v40  ;;  %v25139_v23 = vld [vmem:[#allocation82_spill] sm:$0xff]  ;;  %v25183_v40 = vld [vmem:[#allocation136_spill] sm:$0xff] }
 0x6ab   : > { %v25140_v46 = vpack.c.bf16 %v25138_v37, %v25139_v23  ;;  %v25186_v37 = vld [vmem:[#allocation135_spill] sm:$0xff]  ;;  %v25187_v23 = vld [vmem:[#allocation133_spill] sm:$0xff] }
 0x6ad   : > { %6492 = vmatpush1.bf16.msra.mxu0 %v25098_v31  ;;  %v25143_v31 = vpack.c.bf16 %v25141_v15, %v25142_v4  ;;  %v25189_v15 = vld [vmem:[#allocation140_spill] sm:$0xff]  ;;  %v25190_v4 = vld [vmem:[#allocation138_spill] sm:$0xff] }
 0x6ae   : > { %6530 = vmatprep.subr.bf16.mxu0 %v25101_v32  ;;  %v25147_v32 = vld [vmem:[#allocation43_spill] sm:$0xff] }
 0x6af   : > { %v25149_v38 = vpack.c.bf16 %v25147_v32, %v25148_v19  ;;  %v25195_v32 = vld [vmem:[#allocation51_spill] sm:$0xff]  ;;  %v25196_v19 = vld [vmem:[#allocation41_spill] sm:$0xff] }
 0x6b0   : > { %6510 = vmatmul.mubr.bf16.vlgmr.msra.gmra.mrb[56].mxu0 %v22584_v11  ;;  %v17597_v11 = vld [vmem:[#allocation8 + $0x214] ss:$24 sps:$4 sm:$0xff]  }
 0x6b1   : > { %6531 = vmatpush1.bf16.msra.mxu0 %v25104_v3  ;;  %6519 = vmatprep.mubr.bf16.mxu0 %v24952_v36 }
 0x6b2   : > { %6532 = vmatprep.subr.bf16.mxu0 %v25107_v26  ;;  %8495 = vmatprep.subr.bf16.mxu1 %v17597_v11 }
 0x6b3   : > { %8496 = vmatpush1.bf16.msra.mxu1 %v17595_v51 }
 0x6b4   : > { %8497 = vmatprep.subr.bf16.mxu1 %v17600_v62  ;;  %v25157_v62 = vld [vmem:[#allocation108_spill] sm:$0xff] }
 0x6b5   : > { %6533 = vmatpush1.bf16.msra.mxu0 %v25110_v34 }
 0x6b6   : > { %6534 = vmatprep.subr.bf16.mxu0 %v25113_v58  ;;  %v25152_v58 = vpack.c.bf16 %v25150_v57, %v25151_v63  ;;  %v25208_v57 = vld [vmem:[#allocation45_spill] sm:$0xff] }
 0x6b7   : > { %8498 = vmatpush1.bf16.msra.mxu1 %v17598_v27  ;;  %v25160_v27 = vld [vmem:[#allocation109_spill] sm:$0xff] }
 0x6b8   : > { %6520 = vmatmul.mubr.bf16.gmra.mrb[60].mxu0 %v22618_v25  ;;  %v17603_v25 = vld [vmem:[#allocation8 + $0x274] ss:$24 sps:$4 sm:$0xff]  }
 0x6b9   : > { %6535 = vmatpush1.bf16.msra.mxu0 %v25116_v43  ;;  %6562 = vmatprep.mubr.bf16.mxu0 %v24952_v36  ;;  %v25155_v43 = vpack.c.bf16 %v25153_v54, %v25154_v52  ;;  %v25213_v52 = vld [vmem:[#allocation42_spill] sm:$0xff] }
 0x6ba   : > { %6536 = vmatprep.subr.bf16.mxu0 %v25119_v41  ;;  %8499 = vmatprep.subr.bf16.mxu1 %v17603_v25  ;;  %v25159_v41 = vld [vmem:[#allocation113_spill] sm:$0xff] }
 0x6bb   : > { %8500 = vmatpush1.bf16.msra.mxu1 %v17601_v60  ;;  %v25161_v53 = vpack.c.bf16 %v25159_v41, %v25160_v27  ;;  %v25169_v60 = vld [vmem:[#allocation119_spill] sm:$0xff]  ;;  %v25219_v41 = vld [vmem:[#allocation118_spill] sm:$0xff] }
 0x6bc   : > { %8501 = vmatprep.subr.bf16.mxu1 %v17606_v47  ;;  %v25220_v27 = vld [vmem:[#allocation115_spill] sm:$0xff] }
 0x6bd   : > { %6537 = vmatpush1.bf16.msra.mxu0 %v25122_v2  ;;  %v25163_v2 = vld [vmem:[#allocation111_spill] sm:$0xff] }
 0x6be   : > { %6538 = vmatprep.subr.bf16.mxu0 %v25125_v21  ;;  %v25168_v21 = vld [vmem:[#allocation31_spill] sm:$0xff] }
 0x6bf   : > { %8502 = vmatpush1.bf16.msra.mxu1 %v17604_v59  ;;  %v25170_v22 = vpack.c.bf16 %v25168_v21, %v25169_v60  ;;  %v25177_v59 = vld [vmem:[#allocation130_spill] sm:$0xff] }
 0x6c0   : > { %8503 = vmatprep.subr.bf16.mxu1 %v17609_v9  ;;  %v25179_v6 = vpack.c.bf16 %v25177_v59, %v25178_v7  ;;  %v25181_v9 = vld [vmem:[#allocation125_spill] sm:$0xff]  ;;  %v25232_v59 = vld [vmem:[#allocation36_spill] sm:$0xff] }
 0x6c1   : > { %6539 = vmatpush1.bf16.msra.mxu0 %v25128_v45  ;;  %v25172_v45 = vld [vmem:[#allocation32_spill] sm:$0xff] }
 0x6c2   : > { %6540 = vmatprep.subr.bf16.mxu0 %v25131_v16  ;;  %v25173_v47 = vpack.c.bf16 %v25171_v8, %v25172_v45  ;;  %v25176_v16 = vpack.c.bf16 %v25174_v17, %v25175_v1  ;;  %v25228_v8 = vld [vmem:[#allocation35_spill] sm:$0xff]  ;;  %v25229_v45 = vld [vmem:[#allocation122_spill] sm:$0xff] }
 0x6c3   : > { %8504 = vmatpush1.bf16.msra.mxu1 %v17607_v29 }
 0x6c4   : > { %8546 = vmatprep.subr.bf16.mxu1 %v17660_v0  ;;  %v25222_v0 = vld [vmem:[#allocation120_spill] sm:$0xff] }
 0x6c5   : > { %6541 = vmatpush1.bf16.msra.mxu0 %v25134_v61  ;;  %v25180_v61 = vld [vmem:[#allocation128_spill] sm:$0xff] }
 0x6c6   : > { %6542 = vmatprep.subr.bf16.mxu0 %v25137_v28  ;;  %v25182_v50 = vpack.c.bf16 %v25180_v61, %v25181_v9  ;;  %v25184_v28 = vld [vmem:[#allocation134_spill] sm:$0xff]  ;;  %v17666_v61 = vld [vmem:[#allocation8 + $0x334] ss:$24 sps:$4 sm:$0xff]   ;;  %v25234_v9 = vld [vmem:[#allocation123_spill] sm:$0xff] }
 0x6c7   : > { %v25185_v29 = vpack.c.bf16 %v25183_v40, %v25184_v28  ;;  %v25237_v28 = vld [vmem:[#allocation132_spill] sm:$0xff] }
 0x6c9   : > { %6543 = vmatpush1.bf16.msra.mxu0 %v25140_v46  ;;  %v25188_v46 = vpack.c.bf16 %v25186_v37, %v25187_v23  ;;  %v17612_v23 = vld [vmem:[#allocation8 + $0xc] ss:$24 sps:$4 sm:$0xff]  }
 0x6ca   : > { %6544 = vmatprep.subr.bf16.mxu0 %v25143_v31  ;;  %v25191_v31 = vpack.c.bf16 %v25189_v15, %v25190_v4  ;;  %v17672_v15 = vld [vmem:[#allocation8 + $0x364] ss:$24 sps:$4 sm:$0xff]  }
 0x6cb   : > { %v25240_v4 = vld [vmem:[#allocation131_spill] sm:$0xff] }
 0x6cd   : > { %6545 = vmatpush1.bf16.msra.mxu0 %v25146_v20  ;;  %v25194_v20 = vpack.c.bf16 %v25192_v55, %v25193_v30  ;;  %v17610_v30 = vld [vmem:[#allocation8 + $0x8] ss:$24 sps:$4 sm:$0xff]  }
 0x6ce   : > { %6583 = vmatprep.subr.bf16.mxu0 %v25149_v38  ;;  %v25197_v38 = vpack.c.bf16 %v25195_v32, %v25196_v19  ;;  %v17670_v32 = vld [vmem:[#allocation8 + $0x360] ss:$24 sps:$4 sm:$0xff]  }
 0x6fc   : > { %v6344_v5 = vpop.xlane.xlu0 %6343 }
 0x6fd   : > { %18882 = vrcp.f32 %v6344_v5  ;;  %v25198_v5 = vld [vmem:[#allocation39_spill] sm:$0xff] }
 0x700   : > { %v6346_v3 = vpop.xlane.xlu1 %6345 }
 0x701   : > { %18884 = vrcp.f32 %v6346_v3  ;;  %v6348_v49 = vpop.xlane.xlu0 %6347  ;;  %v25199_v3 = vld [vmem:[#allocation54_spill] sm:$0xff] }
 0x704   : > { %v6350_v14 = vpop.xlane.xlu1 %6349 }
 0x705   : > { %18886 = vrcp.f32 %v6350_v14  ;;  %v25201_v14 = vld [vmem:[#allocation59_spill] sm:$0xff] }
 0x706   : > { %18888 = vrcp.f32 %v6348_v49  ;;  %v25200_v49 = vpack.c.bf16 %v25198_v5, %v25199_v3 }
 0x707   : > { %v18883_v12 = vpop.eup %18882 }
 0x708   : > { %v6363_v24 = vmul.f32 %v18883_v12, %v22586_v44  ;;  %v25202_v12 = vld [vmem:[#allocation61_spill] sm:$0xff] }
 0x70b   : > { %v18885_v26 = vpop.eup %18884 }
 0x70c   : > { %v6364_v42 = vmul.f32 %v18885_v26, %v22597_v48  ;;  %v25156_v48 = vld [vmem:[#allocation105_spill] sm:$0xff]  ;;  %v25203_v26 = vpack.c.bf16 %v25201_v14, %v25202_v12 }
 0x70d   : > { %v25158_v39 = vpack.c.bf16 %v25156_v48, %v25157_v62  ;;  %v25216_v48 = vld [vmem:[#allocation44_spill] sm:$0xff]  ;;  %v25217_v62 = vld [vmem:[#allocation107_spill] sm:$0xff] }
 0x70e   : > { %v22758_v13 = vpack.c.bf16 %v6364_v42, %v6363_v24  ;;  %v25204_v24 = vld [vmem:[#allocation57_spill] sm:$0xff]  ;;  %v25205_v42 = vld [vmem:[#allocation47_spill] sm:$0xff] }
 0x70f   : > { %v18887_v34 = vpop.eup %18886 }
 0x710   : > { %6563 = vmatmul.mubr.bf16.vlgmr.msra.gmra.mrb[64].mxu0 %v22758_v13  ;;  %v18889_v11 = vpop.eup %18888  ;;  %v6366_v51 = vmul.f32 %v18887_v34, %v22609_v35  ;;  %v25162_v35 = vld [vmem:[#allocation114_spill] sm:$0xff]  ;;  %v25206_v34 = vpack.c.bf16 %v25204_v24, %v25205_v42  ;;  %v17676_v42 = vld [vmem:[#allocation8 + $0x390] ss:$24 sps:$4 sm:$0xff]  }
 0x711   : > { %6584 = vmatpush1.bf16.msra.mxu0 %v25152_v58  ;;  %6572 = vmatprep.mubr.bf16.mxu0 %v24952_v36  ;;  %v6365_v44 = vmul.f32 %v18889_v11, %v22599_v56  ;;  %v25164_v25 = vpack.c.bf16 %v25162_v35, %v25163_v2  ;;  %v25165_v56 = vld [vmem:[#allocation33_spill] sm:$0xff]  ;;  %v25207_v11 = vld [vmem:[#allocation102_spill] sm:$0xff]  ;;  %v25210_v58 = vld [vmem:[#allocation104_spill] sm:$0xff] }
 0x712   : > { %6585 = vmatprep.subr.bf16.mxu0 %v25155_v43  ;;  %v25167_v33 = vpack.c.bf16 %v25165_v56, %v25166_v10  ;;  %v25209_v63 = vpack.c.bf16 %v25207_v11, %v25208_v57  ;;  %v25214_v43 = vld [vmem:[#allocation112_spill] sm:$0xff]  ;;  %v25226_v56 = vld [vmem:[#allocation121_spill] sm:$0xff] }
 0x713   : > { %v22773_v18 = vpack.c.bf16 %v6366_v51, %v6365_v44  ;;  %v25211_v51 = vld [vmem:[#allocation40_spill] sm:$0xff]  ;;  %v25215_v44 = vpack.c.bf16 %v25213_v52, %v25214_v43  ;;  %v17621_v11 = vld [vmem:[#allocation8 + $0x9c] ss:$24 sps:$4 sm:$0xff]  }
 0x714   : > { %v25212_v54 = vpack.c.bf16 %v25210_v58, %v25211_v51  ;;  %v25223_v35 = vld [vmem:[#allocation116_spill] sm:$0xff]  ;;  %v17627_v43 = vld [vmem:[#allocation8 + $0xfc] ss:$24 sps:$4 sm:$0xff]  }
 0x715   : > { %6586 = vmatpush1.bf16.msra.mxu0 %v25158_v39  ;;  %v25218_v39 = vpack.c.bf16 %v25216_v48, %v25217_v62  ;;  %v25224_v2 = vpack.c.bf16 %v25222_v0, %v25223_v35  ;;  %v17690_v57 = vld [vmem:[#allocation8 + $0x3f4] ss:$24 sps:$4 sm:$0xff]   ;;  %v17688_v51 = vld [vmem:[#allocation8 + $0x3f0] ss:$24 sps:$4 sm:$0xff]  }
 0x716   : > { %6587 = vmatprep.subr.bf16.mxu0 %v25161_v53  ;;  %v25221_v53 = vpack.c.bf16 %v25219_v41, %v25220_v27  ;;  %v17624_v58 = vld [vmem:[#allocation8 + $0xcc] ss:$24 sps:$4 sm:$0xff]   ;;  %v17622_v52 = vld [vmem:[#allocation8 + $0xc8] ss:$24 sps:$4 sm:$0xff]   ;;  %v17625_v48 = vld [vmem:[#allocation8 + $0xf8] ss:$24 sps:$4 sm:$0xff]  }
 0x717   : > { %v17630_v62 = vld [vmem:[#allocation8 + $0x12c] ss:$24 sps:$4 sm:$0xff]   ;;  %v17700_v41 = vld [vmem:[#allocation8 + $0x450] ss:$24 sps:$4 sm:$0xff]  }
 0x718   : > { %6573 = vmatmul.mubr.bf16.gmra.mrb[68].mxu0 %v22773_v18  ;;  %v17628_v35 = vld [vmem:[#allocation8 + $0x128] ss:$24 sps:$4 sm:$0xff]  }
 0x719   : > { %6588 = vmatpush1.bf16.msra.mxu0 %v25164_v25  ;;  %6615 = vmatprep.mubr.bf16.mxu0 %v24952_v36  ;;  %v25225_v25 = vld [vmem:[#allocation30_spill] sm:$0xff] }
 0x71a   : > { %6589 = vmatprep.subr.bf16.mxu0 %v25167_v33  ;;  %v25227_v10 = vpack.c.bf16 %v25225_v25, %v25226_v56  ;;  %v17633_v56 = vld [vmem:[#allocation8 + $0x15c] ss:$24 sps:$4 sm:$0xff]  }
 0x71d   : > { %6590 = vmatpush1.bf16.msra.mxu0 %v25170_v22 }
 0x71e   : > { %6591 = vmatprep.subr.bf16.mxu0 %v25173_v47  ;;  %v25230_v47 = vpack.c.bf16 %v25228_v8, %v25229_v45  ;;  %v17636_v8 = vld [vmem:[#allocation8 + $0x18c] ss:$24 sps:$4 sm:$0xff]  }
 0x721   : > { %6592 = vmatpush1.bf16.msra.mxu0 %v25176_v16  ;;  %v25231_v16 = vld [vmem:[#allocation124_spill] sm:$0xff] }
 0x722   : > { %6593 = vmatprep.subr.bf16.mxu0 %v25179_v6  ;;  %v25233_v7 = vpack.c.bf16 %v25231_v16, %v25232_v59  ;;  %v17658_v6 = vld [vmem:[#allocation8 + $0x300] ss:$24 sps:$4 sm:$0xff]   ;;  %v17720_v16 = vld [vmem:[#allocation8 + $0x4e4] ss:$24 sps:$4 sm:$0xff]  }
 0x725   : > { %6594 = vmatpush1.bf16.msra.mxu0 %v25182_v50  ;;  %v25235_v50 = vld [vmem:[#allocation34_spill] sm:$0xff] }
 0x726   : > { %6595 = vmatprep.subr.bf16.mxu0 %v25185_v29  ;;  %v25236_v40 = vpack.c.bf16 %v25234_v9, %v25235_v50  ;;  %v25238_v29 = vld [vmem:[#allocation129_spill] sm:$0xff] }
 0x727   : > { %v25239_v37 = vpack.c.bf16 %v25237_v28, %v25238_v29  ;;  %v17639_v9 = vld [vmem:[#allocation8 + $0x1bc] ss:$24 sps:$4 sm:$0xff]   ;;  %v17637_v29 = vld [vmem:[#allocation8 + $0x1b8] ss:$24 sps:$4 sm:$0xff]  }
 0x728   : > { %v17726_v28 = vld [vmem:[#allocation8 + $0x514] ss:$24 sps:$4 sm:$0xff]  }
 0x729   : > { %6596 = vmatpush1.bf16.msra.mxu0 %v25188_v46  ;;  %v17664_v46 = vld [vmem:[#allocation8 + $0x330] ss:$24 sps:$4 sm:$0xff]  }
 0x72a   : > { %6597 = vmatprep.subr.bf16.mxu0 %v25191_v31  ;;  %v25241_v31 = vld [vmem:[#allocation127_spill] sm:$0xff] }
 0x72b   : > { %v25242_v55 = vpack.c.bf16 %v25240_v4, %v25241_v31  ;;  %v17645_v4 = vld [vmem:[#allocation8 + $0x21c] ss:$24 sps:$4 sm:$0xff]   ;;  %v17730_v31 = vld [vmem:[#allocation8 + $0x540] ss:$24 sps:$4 sm:$0xff]  }
 0x72d   : > { %6598 = vmatpush1.bf16.msra.mxu0 %v25194_v20  ;;  %v17615_v20 = vld [vmem:[#allocation8 + $0x3c] ss:$24 sps:$4 sm:$0xff]  }
 0x72e   : > { %6636 = vmatprep.subr.bf16.mxu0 %v25197_v38  ;;  %v17678_v38 = vld [vmem:[#allocation8 + $0x394] ss:$24 sps:$4 sm:$0xff]  }
 0x730   : > { %6616 = vmatmul.mubr.bf16.vlgmr.msra.gmra.mrb[72].mxu0 %v22758_v13 }
 0x731   : > { %6637 = vmatpush1.bf16.msra.mxu0 %v25200_v49  ;;  %6625 = vmatprep.mubr.bf16.mxu0 %v24952_v36  ;;  %v17613_v49 = vld [vmem:[#allocation8 + $0x38] ss:$24 sps:$4 sm:$0xff]  }
 0x732   : > { %6638 = vmatprep.subr.bf16.mxu0 %v25203_v26  ;;  %v17618_v26 = vld [vmem:[#allocation8 + $0x6c] ss:$24 sps:$4 sm:$0xff]  }
 0x735   : > { %6639 = vmatpush1.bf16.msra.mxu0 %v25206_v34  ;;  %v17684_v34 = vld [vmem:[#allocation8 + $0x3c4] ss:$24 sps:$4 sm:$0xff]  }
 0x736   : > { %6640 = vmatprep.subr.bf16.mxu0 %v25209_v63  ;;  %v17619_v63 = vld [vmem:[#allocation8 + $0x98] ss:$24 sps:$4 sm:$0xff]  }
 0x738   : > { %6626 = vmatmul.mubr.bf16.gmra.mrb[76].mxu0 %v22773_v18 }
 0x739   : > { %6641 = vmatpush1.bf16.msra.mxu0 %v25212_v54  ;;  %6668 = vmatprep.mubr.bf16.mxu0 %v24952_v36  ;;  %v17696_v54 = vld [vmem:[#allocation8 + $0x424] ss:$24 sps:$4 sm:$0xff]  }
 0x73a   : > { %6642 = vmatprep.subr.bf16.mxu0 %v25215_v44  ;;  %v17694_v44 = vld [vmem:[#allocation8 + $0x420] ss:$24 sps:$4 sm:$0xff]  }
 0x73d   : > { %6643 = vmatpush1.bf16.msra.mxu0 %v25218_v39 }
 0x73e   : > { %6644 = vmatprep.subr.bf16.mxu0 %v25221_v53  ;;  %v17708_v53 = vld [vmem:[#allocation8 + $0x484] ss:$24 sps:$4 sm:$0xff]  }
 0x741   : > { %6645 = vmatpush1.bf16.msra.mxu0 %v25224_v2 }
 0x742   : > { %6646 = vmatprep.subr.bf16.mxu0 %v25227_v10  ;;  %v6405_v33 = vpop.f32.mrb[40].mxu0 }
 0x743   : > { %v6407_v21 = vpop.f32.mrb[41].mxu0 }
 0x744   : > { %v6409_v60 = vpop.f32.mrb[42].mxu0 }
 0x745   : > { %v22850_v22 = vpack.c.bf16 %v6409_v60, %v6405_v33  ;;  %6647 = vmatpush1.bf16.msra.mxu0 %v25230_v47  ;;  %v6411_v17 = vpop.f32.mrb[43].mxu0  ;;  %v17706_v33 = vld [vmem:[#allocation8 + $0x480] ss:$24 sps:$4 sm:$0xff]   ;;  %v17712_v47 = vld [vmem:[#allocation8 + $0x4b0] ss:$24 sps:$4 sm:$0xff]  }
 0x746   : > { %v22855_v1 = vpack.c.bf16 %v6411_v17, %v6407_v21  ;;  %6648 = vmatprep.subr.bf16.mxu0 %v25233_v7  ;;  %v17714_v21 = vld [vmem:[#allocation8 + $0x4b4] ss:$24 sps:$4 sm:$0xff]   ;;  %v17631_v60 = vld [vmem:[#allocation8 + $0x158] ss:$24 sps:$4 sm:$0xff]   ;;  %v17634_v7 = vld [vmem:[#allocation8 + $0x188] ss:$24 sps:$4 sm:$0xff]  }
 0x748   : > { %8505 = vmatprep.mubr.bf16.mxu1 %v22855_v1 }
 0x749   : > { %6649 = vmatpush1.bf16.msra.mxu0 %v25236_v40  ;;  %8506 = vmatmul.mubr.bf16.vlgmr.msra.gmra.mrb[232].mxu1 %v22850_v22  ;;  %v17718_v40 = vld [vmem:[#allocation8 + $0x4e0] ss:$24 sps:$4 sm:$0xff]  }
 0x74a   : > { %6650 = vmatprep.subr.bf16.mxu0 %v25239_v37  ;;  %8547 = vmatpush1.bf16.msra.mxu1 %v17658_v6  ;;  %v17642_v37 = vld [vmem:[#allocation8 + $0x1ec] ss:$24 sps:$4 sm:$0xff]  }
 0x74b   : > { %8548 = vmatprep.subr.bf16.mxu1 %v17666_v61 }
 0x74d   : > { %6651 = vmatpush1.bf16.msra.mxu0 %v25242_v55  ;;  %v17738_v55 = vld [vmem:[#allocation8 + $0x574] ss:$24 sps:$4 sm:$0xff]  }
 0x74e   : > { %8692 = vmatprep.subr.bf16.mxu0 %v17612_v23  ;;  %8549 = vmatpush1.bf16.msra.mxu1 %v17664_v46  ;;  %v17724_v23 = vld [vmem:[#allocation8 + $0x510] ss:$24 sps:$4 sm:$0xff]   ;;  %v17732_v46 = vld [vmem:[#allocation8 + $0x544] ss:$24 sps:$4 sm:$0xff]  }
 0x74f   : > { %v6415_v19 = vpop.f32.mrb[44].mxu0  ;;  %8550 = vmatprep.subr.bf16.mxu1 %v17672_v15  ;;  %v17640_v15 = vld [vmem:[#allocation8 + $0x1e8] ss:$24 sps:$4 sm:$0xff]  }
 0x750   : > { %v6417_v5 = vpop.f32.mrb[45].mxu0  ;;  %6669 = vmatmul.mubr.bf16.vlgmr.msra.gmra.mrb[80].mxu0 %v22758_v13  ;;  %v17616_v13 = vld [vmem:[#allocation8 + $0x68] ss:$24 sps:$4 sm:$0xff]  }
 0x751   : > { %v6419_v3 = vpop.f32.mrb[46].mxu0  ;;  %8693 = vmatpush1.bf16.msra.mxu0 %v17610_v30  ;;  %6678 = vmatprep.mubr.bf16.mxu0 %v24952_v36  ;;  %v17682_v36 = vld [vmem:[#allocation8 + $0x3c0] ss:$24 sps:$4 sm:$0xff]  }
 0x752   : > { %v22873_v14 = vpack.c.bf16 %v6419_v3, %v6415_v19  ;;  %v6421_v12 = vpop.f32.mrb[47].mxu0  ;;  %8694 = vmatprep.subr.bf16.mxu0 %v17615_v20  ;;  %8551 = vmatpush1.bf16.msra.mxu1 %v17670_v32  ;;  %v17643_v30 = vld [vmem:[#allocation8 + $0x218] ss:$24 sps:$4 sm:$0xff]   ;;  %v17648_v20 = vld [vmem:[#allocation8 + $0x24c] ss:$24 sps:$4 sm:$0xff]  }
 0x753   : > { %v22875_v24 = vpack.c.bf16 %v6421_v12, %v6417_v5  ;;  %8552 = vmatprep.subr.bf16.mxu1 %v17678_v38  ;;  %v17736_v32 = vld [vmem:[#allocation8 + $0x570] ss:$24 sps:$4 sm:$0xff]   ;;  %v17744_v19 = vld [vmem:[#allocation8 + $0x5a4] ss:$24 sps:$4 sm:$0xff]   ;;  %v17742_v3 = vld [vmem:[#allocation8 + $0x5a0] ss:$24 sps:$4 sm:$0xff]  }
 0x754   : > { %v17646_v38 = vld [vmem:[#allocation8 + $0x248] ss:$24 sps:$4 sm:$0xff]   ;;  %v17651_v5 = vld [vmem:[#allocation8 + $0x27c] ss:$24 sps:$4 sm:$0xff]   ;;  %v17649_v12 = vld [vmem:[#allocation8 + $0x278] ss:$24 sps:$4 sm:$0xff]  }
 0x755   : > { %8515 = vmatprep.mubr.bf16.mxu1 %v22875_v24  ;;  %8695 = vmatpush1.bf16.msra.mxu0 %v17613_v49  ;;  %v17750_v49 = vld [vmem:[#allocation8 + $0x5d4] ss:$24 sps:$4 sm:$0xff]  }
 0x756   : > { %8516 = vmatmul.mubr.bf16.gmra.mrb[236].mxu1 %v22873_v14  ;;  %8696 = vmatprep.subr.bf16.mxu0 %v17618_v26  ;;  %v17654_v26 = vld [vmem:[#allocation8 + $0x2ac] ss:$24 sps:$4 sm:$0xff]  }
 0x757   : > { %8553 = vmatpush1.bf16.msra.mxu1 %v17676_v42 }
 0x758   : > { %6679 = vmatmul.mubr.bf16.gmra.mrb[84].mxu0 %v22773_v18  ;;  %8554 = vmatprep.subr.bf16.mxu1 %v17684_v34  ;;  %v17702_v18 = vld [vmem:[#allocation8 + $0x454] ss:$24 sps:$4 sm:$0xff]   ;;  %v17748_v34 = vld [vmem:[#allocation8 + $0x5d0] ss:$24 sps:$4 sm:$0xff]  }
 0x759   : > { %8697 = vmatpush1.bf16.msra.mxu0 %v17616_v13  ;;  %8724 = vmatprep.mubr.bf16.mxu0 %v22855_v1 }
 0x75a   : > { %8698 = vmatprep.subr.bf16.mxu0 %v17621_v11  ;;  %v17756_v11 = vld [vmem:[#allocation8 + $0x604] ss:$24 sps:$4 sm:$0xff]  }
 0x75b   : > { %8555 = vmatpush1.bf16.msra.mxu1 %v17682_v36 }
 0x75c   : > { %8556 = vmatprep.subr.bf16.mxu1 %v17690_v57  ;;  %v17652_v57 = vld [vmem:[#allocation8 + $0x2a8] ss:$24 sps:$4 sm:$0xff]  }
 0x75d   : > { %8699 = vmatpush1.bf16.msra.mxu0 %v17619_v63 }
 0x75e   : > { %8700 = vmatprep.subr.bf16.mxu0 %v17624_v58 }
 0x75f   : > { %8557 = vmatpush1.bf16.msra.mxu1 %v17688_v51  ;;  %v17657_v51 = vld [vmem:[#allocation8 + $0x2dc] ss:$24 sps:$4 sm:$0xff]  }
 0x760   : > { %8558 = vmatprep.subr.bf16.mxu1 %v17696_v54 }
 0x761   : > { %8701 = vmatpush1.bf16.msra.mxu0 %v17622_v52  ;;  %v17655_v52 = vld [vmem:[#allocation8 + $0x2d8] ss:$24 sps:$4 sm:$0xff]  }
 0x762   : > { %8702 = vmatprep.subr.bf16.mxu0 %v17627_v43  ;;  %v17663_v43 = vld [vmem:[#allocation8 + $0x30c] ss:$24 sps:$4 sm:$0xff]  }
 0x763   : > { %v6458_v39 = vpop.f32.mrb[48].mxu0  ;;  %8559 = vmatpush1.bf16.msra.mxu1 %v17694_v44 }
 0x764   : > { %v6460_v27 = vpop.f32.mrb[49].mxu0  ;;  %8560 = vmatprep.subr.bf16.mxu1 %v17702_v18 }
 0x765   : > { %v6462_v0 = vpop.f32.mrb[50].mxu0  ;;  %8703 = vmatpush1.bf16.msra.mxu0 %v17625_v48 }
 0x766   : > { %v22881_v2 = vpack.c.bf16 %v6462_v0, %v6458_v39  ;;  %v6464_v25 = vpop.f32.mrb[51].mxu0  ;;  %8704 = vmatprep.subr.bf16.mxu0 %v17630_v62  ;;  %v17661_v62 = vld [vmem:[#allocation8 + $0x308] ss:$24 sps:$4 sm:$0xff]   ;;  %v17667_v0 = vld [vmem:[#allocation8 + $0x338] ss:$24 sps:$4 sm:$0xff]  }
 0x767   : > { %v22883_v10 = vpack.c.bf16 %v6464_v25, %v6460_v27  ;;  %8561 = vmatpush1.bf16.msra.mxu1 %v17700_v41  ;;  %v17669_v27 = vld [vmem:[#allocation8 + $0x33c] ss:$24 sps:$4 sm:$0xff]   ;;  %v17673_v25 = vld [vmem:[#allocation8 + $0x368] ss:$24 sps:$4 sm:$0xff]  }
 0x768   : > { %8562 = vmatprep.subr.bf16.mxu1 %v17708_v53 }
 0x769   : > { %8705 = vmatpush1.bf16.msra.mxu0 %v17628_v35  ;;  %v17675_v35 = vld [vmem:[#allocation8 + $0x36c] ss:$24 sps:$4 sm:$0xff]  }
 0x76a   : > { %8706 = vmatprep.subr.bf16.mxu0 %v17633_v56  ;;  %v17681_v56 = vld [vmem:[#allocation8 + $0x39c] ss:$24 sps:$4 sm:$0xff]  }
 0x76b   : > { %v6468_v45 = vpop.f32.mrb[52].mxu0  ;;  %8563 = vmatpush1.bf16.msra.mxu1 %v17706_v33  ;;  %v17679_v33 = vld [vmem:[#allocation8 + $0x398] ss:$24 sps:$4 sm:$0xff]  }
 0x76c   : > { %v6470_v17 = vpop.f32.mrb[53].mxu0  ;;  %8564 = vmatprep.subr.bf16.mxu1 %v17714_v21  ;;  %v17687_v21 = vld [vmem:[#allocation8 + $0x3cc] ss:$24 sps:$4 sm:$0xff]  }
 0x76d   : > { %v6472_v59 = vpop.f32.mrb[54].mxu0  ;;  %8707 = vmatpush1.bf16.msra.mxu0 %v17631_v60  ;;  %v17685_v60 = vld [vmem:[#allocation8 + $0x3c8] ss:$24 sps:$4 sm:$0xff]  }
 0x76e   : > { %v22885_v6 = vpack.c.bf16 %v6472_v59, %v6468_v45  ;;  %v6474_v61 = vpop.f32.mrb[55].mxu0  ;;  %8708 = vmatprep.subr.bf16.mxu0 %v17636_v8  ;;  %v17693_v8 = vld [vmem:[#allocation8 + $0x3fc] ss:$24 sps:$4 sm:$0xff]   ;;  %v17691_v45 = vld [vmem:[#allocation8 + $0x3f8] ss:$24 sps:$4 sm:$0xff]  }
 0x76f   : > { %v22887_v50 = vpack.c.bf16 %v6474_v61, %v6470_v17  ;;  %8565 = vmatpush1.bf16.msra.mxu1 %v17712_v47  ;;  %v17699_v47 = vld [vmem:[#allocation8 + $0x42c] ss:$24 sps:$4 sm:$0xff]   ;;  %v17697_v17 = vld [vmem:[#allocation8 + $0x428] ss:$24 sps:$4 sm:$0xff]   ;;  %v17703_v59 = vld [vmem:[#allocation8 + $0x458] ss:$24 sps:$4 sm:$0xff]  }
 0x770   : > { %8566 = vmatprep.subr.bf16.mxu1 %v17720_v16  ;;  %v17705_v16 = vld [vmem:[#allocation8 + $0x45c] ss:$24 sps:$4 sm:$0xff]   ;;  %v17709_v61 = vld [vmem:[#allocation8 + $0x488] ss:$24 sps:$4 sm:$0xff]  }
 0x771   : > { %8709 = vmatpush1.bf16.msra.mxu0 %v17634_v7  ;;  %v17711_v7 = vld [vmem:[#allocation8 + $0x48c] ss:$24 sps:$4 sm:$0xff]  }
 0x772   : > { %8710 = vmatprep.subr.bf16.mxu0 %v17639_v9  ;;  %v17717_v9 = vld [vmem:[#allocation8 + $0x4bc] ss:$24 sps:$4 sm:$0xff]  }
 0x773   : > { %8567 = vmatpush1.bf16.msra.mxu1 %v17718_v40  ;;  %v17715_v40 = vld [vmem:[#allocation8 + $0x4b8] ss:$24 sps:$4 sm:$0xff]  }
 0x774   : > { %8568 = vmatprep.subr.bf16.mxu1 %v17726_v28  ;;  %v17723_v28 = vld [vmem:[#allocation8 + $0x4ec] ss:$24 sps:$4 sm:$0xff]  }
 0x775   : > { %8711 = vmatpush1.bf16.msra.mxu0 %v17637_v29  ;;  %v17721_v29 = vld [vmem:[#allocation8 + $0x4e8] ss:$24 sps:$4 sm:$0xff]  }
 0x776   : > { %8712 = vmatprep.subr.bf16.mxu0 %v17642_v37  ;;  %v17729_v37 = vld [vmem:[#allocation8 + $0x51c] ss:$24 sps:$4 sm:$0xff]  }
 0x777   : > { %8569 = vmatpush1.bf16.msra.mxu1 %v17724_v23  ;;  %v17727_v23 = vld [vmem:[#allocation8 + $0x518] ss:$24 sps:$4 sm:$0xff]  }
 0x778   : > { %8570 = vmatprep.subr.bf16.mxu1 %v17732_v46  ;;  %v17735_v46 = vld [vmem:[#allocation8 + $0x54c] ss:$24 sps:$4 sm:$0xff]  }
 0x779   : > { %8713 = vmatpush1.bf16.msra.mxu0 %v17640_v15  ;;  %v17733_v15 = vld [vmem:[#allocation8 + $0x548] ss:$24 sps:$4 sm:$0xff]  }
 0x77a   : > { %8714 = vmatprep.subr.bf16.mxu0 %v17645_v4  ;;  %v17741_v4 = vld [vmem:[#allocation8 + $0x57c] ss:$24 sps:$4 sm:$0xff]  }
 0x77b   : > { %8571 = vmatpush1.bf16.msra.mxu1 %v17730_v31  ;;  %v17739_v31 = vld [vmem:[#allocation8 + $0x578] ss:$24 sps:$4 sm:$0xff]  }
 0x77c   : > { %8572 = vmatprep.subr.bf16.mxu1 %v17738_v55  ;;  %v17747_v55 = vld [vmem:[#allocation8 + $0x5ac] ss:$24 sps:$4 sm:$0xff]  }
 0x77d   : > { %8715 = vmatpush1.bf16.msra.mxu0 %v17643_v30  ;;  %v17745_v30 = vld [vmem:[#allocation8 + $0x5a8] ss:$24 sps:$4 sm:$0xff]  }
 0x77e   : > { %8716 = vmatprep.subr.bf16.mxu0 %v17648_v20  ;;  %v17753_v20 = vld [vmem:[#allocation8 + $0x5dc] ss:$24 sps:$4 sm:$0xff]  }
 0x77f   : > { %8573 = vmatpush1.bf16.msra.mxu1 %v17736_v32  ;;  %v17751_v32 = vld [vmem:[#allocation8 + $0x5d8] ss:$24 sps:$4 sm:$0xff]  }
 0x780   : > { %8574 = vmatprep.subr.bf16.mxu1 %v17744_v19  ;;  %v17759_v19 = vld [vmem:[#allocation8 + $0x60c] ss:$24 sps:$4 sm:$0xff]  }
 0x781   : > { %8717 = vmatpush1.bf16.msra.mxu0 %v17646_v38 }
 0x782   : > { %8718 = vmatprep.subr.bf16.mxu0 %v17651_v5 }
 0x783   : > { %v6511_v42 = vpop.f32.mrb[56].mxu0  ;;  %8575 = vmatpush1.bf16.msra.mxu1 %v17742_v3 }
 0x784   : > { %v6513_v13 = vpop.f32.mrb[57].mxu0  ;;  %8576 = vmatprep.subr.bf16.mxu1 %v17750_v49 }
 0x785   : > { %v6515_v36 = vpop.f32.mrb[58].mxu0  ;;  %8719 = vmatpush1.bf16.msra.mxu0 %v17649_v12 }
 0x786   : > { %v22889_v63 = vpack.c.bf16 %v6515_v36, %v6511_v42  ;;  %v6517_v58 = vpop.f32.mrb[59].mxu0  ;;  %8720 = vmatprep.subr.bf16.mxu0 %v17654_v26 }
 0x787   : > { %v22891_v54 = vpack.c.bf16 %v6517_v58, %v6513_v13  ;;  %8577 = vmatpush1.bf16.msra.mxu1 %v17748_v34  ;;  %v17754_v58 = vld [vmem:[#allocation8 + $0x600] ss:$24 sps:$4 sm:$0xff]  }
 0x788   : > { %8619 = vmatprep.subr.bf16.mxu1 %v17756_v11 }
 0x789   : > { %8721 = vmatpush1.bf16.msra.mxu0 %v17652_v57 }
 0x78a   : > { %8722 = vmatprep.subr.bf16.mxu0 %v17657_v51  ;;  %v17757_v51 = vld [vmem:[#allocation8 + $0x608] ss:$24 sps:$4 sm:$0xff]  }
 0x78b   : > { %v6521_v44 = vpop.f32.mrb[60].mxu0 }
 0x78c   : > { %v6523_v18 = vpop.f32.mrb[61].mxu0 }
 0x78d   : > { %v6525_v48 = vpop.f32.mrb[62].mxu0  ;;  %8723 = vmatpush1.bf16.msra.mxu0 %v17655_v52  ;;  %v17762_v52 = vld [vmem:[#allocation8 + $0x634] ss:$24 sps:$4 sm:$0xff]  }
 0x78e   : > { %v22893_v39 = vpack.c.bf16 %v6525_v48, %v6521_v44  ;;  %v6527_v41 = vpop.f32.mrb[63].mxu0  ;;  %8765 = vmatprep.subr.bf16.mxu0 %v17663_v43  ;;  %v17765_v43 = vld [vmem:[#allocation8 + $0x63c] ss:$24 sps:$4 sm:$0xff]   ;;  %v17760_v44 = vld [vmem:[#allocation8 + $0x630] ss:$24 sps:$4 sm:$0xff]  }
 0x78f   : > { %v22895_v53 = vpack.c.bf16 %v6527_v41, %v6523_v18  ;;  %v17763_v18 = vld [vmem:[#allocation8 + $0x638] ss:$24 sps:$4 sm:$0xff]   ;;  %v17768_v48 = vld [vmem:[#allocation8 + $0x664] ss:$24 sps:$4 sm:$0xff]  }
 0x790   : > { %8725 = vmatmul.mubr.bf16.vlgmr.msra.gmra.mrb[88].mxu0 %v22850_v22  ;;  %v17766_v41 = vld [vmem:[#allocation8 + $0x660] ss:$24 sps:$4 sm:$0xff]  }
 0x791   : > { %8734 = vmatprep.mubr.bf16.mxu0 %v22875_v24  ;;  %8766 = vmatpush1.bf16.msra.mxu0 %v17661_v62  ;;  %v17771_v62 = vld [vmem:[#allocation8 + $0x66c] ss:$24 sps:$4 sm:$0xff]  }
 0x792   : > { %8767 = vmatprep.subr.bf16.mxu0 %v17669_v27  ;;  %v17769_v27 = vld [vmem:[#allocation8 + $0x668] ss:$24 sps:$4 sm:$0xff]  }
 0x795   : > { %8768 = vmatpush1.bf16.msra.mxu0 %v17667_v0  ;;  %v17774_v0 = vld [vmem:[#allocation8 + $0x694] ss:$24 sps:$4 sm:$0xff]  }
 0x796   : > { %8769 = vmatprep.subr.bf16.mxu0 %v17675_v35  ;;  %v17777_v35 = vld [vmem:[#allocation8 + $0x69c] ss:$24 sps:$4 sm:$0xff]  }
 0x798   : > { %8735 = vmatmul.mubr.bf16.gmra.mrb[92].mxu0 %v22873_v14 }
 0x799   : > { %8770 = vmatpush1.bf16.msra.mxu0 %v17673_v25 }
 0x79a   : > { %8771 = vmatprep.subr.bf16.mxu0 %v17681_v56  ;;  %v17772_v56 = vld [vmem:[#allocation8 + $0x690] ss:$24 sps:$4 sm:$0xff]  }
 0x79d   : > { %8772 = vmatpush1.bf16.msra.mxu0 %v17679_v33  ;;  %v17775_v33 = vld [vmem:[#allocation8 + $0x698] ss:$24 sps:$4 sm:$0xff]  }
 0x79e   : > { %8773 = vmatprep.subr.bf16.mxu0 %v17687_v21 }
 0x7a1   : > { %8774 = vmatpush1.bf16.msra.mxu0 %v17685_v60  ;;  %v17780_v60 = vld [vmem:[#allocation8 + $0x6c4] ss:$24 sps:$4 sm:$0xff]  }
 0x7a2   : > { %8775 = vmatprep.subr.bf16.mxu0 %v17693_v8  ;;  %v17783_v8 = vld [vmem:[#allocation8 + $0x6cc] ss:$24 sps:$4 sm:$0xff]  }
 0x7a5   : > { %8776 = vmatpush1.bf16.msra.mxu0 %v17691_v45 }
 0x7a6   : > { %8777 = vmatprep.subr.bf16.mxu0 %v17699_v47 }
 0x7a9   : > { %8778 = vmatpush1.bf16.msra.mxu0 %v17697_v17 }
 0x7aa   : > { %8779 = vmatprep.subr.bf16.mxu0 %v17705_v16 }
 0x7ad   : > { %8780 = vmatpush1.bf16.msra.mxu0 %v17703_v59  ;;  %v17778_v59 = vld [vmem:[#allocation8 + $0x6c0] ss:$24 sps:$4 sm:$0xff]  }
 0x7ae   : > { %8781 = vmatprep.subr.bf16.mxu0 %v17711_v7  ;;  %v17781_v7 = vld [vmem:[#allocation8 + $0x6c8] ss:$24 sps:$4 sm:$0xff]  }
 0x7b1   : > { %8782 = vmatpush1.bf16.msra.mxu0 %v17709_v61  ;;  %v17786_v61 = vld [vmem:[#allocation8 + $0x6f4] ss:$24 sps:$4 sm:$0xff]  }
 0x7b2   : > { %8783 = vmatprep.subr.bf16.mxu0 %v17717_v9  ;;  %v17789_v9 = vld [vmem:[#allocation8 + $0x6fc] ss:$24 sps:$4 sm:$0xff]  }
 0x7b5   : > { %8784 = vmatpush1.bf16.msra.mxu0 %v17715_v40 }
 0x7b6   : > { %8785 = vmatprep.subr.bf16.mxu0 %v17723_v28  ;;  %v17784_v28 = vld [vmem:[#allocation8 + $0x6f0] ss:$24 sps:$4 sm:$0xff]  }
 0x7b9   : > { %8786 = vmatpush1.bf16.msra.mxu0 %v17721_v29  ;;  %v17787_v29 = vld [vmem:[#allocation8 + $0x6f8] ss:$24 sps:$4 sm:$0xff]  }
 0x7ba   : > { %8787 = vmatprep.subr.bf16.mxu0 %v17729_v37 }
 0x7bd   : > { %8788 = vmatpush1.bf16.msra.mxu0 %v17727_v23  ;;  %v17792_v23 = vld [vmem:[#allocation8 + $0x724] ss:$24 sps:$4 sm:$0xff]  }
 0x7be   : > { %8789 = vmatprep.subr.bf16.mxu0 %v17735_v46  ;;  %v17795_v46 = vld [vmem:[#allocation8 + $0x72c] ss:$24 sps:$4 sm:$0xff]  }
 0x7c1   : > { %8790 = vmatpush1.bf16.msra.mxu0 %v17733_v15 }
 0x7c2   : > { %8791 = vmatprep.subr.bf16.mxu0 %v17741_v4 }
 0x7c5   : > { %8792 = vmatpush1.bf16.msra.mxu0 %v17739_v31 }
 0x7c6   : > { %8793 = vmatprep.subr.bf16.mxu0 %v17747_v55 }
 0x7c9   : > { %8794 = vmatpush1.bf16.msra.mxu0 %v17745_v30  ;;  %v17790_v30 = vld [vmem:[#allocation8 + $0x720] ss:$24 sps:$4 sm:$0xff]  }
 0x7ca   : > { %8795 = vmatprep.subr.bf16.mxu0 %v17753_v20  ;;  %v17793_v20 = vld [vmem:[#allocation8 + $0x728] ss:$24 sps:$4 sm:$0xff]  }
 0x7cd   : > { %8796 = vmatpush1.bf16.msra.mxu0 %v17751_v32  ;;  %v17798_v32 = vld [vmem:[#allocation8 + $0x754] ss:$24 sps:$4 sm:$0xff]  }
 0x7ce   : > { %8838 = vmatprep.subr.bf16.mxu0 %v17759_v19  ;;  %v17801_v19 = vld [vmem:[#allocation8 + $0x75c] ss:$24 sps:$4 sm:$0xff]  }
 0x7e3   : > { %v6564_v38 = vpop.f32.mrb[64].mxu0 }
 0x7e4   : > { %v6566_v5 = vpop.f32.mrb[65].mxu0 }
 0x7e5   : > { %v6568_v3 = vpop.f32.mrb[66].mxu0 }
 0x7e6   : > { %v22900_v49 = vpack.c.bf16 %v6568_v3, %v6564_v38  ;;  %v6570_v12 = vpop.f32.mrb[67].mxu0  ;;  %v17796_v38 = vld [vmem:[#allocation8 + $0x750] ss:$24 sps:$4 sm:$0xff]   ;;  %v17804_v3 = vld [vmem:[#allocation8 + $0x784] ss:$24 sps:$4 sm:$0xff]  }
 0x7e7   : > { %v22902_v26 = vpack.c.bf16 %v6570_v12, %v6566_v5  ;;  %v17799_v5 = vld [vmem:[#allocation8 + $0x758] ss:$24 sps:$4 sm:$0xff]   ;;  %v17807_v12 = vld [vmem:[#allocation8 + $0x78c] ss:$24 sps:$4 sm:$0xff]  }
 0x7e9   : > { %8525 = vmatprep.mubr.bf16.mxu1 %v22902_v26  ;;  %8744 = vmatprep.mubr.bf16.mxu0 %v22902_v26 }
 0x7ea   : > { %8526 = vmatmul.mubr.bf16.gmra.mrb[240].mxu1 %v22900_v49  ;;  %8745 = vmatmul.mubr.bf16.gmra.mrb[96].mxu0 %v22900_v49 }
 0x7eb   : > { %v6574_v42 = vpop.f32.mrb[68].mxu0 }
 0x7ec   : > { %v6576_v34 = vpop.f32.mrb[69].mxu0 }
 0x7ed   : > { %v6578_v13 = vpop.f32.mrb[70].mxu0 }
 0x7ee   : > { %v22908_v11 = vpack.c.bf16 %v6578_v13, %v6574_v42  ;;  %v6580_v36 = vpop.f32.mrb[71].mxu0  ;;  %v17802_v42 = vld [vmem:[#allocation8 + $0x780] ss:$24 sps:$4 sm:$0xff]   ;;  %v17810_v13 = vld [vmem:[#allocation8 + $0x7b4] ss:$24 sps:$4 sm:$0xff]  }
 0x7ef   : > { %v22910_v57 = vpack.c.bf16 %v6580_v36, %v6576_v34  ;;  %v17805_v34 = vld [vmem:[#allocation8 + $0x788] ss:$24 sps:$4 sm:$0xff]   ;;  %v17813_v36 = vld [vmem:[#allocation8 + $0x7bc] ss:$24 sps:$4 sm:$0xff]  }
 0x7f1   : > { %8535 = vmatprep.mubr.bf16.mxu1 %v22910_v57  ;;  %8754 = vmatprep.mubr.bf16.mxu0 %v22910_v57 }
 0x7f2   : > { %8536 = vmatmul.mubr.bf16.gmra.mrb[244].mxu1 %v22908_v11  ;;  %8755 = vmatmul.mubr.bf16.gmra.mrb[100].mxu0 %v22908_v11 }
 0x7f3   : > { %8578 = vmatprep.mubr.bf16.mxu1 %v22883_v10  ;;  %8797 = vmatprep.mubr.bf16.mxu0 %v22883_v10 }
 0x7fa   : > { %8579 = vmatmul.mubr.bf16.vlgmr.msra.gmra.mrb[232].mxu1 %v22881_v2  ;;  %8798 = vmatmul.mubr.bf16.vlgmr.msra.gmra.mrb[88].mxu0 %v22881_v2 }
 0x7fb   : > { %8620 = vmatpush1.bf16.msra.mxu1 %v17754_v58  ;;  %8839 = vmatpush1.bf16.msra.mxu0 %v17757_v51  ;;  %v17808_v58 = vld [vmem:[#allocation8 + $0x7b0] ss:$24 sps:$4 sm:$0xff]  }
 0x7fc   : > { %8588 = vmatprep.mubr.bf16.mxu1 %v22887_v50  ;;  %8807 = vmatprep.mubr.bf16.mxu0 %v22887_v50  ;;  %v17811_v51 = vld [vmem:[#allocation8 + $0x7b8] ss:$24 sps:$4 sm:$0xff]  }
 0x7fd   : > { %8621 = vmatprep.subr.bf16.mxu1 %v17762_v52  ;;  %8840 = vmatprep.subr.bf16.mxu0 %v17765_v43  ;;  %v17816_v52 = vld [vmem:[#allocation8 + $0x7e4] ss:$24 sps:$4 sm:$0xff]  }
 0x7fe   : > { %v17819_v43 = vld [vmem:[#allocation8 + $0x7ec] ss:$24 sps:$4 sm:$0xff]  }
 0x7ff   : > { %8622 = vmatpush1.bf16.msra.mxu1 %v17760_v44  ;;  %8841 = vmatpush1.bf16.msra.mxu0 %v17763_v18  ;;  %v17814_v44 = vld [vmem:[#allocation8 + $0x7e0] ss:$24 sps:$4 sm:$0xff]  }
 0x800   : > { %8623 = vmatprep.subr.bf16.mxu1 %v17768_v48  ;;  %8842 = vmatprep.subr.bf16.mxu0 %v17771_v62  ;;  %v17817_v18 = vld [vmem:[#allocation8 + $0x7e8] ss:$24 sps:$4 sm:$0xff]   ;;  %v17822_v48 = vld [vmem:[#allocation8 + $0x814] ss:$24 sps:$4 sm:$0xff]  }
 0x801   : > { %v17825_v62 = vld [vmem:[#allocation8 + $0x81c] ss:$24 sps:$4 sm:$0xff]  }
 0x802   : > { %8589 = vmatmul.mubr.bf16.gmra.mrb[236].mxu1 %v22885_v6  ;;  %8808 = vmatmul.mubr.bf16.gmra.mrb[92].mxu0 %v22885_v6 }
 0x803   : > { %v6617_v25 = vpop.f32.mrb[72].mxu0  ;;  %8624 = vmatpush1.bf16.msra.mxu1 %v17766_v41  ;;  %8843 = vmatpush1.bf16.msra.mxu0 %v17769_v27  ;;  %v17820_v27 = vld [vmem:[#allocation8 + $0x810] ss:$24 sps:$4 sm:$0xff]  }
 0x804   : > { %v6619_v21 = vpop.f32.mrb[73].mxu0  ;;  %8625 = vmatprep.subr.bf16.mxu1 %v17774_v0  ;;  %8844 = vmatprep.subr.bf16.mxu0 %v17777_v35  ;;  %v17823_v0 = vld [vmem:[#allocation8 + $0x818] ss:$24 sps:$4 sm:$0xff]  }
 0x805   : > { %v6621_v45 = vpop.f32.mrb[74].mxu0 }
 0x806   : > { %v22924_v47 = vpack.c.bf16 %v6621_v45, %v6617_v25  ;;  %v6623_v17 = vpop.f32.mrb[75].mxu0  ;;  %v17828_v25 = vld [vmem:[#allocation8 + $0x844] ss:$24 sps:$4 sm:$0xff]   ;;  %v17826_v45 = vld [vmem:[#allocation8 + $0x840] ss:$24 sps:$4 sm:$0xff]  }
 0x807   : > { %v22926_v16 = vpack.c.bf16 %v6623_v17, %v6619_v21  ;;  %8626 = vmatpush1.bf16.msra.mxu1 %v17772_v56  ;;  %8845 = vmatpush1.bf16.msra.mxu0 %v17775_v33  ;;  %v17831_v56 = vld [vmem:[#allocation8 + $0x84c] ss:$24 sps:$4 sm:$0xff]   ;;  %v17829_v17 = vld [vmem:[#allocation8 + $0x848] ss:$24 sps:$4 sm:$0xff]  }
 0x808   : > { %8627 = vmatprep.subr.bf16.mxu1 %v17780_v60  ;;  %8846 = vmatprep.subr.bf16.mxu0 %v17783_v8 }
 0x809   : > { %8598 = vmatprep.mubr.bf16.mxu1 %v22926_v16  ;;  %8817 = vmatprep.mubr.bf16.mxu0 %v22926_v16 }
 0x80a   : > { %8599 = vmatmul.mubr.bf16.gmra.mrb[240].mxu1 %v22924_v47  ;;  %8818 = vmatmul.mubr.bf16.gmra.mrb[96].mxu0 %v22924_v47 }
 0x80b   : > { %v6627_v40 = vpop.f32.mrb[76].mxu0  ;;  %8628 = vmatpush1.bf16.msra.mxu1 %v17778_v59  ;;  %8847 = vmatpush1.bf16.msra.mxu0 %v17781_v7  ;;  %v17834_v59 = vld [vmem:[#allocation8 + $0x874] ss:$24 sps:$4 sm:$0xff]  }
 0x80c   : > { %v6629_v37 = vpop.f32.mrb[77].mxu0  ;;  %8629 = vmatprep.subr.bf16.mxu1 %v17786_v61  ;;  %8848 = vmatprep.subr.bf16.mxu0 %v17789_v9  ;;  %v17837_v7 = vld [vmem:[#allocation8 + $0x87c] ss:$24 sps:$4 sm:$0xff]   ;;  %v17832_v9 = vld [vmem:[#allocation8 + $0x870] ss:$24 sps:$4 sm:$0xff]  }
 0x80d   : > { %v6631_v15 = vpop.f32.mrb[78].mxu0 }
 0x80e   : > { %v22932_v4 = vpack.c.bf16 %v6631_v15, %v6627_v40  ;;  %v6633_v31 = vpop.f32.mrb[79].mxu0  ;;  %v17835_v40 = vld [vmem:[#allocation8 + $0x878] ss:$24 sps:$4 sm:$0xff]  }
 0x80f   : > { %v22934_v55 = vpack.c.bf16 %v6633_v31, %v6629_v37  ;;  %8630 = vmatpush1.bf16.msra.mxu1 %v17784_v28  ;;  %8849 = vmatpush1.bf16.msra.mxu0 %v17787_v29  ;;  %v17840_v29 = vld [vmem:[#allocation8 + $0x8a4] ss:$24 sps:$4 sm:$0xff]  }
 0x810   : > { %8631 = vmatprep.subr.bf16.mxu1 %v17792_v23  ;;  %8850 = vmatprep.subr.bf16.mxu0 %v17795_v46  ;;  %v17843_v37 = vld [vmem:[#allocation8 + $0x8ac] ss:$24 sps:$4 sm:$0xff]  }
 0x811   : > { %8608 = vmatprep.mubr.bf16.mxu1 %v22934_v55  ;;  %8827 = vmatprep.mubr.bf16.mxu0 %v22934_v55 }
 0x812   : > { %8609 = vmatmul.mubr.bf16.gmra.mrb[244].mxu1 %v22932_v4  ;;  %8828 = vmatmul.mubr.bf16.gmra.mrb[100].mxu0 %v22932_v4 }
 0x813   : > { %8632 = vmatpush1.bf16.msra.mxu1 %v17790_v30  ;;  %8851 = vmatpush1.bf16.msra.mxu0 %v17793_v20  ;;  %v17838_v30 = vld [vmem:[#allocation8 + $0x8a0] ss:$24 sps:$4 sm:$0xff]  }
 0x814   : > { %8651 = vmatprep.mubr.bf16.mxu1 %v22891_v54  ;;  %8870 = vmatprep.mubr.bf16.mxu0 %v22891_v54  ;;  %v17841_v20 = vld [vmem:[#allocation8 + $0x8a8] ss:$24 sps:$4 sm:$0xff]  }
 0x815   : > { %8633 = vmatprep.subr.bf16.mxu1 %v17798_v32  ;;  %8852 = vmatprep.subr.bf16.mxu0 %v17801_v19  ;;  %v17846_v32 = vld [vmem:[#allocation8 + $0x8d4] ss:$24 sps:$4 sm:$0xff]  }
 0x816   : > { %v17849_v19 = vld [vmem:[#allocation8 + $0x8dc] ss:$24 sps:$4 sm:$0xff]  }
 0x817   : > { %8634 = vmatpush1.bf16.msra.mxu1 %v17796_v38  ;;  %8853 = vmatpush1.bf16.msra.mxu0 %v17799_v5  ;;  %v17844_v38 = vld [vmem:[#allocation8 + $0x8d0] ss:$24 sps:$4 sm:$0xff]  }
 0x818   : > { %8635 = vmatprep.subr.bf16.mxu1 %v17804_v3  ;;  %8854 = vmatprep.subr.bf16.mxu0 %v17807_v12  ;;  %v17847_v5 = vld [vmem:[#allocation8 + $0x8d8] ss:$24 sps:$4 sm:$0xff]   ;;  %v17852_v3 = vld [vmem:[#allocation8 + $0x14] ss:$24 sps:$4 sm:$0xff]  }
 0x819   : > { %v17850_v12 = vld [vmem:[#allocation8 + $0x10] ss:$24 sps:$4 sm:$0xff]  }
 0x81b   : > { %8636 = vmatpush1.bf16.msra.mxu1 %v17802_v42  ;;  %8855 = vmatpush1.bf16.msra.mxu0 %v17805_v34  ;;  %v17855_v42 = vld [vmem:[#allocation8 + $0x44] ss:$24 sps:$4 sm:$0xff]   ;;  %v17853_v34 = vld [vmem:[#allocation8 + $0x40] ss:$24 sps:$4 sm:$0xff]  }
 0x81c   : > { %8637 = vmatprep.subr.bf16.mxu1 %v17810_v13  ;;  %8856 = vmatprep.subr.bf16.mxu0 %v17813_v36  ;;  %v17858_v13 = vld [vmem:[#allocation8 + $0x74] ss:$24 sps:$4 sm:$0xff]   ;;  %v17856_v36 = vld [vmem:[#allocation8 + $0x70] ss:$24 sps:$4 sm:$0xff]  }
 0x81f   : > { %8638 = vmatpush1.bf16.msra.mxu1 %v17808_v58  ;;  %8857 = vmatpush1.bf16.msra.mxu0 %v17811_v51  ;;  %v17861_v58 = vld [vmem:[#allocation8 + $0xa4] ss:$24 sps:$4 sm:$0xff]   ;;  %v17859_v51 = vld [vmem:[#allocation8 + $0xa0] ss:$24 sps:$4 sm:$0xff]  }
 0x820   : > { %8639 = vmatprep.subr.bf16.mxu1 %v17816_v52  ;;  %8858 = vmatprep.subr.bf16.mxu0 %v17819_v43  ;;  %v17864_v52 = vld [vmem:[#allocation8 + $0xd4] ss:$24 sps:$4 sm:$0xff]   ;;  %v17862_v43 = vld [vmem:[#allocation8 + $0xd0] ss:$24 sps:$4 sm:$0xff]  }
 0x823   : > { %v6670_v41 = vpop.f32.mrb[80].mxu0  ;;  %8640 = vmatpush1.bf16.msra.mxu1 %v17814_v44  ;;  %8859 = vmatpush1.bf16.msra.mxu0 %v17817_v18  ;;  %v17867_v44 = vld [vmem:[#allocation8 + $0x104] ss:$24 sps:$4 sm:$0xff]   ;;  %v17865_v18 = vld [vmem:[#allocation8 + $0x100] ss:$24 sps:$4 sm:$0xff]  }
 0x824   : > { %v6672_v35 = vpop.f32.mrb[81].mxu0  ;;  %8641 = vmatprep.subr.bf16.mxu1 %v17822_v48  ;;  %8860 = vmatprep.subr.bf16.mxu0 %v17825_v62  ;;  %v17870_v48 = vld [vmem:[#allocation8 + $0x134] ss:$24 sps:$4 sm:$0xff]   ;;  %v17868_v62 = vld [vmem:[#allocation8 + $0x130] ss:$24 sps:$4 sm:$0xff]  }
 0x825   : > { %v6674_v33 = vpop.f32.mrb[82].mxu0 }
 0x826   : > { %v22942_v21 = vpack.c.bf16 %v6674_v33, %v6670_v41  ;;  %v6676_v60 = vpop.f32.mrb[83].mxu0  ;;  %v17873_v41 = vld [vmem:[#allocation8 + $0x164] ss:$24 sps:$4 sm:$0xff]  }
 0x827   : > { %v22944_v8 = vpack.c.bf16 %v6676_v60, %v6672_v35  ;;  %8642 = vmatpush1.bf16.msra.mxu1 %v17820_v27  ;;  %8861 = vmatpush1.bf16.msra.mxu0 %v17823_v0  ;;  %v17871_v27 = vld [vmem:[#allocation8 + $0x160] ss:$24 sps:$4 sm:$0xff]   ;;  %v17876_v0 = vld [vmem:[#allocation8 + $0x194] ss:$24 sps:$4 sm:$0xff]   ;;  %v17972_v35 = vld [vmem:[#allocation10 + $0x4] ss:$24 sps:$4 sm:$0xff]  }
 0x828   : > { %8643 = vmatprep.subr.bf16.mxu1 %v17828_v25  ;;  %8862 = vmatprep.subr.bf16.mxu0 %v17831_v56  ;;  %v17970_v25 = vld [vmem:[#allocation10] ss:$24 sps:$4 sm:$0xff]   ;;  %v17874_v56 = vld [vmem:[#allocation8 + $0x190] ss:$24 sps:$4 sm:$0xff]   ;;  %v17879_v33 = vld [vmem:[#allocation8 + $0x1c4] ss:$24 sps:$4 sm:$0xff]  }
 0x829   : > { %v17978_v60 = vld [vmem:[#allocation10 + $0x34] ss:$24 sps:$4 sm:$0xff]  }
 0x82b   : > { %v6680_v61 = vpop.f32.mrb[84].mxu0  ;;  %8644 = vmatpush1.bf16.msra.mxu1 %v17826_v45  ;;  %8863 = vmatpush1.bf16.msra.mxu0 %v17829_v17  ;;  %v17976_v45 = vld [vmem:[#allocation10 + $0x30] ss:$24 sps:$4 sm:$0xff]   ;;  %v17877_v17 = vld [vmem:[#allocation8 + $0x1c0] ss:$24 sps:$4 sm:$0xff]  }
 0x82c   : > { %v6682_v28 = vpop.f32.mrb[85].mxu0  ;;  %8645 = vmatprep.subr.bf16.mxu1 %v17834_v59  ;;  %8864 = vmatprep.subr.bf16.mxu0 %v17837_v7  ;;  %v17882_v59 = vld [vmem:[#allocation8 + $0x1f4] ss:$24 sps:$4 sm:$0xff]   ;;  %v17982_v7 = vld [vmem:[#allocation10 + $0x60] ss:$24 sps:$4 sm:$0xff]  }
 0x82d   : > { %v6684_v23 = vpop.f32.mrb[86].mxu0 }
 0x82e   : > { %v22946_v46 = vpack.c.bf16 %v6684_v23, %v6680_v61  ;;  %v6686_v15 = vpop.f32.mrb[87].mxu0  ;;  %v17880_v61 = vld [vmem:[#allocation8 + $0x1f0] ss:$24 sps:$4 sm:$0xff]   ;;  %v17996_v23 = vld [vmem:[#allocation10 + $0xc4] ss:$24 sps:$4 sm:$0xff]  }
 0x82f   : > { %v22948_v31 = vpack.c.bf16 %v6686_v15, %v6682_v28  ;;  %8646 = vmatpush1.bf16.msra.mxu1 %v17832_v9  ;;  %8865 = vmatpush1.bf16.msra.mxu0 %v17835_v40  ;;  %v17885_v9 = vld [vmem:[#allocation8 + $0x224] ss:$24 sps:$4 sm:$0xff]   ;;  %v17990_v40 = vld [vmem:[#allocation10 + $0x94] ss:$24 sps:$4 sm:$0xff]   ;;  %v17988_v28 = vld [vmem:[#allocation10 + $0x90] ss:$24 sps:$4 sm:$0xff]  }
 0x830   : > { %8647 = vmatprep.subr.bf16.mxu1 %v17840_v29  ;;  %8866 = vmatprep.subr.bf16.mxu0 %v17843_v37  ;;  %v17883_v29 = vld [vmem:[#allocation8 + $0x220] ss:$24 sps:$4 sm:$0xff]   ;;  %v17888_v37 = vld [vmem:[#allocation8 + $0x254] ss:$24 sps:$4 sm:$0xff]  }
 0x831   : > { %v17994_v15 = vld [vmem:[#allocation10 + $0xc0] ss:$24 sps:$4 sm:$0xff]  }
 0x833   : > { %8648 = vmatpush1.bf16.msra.mxu1 %v17838_v30  ;;  %8867 = vmatpush1.bf16.msra.mxu0 %v17841_v20  ;;  %v17886_v30 = vld [vmem:[#allocation8 + $0x250] ss:$24 sps:$4 sm:$0xff]   ;;  %v17891_v20 = vld [vmem:[#allocation8 + $0x284] ss:$24 sps:$4 sm:$0xff]  }
 0x834   : > { %8649 = vmatprep.subr.bf16.mxu1 %v17846_v32  ;;  %8868 = vmatprep.subr.bf16.mxu0 %v17849_v19  ;;  %v18002_v32 = vld [vmem:[#allocation10 + $0xf4] ss:$24 sps:$4 sm:$0xff]   ;;  %v18000_v19 = vld [vmem:[#allocation10 + $0xf0] ss:$24 sps:$4 sm:$0xff]  }
 0x837   : > { %8650 = vmatpush1.bf16.msra.mxu1 %v17844_v38  ;;  %8869 = vmatpush1.bf16.msra.mxu0 %v17847_v5  ;;  %v17889_v38 = vld [vmem:[#allocation8 + $0x280] ss:$24 sps:$4 sm:$0xff]   ;;  %v17894_v5 = vld [vmem:[#allocation8 + $0x2b4] ss:$24 sps:$4 sm:$0xff]  }
 0x838   : > { %8911 = vmatprep.subr.bf16.mxu1 %v17852_v3  ;;  %10962 = vmatprep.subr.bf16.mxu0 %v17972_v35  ;;  %v18008_v3 = vld [vmem:[#allocation10 + $0x124] ss:$24 sps:$4 sm:$0xff]   ;;  %v18030_v35 = vld [vmem:[#allocation10 + $0x1e0] ss:$24 sps:$4 sm:$0xff]  }
 0x83a   : > { %8652 = vmatmul.mubr.bf16.vlgmr.msra.gmra.mrb[232].mxu1 %v22889_v63  ;;  %8871 = vmatmul.mubr.bf16.vlgmr.msra.gmra.mrb[88].mxu0 %v22889_v63 }
 0x83b   : > { %8661 = vmatprep.mubr.bf16.mxu1 %v22895_v53  ;;  %8880 = vmatprep.mubr.bf16.mxu0 %v22895_v53 }
 0x83c   : > { %8912 = vmatpush1.bf16.msra.mxu1 %v17850_v12  ;;  %10963 = vmatpush1.bf16.msra.mxu0 %v17970_v25  ;;  %v18006_v12 = vld [vmem:[#allocation10 + $0x120] ss:$24 sps:$4 sm:$0xff]   ;;  %v17904_v25 = vld [vmem:[#allocation8 + $0x370] ss:$24 sps:$4 sm:$0xff]  }
 0x83d   : > { %8913 = vmatprep.subr.bf16.mxu1 %v17855_v42  ;;  %10964 = vmatprep.subr.bf16.mxu0 %v17978_v60  ;;  %v17892_v42 = vld [vmem:[#allocation8 + $0x2b0] ss:$24 sps:$4 sm:$0xff]   ;;  %v17912_v60 = vld [vmem:[#allocation8 + $0x3d4] ss:$24 sps:$4 sm:$0xff]  }
 0x840   : > { %8914 = vmatpush1.bf16.msra.mxu1 %v17853_v34  ;;  %10965 = vmatpush1.bf16.msra.mxu0 %v17976_v45  ;;  %v17897_v34 = vld [vmem:[#allocation8 + $0x2e4] ss:$24 sps:$4 sm:$0xff]  }
 0x841   : > { %8915 = vmatprep.subr.bf16.mxu1 %v17858_v13  ;;  %v18014_v13 = vld [vmem:[#allocation10 + $0x154] ss:$24 sps:$4 sm:$0xff]   ;;  %v18044_v45 = vld [vmem:[#allocation10 + $0x244] ss:$24 sps:$4 sm:$0xff]  }
 0x842   : > { %8662 = vmatmul.mubr.bf16.gmra.mrb[236].mxu1 %v22893_v39  ;;  %8881 = vmatmul.mubr.bf16.gmra.mrb[92].mxu0 %v22893_v39 }
 0x843   : > { %8671 = vmatprep.mubr.bf16.mxu1 %v22944_v8  ;;  %8890 = vmatprep.mubr.bf16.mxu0 %v22944_v8 }
 0x844   : > { %8916 = vmatpush1.bf16.msra.mxu1 %v17856_v36  ;;  %v18012_v36 = vld [vmem:[#allocation10 + $0x150] ss:$24 sps:$4 sm:$0xff]  }
 0x845   : > { %8917 = vmatprep.subr.bf16.mxu1 %v17861_v58  ;;  %v17895_v58 = vld [vmem:[#allocation8 + $0x2e0] ss:$24 sps:$4 sm:$0xff]  }
 0x848   : > { %8918 = vmatpush1.bf16.msra.mxu1 %v17859_v51  ;;  %v17900_v51 = vld [vmem:[#allocation8 + $0x314] ss:$24 sps:$4 sm:$0xff]  }
 0x849   : > { %8919 = vmatprep.subr.bf16.mxu1 %v17864_v52  ;;  %v18020_v52 = vld [vmem:[#allocation10 + $0x184] ss:$24 sps:$4 sm:$0xff]  }
 0x84a   : > { %8672 = vmatmul.mubr.bf16.gmra.mrb[240].mxu1 %v22942_v21  ;;  %8891 = vmatmul.mubr.bf16.gmra.mrb[96].mxu0 %v22942_v21 }
 0x84b   : > { %8681 = vmatprep.mubr.bf16.mxu1 %v22948_v31  ;;  %8900 = vmatprep.mubr.bf16.mxu0 %v22948_v31 }
 0x84c   : > { %8920 = vmatpush1.bf16.msra.mxu1 %v17862_v43  ;;  %v18018_v43 = vld [vmem:[#allocation10 + $0x180] ss:$24 sps:$4 sm:$0xff]  }
 0x84d   : > { %8921 = vmatprep.subr.bf16.mxu1 %v17867_v44  ;;  %v17898_v44 = vld [vmem:[#allocation8 + $0x310] ss:$24 sps:$4 sm:$0xff]  }
 0x850   : > { %8922 = vmatpush1.bf16.msra.mxu1 %v17865_v18  ;;  %v17903_v18 = vld [vmem:[#allocation8 + $0x344] ss:$24 sps:$4 sm:$0xff]  }
 0x851   : > { %8923 = vmatprep.subr.bf16.mxu1 %v17870_v48  ;;  %v18026_v48 = vld [vmem:[#allocation10 + $0x1b4] ss:$24 sps:$4 sm:$0xff]  }
 0x852   : > { %8682 = vmatmul.mubr.bf16.gmra.mrb[244].mxu1 %v22946_v46  ;;  %8901 = vmatmul.mubr.bf16.gmra.mrb[100].mxu0 %v22946_v46 }
 0x853   : > { %8943 = vmatprep.mubr.bf16.mxu1 %v22855_v1  ;;  %v17984_v1 = vld [vmem:[#allocation10 + $0x64] ss:$24 sps:$4 sm:$0xff]  }
 0x854   : > { %8924 = vmatpush1.bf16.msra.mxu1 %v17868_v62  ;;  %10966 = vmatprep.subr.bf16.mxu0 %v17984_v1  ;;  %v18024_v62 = vld [vmem:[#allocation10 + $0x1b0] ss:$24 sps:$4 sm:$0xff]   ;;  %v17915_v1 = vld [vmem:[#allocation8 + $0x404] ss:$24 sps:$4 sm:$0xff]  }
 0x855   : > { %8925 = vmatprep.subr.bf16.mxu1 %v17873_v41  ;;  %10967 = vmatpush1.bf16.msra.mxu0 %v17982_v7  ;;  %v17901_v41 = vld [vmem:[#allocation8 + $0x340] ss:$24 sps:$4 sm:$0xff]   ;;  %v18050_v7 = vld [vmem:[#allocation10 + $0x274] ss:$24 sps:$4 sm:$0xff]  }
 0x856   : > { %10968 = vmatprep.subr.bf16.mxu0 %v17990_v40  ;;  %v18054_v40 = vld [vmem:[#allocation10 + $0x2a0] ss:$24 sps:$4 sm:$0xff]  }
 0x858   : > { %8926 = vmatpush1.bf16.msra.mxu1 %v17871_v27  ;;  %v17906_v27 = vld [vmem:[#allocation8 + $0x374] ss:$24 sps:$4 sm:$0xff]  }
 0x859   : > { %8927 = vmatprep.subr.bf16.mxu1 %v17876_v0  ;;  %10969 = vmatpush1.bf16.msra.mxu0 %v17988_v28  ;;  %v18032_v0 = vld [vmem:[#allocation10 + $0x1e4] ss:$24 sps:$4 sm:$0xff]   ;;  %v17916_v28 = vld [vmem:[#allocation8 + $0x430] ss:$24 sps:$4 sm:$0xff]  }
 0x85a   : > { %10970 = vmatprep.subr.bf16.mxu0 %v17996_v23  ;;  %v17924_v23 = vld [vmem:[#allocation8 + $0x494] ss:$24 sps:$4 sm:$0xff]  }
 0x85c   : > { %8928 = vmatpush1.bf16.msra.mxu1 %v17874_v56  ;;  %v17909_v56 = vld [vmem:[#allocation8 + $0x3a4] ss:$24 sps:$4 sm:$0xff]  }
 0x85d   : > { %8929 = vmatprep.subr.bf16.mxu1 %v17879_v33  ;;  %10971 = vmatpush1.bf16.msra.mxu0 %v17994_v15  ;;  %v18038_v33 = vld [vmem:[#allocation10 + $0x214] ss:$24 sps:$4 sm:$0xff]   ;;  %v18068_v15 = vld [vmem:[#allocation10 + $0x304] ss:$24 sps:$4 sm:$0xff]  }
 0x85e   : > { %10972 = vmatprep.subr.bf16.mxu0 %v18002_v32  ;;  %v17925_v32 = vld [vmem:[#allocation8 + $0x4c0] ss:$24 sps:$4 sm:$0xff]  }
 0x860   : > { %8930 = vmatpush1.bf16.msra.mxu1 %v17877_v17  ;;  %v18042_v17 = vld [vmem:[#allocation10 + $0x240] ss:$24 sps:$4 sm:$0xff]  }
 0x861   : > { %8931 = vmatprep.subr.bf16.mxu1 %v17882_v59  ;;  %10973 = vmatpush1.bf16.msra.mxu0 %v18000_v19  ;;  %v17910_v59 = vld [vmem:[#allocation8 + $0x3d0] ss:$24 sps:$4 sm:$0xff]   ;;  %v17930_v19 = vld [vmem:[#allocation8 + $0x4f4] ss:$24 sps:$4 sm:$0xff]  }
 0x862   : > { %10974 = vmatprep.subr.bf16.mxu0 %v18008_v3  ;;  %v17934_v3 = vld [vmem:[#allocation8 + $0x550] ss:$24 sps:$4 sm:$0xff]  }
 0x864   : > { %8932 = vmatpush1.bf16.msra.mxu1 %v17880_v61  ;;  %v17918_v61 = vld [vmem:[#allocation8 + $0x434] ss:$24 sps:$4 sm:$0xff]  }
 0x865   : > { %8933 = vmatprep.subr.bf16.mxu1 %v17885_v9  ;;  %10975 = vmatpush1.bf16.msra.mxu0 %v18006_v12  ;;  %v18056_v9 = vld [vmem:[#allocation10 + $0x2a4] ss:$24 sps:$4 sm:$0xff]  }
 0x866   : > { %10976 = vmatprep.subr.bf16.mxu0 %v18014_v13  ;;  %v17939_v12 = vld [vmem:[#allocation8 + $0x584] ss:$24 sps:$4 sm:$0xff]   ;;  %v17940_v13 = vld [vmem:[#allocation8 + $0x5b0] ss:$24 sps:$4 sm:$0xff]  }
 0x868   : > { %8934 = vmatpush1.bf16.msra.mxu1 %v17883_v29  ;;  %v17921_v29 = vld [vmem:[#allocation8 + $0x464] ss:$24 sps:$4 sm:$0xff]  }
 0x869   : > { %8935 = vmatprep.subr.bf16.mxu1 %v17888_v37  ;;  %10977 = vmatpush1.bf16.msra.mxu0 %v18012_v36  ;;  %v18062_v37 = vld [vmem:[#allocation10 + $0x2d4] ss:$24 sps:$4 sm:$0xff]   ;;  %v17945_v36 = vld [vmem:[#allocation8 + $0x5e4] ss:$24 sps:$4 sm:$0xff]  }
 0x86a   : > { %10978 = vmatprep.subr.bf16.mxu0 %v18020_v52  ;;  %v17946_v52 = vld [vmem:[#allocation8 + $0x610] ss:$24 sps:$4 sm:$0xff]  }
 0x86c   : > { %8936 = vmatpush1.bf16.msra.mxu1 %v17886_v30  ;;  %v17922_v30 = vld [vmem:[#allocation8 + $0x490] ss:$24 sps:$4 sm:$0xff]  }
 0x86d   : > { %8937 = vmatprep.subr.bf16.mxu1 %v17891_v20  ;;  %10979 = vmatpush1.bf16.msra.mxu0 %v18018_v43  ;;  %v17927_v20 = vld [vmem:[#allocation8 + $0x4c4] ss:$24 sps:$4 sm:$0xff]  }
 0x86e   : > { %10980 = vmatprep.subr.bf16.mxu0 %v18026_v48  ;;  %v17951_v43 = vld [vmem:[#allocation8 + $0x644] ss:$24 sps:$4 sm:$0xff]   ;;  %v17952_v48 = vld [vmem:[#allocation8 + $0x670] ss:$24 sps:$4 sm:$0xff]  }
 0x870   : > { %8938 = vmatpush1.bf16.msra.mxu1 %v17889_v38  ;;  %v17933_v38 = vld [vmem:[#allocation8 + $0x524] ss:$24 sps:$4 sm:$0xff]  }
 0x871   : > { %8939 = vmatprep.subr.bf16.mxu1 %v17894_v5  ;;  %10981 = vmatpush1.bf16.msra.mxu0 %v18024_v62  ;;  %v17936_v5 = vld [vmem:[#allocation8 + $0x554] ss:$24 sps:$4 sm:$0xff]   ;;  %v17957_v62 = vld [vmem:[#allocation8 + $0x6a4] ss:$24 sps:$4 sm:$0xff]  }
 0x872   : > { %10982 = vmatprep.subr.bf16.mxu0 %v18032_v0  ;;  %v17961_v0 = vld [vmem:[#allocation8 + $0x700] ss:$24 sps:$4 sm:$0xff]  }
 0x874   : > { %8940 = vmatpush1.bf16.msra.mxu1 %v17892_v42  ;;  %v17937_v42 = vld [vmem:[#allocation8 + $0x580] ss:$24 sps:$4 sm:$0xff]  }
 0x875   : > { %8941 = vmatprep.subr.bf16.mxu1 %v17897_v34  ;;  %10983 = vmatpush1.bf16.msra.mxu0 %v18030_v35  ;;  %v17942_v34 = vld [vmem:[#allocation8 + $0x5b4] ss:$24 sps:$4 sm:$0xff]  }
 0x876   : > { %10984 = vmatprep.subr.bf16.mxu0 %v18038_v33  ;;  %v17966_v35 = vld [vmem:[#allocation8 + $0x734] ss:$24 sps:$4 sm:$0xff]   ;;  %v17979_v33 = vld [vmem:[#allocation8 + $0x7c0] ss:$24 sps:$4 sm:$0xff]  }
 0x878   : > { %8942 = vmatpush1.bf16.msra.mxu1 %v17895_v58  ;;  %v17943_v58 = vld [vmem:[#allocation8 + $0x5e0] ss:$24 sps:$4 sm:$0xff]  }
 0x879   : > { %8984 = vmatprep.subr.bf16.mxu1 %v17900_v51  ;;  %v17948_v51 = vld [vmem:[#allocation8 + $0x614] ss:$24 sps:$4 sm:$0xff]  }
 0x87b   : > { %8944 = vmatmul.mubr.bf16.vlgmr.msra.gmra.mrb[248].mxu1 %v22850_v22  ;;  %v18036_v22 = vld [vmem:[#allocation10 + $0x210] ss:$24 sps:$4 sm:$0xff]  }
 0x87c   : > { %8953 = vmatprep.mubr.bf16.mxu1 %v22875_v24  ;;  %8985 = vmatpush1.bf16.msra.mxu1 %v17898_v44  ;;  %v17907_v24 = vld [vmem:[#allocation8 + $0x3a0] ss:$24 sps:$4 sm:$0xff]  }
 0x87d   : > { %8986 = vmatprep.subr.bf16.mxu1 %v17903_v18  ;;  %10985 = vmatpush1.bf16.msra.mxu0 %v18036_v22  ;;  %v17949_v44 = vld [vmem:[#allocation8 + $0x640] ss:$24 sps:$4 sm:$0xff]   ;;  %v17954_v18 = vld [vmem:[#allocation8 + $0x674] ss:$24 sps:$4 sm:$0xff]  }
 0x87e   : > { %10986 = vmatprep.subr.bf16.mxu0 %v18044_v45  ;;  %v17987_v22 = vld [vmem:[#allocation8 + $0x7f4] ss:$24 sps:$4 sm:$0xff]  }
 0x87f   : > { %v17999_v45 = vld [vmem:[#allocation8 + $0x854] ss:$24 sps:$4 sm:$0xff]  }
 0x880   : > { %8987 = vmatpush1.bf16.msra.mxu1 %v17901_v41  ;;  %v17955_v41 = vld [vmem:[#allocation8 + $0x6a0] ss:$24 sps:$4 sm:$0xff]  }
 0x881   : > { %8988 = vmatprep.subr.bf16.mxu1 %v17906_v27  ;;  %10987 = vmatpush1.bf16.msra.mxu0 %v18042_v17  ;;  %v17960_v27 = vld [vmem:[#allocation8 + $0x6d4] ss:$24 sps:$4 sm:$0xff]   ;;  %v18005_v17 = vld [vmem:[#allocation8 + $0x884] ss:$24 sps:$4 sm:$0xff]  }
 0x882   : > { %10988 = vmatprep.subr.bf16.mxu0 %v18050_v7  ;;  %v18009_v7 = vld [vmem:[#allocation8 + $0x8b0] ss:$24 sps:$4 sm:$0xff]  }
 0x883   : > { %8954 = vmatmul.mubr.bf16.gmra.mrb[252].mxu1 %v22873_v14  ;;  %v18048_v14 = vld [vmem:[#allocation10 + $0x270] ss:$24 sps:$4 sm:$0xff]  }
 0x884   : > { %8963 = vmatprep.mubr.bf16.mxu1 %v22902_v26  ;;  %8989 = vmatpush1.bf16.msra.mxu1 %v17904_v25  ;;  %v17913_v26 = vld [vmem:[#allocation8 + $0x400] ss:$24 sps:$4 sm:$0xff]  }
 0x885   : > { %8990 = vmatprep.subr.bf16.mxu1 %v17909_v56  ;;  %10989 = vmatpush1.bf16.msra.mxu0 %v18048_v14  ;;  %v17967_v25 = vld [vmem:[#allocation8 + $0x760] ss:$24 sps:$4 sm:$0xff]   ;;  %v17975_v56 = vld [vmem:[#allocation8 + $0x794] ss:$24 sps:$4 sm:$0xff]   ;;  %v18017_v14 = vld [vmem:[#allocation8 + $0x8e4] ss:$24 sps:$4 sm:$0xff]  }
 0x886   : > { %10990 = vmatprep.subr.bf16.mxu0 %v18056_v9  ;;  %v18021_v9 = vld [vmem:[#allocation10 + $0x8] ss:$24 sps:$4 sm:$0xff]  }
 0x888   : > { %8991 = vmatpush1.bf16.msra.mxu1 %v17907_v24  ;;  %v17985_v24 = vld [vmem:[#allocation8 + $0x7f0] ss:$24 sps:$4 sm:$0xff]  }
 0x889   : > { %8992 = vmatprep.subr.bf16.mxu1 %v17912_v60  ;;  %10991 = vmatpush1.bf16.msra.mxu0 %v18054_v40  ;;  %v17993_v60 = vld [vmem:[#allocation8 + $0x824] ss:$24 sps:$4 sm:$0xff]  }
 0x88a   : > { %10992 = vmatprep.subr.bf16.mxu0 %v18062_v37  ;;  %v18029_v40 = vld [vmem:[#allocation10 + $0x3c] ss:$24 sps:$4 sm:$0xff]   ;;  %v18033_v37 = vld [vmem:[#allocation10 + $0x68] ss:$24 sps:$4 sm:$0xff]  }
 0x88b   : > { %8964 = vmatmul.mubr.bf16.gmra.mrb[0].mxu1 %v22900_v49  ;;  %v18060_v49 = vld [vmem:[#allocation10 + $0x2d0] ss:$24 sps:$4 sm:$0xff]  }
 0x88c   : > { %8973 = vmatprep.mubr.bf16.mxu1 %v22910_v57  ;;  %8993 = vmatpush1.bf16.msra.mxu1 %v17910_v59  ;;  %v17919_v57 = vld [vmem:[#allocation8 + $0x460] ss:$24 sps:$4 sm:$0xff]  }
 0x88d   : > { %8994 = vmatprep.subr.bf16.mxu1 %v17915_v1  ;;  %10993 = vmatpush1.bf16.msra.mxu0 %v18060_v49  ;;  %v18003_v59 = vld [vmem:[#allocation8 + $0x880] ss:$24 sps:$4 sm:$0xff]   ;;  %v18011_v1 = vld [vmem:[#allocation8 + $0x8b4] ss:$24 sps:$4 sm:$0xff]  }
 0x88e   : > { %11035 = vmatprep.subr.bf16.mxu0 %v18068_v15  ;;  %v18041_v49 = vld [vmem:[#allocation10 + $0x9c] ss:$24 sps:$4 sm:$0xff]  }
 0x88f   : > { %v18053_v15 = vld [vmem:[#allocation10 + $0xfc] ss:$24 sps:$4 sm:$0xff]  }
 0x890   : > { %8995 = vmatpush1.bf16.msra.mxu1 %v17913_v26  ;;  %v18015_v26 = vld [vmem:[#allocation8 + $0x8e0] ss:$24 sps:$4 sm:$0xff]  }
 0x891   : > { %8996 = vmatprep.subr.bf16.mxu1 %v17918_v61  ;;  %v18023_v61 = vld [vmem:[#allocation10 + $0xc] ss:$24 sps:$4 sm:$0xff]  }
 0x893   : > { %8974 = vmatmul.mubr.bf16.gmra.mrb[4].mxu1 %v22908_v11  ;;  %v17928_v11 = vld [vmem:[#allocation8 + $0x4f0] ss:$24 sps:$4 sm:$0xff]  }
 0x894   : > { %8997 = vmatpush1.bf16.msra.mxu1 %v17916_v28  ;;  %9016 = vmatprep.mubr.bf16.mxu1 %v22883_v10  ;;  %v17931_v10 = vld [vmem:[#allocation8 + $0x520] ss:$24 sps:$4 sm:$0xff]  }
 0x895   : > { %8998 = vmatprep.subr.bf16.mxu1 %v17921_v29  ;;  %v18027_v28 = vld [vmem:[#allocation10 + $0x38] ss:$24 sps:$4 sm:$0xff]   ;;  %v18035_v29 = vld [vmem:[#allocation10 + $0x6c] ss:$24 sps:$4 sm:$0xff]  }
 0x898   : > { %8999 = vmatpush1.bf16.msra.mxu1 %v17919_v57  ;;  %v18039_v57 = vld [vmem:[#allocation10 + $0x98] ss:$24 sps:$4 sm:$0xff]  }
 0x899   : > { %9000 = vmatprep.subr.bf16.mxu1 %v17924_v23  ;;  %v18047_v23 = vld [vmem:[#allocation10 + $0xcc] ss:$24 sps:$4 sm:$0xff]  }
 0x89c   : > { %9001 = vmatpush1.bf16.msra.mxu1 %v17922_v30  ;;  %v25244_v30 = vld [vmem:[#allocation21_spill] sm:$0xff] }
 0x89d   : > { %9002 = vmatprep.subr.bf16.mxu1 %v17927_v20  ;;  %v25245_v20 = vld [vmem:[#allocation20_spill] sm:$0xff] }
 0x8a0   : > { %9003 = vmatpush1.bf16.msra.mxu1 %v17925_v32 }
 0x8a1   : > { %9004 = vmatprep.subr.bf16.mxu1 %v17930_v19 }
 0x8a4   : > { %9005 = vmatpush1.bf16.msra.mxu1 %v17928_v11 }
 0x8a5   : > { %9006 = vmatprep.subr.bf16.mxu1 %v17933_v38  ;;  %v18059_v38 = vld [vmem:[#allocation10 + $0x12c] ss:$24 sps:$4 sm:$0xff]  }
 0x8a8   : > { %9007 = vmatpush1.bf16.msra.mxu1 %v17931_v10 }
 0x8a9   : > { %9008 = vmatprep.subr.bf16.mxu1 %v17936_v5 }
 0x8ac   : > { %9009 = vmatpush1.bf16.msra.mxu1 %v17934_v3 }
 0x8ad   : > { %9010 = vmatprep.subr.bf16.mxu1 %v17939_v12 }
 0x8b0   : > { %9011 = vmatpush1.bf16.msra.mxu1 %v17937_v42 }
 0x8b1   : > { %9012 = vmatprep.subr.bf16.mxu1 %v17942_v34 }
 0x8b4   : > { %9013 = vmatpush1.bf16.msra.mxu1 %v17940_v13  ;;  %v18057_v13 = vld [vmem:[#allocation10 + $0x128] ss:$24 sps:$4 sm:$0xff]  }
 0x8b5   : > { %9014 = vmatprep.subr.bf16.mxu1 %v17945_v36 }
 0x8b8   : > { %9015 = vmatpush1.bf16.msra.mxu1 %v17943_v58 }
 0x8b9   : > { %9057 = vmatprep.subr.bf16.mxu1 %v17948_v51  ;;  %v18065_v51 = vld [vmem:[#allocation10 + $0x15c] ss:$24 sps:$4 sm:$0xff]  }
 0x8bb   : > { %9017 = vmatmul.mubr.bf16.vlgmr.msra.gmra.mrb[248].mxu1 %v22881_v2  ;;  %v17958_v2 = vld [vmem:[#allocation8 + $0x6d0] ss:$24 sps:$4 sm:$0xff]  }
 0x8bc   : > { %9026 = vmatprep.mubr.bf16.mxu1 %v22887_v50  ;;  %9058 = vmatpush1.bf16.msra.mxu1 %v17946_v52  ;;  %v17963_v50 = vld [vmem:[#allocation8 + $0x704] ss:$24 sps:$4 sm:$0xff]   ;;  %v18986_v52 = vld [vmem:[%s19621_s13 + $0x8] sm:$0xff] }
 0x8bd   : > { %9059 = vmatprep.subr.bf16.mxu1 %v17951_v43 }
 0x8c0   : > { %9060 = vmatpush1.bf16.msra.mxu1 %v17949_v44  ;;  %v18987_v44 = vld [vmem:[%s19621_s13 + $0x30] sm:$0xff] }
 0x8c1   : > { %9061 = vmatprep.subr.bf16.mxu1 %v17954_v18 }
 0x8c3   : > { %9027 = vmatmul.mubr.bf16.gmra.mrb[252].mxu1 %v22885_v6  ;;  %v17964_v6 = vld [vmem:[#allocation8 + $0x730] ss:$24 sps:$4 sm:$0xff]  }
 0x8c4   : > { %9036 = vmatprep.mubr.bf16.mxu1 %v22926_v16  ;;  %9062 = vmatpush1.bf16.msra.mxu1 %v17952_v48  ;;  %v17969_v16 = vld [vmem:[#allocation8 + $0x764] ss:$24 sps:$4 sm:$0xff]  }
 0x8c5   : > { %9063 = vmatprep.subr.bf16.mxu1 %v17957_v62  ;;  %v18988_v48 = vld [vmem:[%s19621_s13 + $0x38] sm:$0xff] }
 0x8c8   : > { %9064 = vmatpush1.bf16.msra.mxu1 %v17955_v41  ;;  %v18063_v41 = vld [vmem:[#allocation10 + $0x158] ss:$24 sps:$4 sm:$0xff]  }
 0x8c9   : > { %9065 = vmatprep.subr.bf16.mxu1 %v17960_v27  ;;  %v18989_v27 = vld [vmem:[%s19621_s13] sm:$0xff] }
 0x8cb   : > { %9037 = vmatmul.mubr.bf16.gmra.mrb[0].mxu1 %v22924_v47  ;;  %v17973_v47 = vld [vmem:[#allocation8 + $0x790] ss:$24 sps:$4 sm:$0xff]  }
 0x8cc   : > { %9046 = vmatprep.mubr.bf16.mxu1 %v22934_v55  ;;  %9066 = vmatpush1.bf16.msra.mxu1 %v17958_v2  ;;  %v17981_v55 = vld [vmem:[#allocation8 + $0x7c4] ss:$24 sps:$4 sm:$0xff]  }
 0x8cd   : > { %9067 = vmatprep.subr.bf16.mxu1 %v17963_v50 }
 0x8d0   : > { %9068 = vmatpush1.bf16.msra.mxu1 %v17961_v0 }
 0x8d1   : > { %9069 = vmatprep.subr.bf16.mxu1 %v17966_v35 }
 0x8d3   : > { %9047 = vmatmul.mubr.bf16.gmra.mrb[4].mxu1 %v22932_v4  ;;  %v17991_v4 = vld [vmem:[#allocation8 + $0x820] ss:$24 sps:$4 sm:$0xff]  }
 0x8d4   : > { %9070 = vmatpush1.bf16.msra.mxu1 %v17964_v6  ;;  %9089 = vmatprep.mubr.bf16.mxu1 %v22891_v54  ;;  %v17997_v54 = vld [vmem:[#allocation8 + $0x850] ss:$24 sps:$4 sm:$0xff]  }
 0x8d5   : > { %9071 = vmatprep.subr.bf16.mxu1 %v17969_v16 }
 0x8d8   : > { %9072 = vmatpush1.bf16.msra.mxu1 %v17967_v25  ;;  %v18066_v25 = vld [vmem:[#allocation10 + $0x300] ss:$24 sps:$4 sm:$0xff]  }
 0x8d9   : > { %9073 = vmatprep.subr.bf16.mxu1 %v17975_v56  ;;  %v18071_v56 = vld [vmem:[#allocation10 + $0x18c] ss:$24 sps:$4 sm:$0xff]  }
 0x8dc   : > { %9074 = vmatpush1.bf16.msra.mxu1 %v17973_v47 }
 0x8dd   : > { %9075 = vmatprep.subr.bf16.mxu1 %v17981_v55 }
 0x8e0   : > { %9076 = vmatpush1.bf16.msra.mxu1 %v17979_v33 }
 0x8e1   : > { %9077 = vmatprep.subr.bf16.mxu1 %v17987_v22  ;;  %v18074_v22 = vld [vmem:[#allocation10 + $0x334] ss:$24 sps:$4 sm:$0xff]  }
 0x8e4   : > { %9078 = vmatpush1.bf16.msra.mxu1 %v17985_v24 }
 0x8e5   : > { %9079 = vmatprep.subr.bf16.mxu1 %v17993_v60 }
 0x8e8   : > { %9080 = vmatpush1.bf16.msra.mxu1 %v17991_v4 }
 0x8e9   : > { %9081 = vmatprep.subr.bf16.mxu1 %v17999_v45  ;;  %v18069_v45 = vld [vmem:[#allocation10 + $0x188] ss:$24 sps:$4 sm:$0xff]  }
 0x8ec   : > { %9082 = vmatpush1.bf16.msra.mxu1 %v17997_v54 }
 0x8ed   : > { %9083 = vmatprep.subr.bf16.mxu1 %v18005_v17 }
 0x8f0   : > { %9084 = vmatpush1.bf16.msra.mxu1 %v18003_v59  ;;  %v18077_v59 = vld [vmem:[#allocation10 + $0x1bc] ss:$24 sps:$4 sm:$0xff]  }
 0x8f1   : > { %9085 = vmatprep.subr.bf16.mxu1 %v18011_v1  ;;  %v18072_v1 = vld [vmem:[#allocation10 + $0x330] ss:$24 sps:$4 sm:$0xff]  }
 0x8f4   : > { %9086 = vmatpush1.bf16.msra.mxu1 %v18009_v7  ;;  %v18990_v7 = vld [vmem:[%s19621_s13 + $0x68] sm:$0xff] }
 0x8f5   : > { %9087 = vmatprep.subr.bf16.mxu1 %v18017_v14 }
 0x8f8   : > { %9088 = vmatpush1.bf16.msra.mxu1 %v18015_v26  ;;  %v18991_v26 = vld [vmem:[%s19621_s13 + $0x90] sm:$0xff] }
 0x8f9   : > { %11181 = vmatprep.subr.bf16.mxu1 %v18023_v61 }
 0x8fb   : > { %9090 = vmatmul.mubr.bf16.vlgmr.msra.gmra.mrb[248].mxu1 %v22889_v63  ;;  %v18045_v63 = vld [vmem:[#allocation10 + $0xc8] ss:$24 sps:$4 sm:$0xff]  }
 0x8fc   : > { %9099 = vmatprep.mubr.bf16.mxu1 %v22895_v53  ;;  %11182 = vmatpush1.bf16.msra.mxu1 %v18021_v9  ;;  %v22988_v53 = vld [vmem:[%s25243_s3] sm:$0x3f]  ;;  %v18992_v9 = vld [vmem:[%s19621_s13 + $0x98] sm:$0xff]  ;;  %s25352_s3 = sld [smem:[#allocation147_spill]] }
 0x8fd   : > { %11183 = vmatprep.subr.bf16.mxu1 %v18029_v40  ;;  %v22998_v32 = vrot.slane %v22988_v53, %v25245_v20 }
 0x900   : > { %11184 = vmatpush1.bf16.msra.mxu1 %v18027_v28  ;;  %v18080_v28 = vld [vmem:[#allocation10 + $0x364] ss:$24 sps:$4 sm:$0xff]  }
 0x901   : > { %11185 = vmatprep.subr.bf16.mxu1 %v18035_v29  ;;  %v18075_v29 = vld [vmem:[#allocation10 + $0x1b8] ss:$24 sps:$4 sm:$0xff]  }
 0x902   : > { %s24207_s14 = scalar_lea.hbm %s25352_s3, %s16709_s21 }
 0x903   : > { %9100 = vmatmul.mubr.bf16.gmra.mrb[252].mxu1 %v22893_v39  ;;  %v22993_v39 = vrot.slane %v22988_v53, %v25244_v30 }
 0x904   : > { %9109 = vmatprep.mubr.bf16.mxu1 %v22944_v8  ;;  %11186 = vmatpush1.bf16.msra.mxu1 %v18033_v37  ;;  %v18051_v8 = vld [vmem:[#allocation10 + $0xf8] ss:$24 sps:$4 sm:$0xff]   ;;  %v18993_v37 = vld [vmem:[%s19621_s13 + $0x60] sm:$0xff] }
 0x905   : > { %11187 = vmatprep.subr.bf16.mxu1 %v18041_v49 }
 0x908   : > { %11188 = vmatpush1.bf16.msra.mxu1 %v18039_v57 }
 0x909   : > { %11189 = vmatprep.subr.bf16.mxu1 %v18047_v23 }
 0x90b   : > { %9110 = vmatmul.mubr.bf16.gmra.mrb[0].mxu1 %v22942_v21 }
 0x90c   : > { %9119 = vmatprep.mubr.bf16.mxu1 %v22948_v31  ;;  %11190 = vmatpush1.bf16.msra.mxu1 %v18045_v63 }
 0x90d   : > { %v8653_v19 = vpop.f32.mrb[232].mxu1  ;;  %v23000_v11 = vpop.f32.mrb[88].mxu0  ;;  %11191 = vmatprep.subr.bf16.mxu1 %v18053_v15 }
 0x90e   : > { %v8655_v10 = vpop.f32.mrb[233].mxu1  ;;  %v23002_v21 = vpop.f32.mrb[89].mxu0  ;;  %v16162_v36 = vadd.f32 %v8653_v19, %v22998_v32  ;;  %v18078_v19 = vld [vmem:[#allocation10 + $0x360] ss:$24 sps:$4 sm:$0xff]  }
 0x90f   : > { %v16163_v5 = vadd.f32 %v8655_v10, %v22993_v39  ;;  %v8657_v31 = vpop.f32.mrb[234].mxu1  ;;  %v23005_v3 = vpop.f32.mrb[90].mxu0 }
 0x910   : > { %v16164_v12 = vadd.f32 %v8657_v31, %v22998_v32  ;;  %11192 = vmatpush1.bf16.msra.mxu1 %v18051_v8  ;;  %v8659_v42 = vpop.f32.mrb[235].mxu1  ;;  %v23008_v34 = vpop.f32.mrb[91].mxu0  ;;  %v23023_v2 = vadd.f32 %v18989_v27, %v16162_v36 }
 0x911   : > { %v16165_v58 = vadd.f32 %v8659_v42, %v22993_v39  ;;  %11193 = vmatprep.subr.bf16.mxu1 %v18059_v38  ;;  %v23013_v43 = vadd.f32 %v18986_v52, %v16163_v5  ;;  %v18083_v38 = vld [vmem:[#allocation10 + $0x1ec] ss:$24 sps:$4 sm:$0xff]  }
 0x912   : > { %v23016_v18 = vadd.f32 %v18987_v44, %v16164_v12  ;;  %25249 = vst [vmem:[#allocation64_spill] sm:$0xff] %v23023_v2  ;;  %v18086_v42 = vld [vmem:[#allocation10 + $0x394] ss:$24 sps:$4 sm:$0xff]  }
 0x913   : > { %25246 = vst [vmem:[#allocation88_spill] sm:$0xff] %v23013_v43  ;;  %v23019_v62 = vadd.f32 %v18988_v48, %v16165_v58  ;;  %9120 = vmatmul.mubr.bf16.gmra.mrb[4].mxu1 %v22946_v46  ;;  %v18089_v48 = vld [vmem:[#allocation10 + $0x21c] ss:$24 sps:$4 sm:$0xff]  }
 0x914   : > { %25247 = vst [vmem:[#allocation95_spill] sm:$0xff] %v23016_v18  ;;  %11194 = vmatpush1.bf16.msra.mxu1 %v18057_v13  ;;  %v23035_v46 = vpack.c.bf16 %v23016_v18, %v23023_v2 }
 0x915   : > { %25248 = vst [vmem:[#allocation90_spill] sm:$0xff] %v23019_v62  ;;  %v8663_v50 = vpop.f32.mrb[236].mxu1  ;;  %v23025_v0 = vpop.f32.mrb[92].mxu0  ;;  %11195 = vmatprep.subr.bf16.mxu1 %v18065_v51  ;;  %v23029_v35 = vpack.c.bf16 %v23019_v62, %v23013_v43  ;;  %v18081_v51 = vld [vmem:[#allocation10 + $0x1e8] ss:$24 sps:$4 sm:$0xff]  }
 0x916   : > { %v8665_v6 = vpop.f32.mrb[237].mxu1  ;;  %v23031_v16 = vpop.f32.mrb[93].mxu0  ;;  %v16166_v54 = vadd.f32 %v8663_v50, %v22998_v32  ;;  %v18084_v50 = vld [vmem:[#allocation10 + $0x390] ss:$24 sps:$4 sm:$0xff]  }
 0x917   : > { %v16167_v47 = vadd.f32 %v8665_v6, %v22993_v39  ;;  %v8667_v55 = vpop.f32.mrb[238].mxu1  ;;  %v23038_v33 = vpop.f32.mrb[94].mxu0  ;;  %10994 = vmatprep.mubr.bf16.mxu0 %v23029_v35  ;;  %11213 = vmatprep.mubr.bf16.mxu1 %v23029_v35  ;;  %v18994_v6 = vld [vmem:[%s19621_s13 + $0xc8] sm:$0xff] }
 0x918   : > { %v16168_v24 = vadd.f32 %v8667_v55, %v22998_v32  ;;  %11196 = vmatpush1.bf16.msra.mxu1 %v18063_v41  ;;  %v8669_v60 = vpop.f32.mrb[239].mxu1  ;;  %v23043_v4 = vpop.f32.mrb[95].mxu0  ;;  %10995 = vmatmul.mubr.bf16.vlgmr.msra.gmra.mrb[104].mxu0 %v23035_v46  ;;  %v23058_v49 = vadd.f32 %v18993_v37, %v16166_v54  ;;  %v25254_v41 = vld [vmem:[#allocation19_spill] sm:$0xff]  ;;  %v18996_v55 = vld [vmem:[%s19621_s13 + $0xf8] sm:$0xff] }
 0x919   : > { %v16169_v17 = vadd.f32 %v8669_v60, %v22993_v39  ;;  %11036 = vmatpush1.bf16.msra.mxu0 %v18066_v25  ;;  %11197 = vmatprep.subr.bf16.mxu1 %v18071_v56  ;;  %v23049_v14 = vadd.f32 %v18990_v7, %v16167_v47  ;;  %v23083_v27 = vsub.s32 3, %v25254_v41  ;;  %v18995_v56 = vld [vmem:[%s19621_s13 + $0xf0] sm:$0xff] }
 0x91a   : > { %v23052_v61 = vadd.f32 %v18991_v26, %v16168_v24  ;;  %11037 = vmatprep.subr.bf16.mxu0 %v18074_v22  ;;  %25253 = vst [vmem:[#allocation69_spill] sm:$0xff] %v23058_v49  ;;  %v18092_v24 = vld [vmem:[#allocation10 + $0x3c4] ss:$24 sps:$4 sm:$0xff]   ;;  %v18087_v60 = vld [vmem:[#allocation10 + $0x218] ss:$24 sps:$4 sm:$0xff]  }
 0x91b   : > { %25250 = vst [vmem:[#allocation94_spill] sm:$0xff] %v23049_v14  ;;  %v23055_v40 = vadd.f32 %v18992_v9, %v16169_v17  ;;  %25255 = vst [vmem:[#allocation99_spill] sm:$0xff] %v23083_v27  ;;  %v23105_v7 = vrot.slane %v22988_v53, %v23083_v27 }
 0x91c   : > { %25251 = vst [vmem:[#allocation92_spill] sm:$0xff] %v23052_v61  ;;  %11198 = vmatpush1.bf16.msra.mxu1 %v18069_v45  ;;  %v23070_v10 = vpack.c.bf16 %v23052_v61, %v23058_v49  ;;  %v18997_v45 = vld [vmem:[%s19621_s13 + $0xc0] sm:$0xff] }
 0x91d   : > { %25252 = vst [vmem:[#allocation93_spill] sm:$0xff] %v23055_v40  ;;  %v8673_v57 = vpop.f32.mrb[240].mxu1  ;;  %v23060_v23 = vpop.f32.mrb[96].mxu0  ;;  %11199 = vmatprep.subr.bf16.mxu1 %v18077_v59  ;;  %v23064_v63 = vpack.c.bf16 %v23055_v40, %v23049_v14  ;;  %11038 = vmatpush1.bf16.msra.mxu0 %v18072_v1 }
 0x91e   : > { %v8675_v15 = vpop.f32.mrb[241].mxu1  ;;  %v23066_v8 = vpop.f32.mrb[97].mxu0  ;;  %11039 = vmatprep.subr.bf16.mxu0 %v18080_v28  ;;  %v16170_v52 = vadd.f32 %v8673_v57, %v22998_v32  ;;  %v18090_v28 = vld [vmem:[#allocation10 + $0x3c0] ss:$24 sps:$4 sm:$0xff]  }
 0x91f   : > { %v16171_v5 = vadd.f32 %v8675_v15, %v22993_v39  ;;  %v8677_v31 = vpop.f32.mrb[242].mxu1  ;;  %v23073_v12 = vpop.f32.mrb[98].mxu0  ;;  %11004 = vmatprep.mubr.bf16.mxu0 %v23064_v63 }
 0x920   : > { %v16172_v13 = vadd.f32 %v8677_v31, %v22998_v32  ;;  %11200 = vmatpush1.bf16.msra.mxu1 %v18075_v29  ;;  %v8679_v36 = vpop.f32.mrb[243].mxu1  ;;  %v23077_v58 = vpop.f32.mrb[99].mxu0  ;;  %11005 = vmatmul.mubr.bf16.gmra.mrb[108].mxu0 %v23070_v10  ;;  %v23095_v54 = vadd.f32 %v18997_v45, %v16170_v52  ;;  %v18095_v29 = vld [vmem:[#allocation10 + $0x24c] ss:$24 sps:$4 sm:$0xff]  }
 0x921   : > { %v16173_v44 = vadd.f32 %v8679_v36, %v22993_v39  ;;  %11040 = vmatpush1.bf16.msra.mxu0 %v18078_v19  ;;  %11201 = vmatprep.subr.bf16.mxu1 %v18083_v38  ;;  %v23086_v25 = vadd.f32 %v18994_v6, %v16171_v5  ;;  %v18098_v38 = vld [vmem:[#allocation10 + $0x3f4] ss:$24 sps:$4 sm:$0xff]   ;;  %v16181_v5 = vadd.f32 %v23008_v34, %v23105_v7  ;;  %v18093_v36 = vld [vmem:[#allocation10 + $0x248] ss:$24 sps:$4 sm:$0xff]  }
 0x922   : > { %v23089_v47 = vadd.f32 %v18995_v56, %v16172_v13  ;;  %11041 = vmatprep.subr.bf16.mxu0 %v18086_v42  ;;  %25259 = vst [vmem:[#allocation98_spill] sm:$0xff] %v23095_v54  ;;  %v16179_v34 = vadd.f32 %v23002_v21, %v23105_v7  ;;  %v18999_v56 = vld [vmem:[%s19621_s13 + $0x150] sm:$0xff] }
 0x923   : > { %25256 = vst [vmem:[#allocation97_spill] sm:$0xff] %v23086_v25  ;;  %v23092_v22 = vadd.f32 %v18996_v55, %v16173_v44  ;;  %v18101_v44 = vld [vmem:[#allocation10 + $0x27c] ss:$24 sps:$4 sm:$0xff]   ;;  %v18099_v21 = vld [vmem:[#allocation10 + $0x278] ss:$24 sps:$4 sm:$0xff]  }
 0x924   : > { %25257 = vst [vmem:[#allocation62_spill] sm:$0xff] %v23089_v47  ;;  %11202 = vmatpush1.bf16.msra.mxu1 %v18081_v51  ;;  %v23111_v37 = vpack.c.bf16 %v23089_v47, %v23095_v54 }
 0x925   : > { %25258 = vst [vmem:[#allocation68_spill] sm:$0xff] %v23092_v22  ;;  %v8683_v17 = vpop.f32.mrb[244].mxu1  ;;  %v23097_v59 = vpop.f32.mrb[100].mxu0  ;;  %11203 = vmatprep.subr.bf16.mxu1 %v18089_v48  ;;  %v23101_v1 = vpack.c.bf16 %v23092_v22, %v23086_v25  ;;  %11042 = vmatpush1.bf16.msra.mxu0 %v18084_v50  ;;  %v18096_v48 = vld [vmem:[#allocation10 + $0x3f0] ss:$24 sps:$4 sm:$0xff]  }
 0x926   : > { %v8685_v26 = vpop.f32.mrb[245].mxu1  ;;  %v23107_v9 = vpop.f32.mrb[101].mxu0  ;;  %11043 = vmatprep.subr.bf16.mxu0 %v18092_v24  ;;  %v16174_v51 = vadd.f32 %v8683_v17, %v22998_v32  ;;  %v18998_v50 = vld [vmem:[%s19621_s13 + $0x128] sm:$0xff]  ;;  %v19002_v17 = vld [vmem:[%s19621_s13 + $0x120] sm:$0xff] }
 0x927   : > { %v16175_v57 = vadd.f32 %v8685_v26, %v22993_v39  ;;  %v8687_v15 = vpop.f32.mrb[246].mxu1  ;;  %v23114_v19 = vpop.f32.mrb[102].mxu0  ;;  %11014 = vmatprep.mubr.bf16.mxu0 %v23101_v1 }
 0x928   : > { %v16176_v31 = vadd.f32 %v8687_v15, %v22998_v32  ;;  %11204 = vmatpush1.bf16.msra.mxu1 %v18087_v60  ;;  %v8689_v42 = vpop.f32.mrb[247].mxu1  ;;  %v23120_v13 = vpop.f32.mrb[103].mxu0  ;;  %11015 = vmatmul.mubr.bf16.gmra.mrb[112].mxu0 %v23111_v37  ;;  %v19000_v32 = vld [vmem:[%s19621_s13 + $0x158] sm:$0xff]  ;;  %v19001_v60 = vld [vmem:[%s19621_s13 + $0x48] sm:$0xff]  ;;  %v23140_v26 = vadd.f32 %v19002_v17, %v16174_v51 }
 0x929   : > { %v16177_v52 = vadd.f32 %v8689_v42, %v22993_v39  ;;  %11044 = vmatpush1.bf16.msra.mxu0 %v18090_v28  ;;  %11205 = vmatprep.subr.bf16.mxu1 %v18095_v29  ;;  %v23128_v6 = vadd.f32 %v18998_v50, %v16175_v57  ;;  %v18104_v39 = vld [vmem:[#allocation10 + $0x424] ss:$24 sps:$4 sm:$0xff]   ;;  %v23137_v45 = vadd.f32 %v19001_v60, %v16181_v5  ;;  %v18114_v50 = vld [vmem:[#allocation10 + $0x480] ss:$24 sps:$4 sm:$0xff]   ;;  %v18120_v60 = vld [vmem:[#allocation10 + $0x4b0] ss:$24 sps:$4 sm:$0xff]  }
 0x92a   : > { %v23131_v55 = vadd.f32 %v18999_v56, %v16176_v31  ;;  %11045 = vmatprep.subr.bf16.mxu0 %v18098_v38  ;;  %25264 = vst [vmem:[#allocation49_spill] sm:$0xff] %v23140_v26  ;;  %v18107_v29 = vld [vmem:[#allocation10 + $0x2ac] ss:$24 sps:$4 sm:$0xff]   ;;  %v19003_v57 = vld [vmem:[%s19621_s13 + $0x18] sm:$0xff] }
 0x92b   : > { %25260 = vst [vmem:[#allocation96_spill] sm:$0xff] %v23128_v6  ;;  %v23134_v24 = vadd.f32 %v19000_v32, %v16177_v52  ;;  %25263 = vst [vmem:[#allocation53_spill] sm:$0xff] %v23137_v45  ;;  %v23147_v15 = vadd.f32 %v19003_v57, %v16179_v34  ;;  %v18102_v38 = vld [vmem:[#allocation10 + $0x420] ss:$24 sps:$4 sm:$0xff]   ;;  %v18110_v31 = vld [vmem:[#allocation10 + $0x454] ss:$24 sps:$4 sm:$0xff]  }
 0x92c   : > { %25261 = vst [vmem:[#allocation67_spill] sm:$0xff] %v23131_v55  ;;  %11206 = vmatpush1.bf16.msra.mxu1 %v18093_v36  ;;  %v23151_v5 = vpack.c.bf16 %v23131_v55, %v23140_v26  ;;  %v18105_v36 = vld [vmem:[#allocation10 + $0x2a8] ss:$24 sps:$4 sm:$0xff]   ;;  %v18113_v51 = vld [vmem:[#allocation10 + $0x2dc] ss:$24 sps:$4 sm:$0xff]  }
 0x92d   : > { %25262 = vst [vmem:[#allocation50_spill] sm:$0xff] %v23134_v24  ;;  %11207 = vmatprep.subr.bf16.mxu1 %v18101_v44  ;;  %v23144_v28 = vpack.c.bf16 %v23134_v24, %v23128_v6  ;;  %25265 = vst [vmem:[#allocation66_spill] sm:$0xff] %v23147_v15  ;;  %11046 = vmatpush1.bf16.msra.mxu0 %v18096_v48  ;;  %v23156_v42 = vpack.c.bf16 %v23137_v45, %v23147_v15  ;;  %v18108_v52 = vld [vmem:[#allocation10 + $0x450] ss:$24 sps:$4 sm:$0xff]   ;;  %v18116_v44 = vld [vmem:[#allocation10 + $0x484] ss:$24 sps:$4 sm:$0xff]  }
 0x92e   : > { %11047 = vmatprep.subr.bf16.mxu0 %v18104_v39  ;;  %v18111_v34 = vld [vmem:[#allocation10 + $0x2d8] ss:$24 sps:$4 sm:$0xff]   ;;  %v18119_v48 = vld [vmem:[#allocation10 + $0x30c] ss:$24 sps:$4 sm:$0xff]   ;;  %v18117_v32 = vld [vmem:[#allocation10 + $0x308] ss:$24 sps:$4 sm:$0xff]  }
 0x92f   : > { %11024 = vmatprep.mubr.bf16.mxu0 %v23144_v28  ;;  %v18122_v56 = vld [vmem:[#allocation10 + $0x4b4] ss:$24 sps:$4 sm:$0xff]   ;;  %v18123_v17 = vld [vmem:[#allocation10 + $0x338] ss:$24 sps:$4 sm:$0xff]  }
 0x930   : > { %11208 = vmatpush1.bf16.msra.mxu1 %v18099_v21  ;;  %11025 = vmatmul.mubr.bf16.gmra.mrb[116].mxu0 %v23151_v5  ;;  %v18125_v39 = vld [vmem:[#allocation10 + $0x33c] ss:$24 sps:$4 sm:$0xff]   ;;  %v18126_v57 = vld [vmem:[#allocation10 + $0x4e0] ss:$24 sps:$4 sm:$0xff]  }
 0x931   : > { %11209 = vmatprep.subr.bf16.mxu1 %v18107_v29  ;;  %11048 = vmatpush1.bf16.msra.mxu0 %v18102_v38  ;;  %v18128_v21 = vld [vmem:[#allocation10 + $0x4e4] ss:$24 sps:$4 sm:$0xff]   ;;  %v18134_v38 = vld [vmem:[#allocation10 + $0x514] ss:$24 sps:$4 sm:$0xff]  }
 0x932   : > { %11067 = vmatprep.mubr.bf16.mxu0 %v23156_v42  ;;  %11049 = vmatprep.subr.bf16.mxu0 %v18110_v31  ;;  %v18131_v29 = vld [vmem:[#allocation10 + $0x36c] ss:$24 sps:$4 sm:$0xff]   ;;  %v18129_v31 = vld [vmem:[#allocation10 + $0x368] ss:$24 sps:$4 sm:$0xff]   ;;  %v19011_v55 = vld [vmem:[%s19621_s13 + $0xd8] sm:$0xff] }
 0x934   : > { %11210 = vmatpush1.bf16.msra.mxu1 %v18105_v36  ;;  %v18137_v36 = vld [vmem:[#allocation10 + $0x39c] ss:$24 sps:$4 sm:$0xff]  }
 0x935   : > { %11211 = vmatprep.subr.bf16.mxu1 %v18113_v51  ;;  %11050 = vmatpush1.bf16.msra.mxu0 %v18108_v52  ;;  %v18132_v51 = vld [vmem:[#allocation10 + $0x510] ss:$24 sps:$4 sm:$0xff]   ;;  %v18140_v52 = vld [vmem:[#allocation10 + $0x544] ss:$24 sps:$4 sm:$0xff]  }
 0x936   : > { %11051 = vmatprep.subr.bf16.mxu0 %v18116_v44  ;;  %v18135_v44 = vld [vmem:[#allocation10 + $0x398] ss:$24 sps:$4 sm:$0xff]  }
 0x938   : > { %11212 = vmatpush1.bf16.msra.mxu1 %v18111_v34  ;;  %v18143_v34 = vld [vmem:[#allocation10 + $0x3cc] ss:$24 sps:$4 sm:$0xff]  }
 0x939   : > { %11254 = vmatprep.subr.bf16.mxu1 %v18119_v48  ;;  %11052 = vmatpush1.bf16.msra.mxu0 %v18114_v50  ;;  %v18138_v48 = vld [vmem:[#allocation10 + $0x540] ss:$24 sps:$4 sm:$0xff]   ;;  %v18146_v50 = vld [vmem:[#allocation10 + $0x574] ss:$24 sps:$4 sm:$0xff]  }
 0x93a   : > { %11053 = vmatprep.subr.bf16.mxu0 %v18122_v56  ;;  %v18141_v56 = vld [vmem:[#allocation10 + $0x3c8] ss:$24 sps:$4 sm:$0xff]  }
 0x93b   : > { %11214 = vmatmul.mubr.bf16.vlgmr.msra.gmra.mrb[8].mxu1 %v23035_v46 }
 0x93c   : > { %11223 = vmatprep.mubr.bf16.mxu1 %v23064_v63  ;;  %11255 = vmatpush1.bf16.msra.mxu1 %v18117_v32  ;;  %v23165_v32 = vsub.s32 2, %v25254_v41 }
 0x93d   : > { %11256 = vmatprep.subr.bf16.mxu1 %v18125_v39  ;;  %11054 = vmatpush1.bf16.msra.mxu0 %v18120_v60  ;;  %v18149_v39 = vld [vmem:[#allocation10 + $0x3fc] ss:$24 sps:$4 sm:$0xff]   ;;  %v18144_v60 = vld [vmem:[#allocation10 + $0x570] ss:$24 sps:$4 sm:$0xff]  }
 0x93e   : > { %11055 = vmatprep.subr.bf16.mxu0 %v18128_v21  ;;  %25266 = vst [vmem:[#allocation58_spill] sm:$0xff] %v23165_v32  ;;  %v18152_v21 = vld [vmem:[#allocation10 + $0x5a4] ss:$24 sps:$4 sm:$0xff]  }
 0x940   : > { %11257 = vmatpush1.bf16.msra.mxu1 %v18123_v17  ;;  %v18147_v17 = vld [vmem:[#allocation10 + $0x3f8] ss:$24 sps:$4 sm:$0xff]  }
 0x941   : > { %11258 = vmatprep.subr.bf16.mxu1 %v18131_v29  ;;  %11056 = vmatpush1.bf16.msra.mxu0 %v18126_v57  ;;  %v23171_v29 = vrot.slane %v22988_v53, %v23165_v32  ;;  %v18155_v57 = vld [vmem:[#allocation10 + $0x42c] ss:$24 sps:$4 sm:$0xff]  }
 0x942   : > { %11057 = vmatprep.subr.bf16.mxu0 %v18134_v38  ;;  %v18150_v38 = vld [vmem:[#allocation10 + $0x5a0] ss:$24 sps:$4 sm:$0xff]  }
 0x943   : > { %11224 = vmatmul.mubr.bf16.gmra.mrb[12].mxu1 %v23070_v10 }
 0x944   : > { %11233 = vmatprep.mubr.bf16.mxu1 %v23101_v1  ;;  %11259 = vmatpush1.bf16.msra.mxu1 %v18129_v31  ;;  %v16180_v31 = vadd.f32 %v23005_v3, %v23171_v29  ;;  %v18156_v3 = vld [vmem:[#allocation10 + $0x5d0] ss:$24 sps:$4 sm:$0xff]  }
 0x945   : > { %11260 = vmatprep.subr.bf16.mxu1 %v18137_v36  ;;  %11058 = vmatpush1.bf16.msra.mxu0 %v18132_v51  ;;  %v18158_v36 = vld [vmem:[#allocation10 + $0x5d4] ss:$24 sps:$4 sm:$0xff]   ;;  %v16185_v51 = vadd.f32 %v23043_v4, %v23105_v7  ;;  %v18188_v4 = vld [vmem:[#allocation10 + $0x604] ss:$24 sps:$4 sm:$0xff]  }
 0x946   : > { %11059 = vmatprep.subr.bf16.mxu0 %v18140_v52  ;;  %v18153_v52 = vld [vmem:[#allocation10 + $0x428] ss:$24 sps:$4 sm:$0xff]  }
 0x948   : > { %11261 = vmatpush1.bf16.msra.mxu1 %v18135_v44  ;;  %v16178_v44 = vadd.f32 %v23000_v11, %v23171_v29  ;;  %v18159_v11 = vld [vmem:[#allocation10 + $0x458] ss:$24 sps:$4 sm:$0xff]  }
 0x949   : > { %11262 = vmatprep.subr.bf16.mxu1 %v18143_v34  ;;  %11060 = vmatpush1.bf16.msra.mxu0 %v18138_v48  ;;  %v18161_v34 = vld [vmem:[#allocation10 + $0x45c] ss:$24 sps:$4 sm:$0xff]   ;;  %v16183_v48 = vadd.f32 %v23031_v16, %v23105_v7  ;;  %v18164_v16 = vld [vmem:[#allocation10 + $0x48c] ss:$24 sps:$4 sm:$0xff]  }
 0x94a   : > { %11061 = vmatprep.subr.bf16.mxu0 %v18146_v50  ;;  %v19004_v50 = vld [vmem:[%s19621_s13 + $0x40] sm:$0xff] }
 0x94b   : > { %11234 = vmatmul.mubr.bf16.gmra.mrb[16].mxu1 %v23111_v37 }
 0x94c   : > { %11243 = vmatprep.mubr.bf16.mxu1 %v23144_v28  ;;  %11263 = vmatpush1.bf16.msra.mxu1 %v18141_v56  ;;  %v23182_v56 = vadd.f32 %v19004_v50, %v16180_v31  ;;  %v18186_v31 = vld [vmem:[#allocation10 + $0x600] ss:$24 sps:$4 sm:$0xff]   ;;  %v16187_v50 = vadd.f32 %v23066_v8, %v23105_v7  ;;  %v18170_v8 = vld [vmem:[#allocation10 + $0x4ec] ss:$24 sps:$4 sm:$0xff]  }
 0x94d   : > { %11264 = vmatprep.subr.bf16.mxu1 %v18149_v39  ;;  %11062 = vmatpush1.bf16.msra.mxu0 %v18144_v60  ;;  %v19005_v39 = vld [vmem:[%s19621_s13 + $0xa8] sm:$0xff] }
 0x94e   : > { %11063 = vmatprep.subr.bf16.mxu0 %v18152_v21  ;;  %25267 = vst [vmem:[#allocation60_spill] sm:$0xff] %v23182_v56  ;;  %v23186_v60 = vadd.f32 %v19005_v39, %v16185_v51  ;;  %v19006_v21 = vld [vmem:[%s19621_s13 + $0x10] sm:$0xff]  ;;  %v16184_v51 = vadd.f32 %v23038_v33, %v23171_v29  ;;  %v23223_v6 = vadd.f32 %v19011_v55, %v16187_v50 }
 0x94f   : > { %v18167_v33 = vld [vmem:[#allocation10 + $0x4bc] ss:$24 sps:$4 sm:$0xff]   ;;  %v16191_v50 = vadd.f32 %v23107_v9, %v23105_v7 }
 0x950   : > { %11265 = vmatpush1.bf16.msra.mxu1 %v18147_v17  ;;  %25268 = vst [vmem:[#allocation56_spill] sm:$0xff] %v23186_v60  ;;  %v23190_v17 = vadd.f32 %v19006_v21, %v16178_v44  ;;  %v16189_v44 = vadd.f32 %v23077_v58, %v23105_v7  ;;  %v18192_v58 = vld [vmem:[#allocation10 + $0x630] ss:$24 sps:$4 sm:$0xff]   ;;  %25274 = vst [vmem:[#allocation70_spill] sm:$0xff] %v23223_v6  ;;  %v19015_v9 = vld [vmem:[%s19621_s13 + $0x138] sm:$0xff] }
 0x951   : > { %11266 = vmatprep.subr.bf16.mxu1 %v18155_v57  ;;  %11064 = vmatpush1.bf16.msra.mxu0 %v18150_v38  ;;  %v19007_v57 = vld [vmem:[%s19621_s13 + $0x78] sm:$0xff]  ;;  %v19009_v21 = vld [vmem:[%s19621_s13 + $0x108] sm:$0xff]  ;;  %v23253_v26 = vadd.f32 %v19015_v9, %v16191_v50 }
 0x952   : > { %11065 = vmatprep.subr.bf16.mxu0 %v18158_v36  ;;  %25269 = vst [vmem:[#allocation46_spill] sm:$0xff] %v23190_v17  ;;  %v23193_v38 = vadd.f32 %v19007_v57, %v16183_v48  ;;  %v23197_v36 = vpack.c.bf16 %v23182_v56, %v23190_v17  ;;  %v18162_v48 = vld [vmem:[#allocation10 + $0x488] ss:$24 sps:$4 sm:$0xff]   ;;  %v18165_v57 = vld [vmem:[#allocation10 + $0x4b8] ss:$24 sps:$4 sm:$0xff]  }
 0x953   : > { %11244 = vmatmul.mubr.bf16.gmra.mrb[20].mxu1 %v23151_v5  ;;  %25278 = vst [vmem:[#allocation73_spill] sm:$0xff] %v23253_v26  ;;  %v18179_v50 = vld [vmem:[#allocation10 + $0x57c] ss:$24 sps:$4 sm:$0xff]  }
 0x954   : > { %11267 = vmatpush1.bf16.msra.mxu1 %v18153_v52  ;;  %11286 = vmatprep.mubr.bf16.mxu1 %v23156_v42  ;;  %25270 = vst [vmem:[#allocation63_spill] sm:$0xff] %v23193_v38  ;;  %v18194_v52 = vld [vmem:[#allocation10 + $0x634] ss:$24 sps:$4 sm:$0xff]  }
 0x955   : > { %11268 = vmatprep.subr.bf16.mxu1 %v18161_v34  ;;  %11066 = vmatpush1.bf16.msra.mxu0 %v18156_v3  ;;  %v23205_v34 = vpack.c.bf16 %v23186_v60, %v23193_v38  ;;  %v16182_v3 = vadd.f32 %v23025_v0, %v23171_v29  ;;  %v23217_v0 = vadd.f32 %v19009_v21, %v16189_v44  ;;  %v18206_v44 = vld [vmem:[#allocation10 + $0x694] ss:$24 sps:$4 sm:$0xff]  }
 0x956   : > { %11108 = vmatprep.subr.bf16.mxu0 %v18188_v4  ;;  %v19008_v4 = vld [vmem:[%s19621_s13 + $0xa0] sm:$0xff]  ;;  %v19013_v21 = vld [vmem:[%s19621_s13 + $0x168] sm:$0xff]  ;;  %v18503_v60 = vld [vmem:[#allocation11 + $0x21c] ss:$24 sps:$4 sm:$0xff]  }
 0x957   : > { %v23214_v39 = vadd.f32 %v19008_v4, %v16184_v51  ;;  %25272 = vst [vmem:[#allocation65_spill] sm:$0xff] %v23217_v0  ;;  %v23235_v55 = vpack.c.bf16 %v23217_v0, %v23223_v6  ;;  %v18230_v9 = vld [vmem:[#allocation10 + $0x754] ss:$24 sps:$4 sm:$0xff]  }
 0x958   : > { %11269 = vmatpush1.bf16.msra.mxu1 %v18159_v11  ;;  %11068 = vmatmul.mubr.bf16.vlgmr.msra.gmra.mrb[104].mxu0 %v23197_v36  ;;  %v18200_v11 = vld [vmem:[#allocation10 + $0x664] ss:$24 sps:$4 sm:$0xff]  }
 0x959   : > { %11270 = vmatprep.subr.bf16.mxu1 %v18164_v16  ;;  %11077 = vmatprep.mubr.bf16.mxu0 %v23205_v34  ;;  %25271 = vst [vmem:[#allocation100_spill] sm:$0xff] %v23214_v39  ;;  %v19010_v16 = vld [vmem:[%s19621_s13 + $0x70] sm:$0xff] }
 0x95a   : > { %11109 = vmatpush1.bf16.msra.mxu0 %v18186_v31  ;;  %v23220_v24 = vadd.f32 %v19010_v16, %v16182_v3  ;;  %v18198_v31 = vld [vmem:[#allocation10 + $0x660] ss:$24 sps:$4 sm:$0xff]   ;;  %v19014_v16 = vld [vmem:[%s19621_s13 + $0xd0] sm:$0xff] }
 0x95b   : > { %11110 = vmatprep.subr.bf16.mxu0 %v18194_v52  ;;  %v16188_v52 = vadd.f32 %v23073_v12, %v23171_v29  ;;  %v18168_v3 = vld [vmem:[#allocation10 + $0x4e8] ss:$24 sps:$4 sm:$0xff]   ;;  %v18173_v12 = vld [vmem:[#allocation10 + $0x51c] ss:$24 sps:$4 sm:$0xff]  }
 0x95c   : > { %11271 = vmatpush1.bf16.msra.mxu1 %v18162_v48  ;;  %25273 = vst [vmem:[#allocation101_spill] sm:$0xff] %v23220_v24  ;;  %v23227_v51 = vpack.c.bf16 %v23214_v39, %v23220_v24  ;;  %v16193_v48 = vadd.f32 %v23120_v13, %v23105_v7  ;;  %v18204_v13 = vld [vmem:[#allocation10 + $0x690] ss:$24 sps:$4 sm:$0xff]   ;;  %v18176_v7 = vld [vmem:[#allocation10 + $0x54c] ss:$24 sps:$4 sm:$0xff]  }
 0x95d   : > { %11272 = vmatprep.subr.bf16.mxu1 %v18167_v33  ;;  %v16186_v33 = vadd.f32 %v23060_v23, %v23171_v29 }
 0x95e   : > { %11111 = vmatpush1.bf16.msra.mxu0 %v18192_v58  ;;  %v19012_v58 = vld [vmem:[%s19621_s13 + $0x100] sm:$0xff]  ;;  %v23247_v23 = vadd.f32 %v19013_v21, %v16193_v48  ;;  %v18218_v48 = vld [vmem:[#allocation10 + $0x6f4] ss:$24 sps:$4 sm:$0xff]   ;;  %v18177_v21 = vld [vmem:[#allocation10 + $0x578] ss:$24 sps:$4 sm:$0xff]  }
 0x95f   : > { %11112 = vmatprep.subr.bf16.mxu0 %v18200_v11  ;;  %v23244_v4 = vadd.f32 %v19012_v58, %v16188_v52  ;;  %v18212_v11 = vld [vmem:[#allocation10 + $0x6c4] ss:$24 sps:$4 sm:$0xff]  }
 0x960   : > { %11273 = vmatpush1.bf16.msra.mxu1 %v18165_v57  ;;  %11078 = vmatmul.mubr.bf16.gmra.mrb[108].mxu0 %v23227_v51  ;;  %25276 = vst [vmem:[#allocation71_spill] sm:$0xff] %v23247_v23  ;;  %v18171_v57 = vld [vmem:[#allocation10 + $0x518] ss:$24 sps:$4 sm:$0xff]  }
 0x961   : > { %11274 = vmatprep.subr.bf16.mxu1 %v18170_v8  ;;  %11087 = vmatprep.mubr.bf16.mxu0 %v23235_v55  ;;  %25275 = vst [vmem:[#allocation22_spill] sm:$0xff] %v23244_v4  ;;  %v23250_v8 = vadd.f32 %v19014_v16, %v16186_v33  ;;  %v18174_v33 = vld [vmem:[#allocation10 + $0x548] ss:$24 sps:$4 sm:$0xff]  }
 0x962   : > { %11113 = vmatpush1.bf16.msra.mxu0 %v18198_v31  ;;  %v18210_v31 = vld [vmem:[#allocation10 + $0x6c0] ss:$24 sps:$4 sm:$0xff]  }
 0x963   : > { %11114 = vmatprep.subr.bf16.mxu0 %v18206_v44  ;;  %25277 = vst [vmem:[#allocation24_spill] sm:$0xff] %v23250_v8  ;;  %v23257_v52 = vpack.c.bf16 %v23244_v4, %v23250_v8  ;;  %v16192_v44 = vadd.f32 %v23114_v19, %v23171_v29  ;;  %v18216_v19 = vld [vmem:[#allocation10 + $0x6f0] ss:$24 sps:$4 sm:$0xff]  }
 0x964   : > { %11275 = vmatpush1.bf16.msra.mxu1 %v18168_v3  ;;  %v23263_v3 = vpack.c.bf16 %v23247_v23, %v23253_v26  ;;  %v19021_v26 = vld [vmem:[%s19621_s13 + $0x20] sm:$0xff] }
 0x965   : > { %11276 = vmatprep.subr.bf16.mxu1 %v18173_v12  ;;  %v16190_v12 = vadd.f32 %v23097_v59, %v23171_v29  ;;  %v18182_v59 = vld [vmem:[#allocation10 + $0x5ac] ss:$24 sps:$4 sm:$0xff]   ;;  %v18222_v29 = vld [vmem:[#allocation10 + $0x720] ss:$24 sps:$4 sm:$0xff]  }
 0x966   : > { %11115 = vmatpush1.bf16.msra.mxu0 %v18204_v13  ;;  %v19016_v13 = vld [vmem:[%s19621_s13 + $0x160] sm:$0xff] }
 0x967   : > { %11116 = vmatprep.subr.bf16.mxu0 %v18212_v11  ;;  %v23270_v58 = vadd.f32 %v19016_v13, %v16192_v44  ;;  %v18224_v11 = vld [vmem:[#allocation10 + $0x724] ss:$24 sps:$4 sm:$0xff]   ;;  %v18242_v13 = vld [vmem:[#allocation10 + $0x7b4] ss:$24 sps:$4 sm:$0xff]  }
 0x968   : > { %11277 = vmatpush1.bf16.msra.mxu1 %v18171_v57  ;;  %11088 = vmatmul.mubr.bf16.gmra.mrb[112].mxu0 %v23257_v52  ;;  %v19017_v57 = vld [vmem:[%s19621_s13 + $0x130] sm:$0xff] }
 0x969   : > { %11278 = vmatprep.subr.bf16.mxu1 %v18176_v7  ;;  %11097 = vmatprep.mubr.bf16.mxu0 %v23263_v3  ;;  %25279 = vst [vmem:[#allocation27_spill] sm:$0xff] %v23270_v58  ;;  %v23273_v16 = vadd.f32 %v19017_v57, %v16190_v12  ;;  %v18185_v44 = vld [vmem:[#allocation10 + $0x5dc] ss:$24 sps:$4 sm:$0xff]   ;;  %v18183_v12 = vld [vmem:[#allocation10 + $0x5d8] ss:$24 sps:$4 sm:$0xff]  }
 0x96a   : > { %11117 = vmatpush1.bf16.msra.mxu0 %v18210_v31  ;;  %v18180_v31 = vld [vmem:[#allocation10 + $0x5a8] ss:$24 sps:$4 sm:$0xff]  }
 0x96b   : > { %11118 = vmatprep.subr.bf16.mxu0 %v18218_v48  ;;  %25280 = vst [vmem:[#allocation75_spill] sm:$0xff] %v23273_v16  ;;  %v23277_v7 = vpack.c.bf16 %v23270_v58, %v23273_v16  ;;  %v18228_v48 = vld [vmem:[#allocation10 + $0x750] ss:$24 sps:$4 sm:$0xff]  }
 0x96c   : > { %11279 = vmatpush1.bf16.msra.mxu1 %v18174_v33  ;;  %v18236_v33 = vld [vmem:[#allocation10 + $0x784] ss:$24 sps:$4 sm:$0xff]   ;;  %v18240_v57 = vld [vmem:[#allocation10 + $0x7b0] ss:$24 sps:$4 sm:$0xff]  }
 0x96d   : > { %11280 = vmatprep.subr.bf16.mxu1 %v18179_v50  ;;  %v18191_v50 = vld [vmem:[#allocation10 + $0x60c] ss:$24 sps:$4 sm:$0xff]  }
 0x96e   : > { %11119 = vmatpush1.bf16.msra.mxu0 %v18216_v19  ;;  %v18234_v19 = vld [vmem:[#allocation10 + $0x780] ss:$24 sps:$4 sm:$0xff]  }
 0x96f   : > { %11120 = vmatprep.subr.bf16.mxu0 %v18224_v11  ;;  %v18189_v11 = vld [vmem:[#allocation10 + $0x608] ss:$24 sps:$4 sm:$0xff]  }
 0x970   : > { %11281 = vmatpush1.bf16.msra.mxu1 %v18177_v21  ;;  %11098 = vmatmul.mubr.bf16.gmra.mrb[116].mxu0 %v23277_v7  ;;  %v18197_v21 = vld [vmem:[#allocation10 + $0x63c] ss:$24 sps:$4 sm:$0xff]  }
 0x971   : > { %11282 = vmatprep.subr.bf16.mxu1 %v18182_v59  ;;  %v18248_v59 = vld [vmem:[#allocation10 + $0x7e4] ss:$24 sps:$4 sm:$0xff]  }
 0x972   : > { %11121 = vmatpush1.bf16.msra.mxu0 %v18222_v29  ;;  %v18195_v29 = vld [vmem:[#allocation10 + $0x638] ss:$24 sps:$4 sm:$0xff]  }
 0x973   : > { %11122 = vmatprep.subr.bf16.mxu0 %v18230_v9  ;;  %v18203_v9 = vld [vmem:[#allocation10 + $0x66c] ss:$24 sps:$4 sm:$0xff]  }
 0x974   : > { %11283 = vmatpush1.bf16.msra.mxu1 %v18180_v31  ;;  %v18246_v31 = vld [vmem:[#allocation10 + $0x7e0] ss:$24 sps:$4 sm:$0xff]  }
 0x975   : > { %11284 = vmatprep.subr.bf16.mxu1 %v18185_v44  ;;  %v18254_v44 = vld [vmem:[#allocation10 + $0x814] ss:$24 sps:$4 sm:$0xff]  }
 0x976   : > { %11123 = vmatpush1.bf16.msra.mxu0 %v18228_v48  ;;  %v18201_v48 = vld [vmem:[#allocation10 + $0x668] ss:$24 sps:$4 sm:$0xff]  }
 0x977   : > { %11124 = vmatprep.subr.bf16.mxu0 %v18236_v33  ;;  %v18209_v33 = vld [vmem:[#allocation10 + $0x69c] ss:$24 sps:$4 sm:$0xff]  }
 0x978   : > { %11285 = vmatpush1.bf16.msra.mxu1 %v18183_v12  ;;  %v18252_v12 = vld [vmem:[#allocation10 + $0x810] ss:$24 sps:$4 sm:$0xff]  }
 0x979   : > { %11327 = vmatprep.subr.bf16.mxu1 %v18191_v50  ;;  %v18260_v50 = vld [vmem:[#allocation10 + $0x844] ss:$24 sps:$4 sm:$0xff]  }
 0x97a   : > { %11125 = vmatpush1.bf16.msra.mxu0 %v18234_v19  ;;  %v18207_v19 = vld [vmem:[#allocation10 + $0x698] ss:$24 sps:$4 sm:$0xff]  }
 0x97b   : > { %11287 = vmatmul.mubr.bf16.vlgmr.msra.gmra.mrb[8].mxu1 %v23197_v36  ;;  %11126 = vmatprep.subr.bf16.mxu0 %v18242_v13  ;;  %v18215_v13 = vld [vmem:[#allocation10 + $0x6cc] ss:$24 sps:$4 sm:$0xff]  }
 0x97c   : > { %11296 = vmatprep.mubr.bf16.mxu1 %v23205_v34  ;;  %11328 = vmatpush1.bf16.msra.mxu1 %v18189_v11  ;;  %v18258_v11 = vld [vmem:[#allocation10 + $0x840] ss:$24 sps:$4 sm:$0xff]  }
 0x97d   : > { %11329 = vmatprep.subr.bf16.mxu1 %v18197_v21  ;;  %v18266_v21 = vld [vmem:[#allocation10 + $0x874] ss:$24 sps:$4 sm:$0xff]  }
 0x97e   : > { %11127 = vmatpush1.bf16.msra.mxu0 %v18240_v57  ;;  %v18213_v57 = vld [vmem:[#allocation10 + $0x6c8] ss:$24 sps:$4 sm:$0xff]  }
 0x97f   : > { %11128 = vmatprep.subr.bf16.mxu0 %v18248_v59  ;;  %v18221_v59 = vld [vmem:[#allocation10 + $0x6fc] ss:$24 sps:$4 sm:$0xff]  }
 0x980   : > { %11330 = vmatpush1.bf16.msra.mxu1 %v18195_v29  ;;  %v18264_v29 = vld [vmem:[#allocation10 + $0x870] ss:$24 sps:$4 sm:$0xff]  }
 0x981   : > { %11331 = vmatprep.subr.bf16.mxu1 %v18203_v9  ;;  %v18272_v9 = vld [vmem:[#allocation10 + $0x8a4] ss:$24 sps:$4 sm:$0xff]  }
 0x982   : > { %11129 = vmatpush1.bf16.msra.mxu0 %v18246_v31  ;;  %v18219_v31 = vld [vmem:[#allocation10 + $0x6f8] ss:$24 sps:$4 sm:$0xff]  }
 0x983   : > { %11297 = vmatmul.mubr.bf16.gmra.mrb[12].mxu1 %v23227_v51  ;;  %11130 = vmatprep.subr.bf16.mxu0 %v18254_v44  ;;  %v18227_v44 = vld [vmem:[#allocation10 + $0x72c] ss:$24 sps:$4 sm:$0xff]  }
 0x984   : > { %11306 = vmatprep.mubr.bf16.mxu1 %v23235_v55  ;;  %11332 = vmatpush1.bf16.msra.mxu1 %v18201_v48  ;;  %v18270_v48 = vld [vmem:[#allocation10 + $0x8a0] ss:$24 sps:$4 sm:$0xff]  }
 0x985   : > { %11333 = vmatprep.subr.bf16.mxu1 %v18209_v33  ;;  %v18278_v33 = vld [vmem:[#allocation10 + $0x8d4] ss:$24 sps:$4 sm:$0xff]  }
 0x986   : > { %11131 = vmatpush1.bf16.msra.mxu0 %v18252_v12  ;;  %v18225_v12 = vld [vmem:[#allocation10 + $0x728] ss:$24 sps:$4 sm:$0xff]  }
 0x987   : > { %11132 = vmatprep.subr.bf16.mxu0 %v18260_v50  ;;  %v18233_v50 = vld [vmem:[#allocation10 + $0x75c] ss:$24 sps:$4 sm:$0xff]  }
 0x988   : > { %11334 = vmatpush1.bf16.msra.mxu1 %v18207_v19  ;;  %v18276_v19 = vld [vmem:[#allocation10 + $0x8d0] ss:$24 sps:$4 sm:$0xff]  }
 0x989   : > { %11335 = vmatprep.subr.bf16.mxu1 %v18215_v13  ;;  %v18284_v13 = vld [vmem:[#allocation10 + $0x14] ss:$24 sps:$4 sm:$0xff]  }
 0x98a   : > { %11133 = vmatpush1.bf16.msra.mxu0 %v18258_v11  ;;  %v18231_v11 = vld [vmem:[#allocation10 + $0x758] ss:$24 sps:$4 sm:$0xff]  }
 0x98b   : > { %11307 = vmatmul.mubr.bf16.gmra.mrb[16].mxu1 %v23257_v52  ;;  %11134 = vmatprep.subr.bf16.mxu0 %v18266_v21  ;;  %v18239_v21 = vld [vmem:[#allocation10 + $0x78c] ss:$24 sps:$4 sm:$0xff]  }
 0x98c   : > { %11316 = vmatprep.mubr.bf16.mxu1 %v23263_v3  ;;  %11336 = vmatpush1.bf16.msra.mxu1 %v18213_v57  ;;  %v18237_v57 = vld [vmem:[#allocation10 + $0x788] ss:$24 sps:$4 sm:$0xff]  }
 0x98d   : > { %11337 = vmatprep.subr.bf16.mxu1 %v18221_v59  ;;  %v18245_v59 = vld [vmem:[#allocation10 + $0x7bc] ss:$24 sps:$4 sm:$0xff]  }
 0x98e   : > { %11135 = vmatpush1.bf16.msra.mxu0 %v18264_v29  ;;  %v18243_v29 = vld [vmem:[#allocation10 + $0x7b8] ss:$24 sps:$4 sm:$0xff]  }
 0x98f   : > { %11136 = vmatprep.subr.bf16.mxu0 %v18272_v9  ;;  %v18251_v9 = vld [vmem:[#allocation10 + $0x7ec] ss:$24 sps:$4 sm:$0xff]  }
 0x990   : > { %11338 = vmatpush1.bf16.msra.mxu1 %v18219_v31  ;;  %v18249_v31 = vld [vmem:[#allocation10 + $0x7e8] ss:$24 sps:$4 sm:$0xff]  }
 0x991   : > { %11339 = vmatprep.subr.bf16.mxu1 %v18227_v44  ;;  %v18257_v44 = vld [vmem:[#allocation10 + $0x81c] ss:$24 sps:$4 sm:$0xff]  }
 0x992   : > { %11137 = vmatpush1.bf16.msra.mxu0 %v18270_v48  ;;  %v18255_v48 = vld [vmem:[#allocation10 + $0x818] ss:$24 sps:$4 sm:$0xff]  }
 0x993   : > { %11317 = vmatmul.mubr.bf16.gmra.mrb[20].mxu1 %v23277_v7  ;;  %11138 = vmatprep.subr.bf16.mxu0 %v18278_v33  ;;  %v18263_v33 = vld [vmem:[#allocation10 + $0x84c] ss:$24 sps:$4 sm:$0xff]  }
 0x994   : > { %11340 = vmatpush1.bf16.msra.mxu1 %v18225_v12  ;;  %v18261_v12 = vld [vmem:[#allocation10 + $0x848] ss:$24 sps:$4 sm:$0xff]  }
 0x995   : > { %11341 = vmatprep.subr.bf16.mxu1 %v18233_v50  ;;  %v18269_v50 = vld [vmem:[#allocation10 + $0x87c] ss:$24 sps:$4 sm:$0xff]  }
 0x996   : > { %11139 = vmatpush1.bf16.msra.mxu0 %v18276_v19  ;;  %v18267_v19 = vld [vmem:[#allocation10 + $0x878] ss:$24 sps:$4 sm:$0xff]  }
 0x997   : > { %11400 = vmatprep.subr.bf16.mxu0 %v18284_v13  ;;  %v18275_v13 = vld [vmem:[#allocation10 + $0x8ac] ss:$24 sps:$4 sm:$0xff]  }
 0x998   : > { %11342 = vmatpush1.bf16.msra.mxu1 %v18231_v11  ;;  %v18273_v11 = vld [vmem:[#allocation10 + $0x8a8] ss:$24 sps:$4 sm:$0xff]  }
 0x999   : > { %11343 = vmatprep.subr.bf16.mxu1 %v18239_v21  ;;  %v18281_v21 = vld [vmem:[#allocation10 + $0x8dc] ss:$24 sps:$4 sm:$0xff]  }
 0x99c   : > { %11344 = vmatpush1.bf16.msra.mxu1 %v18237_v57  ;;  %v18279_v57 = vld [vmem:[#allocation10 + $0x8d8] ss:$24 sps:$4 sm:$0xff]  }
 0x99d   : > { %11345 = vmatprep.subr.bf16.mxu1 %v18245_v59  ;;  %v23288_v59 = vsub.s32 5, %v25254_v41 }
 0x99f   : > { %25281 = vst [vmem:[#allocation29_spill] sm:$0xff] %v23288_v59 }
 0x9a0   : > { %11346 = vmatpush1.bf16.msra.mxu1 %v18243_v29  ;;  %v23291_v29 = vsub.s32 4, %v25254_v41 }
 0x9a1   : > { %11347 = vmatprep.subr.bf16.mxu1 %v18251_v9  ;;  %v23295_v9 = vrot.slane %v22988_v53, %v23288_v59 }
 0x9a4   : > { %11348 = vmatpush1.bf16.msra.mxu1 %v18249_v31  ;;  %v23299_v31 = vrot.slane %v22988_v53, %v23291_v29  ;;  %v19020_v53 = vld [vmem:[%s19621_s13 + $0x58] sm:$0xff] }
 0x9a5   : > { %11349 = vmatprep.subr.bf16.mxu1 %v18257_v44 }
 0x9a8   : > { %11350 = vmatpush1.bf16.msra.mxu1 %v18255_v48 }
 0x9a9   : > { %11351 = vmatprep.subr.bf16.mxu1 %v18263_v33 }
 0x9ac   : > { %11352 = vmatpush1.bf16.msra.mxu1 %v18261_v12 }
 0x9ad   : > { %11353 = vmatprep.subr.bf16.mxu1 %v18269_v50 }
 0x9b0   : > { %11354 = vmatpush1.bf16.msra.mxu1 %v18267_v19 }
 0x9b1   : > { %11355 = vmatprep.subr.bf16.mxu1 %v18275_v13 }
 0x9b4   : > { %11356 = vmatpush1.bf16.msra.mxu1 %v18273_v11  ;;  %v19018_v11 = vld [vmem:[%s19621_s13 + $0x50] sm:$0xff] }
 0x9b5   : > { %11357 = vmatprep.subr.bf16.mxu1 %v18281_v21 }
 0x9b8   : > { %11358 = vmatpush1.bf16.msra.mxu1 %v18279_v57  ;;  %v19019_v57 = vld [vmem:[%s19621_s13 + $0x28] sm:$0xff] }
 0x9ce   : > { %v9091_v44 = vpop.f32.mrb[248].mxu1 }
 0x9cf   : > { %v9093_v48 = vpop.f32.mrb[249].mxu1  ;;  %v16194_v50 = vadd.f32 %v9091_v44, %v23299_v31 }
 0x9d0   : > { %v16195_v33 = vadd.f32 %v9093_v48, %v23295_v9  ;;  %v9095_v12 = vpop.f32.mrb[250].mxu1 }
 0x9d1   : > { %v16196_v19 = vadd.f32 %v9095_v12, %v23299_v31  ;;  %v9097_v41 = vpop.f32.mrb[251].mxu1  ;;  %v23315_v16 = vadd.f32 %v19021_v26, %v16194_v50  ;;  %v18282_v12 = vld [vmem:[#allocation10 + $0x10] ss:$24 sps:$4 sm:$0xff]  }
 0x9d2   : > { %v16197_v13 = vadd.f32 %v9097_v41, %v23295_v9  ;;  %v23309_v23 = vadd.f32 %v19019_v57, %v16195_v33  ;;  %v18287_v33 = vld [vmem:[#allocation10 + $0x44] ss:$24 sps:$4 sm:$0xff]  }
 0x9d3   : > { %v23306_v21 = vadd.f32 %v19018_v11, %v16196_v19  ;;  %25285 = vst [vmem:[#allocation28_spill] sm:$0xff] %v23315_v16 }
 0x9d4   : > { %25283 = vst [vmem:[#allocation26_spill] sm:$0xff] %v23309_v23  ;;  %v23312_v58 = vadd.f32 %v19020_v53, %v16197_v13 }
 0x9d5   : > { %25282 = vst [vmem:[#allocation72_spill] sm:$0xff] %v23306_v21  ;;  %v23323_v19 = vpack.c.bf16 %v23306_v21, %v23315_v16  ;;  %v19023_v16 = vld [vmem:[%s19621_s13 + $0x88] sm:$0xff] }
 0x9d6   : > { %25284 = vst [vmem:[#allocation74_spill] sm:$0xff] %v23312_v58  ;;  %v9101_v48 = vpop.f32.mrb[252].mxu1  ;;  %v23319_v44 = vpack.c.bf16 %v23312_v58, %v23309_v23  ;;  %v19022_v58 = vld [vmem:[%s19621_s13 + $0xb0] sm:$0xff] }
 0x9d7   : > { %v9103_v41 = vpop.f32.mrb[253].mxu1  ;;  %v16198_v26 = vadd.f32 %v9101_v48, %v23299_v31  ;;  %v18290_v23 = vld [vmem:[#allocation10 + $0x74] ss:$24 sps:$4 sm:$0xff]   ;;  %v19024_v48 = vld [vmem:[%s19621_s13 + $0xb8] sm:$0xff] }
 0x9d8   : > { %v16199_v11 = vadd.f32 %v9103_v41, %v23295_v9  ;;  %v9105_v13 = vpop.f32.mrb[254].mxu1  ;;  %11140 = vmatprep.mubr.bf16.mxu0 %v23319_v44  ;;  %11359 = vmatprep.mubr.bf16.mxu1 %v23319_v44  ;;  %v18285_v41 = vld [vmem:[#allocation10 + $0x40] ss:$24 sps:$4 sm:$0xff]  }
 0x9d9   : > { %v16200_v50 = vadd.f32 %v9105_v13, %v23299_v31  ;;  %v9107_v57 = vpop.f32.mrb[255].mxu1  ;;  %11141 = vmatmul.mubr.bf16.vlgmr.msra.gmra.mrb[104].mxu0 %v23323_v19  ;;  %11360 = vmatmul.mubr.bf16.vlgmr.msra.gmra.mrb[8].mxu1 %v23323_v19  ;;  %v19025_v13 = vld [vmem:[%s19621_s13 + $0x80] sm:$0xff] }
 0x9da   : > { %v16201_v53 = vadd.f32 %v9107_v57, %v23295_v9  ;;  %11401 = vmatpush1.bf16.msra.mxu0 %v18282_v12  ;;  %v23337_v0 = vadd.f32 %v19023_v16, %v16199_v11  ;;  %v23343_v4 = vadd.f32 %v19025_v13, %v16198_v26  ;;  %v18288_v57 = vld [vmem:[#allocation10 + $0x70] ss:$24 sps:$4 sm:$0xff]  }
 0x9db   : > { %v23334_v21 = vadd.f32 %v19022_v58, %v16200_v50  ;;  %11402 = vmatprep.subr.bf16.mxu0 %v18287_v33  ;;  %v18293_v33 = vld [vmem:[#allocation10 + $0xa4] ss:$24 sps:$4 sm:$0xff]   ;;  %v19026_v13 = vld [vmem:[%s19621_s13 + $0x110] sm:$0xff] }
 0x9dc   : > { %25287 = vst [vmem:[#allocation48_spill] sm:$0xff] %v23337_v0  ;;  %v23340_v22 = vadd.f32 %v19024_v48, %v16201_v53  ;;  %25289 = vst [vmem:[#allocation52_spill] sm:$0xff] %v23343_v4  ;;  %v18291_v48 = vld [vmem:[#allocation10 + $0xa0] ss:$24 sps:$4 sm:$0xff]  }
 0x9dd   : > { %25286 = vst [vmem:[#allocation77_spill] sm:$0xff] %v23334_v21  ;;  %v23351_v58 = vpack.c.bf16 %v23334_v21, %v23343_v4  ;;  %v19027_v21 = vld [vmem:[%s19621_s13 + $0xe8] sm:$0xff] }
 0x9de   : > { %25288 = vst [vmem:[#allocation79_spill] sm:$0xff] %v23340_v22  ;;  %11403 = vmatpush1.bf16.msra.mxu0 %v18285_v41  ;;  %v9111_v47 = vpop.f32.mrb[0].mxu1  ;;  %v23347_v12 = vpack.c.bf16 %v23340_v22, %v23337_v0  ;;  %v18296_v22 = vld [vmem:[#allocation10 + $0xd4] ss:$24 sps:$4 sm:$0xff]  }
 0x9df   : > { %v9113_v16 = vpop.f32.mrb[1].mxu1  ;;  %11404 = vmatprep.subr.bf16.mxu0 %v18290_v23  ;;  %v16202_v50 = vadd.f32 %v9111_v47, %v23299_v31  ;;  %v19028_v47 = vld [vmem:[%s19621_s13 + $0x118] sm:$0xff] }
 0x9e0   : > { %v16203_v11 = vadd.f32 %v9113_v16, %v23295_v9  ;;  %v9115_v26 = vpop.f32.mrb[2].mxu1  ;;  %11150 = vmatprep.mubr.bf16.mxu0 %v23347_v12  ;;  %11369 = vmatprep.mubr.bf16.mxu1 %v23347_v12 }
 0x9e1   : > { %v16204_v53 = vadd.f32 %v9115_v26, %v23299_v31  ;;  %v9117_v41 = vpop.f32.mrb[3].mxu1  ;;  %11151 = vmatmul.mubr.bf16.gmra.mrb[108].mxu0 %v23351_v58  ;;  %11370 = vmatmul.mubr.bf16.gmra.mrb[12].mxu1 %v23351_v58  ;;  %v19029_v26 = vld [vmem:[%s19621_s13 + $0xe0] sm:$0xff] }
 0x9e2   : > { %v16205_v23 = vadd.f32 %v9117_v41, %v23295_v9  ;;  %11405 = vmatpush1.bf16.msra.mxu0 %v18288_v57  ;;  %v23365_v0 = vadd.f32 %v19027_v21, %v16203_v11  ;;  %v23371_v6 = vadd.f32 %v19029_v26, %v16202_v50  ;;  %v18294_v41 = vld [vmem:[#allocation10 + $0xd0] ss:$24 sps:$4 sm:$0xff]   ;;  %v18299_v11 = vld [vmem:[#allocation10 + $0x104] ss:$24 sps:$4 sm:$0xff]  }
 0x9e3   : > { %v23362_v16 = vadd.f32 %v19026_v13, %v16204_v53  ;;  %11406 = vmatprep.subr.bf16.mxu0 %v18293_v33  ;;  %v19030_v26 = vld [vmem:[%s19621_s13 + $0x170] sm:$0xff] }
 0x9e4   : > { %25291 = vst [vmem:[#allocation76_spill] sm:$0xff] %v23365_v0  ;;  %v23368_v4 = vadd.f32 %v19028_v47, %v16205_v23  ;;  %25293 = vst [vmem:[#allocation78_spill] sm:$0xff] %v23371_v6  ;;  %v18297_v47 = vld [vmem:[#allocation10 + $0x100] ss:$24 sps:$4 sm:$0xff]  }
 0x9e5   : > { %25290 = vst [vmem:[#allocation81_spill] sm:$0xff] %v23362_v16  ;;  %v23379_v33 = vpack.c.bf16 %v23362_v16, %v23371_v6  ;;  %v19031_v16 = vld [vmem:[%s19621_s13 + $0x148] sm:$0xff] }
 0x9e6   : > { %25292 = vst [vmem:[#allocation83_spill] sm:$0xff] %v23368_v4  ;;  %11407 = vmatpush1.bf16.msra.mxu0 %v18291_v48  ;;  %v9121_v25 = vpop.f32.mrb[4].mxu1  ;;  %v23375_v57 = vpack.c.bf16 %v23368_v4, %v23365_v0  ;;  %v18302_v4 = vld [vmem:[#allocation10 + $0x134] ss:$24 sps:$4 sm:$0xff]  }
 0x9e7   : > { %v9123_v21 = vpop.f32.mrb[5].mxu1  ;;  %11408 = vmatprep.subr.bf16.mxu0 %v18296_v22  ;;  %v16206_v23 = vadd.f32 %v9121_v25, %v23299_v31  ;;  %v19032_v25 = vld [vmem:[%s19621_s13 + $0x178] sm:$0xff] }
 0x9e8   : > { %v16207_v53 = vadd.f32 %v9123_v21, %v23295_v9  ;;  %v9125_v50 = vpop.f32.mrb[6].mxu1  ;;  %11160 = vmatprep.mubr.bf16.mxu0 %v23375_v57  ;;  %11379 = vmatprep.mubr.bf16.mxu1 %v23375_v57 }
 0x9e9   : > { %v16208_v48 = vadd.f32 %v9125_v50, %v23299_v31  ;;  %v9127_v13 = vpop.f32.mrb[7].mxu1  ;;  %11161 = vmatmul.mubr.bf16.gmra.mrb[112].mxu0 %v23379_v33  ;;  %11380 = vmatmul.mubr.bf16.gmra.mrb[16].mxu1 %v23379_v33  ;;  %v19033_v31 = vld [vmem:[%s19621_s13 + $0x140] sm:$0xff]  ;;  %s14589_s13 = scalar_lea.sflag [#allocation4], %s19615_s19 }
 0x9ea   : > { %v16209_v22 = vadd.f32 %v9127_v13, %v23295_v9  ;;  %11409 = vmatpush1.bf16.msra.mxu0 %v18294_v41  ;;  %v23393_v0 = vadd.f32 %v19031_v16, %v16207_v53  ;;  %v23399_v50 = vadd.f32 %v19033_v31, %v16206_v23  ;;  %v18300_v41 = vld [vmem:[#allocation10 + $0x130] ss:$24 sps:$4 sm:$0xff]   ;;  %v18303_v16 = vld [vmem:[#allocation10 + $0x160] ss:$24 sps:$4 sm:$0xff]   ;;  %v18308_v53 = vld [vmem:[#allocation10 + $0x194] ss:$24 sps:$4 sm:$0xff]  }
 0x9eb   : > { %v23390_v21 = vadd.f32 %v19030_v26, %v16208_v48  ;;  %11410 = vmatprep.subr.bf16.mxu0 %v18299_v11  ;;  %v18305_v11 = vld [vmem:[#allocation10 + $0x164] ss:$24 sps:$4 sm:$0xff]   ;;  %v18306_v23 = vld [vmem:[#allocation10 + $0x190] ss:$24 sps:$4 sm:$0xff]   ;;  %v18320_v31 = vld [vmem:[#allocation10 + $0x254] ss:$24 sps:$4 sm:$0xff]  }
 0x9ec   : > { %25295 = vst [vmem:[#allocation80_spill] sm:$0xff] %v23393_v0  ;;  %v23396_v6 = vadd.f32 %v19032_v25, %v16209_v22  ;;  %25297 = vst [vmem:[#allocation82_spill] sm:$0xff] %v23399_v50  ;;  %v18311_v13 = vld [vmem:[#allocation10 + $0x1c4] ss:$24 sps:$4 sm:$0xff]   ;;  %v18314_v22 = vld [vmem:[#allocation10 + $0x1f4] ss:$24 sps:$4 sm:$0xff]  }
 0x9ed   : > { %25294 = vst [vmem:[#allocation85_spill] sm:$0xff] %v23390_v21  ;;  %v23407_v48 = vpack.c.bf16 %v23390_v21, %v23399_v50  ;;  %v18317_v26 = vld [vmem:[#allocation10 + $0x224] ss:$24 sps:$4 sm:$0xff]   ;;  %v18315_v25 = vld [vmem:[#allocation10 + $0x220] ss:$24 sps:$4 sm:$0xff]  }
 0x9ee   : > { %25296 = vst [vmem:[#allocation87_spill] sm:$0xff] %v23396_v6  ;;  %11411 = vmatpush1.bf16.msra.mxu0 %v18297_v47  ;;  %v23403_v9 = vpack.c.bf16 %v23396_v6, %v23393_v0  ;;  %v18312_v47 = vld [vmem:[#allocation10 + $0x1f0] ss:$24 sps:$4 sm:$0xff]  }
 0x9ef   : > { %11412 = vmatprep.subr.bf16.mxu0 %v18302_v4  ;;  %v18309_v4 = vld [vmem:[#allocation10 + $0x1c0] ss:$24 sps:$4 sm:$0xff]  }
 0x9f0   : > { %11170 = vmatprep.mubr.bf16.mxu0 %v23403_v9  ;;  %11389 = vmatprep.mubr.bf16.mxu1 %v23403_v9 }
 0x9f1   : > { %11171 = vmatmul.mubr.bf16.gmra.mrb[116].mxu0 %v23407_v48  ;;  %11390 = vmatmul.mubr.bf16.gmra.mrb[20].mxu1 %v23407_v48 }
 0x9f2   : > { %11413 = vmatpush1.bf16.msra.mxu0 %v18300_v41  ;;  %11432 = vmatprep.mubr.bf16.mxu0 %v23029_v35  ;;  %v18318_v35 = vld [vmem:[#allocation10 + $0x250] ss:$24 sps:$4 sm:$0xff]   ;;  %v18323_v41 = vld [vmem:[#allocation10 + $0x284] ss:$24 sps:$4 sm:$0xff]  }
 0x9f3   : > { %11414 = vmatprep.subr.bf16.mxu0 %v18305_v11  ;;  %v18321_v11 = vld [vmem:[#allocation10 + $0x280] ss:$24 sps:$4 sm:$0xff]  }
 0x9f6   : > { %11415 = vmatpush1.bf16.msra.mxu0 %v18303_v16  ;;  %v18326_v16 = vld [vmem:[#allocation10 + $0x2b4] ss:$24 sps:$4 sm:$0xff]  }
 0x9f7   : > { %11416 = vmatprep.subr.bf16.mxu0 %v18308_v53  ;;  %v18324_v53 = vld [vmem:[#allocation10 + $0x2b0] ss:$24 sps:$4 sm:$0xff]  }
 0x9fa   : > { %11417 = vmatpush1.bf16.msra.mxu0 %v18306_v23  ;;  %v18420_v23 = vld [vmem:[#allocation11] ss:$24 sps:$4 sm:$0xff]  }
 0x9fb   : > { %11418 = vmatprep.subr.bf16.mxu0 %v18311_v13  ;;  %v18422_v13 = vld [vmem:[#allocation11 + $0x4] ss:$24 sps:$4 sm:$0xff]  }
 0x9fc   : > { %13835 = vmatprep.subr.bf16.mxu1 %v18422_v13  ;;  %v18338_v13 = vld [vmem:[#allocation10 + $0x374] ss:$24 sps:$4 sm:$0xff]  }
 0x9fd   : > { %13836 = vmatpush1.bf16.msra.mxu1 %v18420_v23  ;;  %v18440_v23 = vld [vmem:[#allocation11 + $0x94] ss:$24 sps:$4 sm:$0xff]  }
 0x9fe   : > { %11419 = vmatpush1.bf16.msra.mxu0 %v18309_v4  ;;  %v18329_v4 = vld [vmem:[#allocation10 + $0x2e4] ss:$24 sps:$4 sm:$0xff]  }
 0x9ff   : > { %11420 = vmatprep.subr.bf16.mxu0 %v18314_v22  ;;  %v18327_v22 = vld [vmem:[#allocation10 + $0x2e0] ss:$24 sps:$4 sm:$0xff]  }
 0xa02   : > { %11421 = vmatpush1.bf16.msra.mxu0 %v18312_v47  ;;  %v18426_v47 = vld [vmem:[#allocation11 + $0x30] ss:$24 sps:$4 sm:$0xff]  }
 0xa03   : > { %11422 = vmatprep.subr.bf16.mxu0 %v18317_v26  ;;  %v18428_v26 = vld [vmem:[#allocation11 + $0x34] ss:$24 sps:$4 sm:$0xff]  }
 0xa04   : > { %13837 = vmatprep.subr.bf16.mxu1 %v18428_v26  ;;  %v18341_v26 = vld [vmem:[#allocation10 + $0x3a4] ss:$24 sps:$4 sm:$0xff]  }
 0xa05   : > { %13838 = vmatpush1.bf16.msra.mxu1 %v18426_v47  ;;  %v18446_v47 = vld [vmem:[#allocation11 + $0xc4] ss:$24 sps:$4 sm:$0xff]  }
 0xa06   : > { %11423 = vmatpush1.bf16.msra.mxu0 %v18315_v25  ;;  %v18332_v25 = vld [vmem:[#allocation10 + $0x314] ss:$24 sps:$4 sm:$0xff]  }
 0xa07   : > { %11424 = vmatprep.subr.bf16.mxu0 %v18320_v31  ;;  %v18330_v31 = vld [vmem:[#allocation10 + $0x310] ss:$24 sps:$4 sm:$0xff]  }
 0xa0a   : > { %11425 = vmatpush1.bf16.msra.mxu0 %v18318_v35  ;;  %v18432_v35 = vld [vmem:[#allocation11 + $0x60] ss:$24 sps:$4 sm:$0xff]  }
 0xa0b   : > { %11426 = vmatprep.subr.bf16.mxu0 %v18323_v41  ;;  %v18434_v41 = vld [vmem:[#allocation11 + $0x64] ss:$24 sps:$4 sm:$0xff]  }
 0xa0c   : > { %13839 = vmatprep.subr.bf16.mxu1 %v18434_v41  ;;  %v18456_v41 = vld [vmem:[#allocation11 + $0x120] ss:$24 sps:$4 sm:$0xff]  }
 0xa0d   : > { %13840 = vmatpush1.bf16.msra.mxu1 %v18432_v35  ;;  %v18342_v35 = vld [vmem:[#allocation10 + $0x3d0] ss:$24 sps:$4 sm:$0xff]  }
 0xa0e   : > { %11427 = vmatpush1.bf16.msra.mxu0 %v18321_v11  ;;  %v18335_v11 = vld [vmem:[#allocation10 + $0x344] ss:$24 sps:$4 sm:$0xff]   ;;  %13841 = vmatprep.subr.bf16.mxu1 %v18440_v23  ;;  %v18350_v23 = vld [vmem:[#allocation10 + $0x434] ss:$24 sps:$4 sm:$0xff]  }
 0xa0f   : > { %11428 = vmatprep.subr.bf16.mxu0 %v18326_v16  ;;  %v18333_v16 = vld [vmem:[#allocation10 + $0x340] ss:$24 sps:$4 sm:$0xff]  }
 0xa12   : > { %11429 = vmatpush1.bf16.msra.mxu0 %v18324_v53  ;;  %v18438_v53 = vld [vmem:[#allocation11 + $0x90] ss:$24 sps:$4 sm:$0xff]  }
 0xa13   : > { %11430 = vmatprep.subr.bf16.mxu0 %v18329_v4  ;;  %13842 = vmatpush1.bf16.msra.mxu1 %v18438_v53  ;;  %v18336_v4 = vld [vmem:[#allocation10 + $0x370] ss:$24 sps:$4 sm:$0xff]   ;;  %v18464_v53 = vld [vmem:[#allocation11 + $0x154] ss:$24 sps:$4 sm:$0xff]  }
 0xa14   : > { %13843 = vmatprep.subr.bf16.mxu1 %v18446_v47  ;;  %v18356_v47 = vld [vmem:[#allocation10 + $0x494] ss:$24 sps:$4 sm:$0xff]  }
 0xa16   : > { %11431 = vmatpush1.bf16.msra.mxu0 %v18327_v22  ;;  %v18444_v22 = vld [vmem:[#allocation11 + $0xc0] ss:$24 sps:$4 sm:$0xff]  }
 0xa17   : > { %11473 = vmatprep.subr.bf16.mxu0 %v18332_v25  ;;  %13844 = vmatpush1.bf16.msra.mxu1 %v18444_v22  ;;  %v18452_v25 = vld [vmem:[#allocation11 + $0xf4] ss:$24 sps:$4 sm:$0xff]   ;;  %v18470_v22 = vld [vmem:[#allocation11 + $0x184] ss:$24 sps:$4 sm:$0xff]  }
 0xa18   : > { %13845 = vmatprep.subr.bf16.mxu1 %v18452_v25  ;;  %v18359_v25 = vld [vmem:[#allocation10 + $0x4c4] ss:$24 sps:$4 sm:$0xff]  }
 0xa19   : > { %11433 = vmatmul.mubr.bf16.vlgmr.msra.gmra.mrb[120].mxu0 %v23035_v46  ;;  %v18339_v46 = vld [vmem:[#allocation10 + $0x3a0] ss:$24 sps:$4 sm:$0xff]  }
 0xa1a   : > { %11442 = vmatprep.mubr.bf16.mxu0 %v23064_v63  ;;  %11474 = vmatpush1.bf16.msra.mxu0 %v18330_v31  ;;  %v18450_v63 = vld [vmem:[#allocation11 + $0xf0] ss:$24 sps:$4 sm:$0xff]   ;;  %v18344_v31 = vld [vmem:[#allocation10 + $0x3d4] ss:$24 sps:$4 sm:$0xff]  }
 0xa1b   : > { %11475 = vmatprep.subr.bf16.mxu0 %v18335_v11  ;;  %13846 = vmatpush1.bf16.msra.mxu1 %v18450_v63  ;;  %v18458_v11 = vld [vmem:[#allocation11 + $0x124] ss:$24 sps:$4 sm:$0xff]   ;;  %v18474_v63 = vld [vmem:[#allocation11 + $0x1b0] ss:$24 sps:$4 sm:$0xff]  }
 0xa1c   : > { %13847 = vmatprep.subr.bf16.mxu1 %v18458_v11  ;;  %v18368_v11 = vld [vmem:[#allocation10 + $0x554] ss:$24 sps:$4 sm:$0xff]  }
 0xa1e   : > { %11476 = vmatpush1.bf16.msra.mxu0 %v18333_v16  ;;  %v18347_v16 = vld [vmem:[#allocation10 + $0x404] ss:$24 sps:$4 sm:$0xff]  }
 0xa1f   : > { %11477 = vmatprep.subr.bf16.mxu0 %v18338_v13  ;;  %13848 = vmatpush1.bf16.msra.mxu1 %v18456_v41  ;;  %v18348_v13 = vld [vmem:[#allocation10 + $0x430] ss:$24 sps:$4 sm:$0xff]   ;;  %v18363_v41 = vld [vmem:[#allocation10 + $0x520] ss:$24 sps:$4 sm:$0xff]  }
 0xa20   : > { %13849 = vmatprep.subr.bf16.mxu1 %v18464_v53  ;;  %v18371_v53 = vld [vmem:[#allocation10 + $0x584] ss:$24 sps:$4 sm:$0xff]  }
 0xa21   : > { %11443 = vmatmul.mubr.bf16.gmra.mrb[124].mxu0 %v23070_v10  ;;  %v18345_v10 = vld [vmem:[#allocation10 + $0x400] ss:$24 sps:$4 sm:$0xff]  }
 0xa22   : > { %11452 = vmatprep.mubr.bf16.mxu0 %v23101_v1  ;;  %11478 = vmatpush1.bf16.msra.mxu0 %v18336_v4  ;;  %v18462_v1 = vld [vmem:[#allocation11 + $0x150] ss:$24 sps:$4 sm:$0xff]   ;;  %v18353_v4 = vld [vmem:[#allocation10 + $0x464] ss:$24 sps:$4 sm:$0xff]  }
 0xa23   : > { %11479 = vmatprep.subr.bf16.mxu0 %v18341_v26  ;;  %13850 = vmatpush1.bf16.msra.mxu1 %v18462_v1  ;;  %v18476_v26 = vld [vmem:[#allocation11 + $0x1b4] ss:$24 sps:$4 sm:$0xff]   ;;  %v18366_v1 = vld [vmem:[#allocation10 + $0x550] ss:$24 sps:$4 sm:$0xff]  }
 0xa24   : > { %13851 = vmatprep.subr.bf16.mxu1 %v18470_v22  ;;  %v18374_v22 = vld [vmem:[#allocation10 + $0x5b4] ss:$24 sps:$4 sm:$0xff]  }
 0xa26   : > { %11480 = vmatpush1.bf16.msra.mxu0 %v18339_v46  ;;  %v18354_v46 = vld [vmem:[#allocation10 + $0x490] ss:$24 sps:$4 sm:$0xff]  }
 0xa27   : > { %11481 = vmatprep.subr.bf16.mxu0 %v18344_v31  ;;  %v18362_v31 = vld [vmem:[#allocation10 + $0x4f4] ss:$24 sps:$4 sm:$0xff]  }
 0xa29   : > { %11453 = vmatmul.mubr.bf16.gmra.mrb[128].mxu0 %v23111_v37  ;;  %v18351_v37 = vld [vmem:[#allocation10 + $0x460] ss:$24 sps:$4 sm:$0xff]  }
 0xa2a   : > { %11462 = vmatprep.mubr.bf16.mxu0 %v23144_v28  ;;  %11482 = vmatpush1.bf16.msra.mxu0 %v18342_v35  ;;  %v18468_v28 = vld [vmem:[#allocation11 + $0x180] ss:$24 sps:$4 sm:$0xff]   ;;  %v18365_v35 = vld [vmem:[#allocation10 + $0x524] ss:$24 sps:$4 sm:$0xff]  }
 0xa2b   : > { %11483 = vmatprep.subr.bf16.mxu0 %v18347_v16  ;;  %13852 = vmatpush1.bf16.msra.mxu1 %v18468_v28  ;;  %v18482_v16 = vld [vmem:[#allocation11 + $0x1e4] ss:$24 sps:$4 sm:$0xff]  }
 0xa2c   : > { %13853 = vmatprep.subr.bf16.mxu1 %v18476_v26  ;;  %v18377_v28 = vld [vmem:[#allocation10 + $0x5e4] ss:$24 sps:$4 sm:$0xff]   ;;  %v18380_v26 = vld [vmem:[#allocation10 + $0x614] ss:$24 sps:$4 sm:$0xff]  }
 0xa2e   : > { %11484 = vmatpush1.bf16.msra.mxu0 %v18345_v10  ;;  %v18480_v10 = vld [vmem:[#allocation11 + $0x1e0] ss:$24 sps:$4 sm:$0xff]  }
 0xa2f   : > { %11485 = vmatprep.subr.bf16.mxu0 %v18350_v23  ;;  %13854 = vmatpush1.bf16.msra.mxu1 %v18474_v63  ;;  %v18488_v23 = vld [vmem:[#allocation11 + $0x214] ss:$24 sps:$4 sm:$0xff]   ;;  %v18378_v63 = vld [vmem:[#allocation10 + $0x610] ss:$24 sps:$4 sm:$0xff]  }
 0xa30   : > { %13855 = vmatprep.subr.bf16.mxu1 %v18482_v16  ;;  %v18389_v16 = vld [vmem:[#allocation10 + $0x6a4] ss:$24 sps:$4 sm:$0xff]  }
 0xa31   : > { %11463 = vmatmul.mubr.bf16.gmra.mrb[132].mxu0 %v23151_v5  ;;  %v18357_v5 = vld [vmem:[#allocation10 + $0x4c0] ss:$24 sps:$4 sm:$0xff]  }
 0xa32   : > { %11486 = vmatpush1.bf16.msra.mxu0 %v18348_v13  ;;  %11505 = vmatprep.mubr.bf16.mxu0 %v23156_v42  ;;  %v18360_v42 = vld [vmem:[#allocation10 + $0x4f0] ss:$24 sps:$4 sm:$0xff]  }
 0xa33   : > { %11487 = vmatprep.subr.bf16.mxu0 %v18353_v4  ;;  %13856 = vmatpush1.bf16.msra.mxu1 %v18480_v10  ;;  %v18486_v13 = vld [vmem:[#allocation11 + $0x210] ss:$24 sps:$4 sm:$0xff]   ;;  %v18369_v4 = vld [vmem:[#allocation10 + $0x580] ss:$24 sps:$4 sm:$0xff]   ;;  %v18392_v10 = vld [vmem:[#allocation10 + $0x6d4] ss:$24 sps:$4 sm:$0xff]  }
 0xa34   : > { %13857 = vmatprep.subr.bf16.mxu1 %v18488_v23  ;;  %v18395_v23 = vld [vmem:[#allocation10 + $0x704] ss:$24 sps:$4 sm:$0xff]  }
 0xa36   : > { %11488 = vmatpush1.bf16.msra.mxu0 %v18351_v37  ;;  %v18372_v37 = vld [vmem:[#allocation10 + $0x5b0] ss:$24 sps:$4 sm:$0xff]  }
 0xa37   : > { %11489 = vmatprep.subr.bf16.mxu0 %v18356_v47  ;;  %13858 = vmatpush1.bf16.msra.mxu1 %v18486_v13  ;;  %v18375_v47 = vld [vmem:[#allocation10 + $0x5e0] ss:$24 sps:$4 sm:$0xff]   ;;  %v18512_v13 = vld [vmem:[#allocation11 + $0x2d4] ss:$24 sps:$4 sm:$0xff]  }
 0xa3a   : > { %11490 = vmatpush1.bf16.msra.mxu0 %v18354_v46  ;;  %v18494_v46 = vld [vmem:[#allocation11 + $0x244] ss:$24 sps:$4 sm:$0xff]  }
 0xa3b   : > { %11491 = vmatprep.subr.bf16.mxu0 %v18359_v25  ;;  %v18492_v25 = vld [vmem:[#allocation11 + $0x240] ss:$24 sps:$4 sm:$0xff]   ;;  %13859 = vmatprep.subr.bf16.mxu1 %v18494_v46 }
 0xa3c   : > { %13860 = vmatpush1.bf16.msra.mxu1 %v18492_v25  ;;  %v18405_v46 = vld [vmem:[#allocation10 + $0x7c0] ss:$24 sps:$4 sm:$0xff]   ;;  %v18408_v25 = vld [vmem:[#allocation10 + $0x7f0] ss:$24 sps:$4 sm:$0xff]  }
 0xa3e   : > { %11492 = vmatpush1.bf16.msra.mxu0 %v18357_v5  ;;  %v18383_v5 = vld [vmem:[#allocation10 + $0x644] ss:$24 sps:$4 sm:$0xff]  }
 0xa3f   : > { %11493 = vmatprep.subr.bf16.mxu0 %v18362_v31  ;;  %v18500_v31 = vld [vmem:[#allocation11 + $0x274] ss:$24 sps:$4 sm:$0xff]  }
 0xa40   : > { %13861 = vmatprep.subr.bf16.mxu1 %v18500_v31  ;;  %v18414_v31 = vld [vmem:[#allocation10 + $0x850] ss:$24 sps:$4 sm:$0xff]  }
 0xa42   : > { %11494 = vmatpush1.bf16.msra.mxu0 %v18360_v42  ;;  %v18381_v42 = vld [vmem:[#allocation10 + $0x640] ss:$24 sps:$4 sm:$0xff]  }
 0xa43   : > { %11495 = vmatprep.subr.bf16.mxu0 %v18365_v35  ;;  %v18498_v35 = vld [vmem:[#allocation11 + $0x270] ss:$24 sps:$4 sm:$0xff]  }
 0xa44   : > { %13862 = vmatpush1.bf16.msra.mxu1 %v18498_v35  ;;  %v18417_v35 = vld [vmem:[#allocation10 + $0x880] ss:$24 sps:$4 sm:$0xff]  }
 0xa46   : > { %11496 = vmatpush1.bf16.msra.mxu0 %v18363_v41  ;;  %v18386_v41 = vld [vmem:[#allocation10 + $0x674] ss:$24 sps:$4 sm:$0xff]  }
 0xa47   : > { %11497 = vmatprep.subr.bf16.mxu0 %v18368_v11  ;;  %v18384_v11 = vld [vmem:[#allocation10 + $0x670] ss:$24 sps:$4 sm:$0xff]  }
 0xa4a   : > { %11498 = vmatpush1.bf16.msra.mxu0 %v18366_v1  ;;  %v18390_v1 = vld [vmem:[#allocation10 + $0x6d0] ss:$24 sps:$4 sm:$0xff]  }
 0xa4b   : > { %11499 = vmatprep.subr.bf16.mxu0 %v18371_v53  ;;  %v18504_v53 = vld [vmem:[#allocation11 + $0x2a0] ss:$24 sps:$4 sm:$0xff]  }
 0xa4e   : > { %11500 = vmatpush1.bf16.msra.mxu0 %v18369_v4  ;;  %v18398_v4 = vld [vmem:[#allocation10 + $0x734] ss:$24 sps:$4 sm:$0xff]  }
 0xa4f   : > { %11501 = vmatprep.subr.bf16.mxu0 %v18374_v22  ;;  %v18396_v22 = vld [vmem:[#allocation10 + $0x730] ss:$24 sps:$4 sm:$0xff]  }
 0xa52   : > { %11502 = vmatpush1.bf16.msra.mxu0 %v18372_v37  ;;  %v18401_v37 = vld [vmem:[#allocation10 + $0x764] ss:$24 sps:$4 sm:$0xff]  }
 0xa53   : > { %11503 = vmatprep.subr.bf16.mxu0 %v18377_v28  ;;  %v18518_v28 = vld [vmem:[#allocation11 + $0x304] ss:$24 sps:$4 sm:$0xff]  }
 0xa56   : > { %11504 = vmatpush1.bf16.msra.mxu0 %v18375_v47  ;;  %v18402_v47 = vld [vmem:[#allocation10 + $0x790] ss:$24 sps:$4 sm:$0xff]  }
 0xa57   : > { %11546 = vmatprep.subr.bf16.mxu0 %v18380_v26  ;;  %v18407_v26 = vld [vmem:[#allocation10 + $0x7c4] ss:$24 sps:$4 sm:$0xff]  }
 0xa59   : > { %11506 = vmatmul.mubr.bf16.vlgmr.msra.gmra.mrb[120].mxu0 %v23197_v36  ;;  %v18387_v36 = vld [vmem:[#allocation10 + $0x6a0] ss:$24 sps:$4 sm:$0xff]  }
 0xa5a   : > { %11515 = vmatprep.mubr.bf16.mxu0 %v23205_v34  ;;  %11547 = vmatpush1.bf16.msra.mxu0 %v18378_v63  ;;  %v18506_v34 = vld [vmem:[#allocation11 + $0x2a4] ss:$24 sps:$4 sm:$0xff]   ;;  %v18410_v63 = vld [vmem:[#allocation10 + $0x7f4] ss:$24 sps:$4 sm:$0xff]  }
 0xa5b   : > { %11548 = vmatprep.subr.bf16.mxu0 %v18383_v5  ;;  %13863 = vmatprep.subr.bf16.mxu1 %v18506_v34  ;;  %v18411_v5 = vld [vmem:[#allocation10 + $0x820] ss:$24 sps:$4 sm:$0xff]  }
 0xa5c   : > { %13864 = vmatpush1.bf16.msra.mxu1 %v18504_v53  ;;  %v18435_v34 = vld [vmem:[#allocation11 + $0x8] ss:$24 sps:$4 sm:$0xff]   ;;  %v18441_v53 = vld [vmem:[#allocation11 + $0x38] ss:$24 sps:$4 sm:$0xff]  }
 0xa5d   : > { %13865 = vmatprep.subr.bf16.mxu1 %v18512_v13  ;;  %v18447_v13 = vld [vmem:[#allocation11 + $0x68] ss:$24 sps:$4 sm:$0xff]  }
 0xa5e   : > { %11549 = vmatpush1.bf16.msra.mxu0 %v18381_v42  ;;  %v18419_v42 = vld [vmem:[#allocation10 + $0x884] ss:$24 sps:$4 sm:$0xff]  }
 0xa5f   : > { %11550 = vmatprep.subr.bf16.mxu0 %v18386_v41  ;;  %v18425_v41 = vld [vmem:[#allocation10 + $0x8b4] ss:$24 sps:$4 sm:$0xff]  }
 0xa61   : > { %11516 = vmatmul.mubr.bf16.gmra.mrb[124].mxu0 %v23227_v51  ;;  %v18393_v51 = vld [vmem:[#allocation10 + $0x700] ss:$24 sps:$4 sm:$0xff]  }
 0xa62   : > { %11525 = vmatprep.mubr.bf16.mxu0 %v23235_v55  ;;  %11551 = vmatpush1.bf16.msra.mxu0 %v18384_v11  ;;  %v18510_v55 = vld [vmem:[#allocation11 + $0x2d0] ss:$24 sps:$4 sm:$0xff]  }
 0xa63   : > { %11552 = vmatprep.subr.bf16.mxu0 %v18389_v16  ;;  %13866 = vmatpush1.bf16.msra.mxu1 %v18510_v55  ;;  %v18423_v11 = vld [vmem:[#allocation10 + $0x8b0] ss:$24 sps:$4 sm:$0xff]   ;;  %v18431_v16 = vld [vmem:[#allocation10 + $0x8e4] ss:$24 sps:$4 sm:$0xff]  }
 0xa64   : > { %13908 = vmatprep.subr.bf16.mxu1 %v18518_v28  ;;  %v18453_v55 = vld [vmem:[#allocation11 + $0x98] ss:$24 sps:$4 sm:$0xff]  }
 0xa66   : > { %11553 = vmatpush1.bf16.msra.mxu0 %v18387_v36  ;;  %v18429_v36 = vld [vmem:[#allocation10 + $0x8e0] ss:$24 sps:$4 sm:$0xff]  }
 0xa67   : > { %11554 = vmatprep.subr.bf16.mxu0 %v18392_v10  ;;  %v18437_v10 = vld [vmem:[#allocation11 + $0xc] ss:$24 sps:$4 sm:$0xff]  }
 0xa69   : > { %11526 = vmatmul.mubr.bf16.gmra.mrb[128].mxu0 %v23257_v52  ;;  %v18399_v52 = vld [vmem:[#allocation10 + $0x760] ss:$24 sps:$4 sm:$0xff]  }
 0xa6a   : > { %11535 = vmatprep.mubr.bf16.mxu0 %v23263_v3  ;;  %11555 = vmatpush1.bf16.msra.mxu0 %v18390_v1  ;;  %v18404_v3 = vld [vmem:[#allocation10 + $0x794] ss:$24 sps:$4 sm:$0xff]  }
 0xa6b   : > { %11556 = vmatprep.subr.bf16.mxu0 %v18395_v23  ;;  %v18443_v1 = vld [vmem:[#allocation11 + $0x3c] ss:$24 sps:$4 sm:$0xff]   ;;  %v18449_v23 = vld [vmem:[#allocation11 + $0x6c] ss:$24 sps:$4 sm:$0xff]  }
 0xa6e   : > { %11557 = vmatpush1.bf16.msra.mxu0 %v18393_v51  ;;  %v18455_v51 = vld [vmem:[#allocation11 + $0x9c] ss:$24 sps:$4 sm:$0xff]  }
 0xa6f   : > { %11558 = vmatprep.subr.bf16.mxu0 %v18398_v4  ;;  %v18461_v4 = vld [vmem:[#allocation11 + $0xcc] ss:$24 sps:$4 sm:$0xff]  }
 0xa71   : > { %11536 = vmatmul.mubr.bf16.gmra.mrb[132].mxu0 %v23277_v7  ;;  %v18413_v7 = vld [vmem:[#allocation10 + $0x824] ss:$24 sps:$4 sm:$0xff]  }
 0xa72   : > { %11559 = vmatpush1.bf16.msra.mxu0 %v18396_v22  ;;  %11578 = vmatprep.mubr.bf16.mxu0 %v23319_v44  ;;  %v18416_v44 = vld [vmem:[#allocation10 + $0x854] ss:$24 sps:$4 sm:$0xff]  }
 0xa73   : > { %11560 = vmatprep.subr.bf16.mxu0 %v18401_v37  ;;  %v18467_v22 = vld [vmem:[#allocation11 + $0xfc] ss:$24 sps:$4 sm:$0xff]  }
 0xa76   : > { %11561 = vmatpush1.bf16.msra.mxu0 %v18399_v52 }
 0xa77   : > { %11562 = vmatprep.subr.bf16.mxu0 %v18404_v3  ;;  %v18473_v3 = vld [vmem:[#allocation11 + $0x12c] ss:$24 sps:$4 sm:$0xff]  }
 0xa7a   : > { %11563 = vmatpush1.bf16.msra.mxu0 %v18402_v47 }
 0xa7b   : > { %11564 = vmatprep.subr.bf16.mxu0 %v18407_v26 }
 0xa7e   : > { %11565 = vmatpush1.bf16.msra.mxu0 %v18405_v46 }
 0xa7f   : > { %11566 = vmatprep.subr.bf16.mxu0 %v18410_v63 }
 0xa82   : > { %11567 = vmatpush1.bf16.msra.mxu0 %v18408_v25 }
 0xa83   : > { %11568 = vmatprep.subr.bf16.mxu0 %v18413_v7 }
 0xa86   : > { %11569 = vmatpush1.bf16.msra.mxu0 %v18411_v5 }
 0xa87   : > { %11570 = vmatprep.subr.bf16.mxu0 %v18416_v44 }
 0xa8a   : > { %11571 = vmatpush1.bf16.msra.mxu0 %v18414_v31  ;;  %v18471_v31 = vld [vmem:[#allocation11 + $0x128] ss:$24 sps:$4 sm:$0xff]  }
 0xa8b   : > { %11572 = vmatprep.subr.bf16.mxu0 %v18419_v42 }
 0xa8e   : > { %11573 = vmatpush1.bf16.msra.mxu0 %v18417_v35 }
 0xa8f   : > { %11574 = vmatprep.subr.bf16.mxu0 %v18425_v41 }
 0xa92   : > { %11575 = vmatpush1.bf16.msra.mxu0 %v18423_v11 }
 0xa93   : > { %11576 = vmatprep.subr.bf16.mxu0 %v18431_v16 }
 0xa96   : > { %11577 = vmatpush1.bf16.msra.mxu0 %v18429_v36 }
 0xa97   : > { %14054 = vmatprep.subr.bf16.mxu0 %v18437_v10  ;;  %v18479_v10 = vld [vmem:[#allocation11 + $0x15c] ss:$24 sps:$4 sm:$0xff]  }
 0xa99   : > { %11579 = vmatmul.mubr.bf16.vlgmr.msra.gmra.mrb[120].mxu0 %v23323_v19  ;;  %v18459_v19 = vld [vmem:[#allocation11 + $0xc8] ss:$24 sps:$4 sm:$0xff]  }
 0xa9a   : > { %11588 = vmatprep.mubr.bf16.mxu0 %v23347_v12  ;;  %14055 = vmatpush1.bf16.msra.mxu0 %v18435_v34  ;;  %v9490_v12 = vld [vmem:[%s25298_s17] sm:$0x3f] }
 0xa9b   : > { %14056 = vmatprep.subr.bf16.mxu0 %v18443_v1  ;;  %v23439_v37 = vrot.slane %v9490_v12, %v25245_v20  ;;  %v23446_v28 = vrot.slane %v9490_v12, %v25244_v30  ;;  %v23449_v52 = vrot.slane %v9490_v12, %v23083_v27  ;;  %v18525_v27 = vld [vmem:[#allocation11 + $0x2d8] ss:$24 sps:$4 sm:$0xff]  }
 0xa9e   : > { %14057 = vmatpush1.bf16.msra.mxu0 %v18441_v53 }
 0xa9f   : > { %14058 = vmatprep.subr.bf16.mxu0 %v18449_v23 }
 0xaa1   : > { %11589 = vmatmul.mubr.bf16.gmra.mrb[124].mxu0 %v23351_v58  ;;  %v23442_v58 = vrot.slane %v9490_v12, %v23165_v32 }
 0xaa2   : > { %11598 = vmatprep.mubr.bf16.mxu0 %v23375_v57  ;;  %14059 = vmatpush1.bf16.msra.mxu0 %v18447_v13  ;;  %v18465_v57 = vld [vmem:[#allocation11 + $0xf8] ss:$24 sps:$4 sm:$0xff]  }
 0xaa3   : > { %14060 = vmatprep.subr.bf16.mxu0 %v18455_v51 }
 0xaa6   : > { %14061 = vmatpush1.bf16.msra.mxu0 %v18453_v55 }
 0xaa7   : > { %14062 = vmatprep.subr.bf16.mxu0 %v18461_v4 }
 0xaa9   : > { %11599 = vmatmul.mubr.bf16.gmra.mrb[128].mxu0 %v23379_v33 }
 0xaaa   : > { %11608 = vmatprep.mubr.bf16.mxu0 %v23403_v9  ;;  %14063 = vmatpush1.bf16.msra.mxu0 %v18459_v19 }
 0xaab   : > { %14064 = vmatprep.subr.bf16.mxu0 %v18467_v22 }
 0xaac   : > { %v11142_v47 = vpop.f32.mrb[104].mxu0  ;;  %v11361_v33 = vpop.f32.mrb[8].mxu1 }
 0xaad   : > { %v23452_v26 = vadd.f32 %v11142_v47, %v23439_v37  ;;  %v23455_v46 = vadd.f32 %v11361_v33, %v23442_v58  ;;  %v11144_v63 = vpop.f32.mrb[105].mxu0  ;;  %v11363_v9 = vpop.f32.mrb[9].mxu1 }
 0xaae   : > { %v23458_v25 = vadd.f32 %v11144_v63, %v23446_v28  ;;  %v23461_v7 = vadd.f32 %v11363_v9, %v23449_v52  ;;  %14065 = vmatpush1.bf16.msra.mxu0 %v18465_v57  ;;  %v11146_v5 = vpop.f32.mrb[106].mxu0  ;;  %v11365_v44 = vpop.f32.mrb[10].mxu1 }
 0xaaf   : > { %v11619_v42 = vmul.f32 %v23452_v26, %v23452_v26  ;;  %v11621_v35 = vmul.f32 %v23455_v46, %v23455_v46  ;;  %v23468_v41 = vadd.f32 %v11146_v5, %v23439_v37  ;;  %v23471_v11 = vadd.f32 %v11365_v44, %v23442_v58  ;;  %v11148_v16 = vpop.f32.mrb[107].mxu0  ;;  %v11367_v36 = vpop.f32.mrb[11].mxu1  ;;  %14066 = vmatprep.subr.bf16.mxu0 %v18473_v3  ;;  %v18477_v3 = vld [vmem:[#allocation11 + $0x158] ss:$24 sps:$4 sm:$0xff]  }
 0xab0   : > { %v11620_v34 = vmul.f32 %v23458_v25, %v23458_v25  ;;  %v11622_v1 = vmul.f32 %v23461_v7, %v23461_v7  ;;  %v23478_v53 = vadd.f32 %v11148_v16, %v23446_v28  ;;  %v23481_v23 = vadd.f32 %v11367_v36, %v23449_v52 }
 0xab1   : > { %v11667_v13 = vmul.f32 %v23452_v26, %v11619_v42  ;;  %v11669_v51 = vmul.f32 %v23455_v46, %v11621_v35  ;;  %v11625_v55 = vmul.f32 %v23468_v41, %v23468_v41  ;;  %v11627_v4 = vmul.f32 %v23471_v11, %v23471_v11  ;;  %11609 = vmatmul.mubr.bf16.gmra.mrb[132].mxu0 %v23407_v48  ;;  %v18485_v48 = vld [vmem:[#allocation11 + $0x18c] ss:$24 sps:$4 sm:$0xff]  }
 0xab2   : > { %v11668_v19 = vmul.f32 %v23458_v25, %v11620_v34  ;;  %v11670_v12 = vmul.f32 %v23461_v7, %v11622_v1  ;;  %v11626_v22 = vmul.f32 %v23478_v53, %v23478_v53  ;;  %v11628_v57 = vmul.f32 %v23481_v23, %v23481_v23  ;;  %14067 = vmatpush1.bf16.msra.mxu0 %v18471_v31  ;;  %v18483_v34 = vld [vmem:[#allocation11 + $0x188] ss:$24 sps:$4 sm:$0xff]  }
 0xab3   : > { %v11715_v47 = vmul.f32 0.044715, %v11667_v13  ;;  %v11717_v33 = vmul.f32 0.044715, %v11669_v51  ;;  %v11673_v63 = vmul.f32 %v23468_v41, %v11625_v55  ;;  %v11675_v9 = vmul.f32 %v23471_v11, %v11627_v4  ;;  %14068 = vmatprep.subr.bf16.mxu0 %v18479_v10  ;;  %v18491_v4 = vld [vmem:[#allocation11 + $0x1bc] ss:$24 sps:$4 sm:$0xff]  }
 0xab4   : > { %v11716_v5 = vmul.f32 0.044715, %v11668_v19  ;;  %v11718_v44 = vmul.f32 0.044715, %v11670_v12  ;;  %v11674_v42 = vmul.f32 %v23478_v53, %v11626_v22  ;;  %v11676_v35 = vmul.f32 %v23481_v23, %v11628_v57  ;;  %v11152_v16 = vpop.f32.mrb[108].mxu0  ;;  %v11371_v36 = vpop.f32.mrb[12].mxu1 }
 0xab5   : > { %v11763_v31 = vadd.f32 %v23452_v26, %v11715_v47  ;;  %v11765_v1 = vadd.f32 %v23455_v46, %v11717_v33  ;;  %v11721_v13 = vmul.f32 0.044715, %v11673_v63  ;;  %v11723_v51 = vmul.f32 0.044715, %v11675_v9  ;;  %v11154_v55 = vpop.f32.mrb[109].mxu0  ;;  %v11373_v6 = vpop.f32.mrb[13].mxu1 }
 0xab6   : > { %v11764_v10 = vadd.f32 %v23458_v25, %v11716_v5  ;;  %v11766_v19 = vadd.f32 %v23461_v7, %v11718_v44  ;;  %v11722_v12 = vmul.f32 0.044715, %v11674_v42  ;;  %v11724_v22 = vmul.f32 0.044715, %v11676_v35  ;;  %14069 = vmatpush1.bf16.msra.mxu0 %v18477_v3  ;;  %v11156_v57 = vpop.f32.mrb[110].mxu0  ;;  %v11375_v21 = vpop.f32.mrb[14].mxu1 }
 0xab7   : > { %v11811_v0 = vmul.f32 0.7978846, %v11763_v31  ;;  %v11813_v50 = vmul.f32 0.7978846, %v11765_v1  ;;  %v11769_v47 = vadd.f32 %v23468_v41, %v11721_v13  ;;  %v11771_v33 = vadd.f32 %v23471_v11, %v11723_v51  ;;  %v11158_v63 = vpop.f32.mrb[111].mxu0  ;;  %v11377_v9 = vpop.f32.mrb[15].mxu1  ;;  %14070 = vmatprep.subr.bf16.mxu0 %v18485_v48 }
 0xab8   : > { %v11812_v8 = vmul.f32 0.7978846, %v11764_v10  ;;  %v11814_v54 = vmul.f32 0.7978846, %v11766_v19  ;;  %v11770_v5 = vadd.f32 %v23478_v53, %v11722_v12  ;;  %v11772_v44 = vadd.f32 %v23481_v23, %v11724_v22  ;;  %v18489_v48 = vld [vmem:[#allocation11 + $0x1b8] ss:$24 sps:$4 sm:$0xff]  }
 0xab9   : > { %18890 = vtanh.f32 %v11811_v0  ;;  %v11817_v42 = vmul.f32 0.7978846, %v11769_v47  ;;  %v11819_v3 = vmul.f32 0.7978846, %v11771_v33  ;;  %v23509_v35 = vadd.f32 %v11152_v16, %v23439_v37  ;;  %v18497_v16 = vld [vmem:[#allocation11 + $0x1ec] ss:$24 sps:$4 sm:$0xff]  }
 0xaba   : > { %18892 = vtanh.f32 %v11813_v50  ;;  %v11818_v31 = vmul.f32 0.7978846, %v11770_v5  ;;  %v11820_v1 = vmul.f32 0.7978846, %v11772_v44  ;;  %v23512_v13 = vadd.f32 %v11371_v36, %v23442_v58  ;;  %14071 = vmatpush1.bf16.msra.mxu0 %v18483_v34  ;;  %v18495_v5 = vld [vmem:[#allocation11 + $0x1e8] ss:$24 sps:$4 sm:$0xff]  }
 0xabb   : > { %18894 = vtanh.f32 %v11812_v8  ;;  %v11631_v51 = vmul.f32 %v23509_v35, %v23509_v35  ;;  %v23517_v10 = vadd.f32 %v11154_v55, %v23446_v28  ;;  %v23520_v0 = vadd.f32 %v11373_v6, %v23449_v52  ;;  %14072 = vmatprep.subr.bf16.mxu0 %v18491_v4 }
 0xabc   : > { %18896 = vtanh.f32 %v11814_v54  ;;  %v11633_v50 = vmul.f32 %v23512_v13, %v23512_v13  ;;  %v23525_v36 = vadd.f32 %v11156_v57, %v23439_v37  ;;  %v23528_v8 = vadd.f32 %v11375_v21, %v23442_v58  ;;  %v23530_v34 = vpop.f32.mrb[112].mxu0  ;;  %v23532_v19 = vpop.f32.mrb[16].mxu1 }
 0xabd   : > { %18898 = vtanh.f32 %v11817_v42  ;;  %v11679_v6 = vmul.f32 %v23509_v35, %v11631_v51  ;;  %v11632_v55 = vmul.f32 %v23517_v10, %v23517_v10  ;;  %v11634_v54 = vmul.f32 %v23520_v0, %v23520_v0  ;;  %v23539_v4 = vpop.f32.mrb[113].mxu0  ;;  %v23541_v12 = vpop.f32.mrb[17].mxu1 }
 0xabe   : > { %18900 = vtanh.f32 %v11819_v3  ;;  %v11681_v21 = vmul.f32 %v23512_v13, %v11633_v50  ;;  %v11637_v22 = vmul.f32 %v23525_v36, %v23525_v36  ;;  %v11639_v57 = vmul.f32 %v23528_v8, %v23528_v8  ;;  %14073 = vmatpush1.bf16.msra.mxu0 %v18489_v48  ;;  %v23548_v47 = vpop.f32.mrb[114].mxu0  ;;  %v23550_v33 = vpop.f32.mrb[18].mxu1 }
 0xabf   : > { %18902 = vtanh.f32 %v11818_v31  ;;  %v11727_v44 = vmul.f32 0.044715, %v11679_v6  ;;  %v11680_v42 = vmul.f32 %v23517_v10, %v11632_v55  ;;  %v11682_v3 = vmul.f32 %v23520_v0, %v11634_v54  ;;  %v23554_v51 = vpop.f32.mrb[115].mxu0  ;;  %v23556_v50 = vpop.f32.mrb[19].mxu1  ;;  %14074 = vmatprep.subr.bf16.mxu0 %v18497_v16 }
 0xac0   : > { %18904 = vtanh.f32 %v11820_v1  ;;  %v11729_v40 = vmul.f32 0.044715, %v11681_v21  ;;  %v11685_v48 = vmul.f32 %v23525_v36, %v11637_v22  ;;  %v11687_v39 = vmul.f32 %v23528_v8, %v11639_v57  ;;  %v18501_v1 = vld [vmem:[#allocation11 + $0x218] ss:$24 sps:$4 sm:$0xff]  }
 0xac1   : > { %v11775_v61 = vadd.f32 %v23509_v35, %v11727_v44  ;;  %v11728_v31 = vmul.f32 0.044715, %v11680_v42  ;;  %v11730_v6 = vmul.f32 0.044715, %v11682_v3  ;;  %v23562_v55 = vadd.f32 %v11158_v63, %v23446_v28  ;;  %v18509_v63 = vld [vmem:[#allocation11 + $0x24c] ss:$24 sps:$4 sm:$0xff]  }
 0xac2   : > { %v11777_v54 = vadd.f32 %v23512_v13, %v11729_v40  ;;  %v11733_v38 = vmul.f32 0.044715, %v11685_v48  ;;  %v11735_v14 = vmul.f32 0.044715, %v11687_v39  ;;  %v23566_v16 = vadd.f32 %v11377_v9, %v23449_v52  ;;  %14075 = vmatpush1.bf16.msra.mxu0 %v18495_v5 }
 0xac3   : > { %v18891_v21 = vpop.eup %18890  ;;  %v11823_v22 = vmul.f32 0.7978846, %v11775_v61  ;;  %v11776_v57 = vadd.f32 %v23517_v10, %v11728_v31  ;;  %v11778_v44 = vadd.f32 %v23520_v0, %v11730_v6  ;;  %v11638_v42 = vmul.f32 %v23562_v55, %v23562_v55  ;;  %14076 = vmatprep.subr.bf16.mxu0 %v18503_v60  ;;  %v18507_v61 = vld [vmem:[#allocation11 + $0x248] ss:$24 sps:$4 sm:$0xff]  }
 0xac4   : > { %v18893_v3 = vpop.eup %18892  ;;  %v11907_v40 = vadd.f32 1.0, %v18891_v21  ;;  %v11825_v48 = vmul.f32 0.7978846, %v11777_v54  ;;  %v11781_v39 = vadd.f32 %v23525_v36, %v11733_v38  ;;  %v11783_v9 = vadd.f32 %v23528_v8, %v11735_v14  ;;  %v23574_v5 = vpop.f32.mrb[116].mxu0 }
 0xac5   : > { %v23576_v24 = vpop.f32.mrb[20].mxu1  ;;  %v23578_v31 = vpop.eup %18894  ;;  %v11909_v6 = vadd.f32 1.0, %v18893_v3  ;;  %18906 = vtanh.f32 %v11823_v22  ;;  %v11824_v49 = vmul.f32 0.7978846, %v11776_v57  ;;  %v11826_v45 = vmul.f32 0.7978846, %v11778_v44 }
 0xac6   : > { %v23580_v60 = vpop.f32.mrb[117].mxu0  ;;  %v23582_v62 = vpop.eup %18896  ;;  %v11955_v54 = vmul.f32 0.5, %v11907_v40  ;;  %18908 = vtanh.f32 %v11825_v48  ;;  %v11829_v38 = vmul.f32 0.7978846, %v11781_v39  ;;  %v11831_v21 = vmul.f32 0.7978846, %v11783_v9  ;;  %14077 = vmatpush1.bf16.msra.mxu0 %v18501_v1 }
 0xac7   : > { %v23584_v14 = vpop.f32.mrb[21].mxu1  ;;  %v18899_v56 = vpop.eup %18898  ;;  %v11957_v18 = vmul.f32 0.5, %v11909_v6  ;;  %18910 = vtanh.f32 %v11824_v49  ;;  %v11686_v15 = vmul.f32 %v23562_v55, %v11638_v42  ;;  %v11640_v22 = vmul.f32 %v23566_v16, %v23566_v16  ;;  %14078 = vmatprep.subr.bf16.mxu0 %v18509_v63  ;;  %v18515_v3 = vld [vmem:[#allocation11 + $0x27c] ss:$24 sps:$4 sm:$0xff]  }
 0xac8   : > { %v23589_v57 = vpop.f32.mrb[118].mxu0  ;;  %v23591_v44 = vpop.f32.mrb[22].mxu1  ;;  %v12003_v48 = vmul.f32 %v23452_v26, %v11955_v54  ;;  %v11913_v39 = vadd.f32 1.0, %v18899_v56  ;;  %18912 = vtanh.f32 %v11826_v45  ;;  %v23596_v1 = vadd.f32 %v23530_v34, %v23439_v37  ;;  %v18513_v34 = vld [vmem:[#allocation11 + $0x278] ss:$24 sps:$4 sm:$0xff]  }
 0xac9   : > { %v18901_v40 = vpop.eup %18900  ;;  %v23598_v49 = vpop.f32.mrb[119].mxu0  ;;  %v12005_v6 = vmul.f32 %v23455_v46, %v11957_v18  ;;  %18914 = vtanh.f32 %v11829_v38  ;;  %v11734_v63 = vmul.f32 0.044715, %v11686_v15  ;;  %v11688_v45 = vmul.f32 %v23566_v16, %v11640_v22  ;;  %v18521_v46 = vld [vmem:[#allocation11 + $0x2ac] ss:$24 sps:$4 sm:$0xff]  }
 0xaca   : > { %v23600_v42 = vpop.f32.mrb[23].mxu1  ;;  %v23602_v9 = vpop.eup %18902  ;;  %v11915_v43 = vadd.f32 1.0, %v18901_v40  ;;  %v11961_v26 = vmul.f32 0.5, %v11913_v39  ;;  %18916 = vtanh.f32 %v11831_v21  ;;  %v11643_v56 = vmul.f32 %v23596_v1, %v23596_v1  ;;  %14079 = vmatpush1.bf16.msra.mxu0 %v18507_v61 }
 0xacb   : > { %v23605_v17 = vpop.eup %18904  ;;  %v11782_v2 = vadd.f32 %v23562_v55, %v11734_v63  ;;  %v23613_v18 = vadd.f32 %v23532_v19, %v23442_v58  ;;  %v23617_v15 = vadd.f32 %v23539_v4, %v23446_v28  ;;  %14080 = vmatprep.subr.bf16.mxu0 %v18515_v3  ;;  %v11736_v21 = vmul.f32 0.044715, %v11688_v45 }
 0xacc   : > { %v11963_v54 = vmul.f32 0.5, %v11915_v43  ;;  %v12009_v38 = vmul.f32 %v23468_v41, %v11961_v26  ;;  %v11691_v22 = vmul.f32 %v23596_v1, %v11643_v56  ;;  %v23623_v43 = vadd.f32 %v23541_v12, %v23449_v52  ;;  %v18519_v12 = vld [vmem:[#allocation11 + $0x2a8] ss:$24 sps:$4 sm:$0xff]   ;;  %v18527_v56 = vld [vmem:[#allocation11 + $0x2dc] ss:$24 sps:$4 sm:$0xff]  }
 0xacd   : > { %v11830_v40 = vmul.f32 0.7978846, %v11782_v2  ;;  %v11645_v19 = vmul.f32 %v23613_v18, %v23613_v18  ;;  %v11644_v4 = vmul.f32 %v23617_v15, %v23617_v15  ;;  %v11784_v41 = vadd.f32 %v23566_v16, %v11736_v21 }
 0xace   : > { %v12011_v61 = vmul.f32 %v23471_v11, %v11963_v54  ;;  %v23630_v3 = vpack.c.bf16 %v12009_v38, %v12003_v48  ;;  %v11739_v39 = vmul.f32 0.044715, %v11691_v22  ;;  %v11646_v63 = vmul.f32 %v23623_v43, %v23623_v43  ;;  %14081 = vmatpush1.bf16.msra.mxu0 %v18513_v34 }
 0xacf   : > { %v18907_v26 = vpop.eup %18906  ;;  %18918 = vtanh.f32 %v11830_v40  ;;  %v11693_v2 = vmul.f32 %v23613_v18, %v11645_v19  ;;  %v11692_v11 = vmul.f32 %v23617_v15, %v11644_v4  ;;  %14082 = vmatprep.subr.bf16.mxu0 %v18521_v46  ;;  %v11832_v38 = vmul.f32 0.7978846, %v11784_v41 }
 0xad0   : > { %v23635_v45 = vpack.c.bf16 %v12011_v61, %v12005_v6  ;;  %v18909_v48 = vpop.eup %18908  ;;  %v11919_v54 = vadd.f32 1.0, %v18907_v26  ;;  %v11787_v21 = vadd.f32 %v23596_v1, %v11739_v39  ;;  %v11694_v22 = vmul.f32 %v23623_v43, %v11646_v63 }
 0xad1   : > { %v23641_v34 = vpop.eup %18910  ;;  %v11921_v30 = vadd.f32 1.0, %v18909_v48  ;;  %v11741_v6 = vmul.f32 0.044715, %v11693_v2  ;;  %v11740_v61 = vmul.f32 0.044715, %v11692_v11  ;;  %v23645_v40 = vadd.f32 %v23548_v47, %v23439_v37 }
 0xad2   : > { %v23647_v19 = vpop.eup %18912  ;;  %v11967_v46 = vmul.f32 0.5, %v11919_v54  ;;  %18920 = vtanh.f32 %v11832_v38  ;;  %v11835_v4 = vmul.f32 0.7978846, %v11787_v21  ;;  %v11742_v41 = vmul.f32 0.044715, %v11694_v22  ;;  %14083 = vmatpush1.bf16.msra.mxu0 %v18519_v12 }
 0xad3   : > { %v18915_v39 = vpop.eup %18914  ;;  %v11969_v26 = vmul.f32 0.5, %v11921_v30  ;;  %v11789_v63 = vadd.f32 %v23613_v18, %v11741_v6  ;;  %v11788_v32 = vadd.f32 %v23617_v15, %v11740_v61  ;;  %v11649_v2 = vmul.f32 %v23645_v40, %v23645_v40  ;;  %14084 = vmatprep.subr.bf16.mxu0 %v18527_v56  ;;  %v18533_v11 = vld [vmem:[#allocation11 + $0x30c] ss:$24 sps:$4 sm:$0xff]  }
 0xad4   : > { %v18917_v47 = vpop.eup %18916  ;;  %v12015_v48 = vmul.f32 %v23509_v35, %v11967_v46  ;;  %v11925_v20 = vadd.f32 1.0, %v18915_v39  ;;  %18922 = vtanh.f32 %v11835_v4  ;;  %v11790_v54 = vadd.f32 %v23623_v43, %v11742_v41 }
 0xad5   : > { %v12017_v12 = vmul.f32 %v23512_v13, %v11969_v26  ;;  %v11927_v38 = vadd.f32 1.0, %v18917_v47  ;;  %v11837_v30 = vmul.f32 0.7978846, %v11789_v63  ;;  %v11836_v21 = vmul.f32 0.7978846, %v11788_v32 }
 0xad6   : > { %v11973_v22 = vmul.f32 0.5, %v11925_v20  ;;  %v11838_v6 = vmul.f32 0.7978846, %v11790_v54  ;;  %v11697_v61 = vmul.f32 %v23645_v40, %v11649_v2  ;;  %v23659_v56 = vadd.f32 %v23550_v33, %v23442_v58  ;;  %14085 = vmatpush1.bf16.msra.mxu0 %v18525_v27 }
 0xad7   : > { %v11975_v59 = vmul.f32 0.5, %v11927_v38  ;;  %18924 = vtanh.f32 %v11837_v30  ;;  %v23663_v35 = vadd.f32 %v23554_v51, %v23446_v28  ;;  %v23667_v13 = vadd.f32 %v23556_v50, %v23449_v52  ;;  %14127 = vmatprep.subr.bf16.mxu0 %v18533_v11 }
 0xad8   : > { %v12021_v20 = vmul.f32 %v23525_v36, %v11973_v22  ;;  %18926 = vtanh.f32 %v11836_v21  ;;  %v11745_v32 = vmul.f32 0.044715, %v11697_v61  ;;  %v11651_v33 = vmul.f32 %v23659_v56, %v23659_v56 }
 0xad9   : > { %v23672_v46 = vpop.eup %18918  ;;  %v12023_v27 = vmul.f32 %v23528_v8, %v11975_v59  ;;  %18928 = vtanh.f32 %v11838_v6  ;;  %v11650_v51 = vmul.f32 %v23663_v35, %v23663_v35  ;;  %v11652_v50 = vmul.f32 %v23667_v13, %v23667_v13 }
 0xada   : > { %v23679_v4 = vpack.c.bf16 %v12021_v20, %v12015_v48  ;;  %v11793_v36 = vadd.f32 %v23645_v40, %v11745_v32  ;;  %v11699_v41 = vmul.f32 %v23659_v56, %v11651_v33  ;;  %v23685_v39 = vadd.f32 %v23574_v5, %v23439_v37 }
 0xadb   : > { %v23687_v26 = vpack.c.bf16 %v12023_v27, %v12017_v12  ;;  %v11698_v59 = vmul.f32 %v23663_v35, %v11650_v51  ;;  %v11700_v8 = vmul.f32 %v23667_v13, %v11652_v50  ;;  %v23693_v63 = vadd.f32 %v23576_v24, %v23442_v58 }
 0xadc   : > { %v23695_v2 = vpop.eup %18920  ;;  %v11841_v11 = vmul.f32 0.7978846, %v11793_v36  ;;  %v11747_v47 = vmul.f32 0.044715, %v11699_v41  ;;  %v11655_v48 = vmul.f32 %v23685_v39, %v23685_v39  ;;  %v23701_v5 = vadd.f32 %v23580_v60, %v23446_v28 }
 0xadd   : > { %v11746_v54 = vmul.f32 0.044715, %v11698_v59  ;;  %v11748_v12 = vmul.f32 0.044715, %v11700_v8  ;;  %v11657_v38 = vmul.f32 %v23693_v63, %v23693_v63  ;;  %v23707_v24 = vadd.f32 %v23584_v14, %v23449_v52 }
 0xade   : > { %v18923_v30 = vpop.eup %18922  ;;  %18930 = vtanh.f32 %v11841_v11  ;;  %v11795_v21 = vadd.f32 %v23659_v56, %v11747_v47  ;;  %v11703_v22 = vmul.f32 %v23685_v39, %v11655_v48  ;;  %v11656_v6 = vmul.f32 %v23701_v5, %v23701_v5 }
 0xadf   : > { %v11931_v60 = vadd.f32 1.0, %v18923_v30  ;;  %v11794_v61 = vadd.f32 %v23663_v35, %v11746_v54  ;;  %v11796_v20 = vadd.f32 %v23667_v13, %v11748_v12  ;;  %v11705_v32 = vmul.f32 %v23693_v63, %v11657_v38 }
 0xae0   : > { %v11843_v33 = vmul.f32 0.7978846, %v11795_v21  ;;  %v11751_v27 = vmul.f32 0.044715, %v11703_v22  ;;  %v11704_v14 = vmul.f32 %v23701_v5, %v11656_v6  ;;  %v11658_v51 = vmul.f32 %v23707_v24, %v23707_v24 }
 0xae1   : > { %v18925_v50 = vpop.eup %18924  ;;  %v11979_v36 = vmul.f32 0.5, %v11931_v60  ;;  %v11842_v41 = vmul.f32 0.7978846, %v11794_v61  ;;  %v11844_v59 = vmul.f32 0.7978846, %v11796_v20  ;;  %v23721_v8 = vadd.f32 %v23589_v57, %v23439_v37 }
 0xae2   : > { %v23723_v11 = vpop.eup %18926  ;;  %v11933_v47 = vadd.f32 1.0, %v18925_v50  ;;  %18932 = vtanh.f32 %v11843_v33  ;;  %v11799_v48 = vadd.f32 %v23685_v39, %v11751_v27  ;;  %v11753_v54 = vmul.f32 0.044715, %v11705_v32 }
 0xae3   : > { %v23726_v12 = vpop.eup %18928  ;;  %v12027_v38 = vmul.f32 %v23596_v1, %v11979_v36  ;;  %18934 = vtanh.f32 %v11842_v41  ;;  %v11752_v30 = vmul.f32 0.044715, %v11704_v14  ;;  %v11706_v21 = vmul.f32 %v23707_v24, %v11658_v51 }
 0xae4   : > { %v11981_v22 = vmul.f32 0.5, %v11933_v47  ;;  %18936 = vtanh.f32 %v11844_v59  ;;  %v11847_v6 = vmul.f32 0.7978846, %v11799_v48  ;;  %v11801_v37 = vadd.f32 %v23693_v63, %v11753_v54 }
 0xae5   : > { %v11800_v57 = vadd.f32 %v23701_v5, %v11752_v30  ;;  %v11754_v60 = vmul.f32 0.044715, %v11706_v21  ;;  %v11661_v61 = vmul.f32 %v23721_v8, %v23721_v8  ;;  %v23736_v20 = vadd.f32 %v23591_v44, %v23442_v58 }
 0xae6   : > { %v23739_v1 = vmul.f32 %v23613_v18, %v11981_v22  ;;  %18938 = vtanh.f32 %v11847_v6  ;;  %v11849_v32 = vmul.f32 0.7978846, %v11801_v37  ;;  %v23743_v33 = vadd.f32 %v23598_v49, %v23446_v28 }
 0xae7   : > { %v11848_v27 = vmul.f32 0.7978846, %v11800_v57  ;;  %v11802_v14 = vadd.f32 %v23707_v24, %v11754_v60  ;;  %v11709_v51 = vmul.f32 %v23721_v8, %v11661_v61  ;;  %v11663_v50 = vmul.f32 %v23736_v20, %v23736_v20 }
 0xae8   : > { %v18931_v36 = vpop.eup %18930  ;;  %18940 = vtanh.f32 %v11849_v32  ;;  %v11662_v58 = vmul.f32 %v23743_v33, %v23743_v33  ;;  %v23753_v44 = vadd.f32 %v23600_v42, %v23449_v52  ;;  %v11908_v28 = vadd.f32 1.0, %v23578_v31 }
 0xae9   : > { %v11937_v49 = vadd.f32 1.0, %v18931_v36  ;;  %18942 = vtanh.f32 %v11848_v27  ;;  %v11850_v18 = vmul.f32 0.7978846, %v11802_v14  ;;  %v11757_v41 = vmul.f32 0.044715, %v11709_v51 }
 0xaea   : > { %v11711_v59 = vmul.f32 %v23736_v20, %v11663_v50  ;;  %v11710_v47 = vmul.f32 %v23743_v33, %v11662_v58  ;;  %v11664_v48 = vmul.f32 %v23753_v44, %v23753_v44  ;;  %v11914_v54 = vadd.f32 1.0, %v23602_v9 }
 0xaeb   : > { %v11985_v30 = vmul.f32 0.5, %v11937_v49  ;;  %18944 = vtanh.f32 %v11850_v18  ;;  %v11805_v52 = vadd.f32 %v23721_v8, %v11757_v41  ;;  %v11956_v42 = vmul.f32 0.5, %v11908_v28  ;;  %v18516_v49 = vld [vmem:[#allocation11 + $0x300] ss:$24 sps:$4 sm:$0xff]   ;;  %v18524_v18 = vld [vmem:[#allocation11 + $0x334] ss:$24 sps:$4 sm:$0xff]  }
 0xaec   : > { %v18933_v21 = vpop.eup %18932  ;;  %v11759_v31 = vmul.f32 0.044715, %v11711_v59  ;;  %v11758_v22 = vmul.f32 0.044715, %v11710_v47  ;;  %v11712_v6 = vmul.f32 %v23753_v44, %v11664_v48  ;;  %v11962_v37 = vmul.f32 0.5, %v11914_v54 }
 0xaed   : > { %v18935_v57 = vpop.eup %18934  ;;  %v12033_v60 = vmul.f32 %v23645_v40, %v11985_v30  ;;  %v11939_v61 = vadd.f32 1.0, %v18933_v21  ;;  %v11853_v32 = vmul.f32 0.7978846, %v11805_v52  ;;  %v12004_v27 = vmul.f32 %v23458_v25, %v11956_v42  ;;  %v18531_v54 = vld [vmem:[#allocation11 + $0x308] ss:$24 sps:$4 sm:$0xff]  }
 0xaee   : > { %v23765_v14 = vpop.eup %18936  ;;  %v11807_v9 = vadd.f32 %v23736_v20, %v11759_v31  ;;  %v11806_v51 = vadd.f32 %v23743_v33, %v11758_v22  ;;  %v11760_v50 = vmul.f32 0.044715, %v11712_v6  ;;  %v12010_v36 = vmul.f32 %v23478_v53, %v11962_v37  ;;  %v18539_v42 = vld [vmem:[#allocation11 + $0x33c] ss:$24 sps:$4 sm:$0xff]  }
 0xaef   : > { %v23770_v58 = vpack.c.bf16 %v12033_v60, %v12027_v38  ;;  %v11987_v28 = vmul.f32 0.5, %v11939_v61  ;;  %18946 = vtanh.f32 %v11853_v32  ;;  %v11920_v40 = vadd.f32 1.0, %v23641_v34  ;;  %v18537_v60 = vld [vmem:[#allocation11 + $0x338] ss:$24 sps:$4 sm:$0xff]  }
 0xaf0   : > { %v18939_v41 = vpop.eup %18938  ;;  %v11855_v59 = vmul.f32 0.7978846, %v11807_v9  ;;  %v11854_v25 = vmul.f32 0.7978846, %v11806_v51  ;;  %v11808_v47 = vadd.f32 %v23753_v44, %v11760_v50  ;;  %v23774_v48 = vpack.c.bf16 %v12010_v36, %v12004_v27 }
 0xaf1   : > { %v12035_v30 = vmul.f32 %v23659_v56, %v11987_v28  ;;  %v11943_v52 = vadd.f32 1.0, %v18939_v41  ;;  %v11926_v53 = vadd.f32 1.0, %v23672_v46  ;;  %v11968_v38 = vmul.f32 0.5, %v11920_v40  ;;  %v18522_v56 = vld [vmem:[#allocation11 + $0x330] ss:$24 sps:$4 sm:$0xff]  }
 0xaf2   : > { %v18941_v21 = vpop.eup %18940  ;;  %18948 = vtanh.f32 %v11855_v59  ;;  %v11856_v31 = vmul.f32 0.7978846, %v11808_v47  ;;  %13867 = vmatprep.mubr.bf16.mxu1 %v23774_v48  ;;  %14086 = vmatprep.mubr.bf16.mxu0 %v23774_v48  ;;  %v11932_v34 = vadd.f32 1.0, %v23723_v11  ;;  %v11938_v22 = vadd.f32 1.0, %v18935_v57  ;;  %v18530_v11 = vld [vmem:[#allocation11 + $0x364] ss:$24 sps:$4 sm:$0xff]  }
 0xaf3   : > { %v18943_v6 = vpop.eup %18942  ;;  %v23782_v37 = vpack.c.bf16 %v12035_v30, %v23739_v1  ;;  %18950 = vtanh.f32 %v11854_v25  ;;  %13868 = vmatmul.mubr.bf16.vlgmr.msra.gmra.mrb[24].mxu1 %v23630_v3  ;;  %14087 = vmatmul.mubr.bf16.vlgmr.msra.gmra.mrb[136].mxu0 %v23630_v3  ;;  %v11974_v46 = vmul.f32 0.5, %v11926_v53  ;;  %v11991_v27 = vmul.f32 0.5, %v11943_v52  ;;  %v18545_v1 = vld [vmem:[#allocation11 + $0x36c] ss:$24 sps:$4 sm:$0xff]   ;;  %v18528_v59 = vld [vmem:[#allocation11 + $0x360] ss:$24 sps:$4 sm:$0xff]  }
 0xaf4   : > { %18952 = vtanh.f32 %v11856_v31  ;;  %13909 = vmatpush1.bf16.msra.mxu1 %v18516_v49  ;;  %14128 = vmatpush1.bf16.msra.mxu0 %v18531_v54  ;;  %v11980_v61 = vmul.f32 0.5, %v11932_v34  ;;  %v11986_v57 = vmul.f32 0.5, %v11938_v22  ;;  %v12016_v9 = vmul.f32 %v23517_v10, %v11968_v38  ;;  %v18543_v30 = vld [vmem:[#allocation11 + $0x368] ss:$24 sps:$4 sm:$0xff]  }
 0xaf5   : > { %v18945_v32 = vpop.eup %18944  ;;  %13910 = vmatprep.subr.bf16.mxu1 %v18524_v18  ;;  %14129 = vmatprep.subr.bf16.mxu0 %v18539_v42  ;;  %v12022_v51 = vmul.f32 %v23562_v55, %v11974_v46  ;;  %v11910_v50 = vadd.f32 1.0, %v23582_v62  ;;  %v11916_v36 = vadd.f32 1.0, %v23605_v17  ;;  %v11945_v28 = vadd.f32 1.0, %v18941_v21  ;;  %v18536_v62 = vld [vmem:[#allocation11 + $0x394] ss:$24 sps:$4 sm:$0xff]  }
 0xaf6   : > { %v12028_v49 = vmul.f32 %v23617_v15, %v11980_v61  ;;  %v12034_v40 = vmul.f32 %v23663_v35, %v11986_v57  ;;  %v11922_v41 = vadd.f32 1.0, %v23647_v19  ;;  %v11928_v55 = vadd.f32 1.0, %v23695_v2  ;;  %v18551_v42 = vld [vmem:[#allocation11 + $0x39c] ss:$24 sps:$4 sm:$0xff]   ;;  %v18549_v57 = vld [vmem:[#allocation11 + $0x398] ss:$24 sps:$4 sm:$0xff]  }
 0xaf7   : > { %v23793_v18 = vpack.c.bf16 %v12022_v51, %v12016_v9  ;;  %v11958_v25 = vmul.f32 0.5, %v11910_v50  ;;  %v11964_v10 = vmul.f32 0.5, %v11916_v36  ;;  %v11944_v15 = vadd.f32 1.0, %v18943_v6  ;;  %v18534_v6 = vld [vmem:[#allocation11 + $0x390] ss:$24 sps:$4 sm:$0xff]  }
 0xaf8   : > { %13911 = vmatpush1.bf16.msra.mxu1 %v18522_v56  ;;  %14130 = vmatpush1.bf16.msra.mxu0 %v18537_v60  ;;  %v23796_v17 = vpack.c.bf16 %v12034_v40, %v12028_v49  ;;  %v11970_v54 = vmul.f32 0.5, %v11922_v41  ;;  %v11934_v35 = vadd.f32 1.0, %v23726_v12  ;;  %v11976_v53 = vmul.f32 0.5, %v11928_v55  ;;  %v18542_v61 = vld [vmem:[#allocation11 + $0x3c4] ss:$24 sps:$4 sm:$0xff]  }
 0xaf9   : > { %v18947_v47 = vpop.eup %18946  ;;  %13912 = vmatprep.subr.bf16.mxu1 %v18530_v11  ;;  %14131 = vmatprep.subr.bf16.mxu0 %v18545_v1  ;;  %v12006_v52 = vmul.f32 %v23461_v7, %v11958_v25  ;;  %v12012_v2 = vmul.f32 %v23481_v23, %v11964_v10  ;;  %v12039_v38 = vmul.f32 %v23685_v39, %v11991_v27  ;;  %v11940_v12 = vadd.f32 1.0, %v23765_v14  ;;  %v18540_v49 = vld [vmem:[#allocation11 + $0x3c0] ss:$24 sps:$4 sm:$0xff]   ;;  %v18557_v41 = vld [vmem:[#allocation11 + $0x3cc] ss:$24 sps:$4 sm:$0xff]  }
 0xafa   : > { %v11949_v19 = vadd.f32 1.0, %v18947_v47  ;;  %13877 = vmatprep.mubr.bf16.mxu1 %v23793_v18  ;;  %14096 = vmatprep.mubr.bf16.mxu0 %v23793_v18  ;;  %v11982_v21 = vmul.f32 0.5, %v11934_v35  ;;  %v11946_v31 = vadd.f32 1.0, %v18945_v32  ;;  %v12018_v23 = vmul.f32 %v23520_v0, %v11970_v54  ;;  %v18548_v25 = vld [vmem:[#allocation11 + $0x3f4] ss:$24 sps:$4 sm:$0xff]  }
 0xafb   : > { %13878 = vmatmul.mubr.bf16.gmra.mrb[28].mxu1 %v23679_v4  ;;  %14097 = vmatmul.mubr.bf16.gmra.mrb[140].mxu0 %v23679_v4  ;;  %v23808_v7 = vpack.c.bf16 %v12012_v2, %v12006_v52  ;;  %v12024_v39 = vmul.f32 %v23566_v16, %v11976_v53  ;;  %v11993_v46 = vmul.f32 0.5, %v11945_v28  ;;  %v11992_v14 = vmul.f32 0.5, %v11944_v15  ;;  %v18546_v15 = vld [vmem:[#allocation11 + $0x3f0] ss:$24 sps:$4 sm:$0xff]   ;;  %v18563_v35 = vld [vmem:[#allocation11 + $0x3fc] ss:$24 sps:$4 sm:$0xff]  }
 0xafc   : > { %v18949_v34 = vpop.eup %18948  ;;  %v11997_v22 = vmul.f32 0.5, %v11949_v19  ;;  %13913 = vmatpush1.bf16.msra.mxu1 %v18528_v59  ;;  %13887 = vmatprep.mubr.bf16.mxu1 %v23796_v17  ;;  %v11988_v32 = vmul.f32 0.5, %v11940_v12  ;;  %v12030_v0 = vmul.f32 %v23623_v43, %v11982_v21  ;;  %v11994_v36 = vmul.f32 0.5, %v11946_v31  ;;  %v18561_v19 = vld [vmem:[#allocation11 + $0x3f8] ss:$24 sps:$4 sm:$0xff]  }
 0xafd   : > { %v18951_v56 = vpop.eup %18950  ;;  %v11951_v60 = vadd.f32 1.0, %v18949_v34  ;;  %13914 = vmatprep.subr.bf16.mxu1 %v18536_v62  ;;  %14106 = vmatprep.mubr.bf16.mxu0 %v23796_v17  ;;  %v23814_v9 = vpack.c.bf16 %v12024_v39, %v12018_v23  ;;  %v18555_v62 = vld [vmem:[#allocation11 + $0x3c8] ss:$24 sps:$4 sm:$0xff]   ;;  %v18575_v53 = vld [vmem:[#allocation11 + $0x45c] ss:$24 sps:$4 sm:$0xff]  }
 0xafe   : > { %v18953_v27 = vpop.eup %18952  ;;  %v12045_v11 = vmul.f32 %v23721_v8, %v11997_v22  ;;  %14132 = vmatpush1.bf16.msra.mxu0 %v18543_v30  ;;  %v11950_v1 = vadd.f32 1.0, %v18951_v56  ;;  %v12036_v51 = vmul.f32 %v23667_v13, %v11988_v32  ;;  %v12041_v8 = vmul.f32 %v23693_v63, %v11993_v46  ;;  %v18569_v30 = vld [vmem:[#allocation11 + $0x42c] ss:$24 sps:$4 sm:$0xff]   ;;  %v18567_v52 = vld [vmem:[#allocation11 + $0x428] ss:$24 sps:$4 sm:$0xff]  }
 0xaff   : > { %v11999_v16 = vmul.f32 0.5, %v11951_v60  ;;  %14133 = vmatprep.subr.bf16.mxu0 %v18551_v42  ;;  %v11952_v50 = vadd.f32 1.0, %v18953_v27  ;;  %v12040_v13 = vmul.f32 %v23701_v5, %v11992_v14  ;;  %v12042_v63 = vmul.f32 %v23707_v24, %v11994_v36  ;;  %v18554_v5 = vld [vmem:[#allocation11 + $0x424] ss:$24 sps:$4 sm:$0xff]   ;;  %v18552_v24 = vld [vmem:[#allocation11 + $0x420] ss:$24 sps:$4 sm:$0xff]  }
 0xb00   : > { %v23818_v28 = vpack.c.bf16 %v12045_v11, %v12039_v38  ;;  %13915 = vmatpush1.bf16.msra.mxu1 %v18534_v6  ;;  %v11998_v40 = vmul.f32 0.5, %v11950_v1  ;;  %v23822_v10 = vpack.c.bf16 %v12036_v51, %v12030_v0  ;;  %v18558_v2 = vld [vmem:[#allocation11 + $0x450] ss:$24 sps:$4 sm:$0xff]   ;;  %v18566_v38 = vld [vmem:[#allocation11 + $0x484] ss:$24 sps:$4 sm:$0xff]  }
 0xb01   : > { %v12047_v59 = vmul.f32 %v23736_v20, %v11999_v16  ;;  %13916 = vmatprep.subr.bf16.mxu1 %v18542_v61  ;;  %v12000_v43 = vmul.f32 0.5, %v11952_v50  ;;  %v18573_v42 = vld [vmem:[#allocation11 + $0x458] ss:$24 sps:$4 sm:$0xff]   ;;  %v18581_v21 = vld [vmem:[#allocation11 + $0x48c] ss:$24 sps:$4 sm:$0xff]  }
 0xb02   : > { %14134 = vmatpush1.bf16.msra.mxu0 %v18549_v57  ;;  %v12046_v55 = vmul.f32 %v23743_v33, %v11998_v40  ;;  %v18564_v12 = vld [vmem:[#allocation11 + $0x480] ss:$24 sps:$4 sm:$0xff]   ;;  %v18572_v31 = vld [vmem:[#allocation11 + $0x4b4] ss:$24 sps:$4 sm:$0xff]   ;;  %v18570_v22 = vld [vmem:[#allocation11 + $0x4b0] ss:$24 sps:$4 sm:$0xff]  }
 0xb03   : > { %v23826_v47 = vpack.c.bf16 %v12047_v59, %v12041_v8  ;;  %13888 = vmatmul.mubr.bf16.gmra.mrb[32].mxu1 %v23770_v58  ;;  %14107 = vmatmul.mubr.bf16.gmra.mrb[144].mxu0 %v23770_v58  ;;  %v12048_v20 = vmul.f32 %v23753_v44, %v12000_v43  ;;  %v18560_v44 = vld [vmem:[#allocation11 + $0x454] ss:$24 sps:$4 sm:$0xff]   ;;  %v18579_v34 = vld [vmem:[#allocation11 + $0x488] ss:$24 sps:$4 sm:$0xff]   ;;  %v18578_v23 = vld [vmem:[#allocation11 + $0x4e4] ss:$24 sps:$4 sm:$0xff]  }
 0xb04   : > { %13917 = vmatpush1.bf16.msra.mxu1 %v18540_v49  ;;  %v23832_v54 = vpack.c.bf16 %v12046_v55, %v12040_v13  ;;  %14135 = vmatprep.subr.bf16.mxu0 %v18557_v41  ;;  %v18587_v6 = vld [vmem:[#allocation11 + $0x4bc] ss:$24 sps:$4 sm:$0xff]   ;;  %v18585_v39 = vld [vmem:[#allocation11 + $0x4b8] ss:$24 sps:$4 sm:$0xff]   ;;  %v18593_v46 = vld [vmem:[#allocation11 + $0x4ec] ss:$24 sps:$4 sm:$0xff]  }
 0xb05   : > { %13918 = vmatprep.subr.bf16.mxu1 %v18548_v25  ;;  %v23834_v33 = vpack.c.bf16 %v12048_v20, %v12042_v63  ;;  %v18576_v56 = vld [vmem:[#allocation11 + $0x4e0] ss:$24 sps:$4 sm:$0xff]   ;;  %v18584_v60 = vld [vmem:[#allocation11 + $0x514] ss:$24 sps:$4 sm:$0xff]   ;;  %v18582_v14 = vld [vmem:[#allocation11 + $0x510] ss:$24 sps:$4 sm:$0xff]  }
 0xb06   : > { %13897 = vmatprep.mubr.bf16.mxu1 %v23832_v54  ;;  %14116 = vmatprep.mubr.bf16.mxu0 %v23832_v54  ;;  %v18591_v61 = vld [vmem:[#allocation11 + $0x4e8] ss:$24 sps:$4 sm:$0xff]   ;;  %v18599_v32 = vld [vmem:[#allocation11 + $0x51c] ss:$24 sps:$4 sm:$0xff]   ;;  %v18597_v11 = vld [vmem:[#allocation11 + $0x518] ss:$24 sps:$4 sm:$0xff]  }
 0xb07   : > { %14136 = vmatpush1.bf16.msra.mxu0 %v18555_v62  ;;  %v18590_v27 = vld [vmem:[#allocation11 + $0x544] ss:$24 sps:$4 sm:$0xff]   ;;  %v18588_v57 = vld [vmem:[#allocation11 + $0x540] ss:$24 sps:$4 sm:$0xff]   ;;  %v18596_v0 = vld [vmem:[#allocation11 + $0x574] ss:$24 sps:$4 sm:$0xff]  }
 0xb08   : > { %13919 = vmatpush1.bf16.msra.mxu1 %v18546_v15  ;;  %14137 = vmatprep.subr.bf16.mxu0 %v18563_v35  ;;  %v18605_v1 = vld [vmem:[#allocation11 + $0x54c] ss:$24 sps:$4 sm:$0xff]   ;;  %v18603_v16 = vld [vmem:[#allocation11 + $0x548] ss:$24 sps:$4 sm:$0xff]   ;;  %v18611_v50 = vld [vmem:[#allocation11 + $0x57c] ss:$24 sps:$4 sm:$0xff]  }
 0xb09   : > { %13920 = vmatprep.subr.bf16.mxu1 %v18554_v5  ;;  %v18594_v51 = vld [vmem:[#allocation11 + $0x570] ss:$24 sps:$4 sm:$0xff]   ;;  %v18602_v36 = vld [vmem:[#allocation11 + $0x5a4] ss:$24 sps:$4 sm:$0xff]   ;;  %v18600_v40 = vld [vmem:[#allocation11 + $0x5a0] ss:$24 sps:$4 sm:$0xff]  }
 0xb0a   : > { %v18609_v49 = vld [vmem:[#allocation11 + $0x578] ss:$24 sps:$4 sm:$0xff]   ;;  %v18614_v41 = vld [vmem:[#allocation11 + $0x5ac] ss:$24 sps:$4 sm:$0xff]   ;;  %v18612_v59 = vld [vmem:[#allocation11 + $0x5a8] ss:$24 sps:$4 sm:$0xff]  }
 0xb0b   : > { %13898 = vmatmul.mubr.bf16.gmra.mrb[36].mxu1 %v23818_v28  ;;  %14138 = vmatpush1.bf16.msra.mxu0 %v18561_v19  ;;  %v18608_v8 = vld [vmem:[#allocation11 + $0x5d4] ss:$24 sps:$4 sm:$0xff]   ;;  %v18606_v25 = vld [vmem:[#allocation11 + $0x5d0] ss:$24 sps:$4 sm:$0xff]   ;;  %v18620_v13 = vld [vmem:[#allocation11 + $0x604] ss:$24 sps:$4 sm:$0xff]  }
 0xb0c   : > { %13921 = vmatpush1.bf16.msra.mxu1 %v18552_v24  ;;  %13940 = vmatprep.mubr.bf16.mxu1 %v23808_v7  ;;  %v18617_v43 = vld [vmem:[#allocation11 + $0x5dc] ss:$24 sps:$4 sm:$0xff]   ;;  %v18615_v55 = vld [vmem:[#allocation11 + $0x5d8] ss:$24 sps:$4 sm:$0xff]   ;;  %v18623_v63 = vld [vmem:[#allocation11 + $0x60c] ss:$24 sps:$4 sm:$0xff]  }
 0xb0d   : > { %13922 = vmatprep.subr.bf16.mxu1 %v18560_v44  ;;  %14117 = vmatmul.mubr.bf16.gmra.mrb[148].mxu0 %v23818_v28  ;;  %v18618_v62 = vld [vmem:[#allocation11 + $0x600] ss:$24 sps:$4 sm:$0xff]   ;;  %v18626_v20 = vld [vmem:[#allocation11 + $0x634] ss:$24 sps:$4 sm:$0xff]   ;;  %v18624_v35 = vld [vmem:[#allocation11 + $0x630] ss:$24 sps:$4 sm:$0xff]  }
 0xb0e   : > { %14139 = vmatprep.subr.bf16.mxu0 %v18569_v30  ;;  %14159 = vmatprep.mubr.bf16.mxu0 %v23808_v7  ;;  %v18621_v15 = vld [vmem:[#allocation11 + $0x608] ss:$24 sps:$4 sm:$0xff]   ;;  %v18629_v5 = vld [vmem:[#allocation11 + $0x63c] ss:$24 sps:$4 sm:$0xff]   ;;  %v18627_v24 = vld [vmem:[#allocation11 + $0x638] ss:$24 sps:$4 sm:$0xff]  }
 0xb0f   : > { %14140 = vmatpush1.bf16.msra.mxu0 %v18567_v52  ;;  %v18632_v19 = vld [vmem:[#allocation11 + $0x664] ss:$24 sps:$4 sm:$0xff]   ;;  %v18630_v44 = vld [vmem:[#allocation11 + $0x660] ss:$24 sps:$4 sm:$0xff]   ;;  %v18638_v52 = vld [vmem:[#allocation11 + $0x694] ss:$24 sps:$4 sm:$0xff]  }
 0xb10   : > { %13923 = vmatpush1.bf16.msra.mxu1 %v18558_v2  ;;  %14141 = vmatprep.subr.bf16.mxu0 %v18575_v53  ;;  %v18635_v30 = vld [vmem:[#allocation11 + $0x66c] ss:$24 sps:$4 sm:$0xff]   ;;  %v18633_v2 = vld [vmem:[#allocation11 + $0x668] ss:$24 sps:$4 sm:$0xff]  }
 0xb11   : > { %13924 = vmatprep.subr.bf16.mxu1 %v18566_v38  ;;  %v18636_v53 = vld [vmem:[#allocation11 + $0x690] ss:$24 sps:$4 sm:$0xff]   ;;  %v18641_v38 = vld [vmem:[#allocation11 + $0x69c] ss:$24 sps:$4 sm:$0xff]  }
 0xb13   : > { %14142 = vmatpush1.bf16.msra.mxu0 %v18573_v42  ;;  %v18644_v42 = vld [vmem:[#allocation11 + $0x6c4] ss:$24 sps:$4 sm:$0xff]  }
 0xb14   : > { %13925 = vmatpush1.bf16.msra.mxu1 %v18564_v12  ;;  %14143 = vmatprep.subr.bf16.mxu0 %v18581_v21  ;;  %v18639_v12 = vld [vmem:[#allocation11 + $0x698] ss:$24 sps:$4 sm:$0xff]  }
 0xb15   : > { %13926 = vmatprep.subr.bf16.mxu1 %v18572_v31  ;;  %v18642_v21 = vld [vmem:[#allocation11 + $0x6c0] ss:$24 sps:$4 sm:$0xff]   ;;  %v18647_v31 = vld [vmem:[#allocation11 + $0x6cc] ss:$24 sps:$4 sm:$0xff]  }
 0xb17   : > { %14144 = vmatpush1.bf16.msra.mxu0 %v18579_v34  ;;  %v18650_v34 = vld [vmem:[#allocation11 + $0x6f4] ss:$24 sps:$4 sm:$0xff]  }
 0xb18   : > { %13927 = vmatpush1.bf16.msra.mxu1 %v18570_v22  ;;  %14145 = vmatprep.subr.bf16.mxu0 %v18587_v6  ;;  %v18645_v22 = vld [vmem:[#allocation11 + $0x6c8] ss:$24 sps:$4 sm:$0xff]  }
 0xb19   : > { %13928 = vmatprep.subr.bf16.mxu1 %v18578_v23  ;;  %v18648_v6 = vld [vmem:[#allocation11 + $0x6f0] ss:$24 sps:$4 sm:$0xff]   ;;  %v18653_v23 = vld [vmem:[#allocation11 + $0x6fc] ss:$24 sps:$4 sm:$0xff]  }
 0xb1b   : > { %14146 = vmatpush1.bf16.msra.mxu0 %v18585_v39  ;;  %v18656_v39 = vld [vmem:[#allocation11 + $0x724] ss:$24 sps:$4 sm:$0xff]  }
 0xb1c   : > { %13929 = vmatpush1.bf16.msra.mxu1 %v18576_v56  ;;  %14147 = vmatprep.subr.bf16.mxu0 %v18593_v46  ;;  %v18651_v56 = vld [vmem:[#allocation11 + $0x6f8] ss:$24 sps:$4 sm:$0xff]  }
 0xb1d   : > { %13930 = vmatprep.subr.bf16.mxu1 %v18584_v60  ;;  %v18654_v46 = vld [vmem:[#allocation11 + $0x720] ss:$24 sps:$4 sm:$0xff]   ;;  %v18659_v60 = vld [vmem:[#allocation11 + $0x72c] ss:$24 sps:$4 sm:$0xff]  }
 0xb1f   : > { %14148 = vmatpush1.bf16.msra.mxu0 %v18591_v61  ;;  %v18662_v61 = vld [vmem:[#allocation11 + $0x754] ss:$24 sps:$4 sm:$0xff]  }
 0xb20   : > { %13931 = vmatpush1.bf16.msra.mxu1 %v18582_v14  ;;  %14149 = vmatprep.subr.bf16.mxu0 %v18599_v32  ;;  %v18657_v14 = vld [vmem:[#allocation11 + $0x728] ss:$24 sps:$4 sm:$0xff]  }
 0xb21   : > { %13932 = vmatprep.subr.bf16.mxu1 %v18590_v27  ;;  %v18660_v32 = vld [vmem:[#allocation11 + $0x750] ss:$24 sps:$4 sm:$0xff]   ;;  %v18665_v27 = vld [vmem:[#allocation11 + $0x75c] ss:$24 sps:$4 sm:$0xff]  }
 0xb23   : > { %14150 = vmatpush1.bf16.msra.mxu0 %v18597_v11  ;;  %v18668_v11 = vld [vmem:[#allocation11 + $0x784] ss:$24 sps:$4 sm:$0xff]  }
 0xb24   : > { %13933 = vmatpush1.bf16.msra.mxu1 %v18588_v57  ;;  %14151 = vmatprep.subr.bf16.mxu0 %v18605_v1  ;;  %v18663_v57 = vld [vmem:[#allocation11 + $0x758] ss:$24 sps:$4 sm:$0xff]  }
 0xb25   : > { %13934 = vmatprep.subr.bf16.mxu1 %v18596_v0  ;;  %v18666_v1 = vld [vmem:[#allocation11 + $0x780] ss:$24 sps:$4 sm:$0xff]   ;;  %v18671_v0 = vld [vmem:[#allocation11 + $0x78c] ss:$24 sps:$4 sm:$0xff]  }
 0xb27   : > { %14152 = vmatpush1.bf16.msra.mxu0 %v18603_v16  ;;  %v18674_v16 = vld [vmem:[#allocation11 + $0x7b4] ss:$24 sps:$4 sm:$0xff]  }
 0xb28   : > { %13935 = vmatpush1.bf16.msra.mxu1 %v18594_v51  ;;  %14153 = vmatprep.subr.bf16.mxu0 %v18611_v50  ;;  %v18669_v51 = vld [vmem:[#allocation11 + $0x788] ss:$24 sps:$4 sm:$0xff]  }
 0xb29   : > { %13936 = vmatprep.subr.bf16.mxu1 %v18602_v36  ;;  %v18672_v50 = vld [vmem:[#allocation11 + $0x7b0] ss:$24 sps:$4 sm:$0xff]   ;;  %v18677_v36 = vld [vmem:[#allocation11 + $0x7bc] ss:$24 sps:$4 sm:$0xff]  }
 0xb2b   : > { %14154 = vmatpush1.bf16.msra.mxu0 %v18609_v49  ;;  %v18680_v49 = vld [vmem:[#allocation11 + $0x7e4] ss:$24 sps:$4 sm:$0xff]  }
 0xb2c   : > { %13937 = vmatpush1.bf16.msra.mxu1 %v18600_v40  ;;  %14155 = vmatprep.subr.bf16.mxu0 %v18614_v41  ;;  %v18675_v40 = vld [vmem:[#allocation11 + $0x7b8] ss:$24 sps:$4 sm:$0xff]  }
 0xb2d   : > { %13938 = vmatprep.subr.bf16.mxu1 %v18608_v8  ;;  %v18678_v41 = vld [vmem:[#allocation11 + $0x7e0] ss:$24 sps:$4 sm:$0xff]   ;;  %v18683_v8 = vld [vmem:[#allocation11 + $0x7ec] ss:$24 sps:$4 sm:$0xff]  }
 0xb2f   : > { %14156 = vmatpush1.bf16.msra.mxu0 %v18612_v59  ;;  %v18686_v59 = vld [vmem:[#allocation11 + $0x814] ss:$24 sps:$4 sm:$0xff]  }
 0xb30   : > { %13939 = vmatpush1.bf16.msra.mxu1 %v18606_v25  ;;  %14157 = vmatprep.subr.bf16.mxu0 %v18617_v43  ;;  %v18681_v25 = vld [vmem:[#allocation11 + $0x7e8] ss:$24 sps:$4 sm:$0xff]  }
 0xb31   : > { %13981 = vmatprep.subr.bf16.mxu1 %v18620_v13  ;;  %v18684_v43 = vld [vmem:[#allocation11 + $0x810] ss:$24 sps:$4 sm:$0xff]   ;;  %v18689_v13 = vld [vmem:[#allocation11 + $0x81c] ss:$24 sps:$4 sm:$0xff]  }
 0xb33   : > { %13941 = vmatmul.mubr.bf16.vlgmr.msra.gmra.mrb[24].mxu1 %v23635_v45  ;;  %14158 = vmatpush1.bf16.msra.mxu0 %v18615_v55  ;;  %v18692_v55 = vld [vmem:[#allocation11 + $0x844] ss:$24 sps:$4 sm:$0xff]  }
 0xb34   : > { %13950 = vmatprep.mubr.bf16.mxu1 %v23814_v9  ;;  %13982 = vmatpush1.bf16.msra.mxu1 %v18618_v62  ;;  %v18687_v62 = vld [vmem:[#allocation11 + $0x818] ss:$24 sps:$4 sm:$0xff]  }
 0xb35   : > { %14200 = vmatprep.subr.bf16.mxu0 %v18623_v63  ;;  %13983 = vmatprep.subr.bf16.mxu1 %v18626_v20  ;;  %v18690_v63 = vld [vmem:[#allocation11 + $0x840] ss:$24 sps:$4 sm:$0xff]   ;;  %v18695_v20 = vld [vmem:[#allocation11 + $0x84c] ss:$24 sps:$4 sm:$0xff]  }
 0xb36   : > { %14160 = vmatmul.mubr.bf16.vlgmr.msra.gmra.mrb[136].mxu0 %v23635_v45 }
 0xb37   : > { %14169 = vmatprep.mubr.bf16.mxu0 %v23814_v9  ;;  %14201 = vmatpush1.bf16.msra.mxu0 %v18621_v15  ;;  %v18698_v15 = vld [vmem:[#allocation11 + $0x874] ss:$24 sps:$4 sm:$0xff]  }
 0xb38   : > { %13984 = vmatpush1.bf16.msra.mxu1 %v18624_v35  ;;  %14202 = vmatprep.subr.bf16.mxu0 %v18629_v5  ;;  %v18693_v35 = vld [vmem:[#allocation11 + $0x848] ss:$24 sps:$4 sm:$0xff]  }
 0xb39   : > { %13985 = vmatprep.subr.bf16.mxu1 %v18632_v19  ;;  %v18696_v5 = vld [vmem:[#allocation11 + $0x870] ss:$24 sps:$4 sm:$0xff]   ;;  %v18701_v19 = vld [vmem:[#allocation11 + $0x87c] ss:$24 sps:$4 sm:$0xff]  }
 0xb3b   : > { %13951 = vmatmul.mubr.bf16.gmra.mrb[28].mxu1 %v23687_v26  ;;  %14203 = vmatpush1.bf16.msra.mxu0 %v18627_v24  ;;  %v18704_v24 = vld [vmem:[#allocation11 + $0x8a4] ss:$24 sps:$4 sm:$0xff]  }
 0xb3c   : > { %13960 = vmatprep.mubr.bf16.mxu1 %v23822_v10  ;;  %13986 = vmatpush1.bf16.msra.mxu1 %v18630_v44  ;;  %v18699_v44 = vld [vmem:[#allocation11 + $0x878] ss:$24 sps:$4 sm:$0xff]  }
 0xb3d   : > { %14204 = vmatprep.subr.bf16.mxu0 %v18635_v30  ;;  %13987 = vmatprep.subr.bf16.mxu1 %v18638_v52  ;;  %v18702_v30 = vld [vmem:[#allocation11 + $0x8a0] ss:$24 sps:$4 sm:$0xff]   ;;  %v18707_v52 = vld [vmem:[#allocation11 + $0x8ac] ss:$24 sps:$4 sm:$0xff]  }
 0xb3e   : > { %14170 = vmatmul.mubr.bf16.gmra.mrb[140].mxu0 %v23687_v26 }
 0xb3f   : > { %14179 = vmatprep.mubr.bf16.mxu0 %v23822_v10  ;;  %14205 = vmatpush1.bf16.msra.mxu0 %v18633_v2  ;;  %v19034_v2 = vld [vmem:[%s25298_s17] sm:$0x3f] }
 0xb40   : > { %13988 = vmatpush1.bf16.msra.mxu1 %v18636_v53  ;;  %14206 = vmatprep.subr.bf16.mxu0 %v18641_v38  ;;  %v23860_v53 = vrot.slane %v19034_v2, %v23291_v29  ;;  %v18710_v38 = vld [vmem:[#allocation11 + $0x8d4] ss:$24 sps:$4 sm:$0xff]  }
 0xb41   : > { %13989 = vmatprep.subr.bf16.mxu1 %v18644_v42  ;;  %v25299_v42 = vld [vmem:[#allocation29_spill] sm:$0xff] }
 0xb43   : > { %13961 = vmatmul.mubr.bf16.gmra.mrb[32].mxu1 %v23782_v37  ;;  %14207 = vmatpush1.bf16.msra.mxu0 %v18639_v12  ;;  %v23863_v12 = vrot.slane %v19034_v2, %v25299_v42 }
 0xb44   : > { %13970 = vmatprep.mubr.bf16.mxu1 %v23834_v33  ;;  %13990 = vmatpush1.bf16.msra.mxu1 %v18642_v21  ;;  %v18705_v21 = vld [vmem:[#allocation11 + $0x8a8] ss:$24 sps:$4 sm:$0xff]  }
 0xb45   : > { %14208 = vmatprep.subr.bf16.mxu0 %v18647_v31  ;;  %13991 = vmatprep.subr.bf16.mxu1 %v18650_v34  ;;  %v18708_v34 = vld [vmem:[#allocation11 + $0x8d0] ss:$24 sps:$4 sm:$0xff]  }
 0xb46   : > { %14180 = vmatmul.mubr.bf16.gmra.mrb[144].mxu0 %v23782_v37 }
 0xb47   : > { %14189 = vmatprep.mubr.bf16.mxu0 %v23834_v33  ;;  %14209 = vmatpush1.bf16.msra.mxu0 %v18645_v22  ;;  %v18713_v22 = vld [vmem:[#allocation11 + $0x8dc] ss:$24 sps:$4 sm:$0xff]  }
 0xb48   : > { %13992 = vmatpush1.bf16.msra.mxu1 %v18648_v6  ;;  %14210 = vmatprep.subr.bf16.mxu0 %v18653_v23 }
 0xb49   : > { %13993 = vmatprep.subr.bf16.mxu1 %v18656_v39  ;;  %v18716_v39 = vld [vmem:[#allocation11 + $0x14] ss:$24 sps:$4 sm:$0xff]  }
 0xb4b   : > { %13971 = vmatmul.mubr.bf16.gmra.mrb[36].mxu1 %v23826_v47  ;;  %14211 = vmatpush1.bf16.msra.mxu0 %v18651_v56 }
 0xb4c   : > { %13994 = vmatpush1.bf16.msra.mxu1 %v18654_v46  ;;  %14212 = vmatprep.subr.bf16.mxu0 %v18659_v60 }
 0xb4d   : > { %13995 = vmatprep.subr.bf16.mxu1 %v18662_v61 }
 0xb4e   : > { %14190 = vmatmul.mubr.bf16.gmra.mrb[148].mxu0 %v23826_v47 }
 0xb4f   : > { %14213 = vmatpush1.bf16.msra.mxu0 %v18657_v14 }
 0xb50   : > { %13996 = vmatpush1.bf16.msra.mxu1 %v18660_v32  ;;  %14214 = vmatprep.subr.bf16.mxu0 %v18665_v27  ;;  %v18711_v32 = vld [vmem:[#allocation11 + $0x8d8] ss:$24 sps:$4 sm:$0xff]  }
 0xb51   : > { %13997 = vmatprep.subr.bf16.mxu1 %v18668_v11 }
 0xb53   : > { %14215 = vmatpush1.bf16.msra.mxu0 %v18663_v57 }
 0xb54   : > { %13998 = vmatpush1.bf16.msra.mxu1 %v18666_v1  ;;  %14216 = vmatprep.subr.bf16.mxu0 %v18671_v0 }
 0xb55   : > { %13999 = vmatprep.subr.bf16.mxu1 %v18674_v16 }
 0xb57   : > { %14217 = vmatpush1.bf16.msra.mxu0 %v18669_v51 }
 0xb58   : > { %14000 = vmatpush1.bf16.msra.mxu1 %v18672_v50  ;;  %14218 = vmatprep.subr.bf16.mxu0 %v18677_v36 }
 0xb59   : > { %14001 = vmatprep.subr.bf16.mxu1 %v18680_v49 }
 0xb5b   : > { %14219 = vmatpush1.bf16.msra.mxu0 %v18675_v40 }
 0xb5c   : > { %14002 = vmatpush1.bf16.msra.mxu1 %v18678_v41  ;;  %14220 = vmatprep.subr.bf16.mxu0 %v18683_v8 }
 0xb5d   : > { %14003 = vmatprep.subr.bf16.mxu1 %v18686_v59 }
 0xb5f   : > { %14221 = vmatpush1.bf16.msra.mxu0 %v18681_v25 }
 0xb60   : > { %14004 = vmatpush1.bf16.msra.mxu1 %v18684_v43  ;;  %14222 = vmatprep.subr.bf16.mxu0 %v18689_v13 }
 0xb61   : > { %14005 = vmatprep.subr.bf16.mxu1 %v18692_v55 }
 0xb63   : > { %14223 = vmatpush1.bf16.msra.mxu0 %v18687_v62 }
 0xb64   : > { %14006 = vmatpush1.bf16.msra.mxu1 %v18690_v63  ;;  %14224 = vmatprep.subr.bf16.mxu0 %v18695_v20 }
 0xb65   : > { %14007 = vmatprep.subr.bf16.mxu1 %v18698_v15 }
 0xb67   : > { %14225 = vmatpush1.bf16.msra.mxu0 %v18693_v35 }
 0xb68   : > { %14008 = vmatpush1.bf16.msra.mxu1 %v18696_v5  ;;  %14226 = vmatprep.subr.bf16.mxu0 %v18701_v19 }
 0xb69   : > { %14009 = vmatprep.subr.bf16.mxu1 %v18704_v24 }
 0xb6b   : > { %14227 = vmatpush1.bf16.msra.mxu0 %v18699_v44 }
 0xb6c   : > { %v11580_v31 = vpop.f32.mrb[120].mxu0  ;;  %14010 = vmatpush1.bf16.msra.mxu1 %v18702_v30  ;;  %14228 = vmatprep.subr.bf16.mxu0 %v18707_v52 }
 0xb6d   : > { %v23866_v6 = vadd.f32 %v11580_v31, %v23860_v53  ;;  %v11582_v23 = vpop.f32.mrb[121].mxu0  ;;  %14011 = vmatprep.subr.bf16.mxu1 %v18710_v38 }
 0xb6e   : > { %v23869_v56 = vadd.f32 %v11582_v23, %v23863_v12  ;;  %v11584_v46 = vpop.f32.mrb[122].mxu0 }
 0xb6f   : > { %v11623_v60 = vmul.f32 %v23866_v6, %v23866_v6  ;;  %v23874_v61 = vadd.f32 %v11584_v46, %v23860_v53  ;;  %v11586_v14 = vpop.f32.mrb[123].mxu0  ;;  %14229 = vmatpush1.bf16.msra.mxu0 %v18705_v21 }
 0xb70   : > { %v11624_v27 = vmul.f32 %v23869_v56, %v23869_v56  ;;  %v23879_v11 = vadd.f32 %v11586_v14, %v23863_v12  ;;  %14012 = vmatpush1.bf16.msra.mxu1 %v18708_v34  ;;  %14230 = vmatprep.subr.bf16.mxu0 %v18713_v22 }
 0xb71   : > { %v11671_v57 = vmul.f32 %v23866_v6, %v11623_v60  ;;  %v11629_v1 = vmul.f32 %v23874_v61, %v23874_v61  ;;  %14273 = vmatprep.subr.bf16.mxu1 %v18716_v39 }
 0xb72   : > { %v11672_v0 = vmul.f32 %v23869_v56, %v11624_v27  ;;  %v11630_v16 = vmul.f32 %v23879_v11, %v23879_v11 }
 0xb73   : > { %v11719_v51 = vmul.f32 0.044715, %v11671_v57  ;;  %v11677_v50 = vmul.f32 %v23874_v61, %v11629_v1  ;;  %14231 = vmatpush1.bf16.msra.mxu0 %v18711_v32 }
 0xb74   : > { %v11720_v36 = vmul.f32 0.044715, %v11672_v0  ;;  %v11678_v49 = vmul.f32 %v23879_v11, %v11630_v16  ;;  %v11590_v40 = vpop.f32.mrb[124].mxu0 }
 0xb75   : > { %v11767_v41 = vadd.f32 %v23866_v6, %v11719_v51  ;;  %v11725_v8 = vmul.f32 0.044715, %v11677_v50  ;;  %v23891_v59 = vadd.f32 %v11590_v40, %v23860_v53  ;;  %v11592_v25 = vpop.f32.mrb[125].mxu0 }
 0xb76   : > { %v11768_v43 = vadd.f32 %v23869_v56, %v11720_v36  ;;  %v11726_v13 = vmul.f32 0.044715, %v11678_v49  ;;  %v23895_v55 = vadd.f32 %v11592_v25, %v23863_v12  ;;  %v11594_v62 = vpop.f32.mrb[126].mxu0 }
 0xb77   : > { %v11815_v63 = vmul.f32 0.7978846, %v11767_v41  ;;  %v11773_v20 = vadd.f32 %v23874_v61, %v11725_v8  ;;  %v11635_v15 = vmul.f32 %v23891_v59, %v23891_v59  ;;  %v23901_v35 = vadd.f32 %v11594_v62, %v23860_v53  ;;  %v11596_v5 = vpop.f32.mrb[127].mxu0 }
 0xb78   : > { %v11816_v19 = vmul.f32 0.7978846, %v11768_v43  ;;  %v11774_v24 = vadd.f32 %v23879_v11, %v11726_v13  ;;  %v11636_v44 = vmul.f32 %v23895_v55, %v23895_v55  ;;  %v23907_v30 = vadd.f32 %v11596_v5, %v23863_v12 }
 0xb79   : > { %18954 = vtanh.f32 %v11815_v63  ;;  %v11821_v52 = vmul.f32 0.7978846, %v11773_v20  ;;  %v11683_v2 = vmul.f32 %v23891_v59, %v11635_v15  ;;  %v11641_v38 = vmul.f32 %v23901_v35, %v23901_v35 }
 0xb7a   : > { %18956 = vtanh.f32 %v11816_v19  ;;  %v11822_v21 = vmul.f32 0.7978846, %v11774_v24  ;;  %v11684_v31 = vmul.f32 %v23895_v55, %v11636_v44  ;;  %v11642_v34 = vmul.f32 %v23907_v30, %v23907_v30 }
 0xb7b   : > { %18958 = vtanh.f32 %v11821_v52  ;;  %v11731_v22 = vmul.f32 0.044715, %v11683_v2  ;;  %v11689_v23 = vmul.f32 %v23901_v35, %v11641_v38 }
 0xb7c   : > { %v11732_v39 = vmul.f32 0.044715, %v11684_v31  ;;  %v11690_v46 = vmul.f32 %v23907_v30, %v11642_v34  ;;  %v11600_v60 = vpop.f32.mrb[128].mxu0  ;;  %18960 = vtanh.f32 %v11822_v21 }
 0xb7d   : > { %v11779_v14 = vadd.f32 %v23891_v59, %v11731_v22  ;;  %v11737_v32 = vmul.f32 0.044715, %v11689_v23  ;;  %v23919_v27 = vadd.f32 %v11600_v60, %v23860_v53  ;;  %v11602_v57 = vpop.f32.mrb[129].mxu0 }
 0xb7e   : > { %v11780_v1 = vadd.f32 %v23895_v55, %v11732_v39  ;;  %v11738_v0 = vmul.f32 0.044715, %v11690_v46  ;;  %v23923_v16 = vadd.f32 %v11602_v57, %v23863_v12  ;;  %v11604_v51 = vpop.f32.mrb[130].mxu0 }
 0xb7f   : > { %v11827_v50 = vmul.f32 0.7978846, %v11779_v14  ;;  %v11785_v36 = vadd.f32 %v23901_v35, %v11737_v32  ;;  %v11647_v49 = vmul.f32 %v23919_v27, %v23919_v27  ;;  %v23929_v40 = vadd.f32 %v11604_v51, %v23860_v53  ;;  %v11606_v41 = vpop.f32.mrb[131].mxu0 }
 0xb80   : > { %v11828_v8 = vmul.f32 0.7978846, %v11780_v1  ;;  %v11786_v25 = vadd.f32 %v23907_v30, %v11738_v0  ;;  %v11648_v43 = vmul.f32 %v23923_v16, %v23923_v16  ;;  %v23935_v13 = vadd.f32 %v11606_v41, %v23863_v12 }
 0xb81   : > { %18962 = vtanh.f32 %v11827_v50  ;;  %v11833_v62 = vmul.f32 0.7978846, %v11785_v36  ;;  %v11695_v63 = vmul.f32 %v23919_v27, %v11647_v49  ;;  %v11653_v20 = vmul.f32 %v23929_v40, %v23929_v40 }
 0xb82   : > { %18964 = vtanh.f32 %v11828_v8  ;;  %v11834_v15 = vmul.f32 0.7978846, %v11786_v25  ;;  %v11696_v5 = vmul.f32 %v23923_v16, %v11648_v43  ;;  %v11654_v19 = vmul.f32 %v23935_v13, %v23935_v13 }
 0xb83   : > { %v18955_v24 = vpop.eup %18954  ;;  %18966 = vtanh.f32 %v11833_v62  ;;  %v11743_v44 = vmul.f32 0.044715, %v11695_v63  ;;  %v11701_v52 = vmul.f32 %v23929_v40, %v11653_v20 }
 0xb84   : > { %v18957_v2 = vpop.eup %18956  ;;  %v11911_v38 = vadd.f32 1.0, %v18955_v24  ;;  %18968 = vtanh.f32 %v11834_v15  ;;  %v11744_v21 = vmul.f32 0.044715, %v11696_v5  ;;  %v11702_v31 = vmul.f32 %v23935_v13, %v11654_v19  ;;  %v11610_v34 = vpop.f32.mrb[132].mxu0 }
 0xb85   : > { %v18959_v22 = vpop.eup %18958  ;;  %v11791_v23 = vadd.f32 %v23919_v27, %v11743_v44  ;;  %v11749_v39 = vmul.f32 0.044715, %v11701_v52  ;;  %v23947_v46 = vadd.f32 %v11610_v34, %v23860_v53  ;;  %v11612_v60 = vpop.f32.mrb[133].mxu0  ;;  %v11912_v14 = vadd.f32 1.0, %v18957_v2 }
 0xb86   : > { %v11959_v32 = vmul.f32 0.5, %v11911_v38  ;;  %v11917_v57 = vadd.f32 1.0, %v18959_v22  ;;  %v11792_v1 = vadd.f32 %v23923_v16, %v11744_v21  ;;  %v11750_v0 = vmul.f32 0.044715, %v11702_v31  ;;  %v11614_v51 = vpop.f32.mrb[134].mxu0  ;;  %v18961_v25 = vpop.eup %18960 }
 0xb87   : > { %v11839_v50 = vmul.f32 0.7978846, %v11791_v23  ;;  %v11797_v36 = vadd.f32 %v23929_v40, %v11749_v39  ;;  %v11659_v49 = vmul.f32 %v23947_v46, %v23947_v46  ;;  %v23954_v41 = vadd.f32 %v11612_v60, %v23863_v12  ;;  %v11616_v8 = vpop.f32.mrb[135].mxu0 }
 0xb88   : > { %v12007_v43 = vmul.f32 %v23866_v6, %v11959_v32  ;;  %v11965_v62 = vmul.f32 0.5, %v11917_v57  ;;  %v11840_v63 = vmul.f32 0.7978846, %v11792_v1  ;;  %v11798_v20 = vadd.f32 %v23935_v13, %v11750_v0 }
 0xb89   : > { %18970 = vtanh.f32 %v11839_v50  ;;  %v11845_v15 = vmul.f32 0.7978846, %v11797_v36  ;;  %v11707_v5 = vmul.f32 %v23947_v46, %v11659_v49  ;;  %v11660_v19 = vmul.f32 %v23954_v41, %v23954_v41 }
 0xb8a   : > { %v12013_v24 = vmul.f32 %v23874_v61, %v11965_v62  ;;  %18972 = vtanh.f32 %v11840_v63  ;;  %v11846_v44 = vmul.f32 0.7978846, %v11798_v20  ;;  %v23963_v52 = vadd.f32 %v11614_v51, %v23860_v53 }
 0xb8b   : > { %v18963_v2 = vpop.eup %18962  ;;  %18974 = vtanh.f32 %v11845_v15  ;;  %v11755_v6 = vmul.f32 0.044715, %v11707_v5  ;;  %v11708_v38 = vmul.f32 %v23954_v41, %v11660_v19  ;;  %v23967_v21 = vadd.f32 %v11616_v8, %v23863_v12 }
 0xb8c   : > { %v18965_v31 = vpop.eup %18964  ;;  %v23969_v34 = vpack.c.bf16 %v12013_v24, %v12007_v43  ;;  %v11923_v22 = vadd.f32 1.0, %v18963_v2  ;;  %18976 = vtanh.f32 %v11846_v44  ;;  %v11665_v61 = vmul.f32 %v23963_v52, %v23963_v52 }
 0xb8d   : > { %v18967_v23 = vpop.eup %18966  ;;  %v11803_v53 = vadd.f32 %v23947_v46, %v11755_v6  ;;  %v11756_v39 = vmul.f32 0.044715, %v11708_v38  ;;  %v11666_v60 = vmul.f32 %v23967_v21, %v23967_v21  ;;  %v11918_v32 = vadd.f32 1.0, %v18961_v25  ;;  %v18714_v38 = vld [vmem:[#allocation11 + $0x10] ss:$24 sps:$4 sm:$0xff]  }
 0xb8e   : > { %v18969_v57 = vpop.eup %18968  ;;  %v11971_v1 = vmul.f32 0.5, %v11923_v22  ;;  %v11929_v12 = vadd.f32 1.0, %v18967_v23  ;;  %v11713_v0 = vmul.f32 %v23963_v52, %v11665_v61  ;;  %v11960_v51 = vmul.f32 0.5, %v11912_v14 }
 0xb8f   : > { %v11851_v50 = vmul.f32 0.7978846, %v11803_v53  ;;  %v11804_v36 = vadd.f32 %v23954_v41, %v11756_v39  ;;  %v11714_v49 = vmul.f32 %v23967_v21, %v11666_v60  ;;  %v11966_v8 = vmul.f32 0.5, %v11918_v32  ;;  %v18719_v53 = vld [vmem:[#allocation11 + $0x44] ss:$24 sps:$4 sm:$0xff]  }
 0xb90   : > { %v12019_v43 = vmul.f32 %v23891_v59, %v11971_v1  ;;  %v11977_v62 = vmul.f32 0.5, %v11929_v12  ;;  %v11761_v63 = vmul.f32 0.044715, %v11713_v0  ;;  %v12008_v20 = vmul.f32 %v23869_v56, %v11960_v51  ;;  %v18717_v0 = vld [vmem:[#allocation11 + $0x40] ss:$24 sps:$4 sm:$0xff]  }
 0xb91   : > { %18978 = vtanh.f32 %v11851_v50  ;;  %v11852_v25 = vmul.f32 0.7978846, %v11804_v36  ;;  %v11762_v15 = vmul.f32 0.044715, %v11714_v49  ;;  %v12014_v5 = vmul.f32 %v23879_v11, %v11966_v8  ;;  %v18722_v8 = vld [vmem:[#allocation11 + $0x74] ss:$24 sps:$4 sm:$0xff]  }
 0xb92   : > { %v12025_v19 = vmul.f32 %v23901_v35, %v11977_v62  ;;  %v11809_v14 = vadd.f32 %v23963_v52, %v11761_v63  ;;  %v11924_v24 = vadd.f32 1.0, %v18965_v31  ;;  %v11930_v44 = vadd.f32 1.0, %v18969_v57 }
 0xb93   : > { %v18971_v2 = vpop.eup %18970  ;;  %18980 = vtanh.f32 %v11852_v25  ;;  %v11810_v6 = vadd.f32 %v23967_v21, %v11762_v15  ;;  %v23985_v59 = vpack.c.bf16 %v12014_v5, %v12008_v20 }
 0xb94   : > { %v18973_v22 = vpop.eup %18972  ;;  %v23987_v56 = vpack.c.bf16 %v12025_v19, %v12019_v43  ;;  %v11935_v61 = vadd.f32 1.0, %v18971_v2  ;;  %v11857_v23 = vmul.f32 0.7978846, %v11809_v14  ;;  %v11972_v11 = vmul.f32 0.5, %v11924_v24  ;;  %v18725_v19 = vld [vmem:[#allocation11 + $0xa4] ss:$24 sps:$4 sm:$0xff]  }
 0xb95   : > { %v18975_v39 = vpop.eup %18974  ;;  %v11858_v35 = vmul.f32 0.7978846, %v11810_v6  ;;  %14013 = vmatprep.mubr.bf16.mxu1 %v23985_v59  ;;  %14232 = vmatprep.mubr.bf16.mxu0 %v23985_v59  ;;  %v11978_v31 = vmul.f32 0.5, %v11930_v44  ;;  %v11936_v60 = vadd.f32 1.0, %v18973_v22  ;;  %v18723_v44 = vld [vmem:[#allocation11 + $0xa0] ss:$24 sps:$4 sm:$0xff]  }
 0xb96   : > { %v18977_v32 = vpop.eup %18976  ;;  %v11983_v57 = vmul.f32 0.5, %v11935_v61  ;;  %v11941_v1 = vadd.f32 1.0, %v18975_v39  ;;  %18982 = vtanh.f32 %v11857_v23  ;;  %14014 = vmatmul.mubr.bf16.vlgmr.msra.gmra.mrb[24].mxu1 %v23969_v34  ;;  %14233 = vmatmul.mubr.bf16.vlgmr.msra.gmra.mrb[136].mxu0 %v23969_v34  ;;  %v12020_v12 = vmul.f32 %v23895_v55, %v11972_v11  ;;  %v18720_v55 = vld [vmem:[#allocation11 + $0x70] ss:$24 sps:$4 sm:$0xff]   ;;  %v18731_v11 = vld [vmem:[#allocation11 + $0x104] ss:$24 sps:$4 sm:$0xff]  }
 0xb97   : > { %18984 = vtanh.f32 %v11858_v35  ;;  %14274 = vmatpush1.bf16.msra.mxu1 %v18714_v38  ;;  %v12026_v51 = vmul.f32 %v23907_v30, %v11978_v31  ;;  %v11942_v50 = vadd.f32 1.0, %v18977_v32  ;;  %v11984_v36 = vmul.f32 0.5, %v11936_v60 }
 0xb98   : > { %v11989_v49 = vmul.f32 0.5, %v11941_v1  ;;  %14275 = vmatprep.subr.bf16.mxu1 %v18719_v53  ;;  %v12031_v63 = vmul.f32 %v23919_v27, %v11983_v57  ;;  %v18726_v53 = vld [vmem:[#allocation11 + $0xd0] ss:$24 sps:$4 sm:$0xff]   ;;  %v18729_v1 = vld [vmem:[#allocation11 + $0x100] ss:$24 sps:$4 sm:$0xff]  }
 0xb99   : > { %v23995_v43 = vpack.c.bf16 %v12026_v51, %v12020_v12  ;;  %v11990_v62 = vmul.f32 0.5, %v11942_v50  ;;  %v12032_v15 = vmul.f32 %v23923_v16, %v11984_v36  ;;  %v18738_v51 = vld [vmem:[#allocation11 + $0x190] ss:$24 sps:$4 sm:$0xff]   ;;  %v18743_v50 = vld [vmem:[#allocation11 + $0x1c4] ss:$24 sps:$4 sm:$0xff]  }
 0xb9a   : > { %v12037_v20 = vmul.f32 %v23929_v40, %v11989_v49  ;;  %v18741_v36 = vld [vmem:[#allocation11 + $0x1c0] ss:$24 sps:$4 sm:$0xff]   ;;  %v18746_v49 = vld [vmem:[#allocation11 + $0x1f4] ss:$24 sps:$4 sm:$0xff]  }
 0xb9b   : > { %v18979_v25 = vpop.eup %18978  ;;  %14276 = vmatpush1.bf16.msra.mxu1 %v18717_v0  ;;  %14023 = vmatprep.mubr.bf16.mxu1 %v23995_v43  ;;  %v12038_v30 = vmul.f32 %v23935_v13, %v11990_v62  ;;  %v18728_v13 = vld [vmem:[#allocation11 + $0xd4] ss:$24 sps:$4 sm:$0xff]   ;;  %v18749_v62 = vld [vmem:[#allocation11 + $0x224] ss:$24 sps:$4 sm:$0xff]  }
 0xb9c   : > { %v24002_v5 = vpack.c.bf16 %v12037_v20, %v12031_v63  ;;  %14242 = vmatprep.mubr.bf16.mxu0 %v23995_v43  ;;  %14277 = vmatprep.subr.bf16.mxu1 %v18722_v8  ;;  %v11947_v24 = vadd.f32 1.0, %v18979_v25  ;;  %v18734_v0 = vld [vmem:[#allocation11 + $0x134] ss:$24 sps:$4 sm:$0xff]   ;;  %v18744_v8 = vld [vmem:[#allocation11 + $0x1f0] ss:$24 sps:$4 sm:$0xff]  }
 0xb9d   : > { %v18981_v14 = vpop.eup %18980  ;;  %v24005_v27 = vpack.c.bf16 %v12038_v30, %v12032_v15  ;;  %v18747_v63 = vld [vmem:[#allocation11 + $0x220] ss:$24 sps:$4 sm:$0xff]   ;;  %v18752_v20 = vld [vmem:[#allocation11 + $0x254] ss:$24 sps:$4 sm:$0xff]   ;;  %v18755_v25 = vld [vmem:[#allocation11 + $0x284] ss:$24 sps:$4 sm:$0xff]  }
 0xb9e   : > { %14024 = vmatmul.mubr.bf16.gmra.mrb[28].mxu1 %v23987_v56  ;;  %14243 = vmatmul.mubr.bf16.gmra.mrb[140].mxu0 %v23987_v56  ;;  %v11948_v40 = vadd.f32 1.0, %v18981_v14  ;;  %v11995_v6 = vmul.f32 0.5, %v11947_v24  ;;  %v18758_v15 = vld [vmem:[#allocation11 + $0x2b4] ss:$24 sps:$4 sm:$0xff]   ;;  %v18756_v30 = vld [vmem:[#allocation11 + $0x2b0] ss:$24 sps:$4 sm:$0xff]  }
 0xb9f   : > { %14278 = vmatpush1.bf16.msra.mxu1 %v18720_v55  ;;  %14033 = vmatprep.mubr.bf16.mxu1 %v24005_v27  ;;  %v18753_v55 = vld [vmem:[#allocation11 + $0x280] ss:$24 sps:$4 sm:$0xff]   ;;  %v18764_v24 = vld [vmem:[#allocation11 + $0x314] ss:$24 sps:$4 sm:$0xff]  }
 0xba0   : > { %v18983_v16 = vpop.eup %18982  ;;  %14279 = vmatprep.subr.bf16.mxu1 %v18725_v19  ;;  %14252 = vmatprep.mubr.bf16.mxu0 %v24005_v27  ;;  %v11996_v61 = vmul.f32 0.5, %v11948_v40  ;;  %v12043_v35 = vmul.f32 %v23947_v46, %v11995_v6  ;;  %v18732_v46 = vld [vmem:[#allocation11 + $0x130] ss:$24 sps:$4 sm:$0xff]   ;;  %v18761_v19 = vld [vmem:[#allocation11 + $0x2e4] ss:$24 sps:$4 sm:$0xff]  }
 0xba1   : > { %v18985_v2 = vpop.eup %18984  ;;  %v11953_v38 = vadd.f32 1.0, %v18983_v16  ;;  %v18759_v14 = vld [vmem:[#allocation11 + $0x2e0] ss:$24 sps:$4 sm:$0xff]   ;;  %v18762_v40 = vld [vmem:[#allocation11 + $0x310] ss:$24 sps:$4 sm:$0xff]  }
 0xba2   : > { %v11954_v22 = vadd.f32 1.0, %v18985_v2  ;;  %v12044_v60 = vmul.f32 %v23954_v41, %v11996_v61  ;;  %v18735_v41 = vld [vmem:[#allocation11 + $0x160] ss:$24 sps:$4 sm:$0xff]   ;;  %v18768_v2 = vld [vmem:[#allocation11 + $0x370] ss:$24 sps:$4 sm:$0xff]  }
 0xba3   : > { %v12001_v23 = vmul.f32 0.5, %v11953_v38  ;;  %14280 = vmatpush1.bf16.msra.mxu1 %v18723_v44  ;;  %v18767_v44 = vld [vmem:[#allocation11 + $0x344] ss:$24 sps:$4 sm:$0xff]   ;;  %v18765_v16 = vld [vmem:[#allocation11 + $0x340] ss:$24 sps:$4 sm:$0xff]  }
 0xba4   : > { %14281 = vmatprep.subr.bf16.mxu1 %v18728_v13  ;;  %v12002_v39 = vmul.f32 0.5, %v11954_v22  ;;  %v18770_v13 = vld [vmem:[#allocation11 + $0x374] ss:$24 sps:$4 sm:$0xff]   ;;  %v18773_v6 = vld [vmem:[#allocation11 + $0x3a4] ss:$24 sps:$4 sm:$0xff]  }
 0xba5   : > { %v12049_v31 = vmul.f32 %v23963_v52, %v12001_v23  ;;  %v18737_v52 = vld [vmem:[#allocation11 + $0x164] ss:$24 sps:$4 sm:$0xff]   ;;  %v18771_v38 = vld [vmem:[#allocation11 + $0x3a0] ss:$24 sps:$4 sm:$0xff]   ;;  %v18776_v22 = vld [vmem:[#allocation11 + $0x3d4] ss:$24 sps:$4 sm:$0xff]  }
 0xba6   : > { %14034 = vmatmul.mubr.bf16.gmra.mrb[32].mxu1 %v24002_v5  ;;  %14253 = vmatmul.mubr.bf16.gmra.mrb[144].mxu0 %v24002_v5  ;;  %v12050_v32 = vmul.f32 %v23967_v21, %v12002_v39  ;;  %v18740_v21 = vld [vmem:[#allocation11 + $0x194] ss:$24 sps:$4 sm:$0xff]   ;;  %v18777_v61 = vld [vmem:[#allocation11 + $0x400] ss:$24 sps:$4 sm:$0xff]  }
 0xba7   : > { %v24017_v57 = vpack.c.bf16 %v12049_v31, %v12043_v35  ;;  %14282 = vmatpush1.bf16.msra.mxu1 %v18726_v53  ;;  %v18782_v23 = vld [vmem:[#allocation11 + $0x434] ss:$24 sps:$4 sm:$0xff]   ;;  %v18783_v53 = vld [vmem:[#allocation11 + $0x460] ss:$24 sps:$4 sm:$0xff]   ;;  %v18792_v31 = vld [vmem:[#allocation11 + $0x4f0] ss:$24 sps:$4 sm:$0xff]  }
 0xba8   : > { %14283 = vmatprep.subr.bf16.mxu1 %v18731_v11  ;;  %v24019_v12 = vpack.c.bf16 %v12050_v32, %v12044_v60  ;;  %v18788_v11 = vld [vmem:[#allocation11 + $0x494] ss:$24 sps:$4 sm:$0xff]   ;;  %v18789_v39 = vld [vmem:[#allocation11 + $0x4c0] ss:$24 sps:$4 sm:$0xff]   ;;  %v18797_v60 = vld [vmem:[#allocation11 + $0x524] ss:$24 sps:$4 sm:$0xff]  }
 0xba9   : > { %v18794_v35 = vld [vmem:[#allocation11 + $0x4f4] ss:$24 sps:$4 sm:$0xff]  }
 0xbaa   : > { %14043 = vmatprep.mubr.bf16.mxu1 %v24019_v12  ;;  %14262 = vmatprep.mubr.bf16.mxu0 %v24019_v12  ;;  %v18800_v32 = vld [vmem:[#allocation11 + $0x554] ss:$24 sps:$4 sm:$0xff]  }
 0xbab   : > { %14284 = vmatpush1.bf16.msra.mxu1 %v18729_v1  ;;  %v18803_v1 = vld [vmem:[#allocation11 + $0x584] ss:$24 sps:$4 sm:$0xff]  }
 0xbac   : > { %14285 = vmatprep.subr.bf16.mxu1 %v18734_v0  ;;  %v18801_v0 = vld [vmem:[#allocation11 + $0x580] ss:$24 sps:$4 sm:$0xff]  }
 0xbae   : > { %14044 = vmatmul.mubr.bf16.gmra.mrb[36].mxu1 %v24017_v57  ;;  %14263 = vmatmul.mubr.bf16.gmra.mrb[148].mxu0 %v24017_v57 }
 0xbaf   : > { %14286 = vmatpush1.bf16.msra.mxu1 %v18732_v46  ;;  %14305 = vmatprep.mubr.bf16.mxu1 %v23774_v48  ;;  %v18750_v48 = vld [vmem:[#allocation11 + $0x250] ss:$24 sps:$4 sm:$0xff]   ;;  %v18806_v46 = vld [vmem:[#allocation11 + $0x5b4] ss:$24 sps:$4 sm:$0xff]  }
 0xbb0   : > { %14287 = vmatprep.subr.bf16.mxu1 %v18737_v52  ;;  %v18804_v52 = vld [vmem:[#allocation11 + $0x5b0] ss:$24 sps:$4 sm:$0xff]  }
 0xbb3   : > { %14288 = vmatpush1.bf16.msra.mxu1 %v18735_v41  ;;  %v18809_v41 = vld [vmem:[#allocation11 + $0x5e4] ss:$24 sps:$4 sm:$0xff]  }
 0xbb4   : > { %14289 = vmatprep.subr.bf16.mxu1 %v18740_v21  ;;  %v18807_v21 = vld [vmem:[#allocation11 + $0x5e0] ss:$24 sps:$4 sm:$0xff]  }
 0xbb7   : > { %14290 = vmatpush1.bf16.msra.mxu1 %v18738_v51  ;;  %v18812_v51 = vld [vmem:[#allocation11 + $0x614] ss:$24 sps:$4 sm:$0xff]  }
 0xbb8   : > { %14291 = vmatprep.subr.bf16.mxu1 %v18743_v50  ;;  %v18810_v50 = vld [vmem:[#allocation11 + $0x610] ss:$24 sps:$4 sm:$0xff]  }
 0xbbb   : > { %14292 = vmatpush1.bf16.msra.mxu1 %v18741_v36  ;;  %v18815_v36 = vld [vmem:[#allocation11 + $0x644] ss:$24 sps:$4 sm:$0xff]  }
 0xbbc   : > { %14293 = vmatprep.subr.bf16.mxu1 %v18746_v49  ;;  %v18813_v49 = vld [vmem:[#allocation11 + $0x640] ss:$24 sps:$4 sm:$0xff]  }
 0xbbf   : > { %14294 = vmatpush1.bf16.msra.mxu1 %v18744_v8  ;;  %v18818_v8 = vld [vmem:[#allocation11 + $0x674] ss:$24 sps:$4 sm:$0xff]  }
 0xbc0   : > { %14295 = vmatprep.subr.bf16.mxu1 %v18749_v62  ;;  %v18816_v62 = vld [vmem:[#allocation11 + $0x670] ss:$24 sps:$4 sm:$0xff]  }
 0xbc3   : > { %14296 = vmatpush1.bf16.msra.mxu1 %v18747_v63  ;;  %v18821_v63 = vld [vmem:[#allocation11 + $0x6a4] ss:$24 sps:$4 sm:$0xff]  }
 0xbc4   : > { %14297 = vmatprep.subr.bf16.mxu1 %v18752_v20  ;;  %v18819_v20 = vld [vmem:[#allocation11 + $0x6a0] ss:$24 sps:$4 sm:$0xff]  }
 0xbc7   : > { %14298 = vmatpush1.bf16.msra.mxu1 %v18750_v48  ;;  %v18824_v48 = vld [vmem:[#allocation11 + $0x6d4] ss:$24 sps:$4 sm:$0xff]  }
 0xbc8   : > { %14299 = vmatprep.subr.bf16.mxu1 %v18755_v25  ;;  %v18825_v25 = vld [vmem:[#allocation11 + $0x700] ss:$24 sps:$4 sm:$0xff]  }
 0xbcb   : > { %14300 = vmatpush1.bf16.msra.mxu1 %v18753_v55  ;;  %v18830_v55 = vld [vmem:[#allocation11 + $0x734] ss:$24 sps:$4 sm:$0xff]  }
 0xbcc   : > { %14301 = vmatprep.subr.bf16.mxu1 %v18758_v15  ;;  %v18831_v15 = vld [vmem:[#allocation11 + $0x760] ss:$24 sps:$4 sm:$0xff]  }
 0xbcf   : > { %14302 = vmatpush1.bf16.msra.mxu1 %v18756_v30  ;;  %v18836_v30 = vld [vmem:[#allocation11 + $0x794] ss:$24 sps:$4 sm:$0xff]  }
 0xbd0   : > { %14303 = vmatprep.subr.bf16.mxu1 %v18761_v19  ;;  %v18837_v19 = vld [vmem:[#allocation11 + $0x7c0] ss:$24 sps:$4 sm:$0xff]  }
 0xbd3   : > { %14304 = vmatpush1.bf16.msra.mxu1 %v18759_v14  ;;  %v18842_v14 = vld [vmem:[#allocation11 + $0x7f4] ss:$24 sps:$4 sm:$0xff]  }
 0xbd4   : > { %14346 = vmatprep.subr.bf16.mxu1 %v18764_v24  ;;  %v18840_v24 = vld [vmem:[#allocation11 + $0x7f0] ss:$24 sps:$4 sm:$0xff]  }
 0xbd6   : > { %14306 = vmatmul.mubr.bf16.vlgmr.msra.gmra.mrb[40].mxu1 %v23630_v3  ;;  %v18774_v3 = vld [vmem:[#allocation11 + $0x3d0] ss:$24 sps:$4 sm:$0xff]  }
 0xbd7   : > { %14315 = vmatprep.mubr.bf16.mxu1 %v23793_v18  ;;  %14347 = vmatpush1.bf16.msra.mxu1 %v18762_v40  ;;  %v18779_v18 = vld [vmem:[#allocation11 + $0x404] ss:$24 sps:$4 sm:$0xff]  }
 0xbd8   : > { %14348 = vmatprep.subr.bf16.mxu1 %v18767_v44  ;;  %v18845_v40 = vld [vmem:[#allocation11 + $0x824] ss:$24 sps:$4 sm:$0xff]   ;;  %v18848_v44 = vld [vmem:[#allocation11 + $0x854] ss:$24 sps:$4 sm:$0xff]  }
 0xbdb   : > { %14349 = vmatpush1.bf16.msra.mxu1 %v18765_v16  ;;  %v18851_v16 = vld [vmem:[#allocation11 + $0x884] ss:$24 sps:$4 sm:$0xff]  }
 0xbdc   : > { %14350 = vmatprep.subr.bf16.mxu1 %v18770_v13  ;;  %v18849_v13 = vld [vmem:[#allocation11 + $0x880] ss:$24 sps:$4 sm:$0xff]  }
 0xbde   : > { %14316 = vmatmul.mubr.bf16.gmra.mrb[44].mxu1 %v23679_v4  ;;  %v18780_v4 = vld [vmem:[#allocation11 + $0x430] ss:$24 sps:$4 sm:$0xff]  }
 0xbdf   : > { %14325 = vmatprep.mubr.bf16.mxu1 %v23796_v17  ;;  %14351 = vmatpush1.bf16.msra.mxu1 %v18768_v2  ;;  %v18785_v17 = vld [vmem:[#allocation11 + $0x464] ss:$24 sps:$4 sm:$0xff]   ;;  %v18854_v2 = vld [vmem:[#allocation11 + $0x8b4] ss:$24 sps:$4 sm:$0xff]  }
 0xbe0   : > { %14352 = vmatprep.subr.bf16.mxu1 %v18773_v6  ;;  %v18852_v6 = vld [vmem:[#allocation11 + $0x8b0] ss:$24 sps:$4 sm:$0xff]  }
 0xbe3   : > { %14353 = vmatpush1.bf16.msra.mxu1 %v18771_v38  ;;  %v18857_v38 = vld [vmem:[#allocation11 + $0x8e4] ss:$24 sps:$4 sm:$0xff]  }
 0xbe4   : > { %14354 = vmatprep.subr.bf16.mxu1 %v18776_v22  ;;  %v18855_v22 = vld [vmem:[#allocation11 + $0x8e0] ss:$24 sps:$4 sm:$0xff]  }
 0xbe6   : > { %14326 = vmatmul.mubr.bf16.gmra.mrb[48].mxu1 %v23770_v58  ;;  %v18786_v58 = vld [vmem:[#allocation11 + $0x490] ss:$24 sps:$4 sm:$0xff]  }
 0xbe7   : > { %14335 = vmatprep.mubr.bf16.mxu1 %v23832_v54  ;;  %14355 = vmatpush1.bf16.msra.mxu1 %v18774_v3  ;;  %v18791_v54 = vld [vmem:[#allocation11 + $0x4c4] ss:$24 sps:$4 sm:$0xff]  }
 0xbe8   : > { %14356 = vmatprep.subr.bf16.mxu1 %v18779_v18  ;;  %v24049_v3 = vld [vmem:[%s25300_s18] sm:$0x3f]  ;;  %v25301_v18 = vld [vmem:[#allocation20_spill] sm:$0xff] }
 0xbeb   : > { %14357 = vmatpush1.bf16.msra.mxu1 %v18777_v61  ;;  %v24054_v61 = vrot.slane %v24049_v3, %v25301_v18 }
 0xbec   : > { %14358 = vmatprep.subr.bf16.mxu1 %v18782_v23  ;;  %v25302_v23 = vld [vmem:[#allocation58_spill] sm:$0xff] }
 0xbee   : > { %14336 = vmatmul.mubr.bf16.gmra.mrb[52].mxu1 %v23818_v28  ;;  %v18795_v28 = vld [vmem:[#allocation11 + $0x520] ss:$24 sps:$4 sm:$0xff]  }
 0xbef   : > { %14359 = vmatpush1.bf16.msra.mxu1 %v18780_v4  ;;  %14378 = vmatprep.mubr.bf16.mxu1 %v23808_v7  ;;  %v18798_v7 = vld [vmem:[#allocation11 + $0x550] ss:$24 sps:$4 sm:$0xff]  }
 0xbf0   : > { %14360 = vmatprep.subr.bf16.mxu1 %v18785_v17 }
 0xbf3   : > { %14361 = vmatpush1.bf16.msra.mxu1 %v18783_v53 }
 0xbf4   : > { %14362 = vmatprep.subr.bf16.mxu1 %v18788_v11 }
 0xbf7   : > { %14363 = vmatpush1.bf16.msra.mxu1 %v18786_v58 }
 0xbf8   : > { %14364 = vmatprep.subr.bf16.mxu1 %v18791_v54 }
 0xbfb   : > { %14365 = vmatpush1.bf16.msra.mxu1 %v18789_v39 }
 0xbfc   : > { %14366 = vmatprep.subr.bf16.mxu1 %v18794_v35 }
 0xbff   : > { %14367 = vmatpush1.bf16.msra.mxu1 %v18792_v31 }
 0xc00   : > { %14368 = vmatprep.subr.bf16.mxu1 %v18797_v60  ;;  %v25305_v60 = vld [vmem:[#allocation64_spill] sm:$0xff] }
 0xc03   : > { %14369 = vmatpush1.bf16.msra.mxu1 %v18795_v28 }
 0xc04   : > { %14370 = vmatprep.subr.bf16.mxu1 %v18800_v32  ;;  %v25306_v32 = vld [vmem:[#allocation46_spill] sm:$0xff] }
 0xc07   : > { %14371 = vmatpush1.bf16.msra.mxu1 %v18798_v7 }
 0xc08   : > { %14372 = vmatprep.subr.bf16.mxu1 %v18803_v1 }
 0xc0b   : > { %14373 = vmatpush1.bf16.msra.mxu1 %v18801_v0 }
 0xc0c   : > { %14374 = vmatprep.subr.bf16.mxu1 %v18806_v46 }
 0xc0f   : > { %14375 = vmatpush1.bf16.msra.mxu1 %v18804_v52 }
 0xc10   : > { %14376 = vmatprep.subr.bf16.mxu1 %v18809_v41  ;;  %v25307_v41 = vld [vmem:[#allocation88_spill] sm:$0xff] }
 0xc13   : > { %14377 = vmatpush1.bf16.msra.mxu1 %v18807_v21 }
 0xc14   : > { %14419 = vmatprep.subr.bf16.mxu1 %v18812_v51  ;;  %v25308_v51 = vld [vmem:[#allocation66_spill] sm:$0xff] }
 0xc16   : > { %14379 = vmatmul.mubr.bf16.vlgmr.msra.gmra.mrb[40].mxu1 %v23635_v45  ;;  %v18822_v45 = vld [vmem:[#allocation11 + $0x6d0] ss:$24 sps:$4 sm:$0xff]  }
 0xc17   : > { %14388 = vmatprep.mubr.bf16.mxu1 %v23814_v9  ;;  %14420 = vmatpush1.bf16.msra.mxu1 %v18810_v50  ;;  %v18827_v9 = vld [vmem:[#allocation11 + $0x704] ss:$24 sps:$4 sm:$0xff]  }
 0xc18   : > { %14421 = vmatprep.subr.bf16.mxu1 %v18815_v36 }
 0xc1b   : > { %14422 = vmatpush1.bf16.msra.mxu1 %v18813_v49 }
 0xc1c   : > { %14423 = vmatprep.subr.bf16.mxu1 %v18818_v8  ;;  %v25309_v8 = vld [vmem:[#allocation95_spill] sm:$0xff] }
 0xc1e   : > { %14389 = vmatmul.mubr.bf16.gmra.mrb[44].mxu1 %v23687_v26  ;;  %v18828_v26 = vld [vmem:[#allocation11 + $0x730] ss:$24 sps:$4 sm:$0xff]  }
 0xc1f   : > { %14398 = vmatprep.mubr.bf16.mxu1 %v23822_v10  ;;  %14424 = vmatpush1.bf16.msra.mxu1 %v18816_v62  ;;  %v18833_v10 = vld [vmem:[#allocation11 + $0x764] ss:$24 sps:$4 sm:$0xff]  }
 0xc20   : > { %14425 = vmatprep.subr.bf16.mxu1 %v18821_v63  ;;  %v25310_v63 = vld [vmem:[#allocation60_spill] sm:$0xff] }
 0xc23   : > { %14426 = vmatpush1.bf16.msra.mxu1 %v18819_v20 }
 0xc24   : > { %14427 = vmatprep.subr.bf16.mxu1 %v18824_v48  ;;  %v25311_v48 = vld [vmem:[#allocation90_spill] sm:$0xff] }
 0xc26   : > { %14399 = vmatmul.mubr.bf16.gmra.mrb[48].mxu1 %v23782_v37  ;;  %v18834_v37 = vld [vmem:[#allocation11 + $0x790] ss:$24 sps:$4 sm:$0xff]  }
 0xc27   : > { %14408 = vmatprep.mubr.bf16.mxu1 %v23834_v33  ;;  %14428 = vmatpush1.bf16.msra.mxu1 %v18822_v45  ;;  %v18839_v33 = vld [vmem:[#allocation11 + $0x7c4] ss:$24 sps:$4 sm:$0xff]  }
 0xc28   : > { %14429 = vmatprep.subr.bf16.mxu1 %v18827_v9  ;;  %v25312_v9 = vld [vmem:[#allocation53_spill] sm:$0xff] }
 0xc2b   : > { %14430 = vmatpush1.bf16.msra.mxu1 %v18825_v25 }
 0xc2c   : > { %14431 = vmatprep.subr.bf16.mxu1 %v18830_v55 }
 0xc2e   : > { %14409 = vmatmul.mubr.bf16.gmra.mrb[52].mxu1 %v23826_v47  ;;  %v18843_v47 = vld [vmem:[#allocation11 + $0x820] ss:$24 sps:$4 sm:$0xff]  }
 0xc2f   : > { %14432 = vmatpush1.bf16.msra.mxu1 %v18828_v26  ;;  %14451 = vmatprep.mubr.bf16.mxu1 %v23985_v59  ;;  %v18846_v59 = vld [vmem:[#allocation11 + $0x850] ss:$24 sps:$4 sm:$0xff]  }
 0xc30   : > { %14433 = vmatprep.subr.bf16.mxu1 %v18833_v10 }
 0xc33   : > { %14434 = vmatpush1.bf16.msra.mxu1 %v18831_v15 }
 0xc34   : > { %14435 = vmatprep.subr.bf16.mxu1 %v18836_v30 }
 0xc37   : > { %14436 = vmatpush1.bf16.msra.mxu1 %v18834_v37 }
 0xc38   : > { %14437 = vmatprep.subr.bf16.mxu1 %v18839_v33 }
 0xc3b   : > { %14438 = vmatpush1.bf16.msra.mxu1 %v18837_v19 }
 0xc3c   : > { %14439 = vmatprep.subr.bf16.mxu1 %v18842_v14 }
 0xc3f   : > { %14440 = vmatpush1.bf16.msra.mxu1 %v18840_v24  ;;  %v25313_v24 = vld [vmem:[#allocation69_spill] sm:$0xff] }
 0xc40   : > { %14441 = vmatprep.subr.bf16.mxu1 %v18845_v40 }
 0xc43   : > { %14442 = vmatpush1.bf16.msra.mxu1 %v18843_v47  ;;  %v25314_v47 = vld [vmem:[#allocation101_spill] sm:$0xff] }
 0xc44   : > { %14443 = vmatprep.subr.bf16.mxu1 %v18848_v44 }
 0xc47   : > { %14444 = vmatpush1.bf16.msra.mxu1 %v18846_v59 }
 0xc48   : > { %14445 = vmatprep.subr.bf16.mxu1 %v18851_v16 }
 0xc4b   : > { %14446 = vmatpush1.bf16.msra.mxu1 %v18849_v13 }
 0xc4c   : > { %14447 = vmatprep.subr.bf16.mxu1 %v18854_v2 }
 0xc4f   : > { %14448 = vmatpush1.bf16.msra.mxu1 %v18852_v6  ;;  %v25315_v6 = vld [vmem:[#allocation94_spill] sm:$0xff] }
 0xc50   : > { %14449 = vmatprep.subr.bf16.mxu1 %v18857_v38 }
 0xc53   : > { %14450 = vmatpush1.bf16.msra.mxu1 %v18855_v22  ;;  %v25316_v22 = vld [vmem:[#allocation63_spill] sm:$0xff] }
 0xc56   : > { %14452 = vmatmul.mubr.bf16.vlgmr.msra.gmra.mrb[40].mxu1 %v23969_v34  ;;  %v24058_v34 = vrot.slane %v24049_v3, %v25302_v23 }
 0xc57   : > { %14461 = vmatprep.mubr.bf16.mxu1 %v23995_v43 }
 0xc5e   : > { %14462 = vmatmul.mubr.bf16.gmra.mrb[44].mxu1 %v23987_v56  ;;  %v25303_v56 = vld [vmem:[#allocation21_spill] sm:$0xff] }
 0xc5f   : > { %14471 = vmatprep.mubr.bf16.mxu1 %v24005_v27  ;;  %v24063_v43 = vrot.slane %v24049_v3, %v25303_v56  ;;  %v25304_v27 = vld [vmem:[#allocation99_spill] sm:$0xff] }
 0xc60   : > { %v24067_v4 = vrot.slane %v24049_v3, %v25304_v27  ;;  %v25317_v27 = vld [vmem:[#allocation92_spill] sm:$0xff] }
 0xc66   : > { %14472 = vmatmul.mubr.bf16.gmra.mrb[48].mxu1 %v24002_v5 }
 0xc67   : > { %14481 = vmatprep.mubr.bf16.mxu1 %v24019_v12 }
 0xc69   : > { %v14015_v17 = vpop.f32.mrb[24].mxu1  ;;  %v14234_v5 = vpop.f32.mrb[136].mxu0 }
 0xc6a   : > { %v16258_v53 = vadd.f32 %v14015_v17, %v24054_v61  ;;  %v16274_v11 = vadd.f32 %v14234_v5, %v24058_v34  ;;  %v14017_v58 = vpop.f32.mrb[25].mxu1  ;;  %v14236_v54 = vpop.f32.mrb[137].mxu0  ;;  %v25318_v5 = vld [vmem:[#allocation100_spill] sm:$0xff] }
 0xc6b   : > { %v16259_v39 = vadd.f32 %v14017_v58, %v24063_v43  ;;  %v16275_v12 = vadd.f32 %v14236_v54, %v24067_v4  ;;  %v14019_v35 = vpop.f32.mrb[26].mxu1  ;;  %v14238_v31 = vpop.f32.mrb[138].mxu0  ;;  %v25320_v54 = vld [vmem:[#allocation56_spill] sm:$0xff] }
 0xc6c   : > { %v14492_v28 = vadd.f32 %v16258_v53, %v25305_v60  ;;  %v14494_v7 = vadd.f32 %v16274_v11, %v25306_v32  ;;  %v16260_v1 = vadd.f32 %v14019_v35, %v24054_v61  ;;  %v16276_v0 = vadd.f32 %v14238_v31, %v24058_v34  ;;  %v14021_v46 = vpop.f32.mrb[27].mxu1  ;;  %v14240_v52 = vpop.f32.mrb[139].mxu0  ;;  %v25319_v11 = vld [vmem:[#allocation93_spill] sm:$0xff] }
 0xc6d   : > { %v14493_v21 = vadd.f32 %v16259_v39, %v25307_v41  ;;  %v14495_v50 = vadd.f32 %v16275_v12, %v25308_v51  ;;  %v16261_v36 = vadd.f32 %v14021_v46, %v24063_v43  ;;  %v16277_v49 = vadd.f32 %v14240_v52, %v24067_v4  ;;  %v25321_v52 = vld [vmem:[#allocation98_spill] sm:$0xff] }
 0xc6e   : > { %14540 = vst [vmem:[%s24083_s15] sm:$0xff] %v14492_v28  ;;  %14542 = vst [vmem:[%s24083_s15 + $0x10] sm:$0xff] %v14494_v7  ;;  %v14498_v62 = vadd.f32 %v16260_v1, %v25309_v8  ;;  %v14500_v20 = vadd.f32 %v16276_v0, %v25310_v63  ;;  %14482 = vmatmul.mubr.bf16.gmra.mrb[52].mxu1 %v24017_v57 }
 0xc6f   : > { %14541 = vst [vmem:[%s24083_s15 + $0x8] sm:$0xff] %v14493_v21  ;;  %14543 = vst [vmem:[%s24083_s15 + $0x18] sm:$0xff] %v14495_v50  ;;  %v14499_v45 = vadd.f32 %v16261_v36, %v25311_v48  ;;  %v14501_v25 = vadd.f32 %v16277_v49, %v25312_v9  ;;  %v25322_v21 = vld [vmem:[#allocation24_spill] sm:$0xff] }
 0xc70   : > { %14546 = vst [vmem:[%s24083_s15 + $0x30] sm:$0xff] %v14498_v62  ;;  %14548 = vst [vmem:[%s24083_s15 + $0x40] sm:$0xff] %v14500_v20  ;;  %v25323_v62 = vld [vmem:[#allocation97_spill] sm:$0xff]  ;;  %v25324_v20 = vld [vmem:[#allocation70_spill] sm:$0xff] }
 0xc71   : > { %14547 = vst [vmem:[%s24083_s15 + $0x38] sm:$0xff] %v14499_v45  ;;  %14549 = vst [vmem:[%s24083_s15 + $0x48] sm:$0xff] %v14501_v25  ;;  %v14025_v55 = vpop.f32.mrb[28].mxu1  ;;  %v14244_v26 = vpop.f32.mrb[140].mxu0  ;;  %v25325_v25 = vld [vmem:[#allocation62_spill] sm:$0xff] }
 0xc72   : > { %v16262_v10 = vadd.f32 %v14025_v55, %v24054_v61  ;;  %v16278_v15 = vadd.f32 %v14244_v26, %v24058_v34  ;;  %v14027_v30 = vpop.f32.mrb[29].mxu1  ;;  %v14246_v37 = vpop.f32.mrb[141].mxu0  ;;  %v25326_v26 = vld [vmem:[#allocation22_spill] sm:$0xff] }
 0xc73   : > { %v16263_v57 = vadd.f32 %v14027_v30, %v24063_v43  ;;  %v16279_v33 = vadd.f32 %v14246_v37, %v24067_v4  ;;  %v14029_v19 = vpop.f32.mrb[30].mxu1  ;;  %v14248_v14 = vpop.f32.mrb[142].mxu0  ;;  %v25328_v37 = vld [vmem:[#allocation65_spill] sm:$0xff] }
 0xc74   : > { %v14504_v40 = vadd.f32 %v16262_v10, %v25313_v24  ;;  %v14506_v44 = vadd.f32 %v16278_v15, %v25314_v47  ;;  %v16264_v59 = vadd.f32 %v14029_v19, %v24054_v61  ;;  %v16280_v16 = vadd.f32 %v14248_v14, %v24058_v34  ;;  %v14031_v13 = vpop.f32.mrb[31].mxu1  ;;  %v14250_v2 = vpop.f32.mrb[143].mxu0  ;;  %v25327_v15 = vld [vmem:[#allocation68_spill] sm:$0xff] }
 0xc75   : > { %v14505_v38 = vadd.f32 %v16263_v57, %v25315_v6  ;;  %v14507_v18 = vadd.f32 %v16279_v33, %v25316_v22  ;;  %v16265_v23 = vadd.f32 %v14031_v13, %v24063_v43  ;;  %v16281_v56 = vadd.f32 %v14250_v2, %v24067_v4  ;;  %v25329_v2 = vld [vmem:[#allocation49_spill] sm:$0xff] }
 0xc76   : > { %14552 = vst [vmem:[%s24083_s15 + $0x60] sm:$0xff] %v14504_v40  ;;  %14554 = vst [vmem:[%s24083_s15 + $0x70] sm:$0xff] %v14506_v44  ;;  %v14510_v17 = vadd.f32 %v16264_v59, %v25317_v27  ;;  %v14512_v53 = vadd.f32 %v16280_v16, %v25318_v5 }
 0xc77   : > { %14553 = vst [vmem:[%s24083_s15 + $0x68] sm:$0xff] %v14505_v38  ;;  %14555 = vst [vmem:[%s24083_s15 + $0x78] sm:$0xff] %v14507_v18  ;;  %v14511_v58 = vadd.f32 %v16265_v23, %v25319_v11  ;;  %v14513_v39 = vadd.f32 %v16281_v56, %v25320_v54  ;;  %v25330_v38 = vld [vmem:[#allocation75_spill] sm:$0xff] }
 0xc78   : > { %14558 = vst [vmem:[%s24083_s15 + $0x90] sm:$0xff] %v14510_v17  ;;  %14560 = vst [vmem:[%s24083_s15 + $0xa0] sm:$0xff] %v14512_v53  ;;  %v25331_v17 = vld [vmem:[#allocation96_spill] sm:$0xff]  ;;  %v25332_v53 = vld [vmem:[#allocation73_spill] sm:$0xff] }
 0xc79   : > { %14559 = vst [vmem:[%s24083_s15 + $0x98] sm:$0xff] %v14511_v58  ;;  %14561 = vst [vmem:[%s24083_s15 + $0xa8] sm:$0xff] %v14513_v39  ;;  %v14035_v12 = vpop.f32.mrb[32].mxu1  ;;  %v14254_v35 = vpop.f32.mrb[144].mxu0  ;;  %v25333_v39 = vld [vmem:[#allocation67_spill] sm:$0xff] }
 0xc7a   : > { %v16266_v31 = vadd.f32 %v14035_v12, %v24054_v61  ;;  %v16282_v60 = vadd.f32 %v14254_v35, %v24058_v34  ;;  %v14037_v28 = vpop.f32.mrb[33].mxu1  ;;  %v14256_v32 = vpop.f32.mrb[145].mxu0  ;;  %v25334_v12 = vld [vmem:[#allocation27_spill] sm:$0xff] }
 0xc7b   : > { %v16267_v7 = vadd.f32 %v14037_v28, %v24063_v43  ;;  %v16283_v1 = vadd.f32 %v14256_v32, %v24067_v4  ;;  %v14039_v0 = vpop.f32.mrb[34].mxu1  ;;  %v14258_v46 = vpop.f32.mrb[146].mxu0 }
 0xc7c   : > { %v14516_v41 = vadd.f32 %v16266_v31, %v25321_v52  ;;  %v14518_v51 = vadd.f32 %v16282_v60, %v25322_v21  ;;  %v16268_v50 = vadd.f32 %v14039_v0, %v24054_v61  ;;  %v16284_v36 = vadd.f32 %v14258_v46, %v24058_v34  ;;  %v14041_v49 = vpop.f32.mrb[35].mxu1  ;;  %v14260_v8 = vpop.f32.mrb[147].mxu0  ;;  %v25336_v60 = vld [vmem:[#allocation71_spill] sm:$0xff]  ;;  %v25337_v52 = vld [vmem:[#allocation28_spill] sm:$0xff] }
 0xc7d   : > { %v14517_v63 = vadd.f32 %v16267_v7, %v25323_v62  ;;  %v14519_v48 = vadd.f32 %v16283_v1, %v25324_v20  ;;  %v16269_v45 = vadd.f32 %v14041_v49, %v24063_v43  ;;  %v16285_v9 = vadd.f32 %v14260_v8, %v24067_v4  ;;  %v25339_v8 = vld [vmem:[#allocation72_spill] sm:$0xff]  ;;  %v25340_v62 = vld [vmem:[#allocation74_spill] sm:$0xff] }
 0xc7e   : > { %14564 = vst [vmem:[%s24083_s15 + $0xc0] sm:$0xff] %v14516_v41  ;;  %14566 = vst [vmem:[%s24083_s15 + $0xd0] sm:$0xff] %v14518_v51  ;;  %v14522_v55 = vadd.f32 %v16268_v50, %v25325_v25  ;;  %v14524_v10 = vadd.f32 %v16284_v36, %v25326_v26  ;;  %v25338_v50 = vld [vmem:[#allocation26_spill] sm:$0xff] }
 0xc7f   : > { %14565 = vst [vmem:[%s24083_s15 + $0xc8] sm:$0xff] %v14517_v63  ;;  %14567 = vst [vmem:[%s24083_s15 + $0xd8] sm:$0xff] %v14519_v48  ;;  %v14523_v30 = vadd.f32 %v16269_v45, %v25327_v15  ;;  %v14525_v57 = vadd.f32 %v16285_v9, %v25328_v37  ;;  %v25341_v9 = vld [vmem:[#allocation52_spill] sm:$0xff]  ;;  %v25343_v37 = vld [vmem:[#allocation77_spill] sm:$0xff] }
 0xc80   : > { %14570 = vst [vmem:[%s24083_s15 + $0xf0] sm:$0xff] %v14522_v55  ;;  %14572 = vst [vmem:[%s24083_s15 + $0x100] sm:$0xff] %v14524_v10  ;;  %v25342_v10 = vld [vmem:[#allocation48_spill] sm:$0xff] }
 0xc81   : > { %14571 = vst [vmem:[%s24083_s15 + $0xf8] sm:$0xff] %v14523_v30  ;;  %14573 = vst [vmem:[%s24083_s15 + $0x108] sm:$0xff] %v14525_v57  ;;  %v14045_v33 = vpop.f32.mrb[36].mxu1  ;;  %v14264_v19 = vpop.f32.mrb[148].mxu0 }
 0xc82   : > { %v16270_v14 = vadd.f32 %v14045_v33, %v24054_v61  ;;  %v16286_v24 = vadd.f32 %v14264_v19, %v24058_v34  ;;  %v14047_v40 = vpop.f32.mrb[37].mxu1  ;;  %v14266_v47 = vpop.f32.mrb[149].mxu0  ;;  %v25344_v33 = vld [vmem:[#allocation79_spill] sm:$0xff] }
 0xc83   : > { %v16271_v44 = vadd.f32 %v14047_v40, %v24063_v43  ;;  %v16287_v59 = vadd.f32 %v14266_v47, %v24067_v4  ;;  %v14049_v16 = vpop.f32.mrb[38].mxu1  ;;  %v14268_v13 = vpop.f32.mrb[150].mxu0 }
 0xc84   : > { %v14528_v6 = vadd.f32 %v16270_v14, %v25329_v2  ;;  %v14530_v22 = vadd.f32 %v16286_v24, %v25330_v38  ;;  %v16272_v18 = vadd.f32 %v14049_v16, %v24054_v61  ;;  %v16288_v23 = vadd.f32 %v14268_v13, %v24058_v34  ;;  %v14051_v56 = vpop.f32.mrb[39].mxu1  ;;  %v14270_v27 = vpop.f32.mrb[151].mxu0  ;;  %v25335_v34 = vld [vmem:[#allocation50_spill] sm:$0xff] }
 0xc85   : > { %v14529_v5 = vadd.f32 %v16271_v44, %v25331_v17  ;;  %v14531_v11 = vadd.f32 %v16287_v59, %v25332_v53  ;;  %v16273_v58 = vadd.f32 %v14051_v56, %v24063_v43  ;;  %v16289_v54 = vadd.f32 %v14270_v27, %v24067_v4  ;;  %v25345_v59 = vld [vmem:[#allocation78_spill] sm:$0xff]  ;;  %v25348_v56 = vld [vmem:[#allocation83_spill] sm:$0xff] }
 0xc86   : > { %14576 = vst [vmem:[%s24083_s15 + $0x120] sm:$0xff] %v14528_v6  ;;  %14578 = vst [vmem:[%s24083_s15 + $0x130] sm:$0xff] %v14530_v22  ;;  %v14534_v61 = vadd.f32 %v16272_v18, %v25333_v39  ;;  %v14536_v35 = vadd.f32 %v16288_v23, %v25334_v12  ;;  %v12384_v43 = vrot.slane %v24049_v3, %v23291_v29  ;;  %v25346_v6 = vld [vmem:[#allocation76_spill] sm:$0xff]  ;;  %v25347_v18 = vld [vmem:[#allocation81_spill] sm:$0xff] }
 0xc87   : > { %14577 = vst [vmem:[%s24083_s15 + $0x128] sm:$0xff] %v14529_v5  ;;  %14579 = vst [vmem:[%s24083_s15 + $0x138] sm:$0xff] %v14531_v11  ;;  %v14535_v31 = vadd.f32 %v16273_v58, %v25335_v34  ;;  %v14537_v28 = vadd.f32 %v16289_v54, %v25336_v60  ;;  %v12388_v4 = vrot.slane %v24049_v3, %v25299_v42  ;;  %v25349_v54 = vld [vmem:[#allocation82_spill] sm:$0xff]  ;;  %v25351_v60 = vld [vmem:[#allocation85_spill] sm:$0xff] }
 0xc88   : > { %14582 = vst [vmem:[%s24083_s15 + $0x150] sm:$0xff] %v14534_v61  ;;  %14584 = vst [vmem:[%s24083_s15 + $0x160] sm:$0xff] %v14536_v35  ;;  %v25350_v35 = vld [vmem:[#allocation80_spill] sm:$0xff] }
 0xc89   : > { %14583 = vst [vmem:[%s24083_s15 + $0x158] sm:$0xff] %v14535_v31  ;;  %14585 = vst [vmem:[%s24083_s15 + $0x168] sm:$0xff] %v14537_v28 }
 0xd29   : > { %v14453_v32 = vpop.f32.mrb[40].mxu1 }
 0xd2a   : > { %v16290_v7 = vadd.f32 %v14453_v32, %v12384_v43  ;;  %v14455_v1 = vpop.f32.mrb[41].mxu1  ;;  %v25353_v32 = vld [vmem:[#allocation87_spill] sm:$0xff] }
 0xd2b   : > { %v16291_v0 = vadd.f32 %v14455_v1, %v12388_v4  ;;  %v14457_v46 = vpop.f32.mrb[42].mxu1 }
 0xd2c   : > { %v14496_v41 = vadd.f32 %v16290_v7, %v25337_v52  ;;  %v16292_v21 = vadd.f32 %v14457_v46, %v12384_v43  ;;  %v14459_v51 = vpop.f32.mrb[43].mxu1 }
 0xd2d   : > { %v14497_v36 = vadd.f32 %v16291_v0, %v25338_v50  ;;  %v16293_v49 = vadd.f32 %v14459_v51, %v12388_v4 }
 0xd2e   : > { %14544 = vst [vmem:[%s24083_s15 + $0x20] sm:$0xff] %v14496_v41  ;;  %v14502_v29 = vadd.f32 %v16292_v21, %v25339_v8 }
 0xd2f   : > { %14545 = vst [vmem:[%s24083_s15 + $0x28] sm:$0xff] %v14497_v36  ;;  %v14503_v42 = vadd.f32 %v16293_v49, %v25340_v62 }
 0xd30   : > { %14550 = vst [vmem:[%s24083_s15 + $0x50] sm:$0xff] %v14502_v29 }
 0xd31   : > { %14551 = vst [vmem:[%s24083_s15 + $0x58] sm:$0xff] %v14503_v42  ;;  %v14463_v3 = vpop.f32.mrb[44].mxu1 }
 0xd32   : > { %v16294_v63 = vadd.f32 %v14463_v3, %v12384_v43  ;;  %v14465_v20 = vpop.f32.mrb[45].mxu1 }
 0xd33   : > { %v16295_v48 = vadd.f32 %v14465_v20, %v12388_v4  ;;  %v14467_v45 = vpop.f32.mrb[46].mxu1 }
 0xd34   : > { %v14508_v25 = vadd.f32 %v16294_v63, %v25341_v9  ;;  %v16296_v55 = vadd.f32 %v14467_v45, %v12384_v43  ;;  %v14469_v26 = vpop.f32.mrb[47].mxu1 }
 0xd35   : > { %v14509_v15 = vadd.f32 %v16295_v48, %v25342_v10  ;;  %v16297_v30 = vadd.f32 %v14469_v26, %v12388_v4 }
 0xd36   : > { %14556 = vst [vmem:[%s24083_s15 + $0x80] sm:$0xff] %v14508_v25  ;;  %v14514_v57 = vadd.f32 %v16296_v55, %v25343_v37 }
 0xd37   : > { %14557 = vst [vmem:[%s24083_s15 + $0x88] sm:$0xff] %v14509_v15  ;;  %v14515_v19 = vadd.f32 %v16297_v30, %v25344_v33 }
 0xd38   : > { %14562 = vst [vmem:[%s24083_s15 + $0xb0] sm:$0xff] %v14514_v57 }
 0xd39   : > { %14563 = vst [vmem:[%s24083_s15 + $0xb8] sm:$0xff] %v14515_v19  ;;  %v14473_v14 = vpop.f32.mrb[48].mxu1 }
 0xd3a   : > { %v16298_v24 = vadd.f32 %v14473_v14, %v12384_v43  ;;  %v14475_v40 = vpop.f32.mrb[49].mxu1 }
 0xd3b   : > { %v16299_v47 = vadd.f32 %v14475_v40, %v12388_v4  ;;  %v14477_v44 = vpop.f32.mrb[50].mxu1 }
 0xd3c   : > { %v14520_v16 = vadd.f32 %v16298_v24, %v25345_v59  ;;  %v16300_v13 = vadd.f32 %v14477_v44, %v12384_v43  ;;  %v14479_v2 = vpop.f32.mrb[51].mxu1 }
 0xd3d   : > { %v14521_v38 = vadd.f32 %v16299_v47, %v25346_v6  ;;  %v16301_v22 = vadd.f32 %v14479_v2, %v12388_v4 }
 0xd3e   : > { %14568 = vst [vmem:[%s24083_s15 + $0xe0] sm:$0xff] %v14520_v16  ;;  %v14526_v23 = vadd.f32 %v16300_v13, %v25347_v18 }
 0xd3f   : > { %14569 = vst [vmem:[%s24083_s15 + $0xe8] sm:$0xff] %v14521_v38  ;;  %v14527_v27 = vadd.f32 %v16301_v22, %v25348_v56 }
 0xd40   : > { %14574 = vst [vmem:[%s24083_s15 + $0x110] sm:$0xff] %v14526_v23 }
 0xd41   : > { %14575 = vst [vmem:[%s24083_s15 + $0x118] sm:$0xff] %v14527_v27  ;;  %v14483_v17 = vpop.f32.mrb[52].mxu1 }
 0xd42   : > { %v16302_v5 = vadd.f32 %v14483_v17, %v12384_v43  ;;  %v14485_v53 = vpop.f32.mrb[53].mxu1 }
 0xd43   : > { %v16303_v11 = vadd.f32 %v14485_v53, %v12388_v4  ;;  %v14487_v58 = vpop.f32.mrb[54].mxu1 }
 0xd44   : > { %v14532_v39 = vadd.f32 %v16302_v5, %v25349_v54  ;;  %v16304_v61 = vadd.f32 %v14487_v58, %v12384_v43  ;;  %v14489_v12 = vpop.f32.mrb[55].mxu1 }
 0xd45   : > { %v14533_v34 = vadd.f32 %v16303_v11, %v25350_v35  ;;  %v16305_v31 = vadd.f32 %v14489_v12, %v12388_v4 }
 0xd46   : > { %14580 = vst [vmem:[%s24083_s15 + $0x140] sm:$0xff] %v14532_v39  ;;  %v14538_v28 = vadd.f32 %v16304_v61, %v25351_v60 }
 0xd47   : > { %14581 = vst [vmem:[%s24083_s15 + $0x148] sm:$0xff] %v14533_v34  ;;  %v14539_v7 = vadd.f32 %v16305_v31, %v25353_v32 }
 0xd48   : > { %14586 = vst [vmem:[%s24083_s15 + $0x170] sm:$0xff] %v14538_v28 }
 0xd49   : > { %14587 = vst [vmem:[%s24083_s15 + $0x178] sm:$0xff] %v14539_v7 }
 0xd4a   : > { %19218 = shalt.err (!%p19215_p6)
}
 0xd4b   : > { %s19219_s20 = scalar_lea.hbm %s24207_s14, 6144  ;;  %s19223_s21 = scalar_lea.hbm %s25352_s3, 12288 }
 0xd4c   : > { %p19220_p10 = scmp.ne.s32.totalorder %s24207_s14, %s19219_s20  ;;  %p19224_p5 = scmp.lt.u32.totalorder %s24207_s14, %s25352_s3 }
 0xd4d   : > { %p19225_p9 = scmp.lt.u32.totalorder %s19223_s21, %s19219_s20  ;;  %p19227_p4 = scmp.lt.u32.totalorder %s19219_s20, %s24207_s14 }
 0xd4e   : > { %p19221_p11 = pnand %p19220_p10, %p25354_p12 }
 0xd4f   : > { %p19226_p7 = por %p19225_p9, %p19224_p5 }
 0xd50   : > { %p19222_p3 = pneg %p19221_p11 }
 0xd51   : > { %p19228_p1 = por %p19227_p4, %p19226_p7 }
 0xd53   : > { %p19229_p13 = pnand %p19228_p1, %p19222_p3 }
 0xd55   : > { %19232 = shalt.err (!%p19229_p13)
}
 0xd56   : > { %s19297_s5 = smov 768   ;;  %s19298_s12 = smov 48  }
 0xd57   : > { %16732 = dma.vmem_to_hbm [thread:$0]  (%p25354_p12), %s24211_s6, 6144, %s24207_s14, %s14589_s13, %s19297_s5, %s19297_s5, %s19298_s12  }
 0xd58 PF: > { %s14618_s29 = sand.u32 1, %s19271_s25   ;;  %p25355_p0 = scmp.ne.s32.totalorder %s24584_s23, 0 }
 0xd59   : > { %p25356_p2 = scmp.ge.s32.totalorder %s19283_s28, 2  ;;  %s14619_s30 = scalar_lea.sflag [#allocation4], %s14618_s29 }
 0xd5b   : > { %p16755_p8 = pnand %p25356_p2, %p25355_p0 }
 0xd5d   : > { %19266 = dma.done.wait (!%p16755_p8), %s14619_s30, 6144  }
 0xd5e   : > { %19268 = vsyncadd (!%p16755_p8), %s14619_s30, 4294961152  ;;  %p29_p6 = scmp.ge.s32.totalorder %s19542_s16, 4   ;;  %s25357_s25 = smov %s19275_s26 }
 0xd5f   : > { %s25358_s26 = smov %s19279_s27  ;;  %s25359_s27 = smov %s19554_s8 }
 0xd60   : > { %s25360_s28 = smov %s19542_s16  ;;  %31 = sbr.rel (!%p29_p6) target bundleno = 16 (0x10), region = 140 }
 0xd67   :  { %14624 = vsyncpa [#allocation3], 1 }
 0xd68   :  { %14626 = vsyncpa [#allocation3 + $0x1], 1 }
 0xd69   :  { %14627 = vsyncpa [#allocation6], 1 }
 0xd6a   :  { %14628 = vsyncpa [#allocation9], 1 }
 0xd6b   :  { %14629 = vsyncpa [#allocation12], 1 }
 0xd6c   :  { %14630 = vsyncpa [#allocation4], 1 }
 0xd6d   :  { %14632 = vsyncpa [#allocation4 + $0x1], 1 }

</bundles_post_ra>
